<compile_context>
chip_gen: v7x
topology: tpu7x:2x2x1
jax: 0.10.0
libtpu: 0.0.40
codegen_flags: <defaults>
</compile_context>

<pallas_src>
import math

import jax
import jax.numpy as jnp
import numpy as np
from jax.experimental import pallas as pl
from jax.experimental.pallas import tpu as pltpu


# ----------------------------------------------------------------------------
# In-kernel helpers (operate on values already in vregs/VMEM).
# ----------------------------------------------------------------------------
def _im2col3x3(x):
    """x: (H, W, C) -> (H*W, 9*C) patches of a 'SAME' 3x3 window (pad 1).

    Column order is tap-major / channel-minor, matching w.reshape(9*C, Co) for a
    PyTorch-style cross-correlation weight laid out as (3, 3, C_in, C_out).
    """
    H, W, C = x.shape
    zrow = jnp.zeros((1, W, C), x.dtype)
    xp = jnp.concatenate([zrow, x, zrow], axis=0)          # (H+2, W, C)
    zcol = jnp.zeros((H + 2, 1, C), x.dtype)
    xp = jnp.concatenate([zcol, xp, zcol], axis=1)         # (H+2, W+2, C)
    cols = []
    for kh in range(3):
        for kw in range(3):
            cols.append(xp[kh:kh + H, kw:kw + W, :].reshape(H * W, C))
    return jnp.concatenate(cols, axis=-1)                  # (H*W, 9*C)


def _group_norm(y, member_scaled, gamma, beta):
    """GroupNorm over one sample with spatial flattened.

    y: (HW, C) f32; member_scaled: (C, C) same-group indicator pre-scaled by
    1/(HW*group_size); gamma/beta: (1, C).  eps matches nn.GroupNorm (1e-5).
    """
    s = jnp.sum(y, axis=0, keepdims=True)                  # (1, C)
    ss = jnp.sum(y * y, axis=0, keepdims=True)             # (1, C)
    stats = jnp.concatenate([s, ss], axis=0)               # (2, C)  -> one tiny dot
    m = jnp.dot(stats, member_scaled, preferred_element_type=jnp.float32)
    mean = m[0:1]
    var = m[1:2] - mean * mean
    return (y - mean) * jax.lax.rsqrt(var + 1e-5) * gamma + beta


# ----------------------------------------------------------------------------
# Pallas kernel: full ConvLSTM-with-peephole recurrence.
# grid = (N, T); h/c state persists in VMEM scratch across the T ("arbitrary") axis.
# ----------------------------------------------------------------------------
def _convlstm_seq_kernel(
    x_ref,                                                  # (H, W, in_c)
    wbig_ref, bbig_ref, m96_ref, g96_ref, bt96_ref,         # fused conv1/conv3/conv2-xh
    w2c_ref, mo_ref, g2_ref, bt2_ref,                       # conv2 peephole + its GN
    h_seq_ref, c_seq_ref,                                   # (HW, hid) per (n, t)
    h_state, c_state,                                       # VMEM scratch (H, W, hid)
):
    H, W, hid = h_state.shape
    hw = H * W

    # prev=None -> zero initial states at the start of every sequence.
    @pl.when(pl.program_id(1) == 0)
    def _():
        h_state[...] = jnp.zeros_like(h_state)
        c_state[...] = jnp.zeros_like(c_state)

    # TODO(synk): nn.Dropout2d (training-mode stochastic channel dropout) is an
    # identity here (eval semantics / dropout_keep == 1.0).
    x = x_ref[...].astype(jnp.float32)                      # (H, W, in_c)
    h = h_state[...]                                        # (H, W, hid)
    c = c_state[...]                                        # (H, W, hid)

    # One padded im2col of cat([x, h, c]) feeds conv1, conv3 and conv2's x/h part.
    patches = _im2col3x3(jnp.concatenate([x, h, c], axis=-1))   # (hw, 9*(in_c+2*hid))
    big = jnp.dot(patches, wbig_ref[...],
                  preferred_element_type=jnp.float32) + bbig_ref[...]   # (hw, 4*hid)

    # conv1 (-> i, f) and conv3 (-> g) share one GroupNorm pass (block-diag groups).
    y96 = _group_norm(big[:, :3 * hid], m96_ref[...], g96_ref[...], bt96_ref[...])
    i_t = jax.nn.sigmoid(y96[:, :hid])
    f_t = jax.nn.sigmoid(y96[:, hid:2 * hid])
    g_t = jnp.tanh(y96[:, 2 * hid:])

    c_t = f_t * c.reshape(hw, hid) + i_t * g_t              # (hw, hid)
    ct_sp = c_t.reshape(H, W, hid)

    # conv2: x/h contribution came from the big matmul; add the peephole part (c_t).
    o_pre = big[:, 3 * hid:] + jnp.dot(_im2col3x3(ct_sp), w2c_ref[...],
                                       preferred_element_type=jnp.float32)
    o_t = jax.nn.sigmoid(_group_norm(o_pre, mo_ref[...], g2_ref[...], bt2_ref[...]))
    h_t = o_t * jnp.tanh(c_t)

    # Carry state in VMEM (cheap layout-preserving reshapes) and emit this step.
    h_state[...] = h_t.reshape(H, W, hid)
    c_state[...] = ct_sp
    h_seq_ref[...] = h_t
    c_seq_ref[...] = c_t


# ----------------------------------------------------------------------------
# Wrapper / glue
# ----------------------------------------------------------------------------
def build_forward(N, T, H, W, in_c, hid_c, param_arrays):
    hw = H * W
    x_spec = pl.BlockSpec((pl.Squeezed(), pl.Squeezed(), H, W, in_c),
                          lambda n, t: (n, t, 0, 0, 0))
    out_spec = pl.BlockSpec((pl.Squeezed(), pl.Squeezed(), hw, hid_c),
                            lambda n, t: (n, t, 0, 0))

    def full_spec(p):
        # Constant block index => parameters stay resident in VMEM across the grid.
        return pl.BlockSpec(p.shape, lambda n, t, _nd=p.ndim: (0,) * _nd)

    grid_spec = pltpu.PrefetchScalarGridSpec(
        num_scalar_prefetch=0,
        grid=(N, T),                                   # T innermost, sequential
        in_specs=[x_spec] + [full_spec(p) for p in param_arrays],
        out_specs=[out_spec, out_spec],
        scratch_shapes=[pltpu.VMEM((H, W, hid_c), jnp.float32),
                        pltpu.VMEM((H, W, hid_c), jnp.float32)],
    )
    out_state = jax.ShapeDtypeStruct((N, T, hw, hid_c), jnp.float32)
    call = pl.pallas_call(
        _convlstm_seq_kernel,
        out_shape=(out_state, out_state),
        grid_spec=grid_spec,
        # Working set here is < 2 MiB, well under the default 32 MiB scoped VMEM
        # limit; when scaling H/W/hid, set vmem_limit_bytes explicitly and budget
        # against v7x's 64 MiB physical VMEM (vs 128 MiB on v5e/v6e).
        compiler_params=pltpu.CompilerParams(
            dimension_semantics=("parallel", "arbitrary")),
    )

    def forward(x_seq_nhwc):
        return call(x_seq_nhwc, *param_arrays)

    return jax.jit(forward)


def init_params(key, in_c, hid_c):
    """Deterministic synthetic parameters (shapes match the torch module)."""
    ks = jax.random.split(key, 12)

    def conv_init(kw, kb, ci, co):
        bound = 1.0 / math.sqrt(ci * 9)
        w = jax.random.uniform(kw, (3, 3, ci, co), jnp.float32, -bound, bound)
        b = jax.random.uniform(kb, (co,), jnp.float32, -bound, bound)
        return w, b

    w1, b1 = conv_init(ks[0], ks[1], in_c + 2 * hid_c, 2 * hid_c)
    w2, b2 = conv_init(ks[2], ks[3], in_c + 2 * hid_c, hid_c)
    w3, b3 = conv_init(ks[4], ks[5], in_c + hid_c, hid_c)
    return dict(
        w1=w1, b1=b1,
        g1=1.0 + 0.1 * jax.random.normal(ks[6], (2 * hid_c,), jnp.float32),
        bt1=0.05 * jax.random.normal(ks[7], (2 * hid_c,), jnp.float32),
        w2=w2, b2=b2,
        g2=1.0 + 0.1 * jax.random.normal(ks[8], (hid_c,), jnp.float32),
        bt2=0.05 * jax.random.normal(ks[9], (hid_c,), jnp.float32),
        w3=w3, b3=b3,
        g3=1.0 + 0.1 * jax.random.normal(ks[10], (hid_c,), jnp.float32),
        bt3=0.05 * jax.random.normal(ks[11], (hid_c,), jnp.float32),
    )


def kernel_param_arrays(P, in_c, hid_c, H, W):
    """Host-side prep: fused conv weight (stacked output channels), fused bias,
    concatenated GN affine params, and pre-scaled group-membership matrices."""
    hid = hid_c
    hw = H * W
    c_full = in_c + 2 * hid

    w1 = np.asarray(P['w1'], np.float32)                   # (3,3,c_full,2*hid)
    w2 = np.asarray(P['w2'], np.float32)                   # (3,3,c_full,hid)
    w3 = np.asarray(P['w3'], np.float32)                   # (3,3,in_c+hid,hid)

    w3_ext = np.zeros((3, 3, c_full, hid), np.float32)     # conv3 never sees c
    w3_ext[:, :, :in_c + hid, :] = w3
    w2_xh = np.zeros((3, 3, c_full, hid), np.float32)      # conv2 x/h rows only
    w2_xh[:, :, :in_c + hid, :] = w2[:, :, :in_c + hid, :]
    w2_c = w2[:, :, in_c + hid:, :]                        # peephole rows (use c_t)

    # column layout: [conv1 i|f (2*hid) | conv3 g (hid) | conv2 x/h part (hid)]
    w_big = np.concatenate([w1, w3_ext, w2_xh], axis=-1).reshape(9 * c_full, 4 * hid)
    w2c = w2_c.reshape(9 * hid, hid)

    b_big = np.concatenate([np.asarray(P['b1']), np.asarray(P['b3']),
                            np.asarray(P['b2'])]).reshape(1, -1).astype(np.float32)
    g96 = np.concatenate([np.asarray(P['g1']),
                          np.asarray(P['g3'])]).reshape(1, -1).astype(np.float32)
    bt96 = np.concatenate([np.asarray(P['bt1']),
                           np.asarray(P['bt3'])]).reshape(1, -1).astype(np.float32)

    def member_scaled(C, gs):
        g = np.arange(C) // gs
        return (g[:, None] == g[None, :]).astype(np.float32) / float(hw * gs)

    gs2 = (2 * hid) // 32        # conv1 GroupNorm group size
    gs1 = hid // 32              # conv2 / conv3 GroupNorm group size
    m96 = np.zeros((3 * hid, 3 * hid), np.float32)
    m96[:2 * hid, :2 * hid] = member_scaled(2 * hid, gs2)
    m96[2 * hid:, 2 * hid:] = member_scaled(hid, gs1)
    mo = member_scaled(hid, gs1)

    j = lambda a: jnp.asarray(a, jnp.float32)
    return (j(w_big), j(b_big), j(m96), j(g96), j(bt96),
            j(w2c), j(mo),
            j(np.asarray(P['g2']).reshape(1, -1)),
            j(np.asarray(P['bt2']).reshape(1, -1)))


def convlstm_forward_pallas(ins_nchw, P, seq_len, hid_c):
    """Mirror of ConvLSTMCellPeep.forward (prev=None -> zero init states)."""
    N, T, in_c, H, W = ins_nchw.shape
    assert seq_len <= T
    ins = jnp.transpose(ins_nchw[:, :seq_len], (0, 1, 3, 4, 2)).astype(jnp.float32)
    params = kernel_param_arrays(P, in_c, hid_c, H, W)
    fwd = build_forward(N, seq_len, H, W, in_c, hid_c, params)
    h_seq, c_seq = fwd(ins)                                 # (N, T, H*W, hid) each

    # Single layout fix-up back to torch NCHW (no per-step transposes).
    def to_nchw(seq):
        return jnp.transpose(seq.reshape(N, seq_len, H, W, hid_c), (0, 1, 4, 2, 3))

    h_nchw, c_nchw = to_nchw(h_seq), to_nchw(c_seq)
    hs = [h_nchw[:, t] for t in range(seq_len)]
    cs = [c_nchw[:, t] for t in range(seq_len)]
    return hs, cs


# ----------------------------------------------------------------------------
# Pure-JAX reference (for numerical verification of the kernel)
# ----------------------------------------------------------------------------
def convlstm_forward_ref(ins_nchw, P, seq_len, hid_c):
    N, T, in_c, H, W = ins_nchw.shape
    ins = jnp.transpose(ins_nchw, (0, 1, 3, 4, 2)).astype(jnp.float32)

    def conv(inp, w, b):
        y = jax.lax.conv_general_dilated(
            inp, w, (1, 1), 'SAME', dimension_numbers=('NHWC', 'HWIO', 'NHWC'))
        return y + b.reshape(1, 1, 1, -1)

    def gn(y, gamma, beta):
        n, hh, ww, cc = y.shape
        yg = y.reshape(n, hh, ww, 32, cc // 32)
        mean = yg.mean(axis=(1, 2, 4), keepdims=True)
        var = ((yg - mean) ** 2).mean(axis=(1, 2, 4), keepdims=True)
        yn = (yg - mean) * jax.lax.rsqrt(var + 1e-5)
        return (yn.reshape(n, hh, ww, cc) * gamma.reshape(1, 1, 1, -1)
                + beta.reshape(1, 1, 1, -1))

    h = jnp.zeros((N, H, W, hid_c), jnp.float32)
    c = jnp.zeros_like(h)
    hs, cs = [], []
    for t in range(seq_len):
        x = ins[:, t]
        y1 = gn(conv(jnp.concatenate([x, h, c], -1), P['w1'], P['b1']),
                P['g1'], P['bt1'])
        i_t = jax.nn.sigmoid(y1[..., :hid_c])
        f_t = jax.nn.sigmoid(y1[..., hid_c:])
        g_t = jnp.tanh(gn(conv(jnp.concatenate([x, h], -1), P['w3'], P['b3']),
                          P['g3'], P['bt3']))
        c_t = f_t * c + i_t * g_t
        o_t = jax.nn.sigmoid(gn(conv(jnp.concatenate([x, h, c_t], -1),
                                     P['w2'], P['b2']), P['g2'], P['bt2']))
        h = o_t * jnp.tanh(c_t)
        c = c_t
        hs.append(jnp.transpose(h, (0, 3, 1, 2)))
        cs.append(jnp.transpose(c, (0, 3, 1, 2)))
    return hs, cs


if __name__ == "__main__":
    # small shapes consistent with the module (GroupNorm(32) forces hid_c % 32 == 0)
    N, T, in_c, hid_c, H, W = 2, 8, 4, 32, 16, 16

    key = jax.random.PRNGKey(0)
    kp, kx = jax.random.split(key)
    P = init_params(kp, in_c, hid_c)
    ins = jax.random.normal(kx, (N, T, in_c, H, W), jnp.float32)  # NCHW per step

    hs, cs = convlstm_forward_pallas(ins, P, T, hid_c)
    out_h = jax.block_until_ready(jnp.stack(hs))
    out_c = jax.block_until_ready(jnp.stack(cs))

    hs_r, cs_r = convlstm_forward_ref(ins, P, T, hid_c)
    np.testing.assert_allclose(np.asarray(out_h), np.asarray(jnp.stack(hs_r)),
                               atol=3e-3, rtol=3e-3)
    np.testing.assert_allclose(np.asarray(out_c), np.asarray(jnp.stack(cs_r)),
                               atol=3e-3, rtol=3e-3)
    print("KERNEL_OK")
</pallas_src>

<mosaic_0001>
module attributes {stable_mosaic.version = 11 : i64} {
  func.func @_convlstm_seq_kernel(%arg0: i32, %arg1: i32, %arg2: memref<1x1x16x16x4xf32, #tpu.memory_space<vmem>>, %arg3: memref<612x128xf32, #tpu.memory_space<vmem>>, %arg4: memref<1x128xf32, #tpu.memory_space<vmem>>, %arg5: memref<96x96xf32, #tpu.memory_space<vmem>>, %arg6: memref<1x96xf32, #tpu.memory_space<vmem>>, %arg7: memref<1x96xf32, #tpu.memory_space<vmem>>, %arg8: memref<288x32xf32, #tpu.memory_space<vmem>>, %arg9: memref<32x32xf32, #tpu.memory_space<vmem>>, %arg10: memref<1x32xf32, #tpu.memory_space<vmem>>, %arg11: memref<1x32xf32, #tpu.memory_space<vmem>>, %arg12: memref<1x1x256x32xf32, #tpu.memory_space<vmem>>, %arg13: memref<1x1x256x32xf32, #tpu.memory_space<vmem>>, %arg14: memref<16x16x32xf32, #tpu.memory_space<vmem>>, %arg15: memref<16x16x32xf32, #tpu.memory_space<vmem>>) attributes {dimension_semantics = [#tpu.dimension_semantics<parallel>, #tpu.dimension_semantics<arbitrary>], iteration_bounds = array<i64: 2, 8>, scalar_prefetch = 0 : i64, scratch_operands = 2 : i64, tpu.core_type = #tpu.core_type<tc>, window_params = [{transform_indices = @transform_0, window_bounds = array<i64: 1, 1, 16, 16, 4>}, {pipeline_mode = #tpu.pipeline_mode<synchronous>, transform_indices = @transform_1, window_bounds = array<i64: 612, 128>}, {pipeline_mode = #tpu.pipeline_mode<synchronous>, transform_indices = @transform_2, window_bounds = array<i64: 1, 128>}, {pipeline_mode = #tpu.pipeline_mode<synchronous>, transform_indices = @transform_3, window_bounds = array<i64: 96, 96>}, {pipeline_mode = #tpu.pipeline_mode<synchronous>, transform_indices = @transform_4, window_bounds = array<i64: 1, 96>}, {pipeline_mode = #tpu.pipeline_mode<synchronous>, transform_indices = @transform_5, window_bounds = array<i64: 1, 96>}, {pipeline_mode = #tpu.pipeline_mode<synchronous>, transform_indices = @transform_6, window_bounds = array<i64: 288, 32>}, {pipeline_mode = #tpu.pipeline_mode<synchronous>, transform_indices = @transform_7, window_bounds = array<i64: 32, 32>}, {pipeline_mode = #tpu.pipeline_mode<synchronous>, transform_indices = @transform_8, window_bounds = array<i64: 1, 32>}, {pipeline_mode = #tpu.pipeline_mode<synchronous>, transform_indices = @transform_9, window_bounds = array<i64: 1, 32>}, {transform_indices = @transform_10, window_bounds = array<i64: 1, 1, 256, 32>}, {transform_indices = @transform_11, window_bounds = array<i64: 1, 1, 256, 32>}]} {
    %c0_i32 = arith.constant 0 : i32
    %0 = arith.cmpi eq, %arg1, %c0_i32 : i32
    %1 = arith.extui %0 : i1 to i32
    %c0_i32_0 = arith.constant 0 : i32
    %2 = arith.cmpi ne, %1, %c0_i32_0 : i32
    scf.if %2 {
      %cst_59 = arith.constant 0.000000e+00 : f32
      %149 = vector.broadcast %cst_59 : f32 to vector<16x16x32xf32>
      %c0_60 = arith.constant 0 : index
      %c0_61 = arith.constant 0 : index
      %c0_62 = arith.constant 0 : index
      %150 = vector.load %arg14[%c0_60, %c0_61, %c0_62] : memref<16x16x32xf32, #tpu.memory_space<vmem>>, vector<16x16x32xf32>
      tpu.vector_store %arg14[%c0_60, %c0_61, %c0_62], %149 {strides = array<i32>} : memref<16x16x32xf32, #tpu.memory_space<vmem>>, vector<16x16x32xf32>,
      %cst_63 = arith.constant 0.000000e+00 : f32
      %151 = vector.broadcast %cst_63 : f32 to vector<16x16x32xf32>
      %c0_64 = arith.constant 0 : index
      %c0_65 = arith.constant 0 : index
      %c0_66 = arith.constant 0 : index
      %152 = vector.load %arg15[%c0_64, %c0_65, %c0_66] : memref<16x16x32xf32, #tpu.memory_space<vmem>>, vector<16x16x32xf32>
      tpu.vector_store %arg15[%c0_64, %c0_65, %c0_66], %151 {strides = array<i32>} : memref<16x16x32xf32, #tpu.memory_space<vmem>>, vector<16x16x32xf32>,
    } else {
    }
    %c0 = arith.constant 0 : index
    %c0_1 = arith.constant 0 : index
    %c0_2 = arith.constant 0 : index
    %c0_3 = arith.constant 0 : index
    %c0_4 = arith.constant 0 : index
    %3 = vector.load %arg2[%c0, %c0_1, %c0_2, %c0_3, %c0_4] : memref<1x1x16x16x4xf32, #tpu.memory_space<vmem>>, vector<1x1x16x16x4xf32>
    %4 = vector.shape_cast %3 : vector<1x1x16x16x4xf32> to vector<16x16x4xf32>
    %c0_5 = arith.constant 0 : index
    %c0_6 = arith.constant 0 : index
    %c0_7 = arith.constant 0 : index
    %5 = vector.load %arg14[%c0_5, %c0_6, %c0_7] : memref<16x16x32xf32, #tpu.memory_space<vmem>>, vector<16x16x32xf32>
    %c0_8 = arith.constant 0 : index
    %c0_9 = arith.constant 0 : index
    %c0_10 = arith.constant 0 : index
    %6 = vector.load %arg15[%c0_8, %c0_9, %c0_10] : memref<16x16x32xf32, #tpu.memory_space<vmem>>, vector<16x16x32xf32>
    %7 = tpu.concatenate %4, %5, %6 in 2 : vector<16x16x4xf32>, vector<16x16x32xf32>, vector<16x16x32xf32> -> vector<16x16x68xf32>
    %cst = arith.constant 0.000000e+00 : f32
    %8 = vector.broadcast %cst : f32 to vector<1x16x68xf32>
    %9 = tpu.concatenate %8, %7, %8 in 0 : vector<1x16x68xf32>, vector<16x16x68xf32>, vector<1x16x68xf32> -> vector<18x16x68xf32>
    %cst_11 = arith.constant 0.000000e+00 : f32
    %10 = vector.broadcast %cst_11 : f32 to vector<18x1x68xf32>
    %11 = tpu.concatenate %10, %9, %10 in 1 : vector<18x1x68xf32>, vector<18x16x68xf32>, vector<18x1x68xf32> -> vector<18x18x68xf32>
    %12 = vector.extract_strided_slice %11 {offsets = [0, 0, 0], sizes = [16, 16, 68], strides = [1, 1, 1]} : vector<18x18x68xf32> to vector<16x16x68xf32>
    %13 = vector.shape_cast %12 : vector<16x16x68xf32> to vector<256x68xf32>
    %14 = vector.extract_strided_slice %11 {offsets = [0, 1, 0], sizes = [16, 16, 68], strides = [1, 1, 1]} : vector<18x18x68xf32> to vector<16x16x68xf32>
    %15 = vector.shape_cast %14 : vector<16x16x68xf32> to vector<256x68xf32>
    %16 = vector.extract_strided_slice %11 {offsets = [0, 2, 0], sizes = [16, 16, 68], strides = [1, 1, 1]} : vector<18x18x68xf32> to vector<16x16x68xf32>
    %17 = vector.shape_cast %16 : vector<16x16x68xf32> to vector<256x68xf32>
    %18 = vector.extract_strided_slice %11 {offsets = [1, 0, 0], sizes = [16, 16, 68], strides = [1, 1, 1]} : vector<18x18x68xf32> to vector<16x16x68xf32>
    %19 = vector.shape_cast %18 : vector<16x16x68xf32> to vector<256x68xf32>
    %20 = vector.extract_strided_slice %11 {offsets = [1, 1, 0], sizes = [16, 16, 68], strides = [1, 1, 1]} : vector<18x18x68xf32> to vector<16x16x68xf32>
    %21 = vector.shape_cast %20 : vector<16x16x68xf32> to vector<256x68xf32>
    %22 = vector.extract_strided_slice %11 {offsets = [1, 2, 0], sizes = [16, 16, 68], strides = [1, 1, 1]} : vector<18x18x68xf32> to vector<16x16x68xf32>
    %23 = vector.shape_cast %22 : vector<16x16x68xf32> to vector<256x68xf32>
    %24 = vector.extract_strided_slice %11 {offsets = [2, 0, 0], sizes = [16, 16, 68], strides = [1, 1, 1]} : vector<18x18x68xf32> to vector<16x16x68xf32>
    %25 = vector.shape_cast %24 : vector<16x16x68xf32> to vector<256x68xf32>
    %26 = vector.extract_strided_slice %11 {offsets = [2, 1, 0], sizes = [16, 16, 68], strides = [1, 1, 1]} : vector<18x18x68xf32> to vector<16x16x68xf32>
    %27 = vector.shape_cast %26 : vector<16x16x68xf32> to vector<256x68xf32>
    %28 = vector.extract_strided_slice %11 {offsets = [2, 2, 0], sizes = [16, 16, 68], strides = [1, 1, 1]} : vector<18x18x68xf32> to vector<16x16x68xf32>
    %29 = vector.shape_cast %28 : vector<16x16x68xf32> to vector<256x68xf32>
    %30 = tpu.concatenate %13, %15, %17, %19, %21, %23, %25, %27, %29 in 1 : vector<256x68xf32>, vector<256x68xf32>, vector<256x68xf32>, vector<256x68xf32>, vector<256x68xf32>, vector<256x68xf32>, vector<256x68xf32>, vector<256x68xf32>, vector<256x68xf32> -> vector<256x612xf32>
    %c0_12 = arith.constant 0 : index
    %c0_13 = arith.constant 0 : index
    %31 = vector.load %arg3[%c0_12, %c0_13] : memref<612x128xf32, #tpu.memory_space<vmem>>, vector<612x128xf32>
    %cst_14 = arith.constant dense<0.000000e+00> : vector<256x128xf32>
    %32 = tpu.matmul %30, %31, %cst_14 {dimension_numbers = #tpu.dot_dimension_numbers<[1], [0], [0], [1], [0, 0, 1, 1], [], []>} : vector<256x612xf32>, vector<612x128xf32>, vector<256x128xf32> -> vector<256x128xf32>
    %c0_15 = arith.constant 0 : index
    %c0_16 = arith.constant 0 : index
    %33 = vector.load %arg4[%c0_15, %c0_16] : memref<1x128xf32, #tpu.memory_space<vmem>>, vector<1x128xf32>
    %34 = vector.broadcast %33 : vector<1x128xf32> to vector<256x128xf32>
    %35 = arith.addf %32, %34 : vector<256x128xf32>
    %36 = vector.extract_strided_slice %35 {offsets = [0, 0], sizes = [256, 96], strides = [1, 1]} : vector<256x128xf32> to vector<256x96xf32>
    %c0_17 = arith.constant 0 : index
    %c0_18 = arith.constant 0 : index
    %37 = vector.load %arg5[%c0_17, %c0_18] : memref<96x96xf32, #tpu.memory_space<vmem>>, vector<96x96xf32>
    %c0_19 = arith.constant 0 : index
    %c0_20 = arith.constant 0 : index
    %38 = vector.load %arg6[%c0_19, %c0_20] : memref<1x96xf32, #tpu.memory_space<vmem>>, vector<1x96xf32>
    %c0_21 = arith.constant 0 : index
    %c0_22 = arith.constant 0 : index
    %39 = vector.load %arg7[%c0_21, %c0_22] : memref<1x96xf32, #tpu.memory_space<vmem>>, vector<1x96xf32>
    %cst_23 = arith.constant dense<0.000000e+00> : vector<96xf32>
    %40 = vector.multi_reduction <add>, %36, %cst_23 [0] : vector<256x96xf32> to vector<96xf32>
    %41 = vector.shape_cast %40 : vector<96xf32> to vector<1x96xf32>
    %42 = arith.mulf %36, %36 : vector<256x96xf32>
    %cst_24 = arith.constant dense<0.000000e+00> : vector<96xf32>
    %43 = vector.multi_reduction <add>, %42, %cst_24 [0] : vector<256x96xf32> to vector<96xf32>
    %44 = vector.shape_cast %43 : vector<96xf32> to vector<1x96xf32>
    %45 = tpu.concatenate %41, %44 in 0 : vector<1x96xf32>, vector<1x96xf32> -> vector<2x96xf32>
    %cst_25 = arith.constant dense<0.000000e+00> : vector<2x96xf32>
    %46 = tpu.matmul %45, %37, %cst_25 {dimension_numbers = #tpu.dot_dimension_numbers<[1], [0], [0], [1], [0, 0, 1, 1], [], []>} : vector<2x96xf32>, vector<96x96xf32>, vector<2x96xf32> -> vector<2x96xf32>
    %47 = vector.extract_strided_slice %46 {offsets = [0, 0], sizes = [1, 96], strides = [1, 1]} : vector<2x96xf32> to vector<1x96xf32>
    %48 = vector.extract_strided_slice %46 {offsets = [1, 0], sizes = [1, 96], strides = [1, 1]} : vector<2x96xf32> to vector<1x96xf32>
    %49 = arith.mulf %47, %47 : vector<1x96xf32>
    %50 = arith.subf %48, %49 : vector<1x96xf32>
    %51 = vector.broadcast %47 : vector<1x96xf32> to vector<256x96xf32>
    %52 = arith.subf %36, %51 : vector<256x96xf32>
    %cst_26 = arith.constant 9.99999974E-6 : f32
    %53 = vector.broadcast %cst_26 : f32 to vector<1x96xf32>
    %54 = arith.addf %50, %53 : vector<1x96xf32>
    %55 = math.rsqrt %54 : vector<1x96xf32>
    %56 = vector.broadcast %55 : vector<1x96xf32> to vector<256x96xf32>
    %57 = arith.mulf %52, %56 : vector<256x96xf32>
    %58 = vector.broadcast %38 : vector<1x96xf32> to vector<256x96xf32>
    %59 = arith.mulf %57, %58 : vector<256x96xf32>
    %60 = vector.broadcast %39 : vector<1x96xf32> to vector<256x96xf32>
    %61 = arith.addf %59, %60 : vector<256x96xf32>
    %62 = vector.extract_strided_slice %61 {offsets = [0, 0], sizes = [256, 32], strides = [1, 1]} : vector<256x96xf32> to vector<256x32xf32>
    %63 = arith.negf %62 : vector<256x32xf32>
    %64 = math.exp %63 : vector<256x32xf32>
    %cst_27 = arith.constant 1.000000e+00 : f32
    %65 = vector.broadcast %cst_27 : f32 to vector<256x32xf32>
    %66 = arith.addf %65, %64 : vector<256x32xf32>
    %67 = arith.divf %65, %66 : vector<256x32xf32>
    %68 = vector.extract_strided_slice %61 {offsets = [0, 32], sizes = [256, 32], strides = [1, 1]} : vector<256x96xf32> to vector<256x32xf32>
    %69 = arith.negf %68 : vector<256x32xf32>
    %70 = math.exp %69 : vector<256x32xf32>
    %cst_28 = arith.constant 1.000000e+00 : f32
    %71 = vector.broadcast %cst_28 : f32 to vector<256x32xf32>
    %72 = arith.addf %71, %70 : vector<256x32xf32>
    %73 = arith.divf %71, %72 : vector<256x32xf32>
    %74 = vector.extract_strided_slice %61 {offsets = [0, 64], sizes = [256, 32], strides = [1, 1]} : vector<256x96xf32> to vector<256x32xf32>
    %75 = math.tanh %74 : vector<256x32xf32>
    %76 = vector.shape_cast %6 : vector<16x16x32xf32> to vector<256x32xf32>
    %77 = arith.mulf %73, %76 : vector<256x32xf32>
    %78 = arith.mulf %67, %75 : vector<256x32xf32>
    %79 = arith.addf %77, %78 : vector<256x32xf32>
    %80 = vector.shape_cast %79 : vector<256x32xf32> to vector<16x16x32xf32>
    %81 = vector.extract_strided_slice %35 {offsets = [0, 96], sizes = [256, 32], strides = [1, 1]} : vector<256x128xf32> to vector<256x32xf32>
    %cst_29 = arith.constant 0.000000e+00 : f32
    %82 = vector.broadcast %cst_29 : f32 to vector<1x16x32xf32>
    %83 = tpu.concatenate %82, %80, %82 in 0 : vector<1x16x32xf32>, vector<16x16x32xf32>, vector<1x16x32xf32> -> vector<18x16x32xf32>
    %cst_30 = arith.constant 0.000000e+00 : f32
    %84 = vector.broadcast %cst_30 : f32 to vector<18x1x32xf32>
    %85 = tpu.concatenate %84, %83, %84 in 1 : vector<18x1x32xf32>, vector<18x16x32xf32>, vector<18x1x32xf32> -> vector<18x18x32xf32>
    %86 = vector.extract_strided_slice %85 {offsets = [0, 0, 0], sizes = [16, 16, 32], strides = [1, 1, 1]} : vector<18x18x32xf32> to vector<16x16x32xf32>
    %87 = vector.shape_cast %86 : vector<16x16x32xf32> to vector<256x32xf32>
    %88 = vector.extract_strided_slice %85 {offsets = [0, 1, 0], sizes = [16, 16, 32], strides = [1, 1, 1]} : vector<18x18x32xf32> to vector<16x16x32xf32>
    %89 = vector.shape_cast %88 : vector<16x16x32xf32> to vector<256x32xf32>
    %90 = vector.extract_strided_slice %85 {offsets = [0, 2, 0], sizes = [16, 16, 32], strides = [1, 1, 1]} : vector<18x18x32xf32> to vector<16x16x32xf32>
    %91 = vector.shape_cast %90 : vector<16x16x32xf32> to vector<256x32xf32>
    %92 = vector.extract_strided_slice %85 {offsets = [1, 0, 0], sizes = [16, 16, 32], strides = [1, 1, 1]} : vector<18x18x32xf32> to vector<16x16x32xf32>
    %93 = vector.shape_cast %92 : vector<16x16x32xf32> to vector<256x32xf32>
    %94 = vector.extract_strided_slice %85 {offsets = [1, 1, 0], sizes = [16, 16, 32], strides = [1, 1, 1]} : vector<18x18x32xf32> to vector<16x16x32xf32>
    %95 = vector.shape_cast %94 : vector<16x16x32xf32> to vector<256x32xf32>
    %96 = vector.extract_strided_slice %85 {offsets = [1, 2, 0], sizes = [16, 16, 32], strides = [1, 1, 1]} : vector<18x18x32xf32> to vector<16x16x32xf32>
    %97 = vector.shape_cast %96 : vector<16x16x32xf32> to vector<256x32xf32>
    %98 = vector.extract_strided_slice %85 {offsets = [2, 0, 0], sizes = [16, 16, 32], strides = [1, 1, 1]} : vector<18x18x32xf32> to vector<16x16x32xf32>
    %99 = vector.shape_cast %98 : vector<16x16x32xf32> to vector<256x32xf32>
    %100 = vector.extract_strided_slice %85 {offsets = [2, 1, 0], sizes = [16, 16, 32], strides = [1, 1, 1]} : vector<18x18x32xf32> to vector<16x16x32xf32>
    %101 = vector.shape_cast %100 : vector<16x16x32xf32> to vector<256x32xf32>
    %102 = vector.extract_strided_slice %85 {offsets = [2, 2, 0], sizes = [16, 16, 32], strides = [1, 1, 1]} : vector<18x18x32xf32> to vector<16x16x32xf32>
    %103 = vector.shape_cast %102 : vector<16x16x32xf32> to vector<256x32xf32>
    %104 = tpu.concatenate %87, %89, %91, %93, %95, %97, %99, %101, %103 in 1 : vector<256x32xf32>, vector<256x32xf32>, vector<256x32xf32>, vector<256x32xf32>, vector<256x32xf32>, vector<256x32xf32>, vector<256x32xf32>, vector<256x32xf32>, vector<256x32xf32> -> vector<256x288xf32>
    %c0_31 = arith.constant 0 : index
    %c0_32 = arith.constant 0 : index
    %105 = vector.load %arg8[%c0_31, %c0_32] : memref<288x32xf32, #tpu.memory_space<vmem>>, vector<288x32xf32>
    %cst_33 = arith.constant dense<0.000000e+00> : vector<256x32xf32>
    %106 = tpu.matmul %104, %105, %cst_33 {dimension_numbers = #tpu.dot_dimension_numbers<[1], [0], [0], [1], [0, 0, 1, 1], [], []>} : vector<256x288xf32>, vector<288x32xf32>, vector<256x32xf32> -> vector<256x32xf32>
    %107 = arith.addf %81, %106 : vector<256x32xf32>
    %c0_34 = arith.constant 0 : index
    %c0_35 = arith.constant 0 : index
    %108 = vector.load %arg9[%c0_34, %c0_35] : memref<32x32xf32, #tpu.memory_space<vmem>>, vector<32x32xf32>
    %c0_36 = arith.constant 0 : index
    %c0_37 = arith.constant 0 : index
    %109 = vector.load %arg10[%c0_36, %c0_37] : memref<1x32xf32, #tpu.memory_space<vmem>>, vector<1x32xf32>
    %c0_38 = arith.constant 0 : index
    %c0_39 = arith.constant 0 : index
    %110 = vector.load %arg11[%c0_38, %c0_39] : memref<1x32xf32, #tpu.memory_space<vmem>>, vector<1x32xf32>
    %cst_40 = arith.constant dense<0.000000e+00> : vector<32xf32>
    %111 = vector.multi_reduction <add>, %107, %cst_40 [0] : vector<256x32xf32> to vector<32xf32>
    %112 = vector.shape_cast %111 : vector<32xf32> to vector<1x32xf32>
    %113 = arith.mulf %107, %107 : vector<256x32xf32>
    %cst_41 = arith.constant dense<0.000000e+00> : vector<32xf32>
    %114 = vector.multi_reduction <add>, %113, %cst_41 [0] : vector<256x32xf32> to vector<32xf32>
    %115 = vector.shape_cast %114 : vector<32xf32> to vector<1x32xf32>
    %116 = tpu.concatenate %112, %115 in 0 : vector<1x32xf32>, vector<1x32xf32> -> vector<2x32xf32>
    %cst_42 = arith.constant dense<0.000000e+00> : vector<2x32xf32>
    %117 = tpu.matmul %116, %108, %cst_42 {dimension_numbers = #tpu.dot_dimension_numbers<[1], [0], [0], [1], [0, 0, 1, 1], [], []>} : vector<2x32xf32>, vector<32x32xf32>, vector<2x32xf32> -> vector<2x32xf32>
    %118 = vector.extract_strided_slice %117 {offsets = [0, 0], sizes = [1, 32], strides = [1, 1]} : vector<2x32xf32> to vector<1x32xf32>
    %119 = vector.extract_strided_slice %117 {offsets = [1, 0], sizes = [1, 32], strides = [1, 1]} : vector<2x32xf32> to vector<1x32xf32>
    %120 = arith.mulf %118, %118 : vector<1x32xf32>
    %121 = arith.subf %119, %120 : vector<1x32xf32>
    %122 = vector.broadcast %118 : vector<1x32xf32> to vector<256x32xf32>
    %123 = arith.subf %107, %122 : vector<256x32xf32>
    %cst_43 = arith.constant 9.99999974E-6 : f32
    %124 = vector.broadcast %cst_43 : f32 to vector<1x32xf32>
    %125 = arith.addf %121, %124 : vector<1x32xf32>
    %126 = math.rsqrt %125 : vector<1x32xf32>
    %127 = vector.broadcast %126 : vector<1x32xf32> to vector<256x32xf32>
    %128 = arith.mulf %123, %127 : vector<256x32xf32>
    %129 = vector.broadcast %109 : vector<1x32xf32> to vector<256x32xf32>
    %130 = arith.mulf %128, %129 : vector<256x32xf32>
    %131 = vector.broadcast %110 : vector<1x32xf32> to vector<256x32xf32>
    %132 = arith.addf %130, %131 : vector<256x32xf32>
    %133 = arith.negf %132 : vector<256x32xf32>
    %134 = math.exp %133 : vector<256x32xf32>
    %cst_44 = arith.constant 1.000000e+00 : f32
    %135 = vector.broadcast %cst_44 : f32 to vector<256x32xf32>
    %136 = arith.addf %135, %134 : vector<256x32xf32>
    %137 = arith.divf %135, %136 : vector<256x32xf32>
    %138 = math.tanh %79 : vector<256x32xf32>
    %139 = arith.mulf %137, %138 : vector<256x32xf32>
    %140 = vector.shape_cast %139 : vector<256x32xf32> to vector<16x16x32xf32>
    %c0_45 = arith.constant 0 : index
    %c0_46 = arith.constant 0 : index
    %c0_47 = arith.constant 0 : index
    %141 = vector.load %arg14[%c0_45, %c0_46, %c0_47] : memref<16x16x32xf32, #tpu.memory_space<vmem>>, vector<16x16x32xf32>
    tpu.vector_store %arg14[%c0_45, %c0_46, %c0_47], %140 {strides = array<i32>} : memref<16x16x32xf32, #tpu.memory_space<vmem>>, vector<16x16x32xf32>,
    %c0_48 = arith.constant 0 : index
    %c0_49 = arith.constant 0 : index
    %c0_50 = arith.constant 0 : index
    %142 = vector.load %arg15[%c0_48, %c0_49, %c0_50] : memref<16x16x32xf32, #tpu.memory_space<vmem>>, vector<16x16x32xf32>
    tpu.vector_store %arg15[%c0_48, %c0_49, %c0_50], %80 {strides = array<i32>} : memref<16x16x32xf32, #tpu.memory_space<vmem>>, vector<16x16x32xf32>,
    %c0_51 = arith.constant 0 : index
    %c0_52 = arith.constant 0 : index
    %c0_53 = arith.constant 0 : index
    %c0_54 = arith.constant 0 : index
    %143 = vector.load %arg12[%c0_51, %c0_52, %c0_53, %c0_54] : memref<1x1x256x32xf32, #tpu.memory_space<vmem>>, vector<1x1x256x32xf32>
    %144 = vector.shape_cast %143 : vector<1x1x256x32xf32> to vector<256x32xf32>
    %145 = vector.shape_cast %139 : vector<256x32xf32> to vector<1x1x256x32xf32>
    tpu.vector_store %arg12[%c0_51, %c0_52, %c0_53, %c0_54], %145 {strides = array<i32>} : memref<1x1x256x32xf32, #tpu.memory_space<vmem>>, vector<1x1x256x32xf32>,
    %c0_55 = arith.constant 0 : index
    %c0_56 = arith.constant 0 : index
    %c0_57 = arith.constant 0 : index
    %c0_58 = arith.constant 0 : index
    %146 = vector.load %arg13[%c0_55, %c0_56, %c0_57, %c0_58] : memref<1x1x256x32xf32, #tpu.memory_space<vmem>>, vector<1x1x256x32xf32>
    %147 = vector.shape_cast %146 : vector<1x1x256x32xf32> to vector<256x32xf32>
    %148 = vector.shape_cast %79 : vector<256x32xf32> to vector<1x1x256x32xf32>
    tpu.vector_store %arg13[%c0_55, %c0_56, %c0_57, %c0_58], %148 {strides = array<i32>} : memref<1x1x256x32xf32, #tpu.memory_space<vmem>>, vector<1x1x256x32xf32>,
    return
  }
  func.func @transform_0(%arg0: i32, %arg1: i32) -> (i32, i32, i32, i32, i32) {
    %c0_i32 = arith.constant 0 : i32
    %c0_i32_0 = arith.constant 0 : i32
    %c0_i32_1 = arith.constant 0 : i32
    %c0_i32_2 = arith.constant 0 : i32
    return %arg0, %arg1, %c0_i32, %c0_i32_0, %c0_i32_1 : i32, i32, i32, i32, i32
  }
  func.func @transform_1(%arg0: i32, %arg1: i32) -> (i32, i32) {
    %c0_i32 = arith.constant 0 : i32
    %c0_i32_0 = arith.constant 0 : i32
    %c0_i32_1 = arith.constant 0 : i32
    return %c0_i32, %c0_i32_0 : i32, i32
  }
  func.func @transform_2(%arg0: i32, %arg1: i32) -> (i32, i32) {
    %c0_i32 = arith.constant 0 : i32
    %c0_i32_0 = arith.constant 0 : i32
    %c0_i32_1 = arith.constant 0 : i32
    return %c0_i32, %c0_i32_0 : i32, i32
  }
  func.func @transform_3(%arg0: i32, %arg1: i32) -> (i32, i32) {
    %c0_i32 = arith.constant 0 : i32
    %c0_i32_0 = arith.constant 0 : i32
    %c0_i32_1 = arith.constant 0 : i32
    return %c0_i32, %c0_i32_0 : i32, i32
  }
  func.func @transform_4(%arg0: i32, %arg1: i32) -> (i32, i32) {
    %c0_i32 = arith.constant 0 : i32
    %c0_i32_0 = arith.constant 0 : i32
    %c0_i32_1 = arith.constant 0 : i32
    return %c0_i32, %c0_i32_0 : i32, i32
  }
  func.func @transform_5(%arg0: i32, %arg1: i32) -> (i32, i32) {
    %c0_i32 = arith.constant 0 : i32
    %c0_i32_0 = arith.constant 0 : i32
    %c0_i32_1 = arith.constant 0 : i32
    return %c0_i32, %c0_i32_0 : i32, i32
  }
  func.func @transform_6(%arg0: i32, %arg1: i32) -> (i32, i32) {
    %c0_i32 = arith.constant 0 : i32
    %c0_i32_0 = arith.constant 0 : i32
    %c0_i32_1 = arith.constant 0 : i32
    return %c0_i32, %c0_i32_0 : i32, i32
  }
  func.func @transform_7(%arg0: i32, %arg1: i32) -> (i32, i32) {
    %c0_i32 = arith.constant 0 : i32
    %c0_i32_0 = arith.constant 0 : i32
    %c0_i32_1 = arith.constant 0 : i32
    return %c0_i32, %c0_i32_0 : i32, i32
  }
  func.func @transform_8(%arg0: i32, %arg1: i32) -> (i32, i32) {
    %c0_i32 = arith.constant 0 : i32
    %c0_i32_0 = arith.constant 0 : i32
    %c0_i32_1 = arith.constant 0 : i32
    return %c0_i32, %c0_i32_0 : i32, i32
  }
  func.func @transform_9(%arg0: i32, %arg1: i32) -> (i32, i32) {
    %c0_i32 = arith.constant 0 : i32
    %c0_i32_0 = arith.constant 0 : i32
    %c0_i32_1 = arith.constant 0 : i32
    return %c0_i32, %c0_i32_0 : i32, i32
  }
  func.func @transform_10(%arg0: i32, %arg1: i32) -> (i32, i32, i32, i32) {
    %c0_i32 = arith.constant 0 : i32
    %c0_i32_0 = arith.constant 0 : i32
    %c0_i32_1 = arith.constant 0 : i32
    return %arg0, %arg1, %c0_i32, %c0_i32_0 : i32, i32, i32, i32
  }
  func.func @transform_11(%arg0: i32, %arg1: i32) -> (i32, i32, i32, i32) {
    %c0_i32 = arith.constant 0 : i32
    %c0_i32_0 = arith.constant 0 : i32
    %c0_i32_1 = arith.constant 0 : i32
    return %arg0, %arg1, %c0_i32, %c0_i32_0 : i32, i32, i32, i32
  }
}

</mosaic_0001>

<bundles_post_ra>
// kernel: forward.1
= control target key start
LH: loop header
LB: loop body
LE: loop exit
PB: predicated region body
PF: predicated region fallthrough
CT: control target
= control target key end

     0   :  { %s9733_s17 = smov 0   ;;  %s9735_s18 = smov 0   ;;  %s15287_s0 = inlined_call_operand.vmem [shape: f32[2,8,16,16,4], index: 0, kind: input, shape index: {}]   ;;  %s15288_s1 = inlined_call_operand.vmem [shape: f32[612,128], index: 1, kind: input, shape index: {}]   ;;  %s15289_s2 = inlined_call_operand.vmem [shape: f32[1,128], index: 2, kind: input, shape index: {}]   ;;  %s15290_s3 = inlined_call_operand.vmem [shape: f32[96,96], index: 3, kind: input, shape index: {}]   ;;  %s15291_s4 = inlined_call_operand.vmem [shape: f32[1,96], index: 4, kind: input, shape index: {}]   ;;  %s15292_s5 = inlined_call_operand.vmem [shape: f32[1,96], index: 5, kind: input, shape index: {}]   ;;  %s15293_s6 = inlined_call_operand.vmem [shape: f32[288,32], index: 6, kind: input, shape index: {}]   ;;  %s15294_s7 = inlined_call_operand.vmem [shape: f32[32,32], index: 7, kind: input, shape index: {}]   ;;  %s15295_s8 = inlined_call_operand.vmem [shape: f32[1,32], index: 8, kind: input, shape index: {}]   ;;  %s15296_s9 = inlined_call_operand.vmem [shape: f32[1,32], index: 9, kind: input, shape index: {}]   ;;  %s15297_s10 = inlined_call_operand.vmem [shape: f32[2,8,256,32], index: 10, kind: output, shape index: {0}]   ;;  %s15298_s11 = inlined_call_operand.vmem [shape: f32[2,8,256,32], index: 11, kind: output, shape index: {1}]  }
   0x1   :  { %s9737_s19 = smov 0   ;;  %s9739_s20 = smov 0  }
   0x2   :  { %s9741_s21 = smov 0  }
   0x3 LB: > { %s31_s22 = sadd.s32 1, %s9647_s19  ;;  %s34_s23 = sadd.s32 1, %s9651_s20  ;;  %s9655_s21 = sphi %s9741_s21, %s22_s21   ;;  %s9651_s20 = sphi %s9739_s20, %s16005_s20   ;;  %s9647_s19 = sphi %s9737_s19, %s16004_s19   ;;  %s9643_s18 = sphi %s9735_s18, %s16003_s18   ;;  %s9639_s17 = sphi %s9733_s17, %s16002_s17  }
   0x4   : > { %p32_p0 = scmp.ge.s32.totalorder %s31_s22, 8  ;;  %p7454_p1 = scmp.ge.s32.totalorder %s9655_s21, 1 }
   0x5   : > { %p362_p2 = scmp.lt.s32.totalorder %s9655_s21, 17 }
   0x6   : > { %s16007_s22 = smov (%p32_p0, %s31_s22), 0  ;;  %s16009_s23 = smov (!%p32_p0, %s34_s23), %s9651_s20 }
   0x7   : > { %15536 = sst [smem:[#allocation4_spill]] %s16007_s22  ;;  %p363_p3 = pnand %p7454_p1, %p362_p2 }
   0x8   : > { %p36_p4 = scmp.ge.s32.totalorder %s16009_s23, 2 }
   0x9   : > { %366 = sbr.rel (%p363_p3) target bundleno = 2986 (0xbaa), region = 60 }
   0xa   : > { %s16011_s23 = smov (%p36_p4, %s16009_s23), 0 }
   0xb   : > { %15537 = sst [smem:[#allocation5_spill]] %s16011_s23 }
  0x10   : > { %p419_p5 = scmp.lt.s32.totalorder %s9643_s18, 1  ;;  %p421_p6 = scmp.lt.s32.totalorder %s9639_s17, 7 }
  0x11   : > { %p7464_p7 = scmp.ne.s32.totalorder %s9639_s17, 0 }
  0x12   : > { %s16013_s18 = smov (!%p419_p5, %s9643_s18), 1  ;;  %vm450_vm0 = vcmask (!%p7464_p7), 261120   ;;  %v9657_v0 = vmov (!%p7464_p7), 0.0  }
  0x13   : > { %s422_s24 = scalar_select %p421_p6, %s9639_s17, 7 }
  0x14   : > { %s7456_s25 = sshll.u32 %s16013_s18, 8  ;;  %449 = sbr.rel (%p7464_p7) target bundleno = 52 (0x34), region = 64  ;;  %451 = vst.msk [vmem:[#allocation2] sm:$0xff] (!%p7464_p7), %vm450_vm0, %v9657_v0  ;;  %452 = vst.msk [vmem:[#allocation2 + $0x8] sm:$0xff] (!%p7464_p7), %vm450_vm0, %v9657_v0 }
  0x15   : > { %s7455_s26 = sshll.u32 %s422_s24, 5  ;;  %453 = vst.msk [vmem:[#allocation2 + $0x10] sm:$0xff] (!%p7464_p7), %vm450_vm0, %v9657_v0  ;;  %454 = vst.msk [vmem:[#allocation2 + $0x18] sm:$0xff] (!%p7464_p7), %vm450_vm0, %v9657_v0 }
  0x16   : > { %s425_s27 = sadd.s32 %s7456_s25, %s7455_s26  ;;  %455 = vst.msk [vmem:[#allocation2 + $0x20] sm:$0xff] (!%p7464_p7), %vm450_vm0, %v9657_v0  ;;  %456 = vst.msk [vmem:[#allocation2 + $0x28] sm:$0xff] (!%p7464_p7), %vm450_vm0, %v9657_v0 }
  0x17   : > { %s7457_s28 = sshll.u32 %s425_s27, 3  ;;  %457 = vst.msk [vmem:[#allocation2 + $0x30] sm:$0xff] (!%p7464_p7), %vm450_vm0, %v9657_v0  ;;  %458 = vst.msk [vmem:[#allocation2 + $0x38] sm:$0xff] (!%p7464_p7), %vm450_vm0, %v9657_v0 }
  0x18   : > { %s9766_s12 = scalar_lea.vmem %s15287_s0, %s7457_s28  ;;  %s9771_s15 = scalar_lea.vmem %s15297_s10, %s7457_s28  ;;  %459 = vst.msk [vmem:[#allocation2 + $0x40] sm:$0xff] (!%p7464_p7), %vm450_vm0, %v9657_v0  ;;  %460 = vst.msk [vmem:[#allocation2 + $0x48] sm:$0xff] (!%p7464_p7), %vm450_vm0, %v9657_v0 }
  0x19   : > { %s9776_s22 = scalar_lea.vmem %s15298_s11, %s7457_s28  ;;  %461 = vst.msk [vmem:[#allocation2 + $0x50] sm:$0xff] (!%p7464_p7), %vm450_vm0, %v9657_v0  ;;  %462 = vst.msk [vmem:[#allocation2 + $0x58] sm:$0xff] (!%p7464_p7), %vm450_vm0, %v9657_v0 }
  0x1a   : > { %463 = vst.msk [vmem:[#allocation2 + $0x60] sm:$0xff] (!%p7464_p7), %vm450_vm0, %v9657_v0  ;;  %464 = vst.msk [vmem:[#allocation2 + $0x68] sm:$0xff] (!%p7464_p7), %vm450_vm0, %v9657_v0 }
  0x1b   : > { %465 = vst.msk [vmem:[#allocation2 + $0x70] sm:$0xff] %vm450_vm0, %v9657_v0  ;;  %466 = vst.msk [vmem:[#allocation2 + $0x78] sm:$0xff] %vm450_vm0, %v9657_v0 }
  0x1c   : > { %467 = vst.msk [vmem:[#allocation2 + $0x80] sm:$0xff] %vm450_vm0, %v9657_v0  ;;  %468 = vst.msk [vmem:[#allocation2 + $0x88] sm:$0xff] %vm450_vm0, %v9657_v0 }
  0x1d   : > { %469 = vst.msk [vmem:[#allocation2 + $0x90] sm:$0xff] %vm450_vm0, %v9657_v0  ;;  %470 = vst.msk [vmem:[#allocation2 + $0x98] sm:$0xff] %vm450_vm0, %v9657_v0 }
  0x1e   : > { %471 = vst.msk [vmem:[#allocation2 + $0xa0] sm:$0xff] %vm450_vm0, %v9657_v0  ;;  %472 = vst.msk [vmem:[#allocation2 + $0xa8] sm:$0xff] %vm450_vm0, %v9657_v0 }
  0x1f   : > { %473 = vst.msk [vmem:[#allocation2 + $0xb0] sm:$0xff] %vm450_vm0, %v9657_v0  ;;  %474 = vst.msk [vmem:[#allocation2 + $0xb8] sm:$0xff] %vm450_vm0, %v9657_v0 }
  0x20   : > { %475 = vst.msk [vmem:[#allocation2 + $0xc0] sm:$0xff] %vm450_vm0, %v9657_v0  ;;  %476 = vst.msk [vmem:[#allocation2 + $0xc8] sm:$0xff] %vm450_vm0, %v9657_v0 }
  0x21   : > { %477 = vst.msk [vmem:[#allocation2 + $0xd0] sm:$0xff] %vm450_vm0, %v9657_v0  ;;  %478 = vst.msk [vmem:[#allocation2 + $0xd8] sm:$0xff] %vm450_vm0, %v9657_v0 }
  0x22   : > { %479 = vst.msk [vmem:[#allocation2 + $0xe0] sm:$0xff] %vm450_vm0, %v9657_v0  ;;  %480 = vst.msk [vmem:[#allocation2 + $0xe8] sm:$0xff] %vm450_vm0, %v9657_v0 }
  0x23   : > { %481 = vst.msk [vmem:[#allocation2 + $0xf0] sm:$0xff] %vm450_vm0, %v9657_v0  ;;  %482 = vst.msk [vmem:[#allocation2 + $0xf8] sm:$0xff] %vm450_vm0, %v9657_v0 }
  0x24   : > { %483 = vst.msk [vmem:[#allocation3] sm:$0xff] %vm450_vm0, %v9657_v0  ;;  %484 = vst.msk [vmem:[#allocation3 + $0x8] sm:$0xff] %vm450_vm0, %v9657_v0 }
  0x25   : > { %485 = vst.msk [vmem:[#allocation3 + $0x10] sm:$0xff] %vm450_vm0, %v9657_v0  ;;  %486 = vst.msk [vmem:[#allocation3 + $0x18] sm:$0xff] %vm450_vm0, %v9657_v0 }
  0x26   : > { %487 = vst.msk [vmem:[#allocation3 + $0x20] sm:$0xff] %vm450_vm0, %v9657_v0  ;;  %488 = vst.msk [vmem:[#allocation3 + $0x28] sm:$0xff] %vm450_vm0, %v9657_v0 }
  0x27   : > { %489 = vst.msk [vmem:[#allocation3 + $0x30] sm:$0xff] %vm450_vm0, %v9657_v0  ;;  %490 = vst.msk [vmem:[#allocation3 + $0x38] sm:$0xff] %vm450_vm0, %v9657_v0 }
  0x28   : > { %491 = vst.msk [vmem:[#allocation3 + $0x40] sm:$0xff] %vm450_vm0, %v9657_v0  ;;  %492 = vst.msk [vmem:[#allocation3 + $0x48] sm:$0xff] %vm450_vm0, %v9657_v0 }
  0x29   : > { %493 = vst.msk [vmem:[#allocation3 + $0x50] sm:$0xff] %vm450_vm0, %v9657_v0  ;;  %494 = vst.msk [vmem:[#allocation3 + $0x58] sm:$0xff] %vm450_vm0, %v9657_v0 }
  0x2a   : > { %495 = vst.msk [vmem:[#allocation3 + $0x60] sm:$0xff] %vm450_vm0, %v9657_v0  ;;  %496 = vst.msk [vmem:[#allocation3 + $0x68] sm:$0xff] %vm450_vm0, %v9657_v0 }
  0x2b   : > { %497 = vst.msk [vmem:[#allocation3 + $0x70] sm:$0xff] %vm450_vm0, %v9657_v0  ;;  %498 = vst.msk [vmem:[#allocation3 + $0x78] sm:$0xff] %vm450_vm0, %v9657_v0 }
  0x2c   : > { %499 = vst.msk [vmem:[#allocation3 + $0x80] sm:$0xff] %vm450_vm0, %v9657_v0  ;;  %500 = vst.msk [vmem:[#allocation3 + $0x88] sm:$0xff] %vm450_vm0, %v9657_v0 }
  0x2d   : > { %501 = vst.msk [vmem:[#allocation3 + $0x90] sm:$0xff] %vm450_vm0, %v9657_v0  ;;  %502 = vst.msk [vmem:[#allocation3 + $0x98] sm:$0xff] %vm450_vm0, %v9657_v0 }
  0x2e   : > { %503 = vst.msk [vmem:[#allocation3 + $0xa0] sm:$0xff] %vm450_vm0, %v9657_v0  ;;  %504 = vst.msk [vmem:[#allocation3 + $0xa8] sm:$0xff] %vm450_vm0, %v9657_v0 }
  0x2f   : > { %505 = vst.msk [vmem:[#allocation3 + $0xb0] sm:$0xff] %vm450_vm0, %v9657_v0  ;;  %506 = vst.msk [vmem:[#allocation3 + $0xb8] sm:$0xff] %vm450_vm0, %v9657_v0 }
  0x30   : > { %507 = vst.msk [vmem:[#allocation3 + $0xc0] sm:$0xff] %vm450_vm0, %v9657_v0  ;;  %508 = vst.msk [vmem:[#allocation3 + $0xc8] sm:$0xff] %vm450_vm0, %v9657_v0 }
  0x31   : > { %509 = vst.msk [vmem:[#allocation3 + $0xd0] sm:$0xff] %vm450_vm0, %v9657_v0  ;;  %510 = vst.msk [vmem:[#allocation3 + $0xd8] sm:$0xff] %vm450_vm0, %v9657_v0 }
  0x32   : > { %511 = vst.msk [vmem:[#allocation3 + $0xe0] sm:$0xff] %vm450_vm0, %v9657_v0  ;;  %512 = vst.msk [vmem:[#allocation3 + $0xe8] sm:$0xff] %vm450_vm0, %v9657_v0 }
  0x33   : > { %513 = vst.msk [vmem:[#allocation3 + $0xf0] sm:$0xff] %vm450_vm0, %v9657_v0  ;;  %514 = vst.msk [vmem:[#allocation3 + $0xf8] sm:$0xff] %vm450_vm0, %v9657_v0 }
  0x34 PF: > { %v547_v2 = vld [vmem:[#allocation2] sm:$0xff]  ;;  %v548_v3 = vld [vmem:[#allocation2 + $0x8] sm:$0xff]  ;;  %s9658_s17 = smov 4   ;;  %v581_v7 = vld [vmem:[#allocation3 + $0x10] sm:$0xff]  ;;  %s9659_s18 = smov 36   ;;  %v15299_v28 = vmov 0.0  }
  0x35   : > { %v549_v1 = vld [vmem:[#allocation2 + $0x10] sm:$0xff]  ;;  %v8222_v4 = vpack.i.bf16 %v548_v3, %v547_v2  ;;  %v579_v5 = vld [vmem:[#allocation3] sm:$0xff]  ;;  %v580_v6 = vld [vmem:[#allocation3 + $0x8] sm:$0xff]  ;;  %v9929_v29 = vrot.slane %v15299_v28, 7  ;;  %vm966_vm1 = vcmask 1040384   ;;  %vm1213_vm2 = vcmask 1045504  }
  0x36   : > { %647 = vrot.lane.b32.xlu1 %v549_v1, %s9658_s17  ;;  %v8227_v8 = vpack.i.bf16 %v580_v6, %v579_v5  ;;  %v582_v9 = vld [vmem:[#allocation3 + $0x18] sm:$0xff]  ;;  %v583_v11 = vld [vmem:[#allocation3 + $0x20] sm:$0xff]  ;;  %v584_v13 = vld [vmem:[#allocation3 + $0x28] sm:$0xff]  ;;  %vm1132_vm3 = vcmask 1046528   ;;  %v15301_v46 = vmov 0.0|0.0   ;;  %s9662_s27 = smov 8  }
  0x37   : > { %8223 = vrot.lane.b32.xlu0 %v8222_v4, %s9658_s17  ;;  %v550_v10 = vld [vmem:[#allocation2 + $0x18] sm:$0xff]  ;;  %v551_v12 = vld [vmem:[#allocation2 + $0x20] sm:$0xff]  ;;  %v552_v14 = vld [vmem:[#allocation2 + $0x28] sm:$0xff]  ;;  %15538 = vst [vmem:[#allocation6_spill] sm:$0xff] %v9929_v29  ;;  %v9935_v32 = vsel %vm966_vm1, 0.0, %v9929_v29  ;;  %v1083_v33 = vsel %vm966_vm1, %v9929_v29, 0.0  ;;  %7870 = vmatprep.subr.bf16.mxu0 %v15301_v46 }
  0x38   : > { %v585_v15 = vld [vmem:[#allocation3 + $0x30] sm:$0xff]  ;;  %v586_v17 = vld [vmem:[#allocation3 + $0x38] sm:$0xff]  ;;  %v587_v19 = vld [vmem:[#allocation3 + $0x40] sm:$0xff]  ;;  %15539 = vst [vmem:[#allocation7_spill] sm:$0xff] %v9935_v32  ;;  %v1214_v36 = vrot.slane %v9935_v32, 2  ;;  %v1215_v37 = vrot.slane %v9929_v29, 2 }
  0x39   : > { %v553_v16 = vld [vmem:[#allocation2 + $0x30] sm:$0xff]  ;;  %v554_v18 = vld [vmem:[#allocation2 + $0x38] sm:$0xff]  ;;  %v555_v20 = vld [vmem:[#allocation2 + $0x40] sm:$0xff]  ;;  %v1217_v38 = vrot.slane %v1083_v33, 2  ;;  %v1133_v40 = vrot.slane %v9935_v32, 1  ;;  %v1134_v41 = vrot.slane %v9929_v29, 1 }
  0x3a   : > { %775 = vrot.lane.b32.xlu1 %v581_v7, %s9659_s18  ;;  %v588_v21 = vld [vmem:[#allocation3 + $0x48] sm:$0xff]  ;;  %v589_v23 = vld [vmem:[#allocation3 + $0x50] sm:$0xff]  ;;  %v590_v25 = vld [vmem:[#allocation3 + $0x58] sm:$0xff]  ;;  %v1136_v42 = vrot.slane %v1083_v33, 1  ;;  %v9947_v44 = vsel %vm1213_vm2, %v1214_v36, %v1215_v37  ;;  %s9663_s14 = smov 68   ;;  %vm867_vm4 = vcmask 31744  }
  0x3b   : > { %8228 = vrot.lane.b32.xlu0 %v8227_v8, %s9659_s18  ;;  %v556_v22 = vld [vmem:[#allocation2 + $0x48] sm:$0xff]  ;;  %v557_v24 = vld [vmem:[#allocation2 + $0x50] sm:$0xff]  ;;  %v558_v26 = vld [vmem:[#allocation2 + $0x58] sm:$0xff]  ;;  %15540 = vst [vmem:[#allocation8_spill] sm:$0xff] %v9947_v44  ;;  %v9950_v45 = vsel %vm1213_vm2, %v1215_v37, %v1217_v38  ;;  %v9955_v48 = vsel %vm1132_vm3, %v1133_v40, %v1134_v41  ;;  %vm900_vm5 = vcmask 293888   ;;  %s9664_s24 = smov 76  }
  0x3c   : > { %v591_v27 = vld [vmem:[#allocation3 + $0x60] sm:$0xff]  ;;  %v592_v31 = vld [vmem:[#allocation3 + $0x68] sm:$0xff]  ;;  %v593_v35 = vld [vmem:[#allocation3 + $0x70] sm:$0xff]  ;;  %15541 = vst [vmem:[#allocation9_spill] sm:$0xff] %v9950_v45  ;;  %v9958_v49 = vsel %vm1132_vm3, %v1134_v41, %v1136_v42  ;;  %v9963_v50 = vpack.i.bf16 %v9950_v45, %v9947_v44  ;;  %vm2107_vm6 = vcmask 64512   ;;  %vm2140_vm7 = vcmask 621568  }
  0x3d   : > { %v559_v30 = vld [vmem:[#allocation2 + $0x60] sm:$0xff]  ;;  %v560_v34 = vld [vmem:[#allocation2 + $0x68] sm:$0xff]  ;;  %v561_v39 = vld [vmem:[#allocation2 + $0x70] sm:$0xff]  ;;  %15542 = vst [vmem:[#allocation10_spill] sm:$0xff] %v9955_v48  ;;  %v8232_v54 = vpack.i.bf16 %v9958_v49, %v9955_v48  ;;  %vm2074_vm8 = vcmask 556032   ;;  %s9665_s13 = smov 84  }
  0x3e   : > { %777 = vrot.lane.b32.xlu1 %v582_v9, %s9659_s18  ;;  %v594_v43 = vld [vmem:[#allocation3 + $0x78] sm:$0xff]  ;;  %15543 = vst [vmem:[#allocation11_spill] sm:$0xff] %v9958_v49  ;;  %15544 = vst [vmem:[#allocation12_spill] sm:$0xff] %v9963_v50  ;;  %v2338_v51 = vld [vmem:[%s15288_s1] sm:$0xff]  ;;  %s9666_s25 = smov 16   ;;  %s9668_s26 = smov 24  }
  0x3f   : > { %649 = vrot.lane.b32.xlu0 %v550_v10, %s9658_s17  ;;  %v562_v47 = vld [vmem:[#allocation2 + $0x78] sm:$0xff]  ;;  %v2339_v52 = vld [vmem:[%s15288_s1 + $0x8] sm:$0xff]  ;;  %v2340_v55 = vld [vmem:[%s15288_s1 + $0x10] sm:$0xff]  ;;  %s9669_s16 = smov 32   ;;  %vm2519_vm9 = vcmask 1043456   ;;  %vm2239_vm10 = vcmask 195584  }
  0x40   : > { %v7871_v53 = vpack.c.bf16 %v2339_v52, %v2338_v51  ;;  %v2341_v56 = vld [vmem:[%s15288_s1 + $0x18] sm:$0xff]  ;;  %v563_v57 = vld [vmem:[#allocation2 + $0x80] sm:$0xff]  ;;  %v2343_v61 = vld [vmem:[%s15288_s1 + $0x28] sm:$0xff]  ;;  %vm2272_vm11 = vcmask 752640   ;;  %vm2173_vm12 = vcmask 130048   ;;  %vm2206_vm13 = vcmask 687104  }
  0x41   : > { %v7874_v58 = vpack.c.bf16 %v2341_v56, %v2340_v55  ;;  %v595_v59 = vld [vmem:[#allocation3 + $0x80] sm:$0xff]  ;;  %v564_v62 = vld [vmem:[#allocation2 + $0x88] sm:$0xff]  ;;  %v2344_v1 = vld [vmem:[%s15288_s1 + $0x30] sm:$0xff]  ;;  %vm2305_vm14 = vcmask 261120   ;;  %vm2422_vm15 = vcmask 818176   ;;  %vm9670_vm0 = vmmov 0  }
  0x42   : > { %779 = vrot.lane.b32.xlu1 %v583_v11, %s9659_s18  ;;  %7872 = vmatpush1.bf16.msra.mxu0 %v7871_v53  ;;  %v2342_v60 = vld [vmem:[%s15288_s1 + $0x20] sm:$0xff]  ;;  %v596_v0 = vld [vmem:[#allocation3 + $0x88] sm:$0xff]  ;;  %v2345_v2 = vld [vmem:[%s15288_s1 + $0x38] sm:$0xff]  ;;  %s9671_s23 = smov 64  }
  0x43   : > { %651 = vrot.lane.b32.xlu0 %v551_v12, %s9658_s17  ;;  %7873 = vmatprep.subr.bf16.mxu0 %v15301_v46  ;;  %v7877_v63 = vpack.c.bf16 %v2343_v61, %v2342_v60  ;;  %v597_v3 = vld [vmem:[#allocation3 + $0x90] sm:$0xff]  ;;  %v7880_v4 = vpack.c.bf16 %v2345_v2, %v2344_v1  ;;  %v2346_v6 = vld [vmem:[%s15288_s1 + $0x40] sm:$0xff]  ;;  %v2347_v7 = vld [vmem:[%s15288_s1 + $0x48] sm:$0xff] }
  0x44   : > { %v565_v5 = vld [vmem:[#allocation2 + $0x90] sm:$0xff]  ;;  %v598_v8 = vld [vmem:[#allocation3 + $0x98] sm:$0xff]  ;;  %v7883_v9 = vpack.c.bf16 %v2347_v7, %v2346_v6  ;;  %v571_v36 = vld [vmem:[#allocation2 + $0xc0] sm:$0xff] }
  0x45   : > { %v566_v10 = vld [vmem:[#allocation2 + $0x98] sm:$0xff]  ;;  %v2348_v11 = vld [vmem:[%s15288_s1 + $0x50] sm:$0xff]  ;;  %v603_v38 = vld [vmem:[#allocation3 + $0xc0] sm:$0xff] }
  0x46   : > { %781 = vrot.lane.b32.xlu1 %v584_v13, %s9659_s18  ;;  %7875 = vmatpush1.bf16.msra.mxu0 %v7874_v58  ;;  %v2349_v12 = vld [vmem:[%s15288_s1 + $0x58] sm:$0xff]  ;;  %v567_v13 = vld [vmem:[#allocation2 + $0xa0] sm:$0xff]  ;;  %v2359_v40 = vld [vmem:[%s15288_s1 + $0xa8] sm:$0xff] }
  0x47   : > { %653 = vrot.lane.b32.xlu0 %v552_v14, %s9658_s17  ;;  %7876 = vmatprep.subr.bf16.mxu0 %v15301_v46  ;;  %v7886_v14 = vpack.c.bf16 %v2349_v12, %v2348_v11  ;;  %v570_v33 = vld [vmem:[#allocation2 + $0xb8] sm:$0xff]  ;;  %v572_v41 = vld [vmem:[#allocation2 + $0xc8] sm:$0xff]  ;;  %v2362_v52 = vld [vmem:[%s15288_s1 + $0xc0] sm:$0xff] }
  0x48   : > { %v2363_v53 = vld [vmem:[%s15288_s1 + $0xc8] sm:$0xff]  ;;  %v2364_v55 = vld [vmem:[%s15288_s1 + $0xd0] sm:$0xff]  ;;  %v2365_v56 = vld [vmem:[%s15288_s1 + $0xd8] sm:$0xff] }
  0x49   : > { %v2366_v58 = vld [vmem:[%s15288_s1 + $0xe0] sm:$0xff]  ;;  %v2369_v1 = vld [vmem:[%s15288_s1 + $0xf8] sm:$0xff]  ;;  %v604_v45 = vld [vmem:[#allocation3 + $0xc8] sm:$0xff] }
  0x4a   : > { %783 = vrot.lane.b32.xlu1 %v585_v15, %s9659_s18  ;;  %7878 = vmatpush1.bf16.msra.mxu0 %v7877_v63  ;;  %v599_v15 = vld [vmem:[#allocation3 + $0xa0] sm:$0xff]  ;;  %v605_v44 = vld [vmem:[#allocation3 + $0xd0] sm:$0xff] }
  0x4b   : > { %655 = vrot.lane.b32.xlu0 %v553_v16, %s9658_s17  ;;  %7879 = vmatprep.subr.bf16.mxu0 %v15301_v46  ;;  %v2350_v16 = vld [vmem:[%s15288_s1 + $0x60] sm:$0xff] }
  0x4c   : > { %v515_v7 = vld [vmem:[%s9766_s12] sm:$0xff] }
  0x4e   : > { %785 = vrot.lane.b32.xlu1 %v586_v17, %s9659_s18  ;;  %7881 = vmatpush1.bf16.msra.mxu0 %v7880_v4  ;;  %v2351_v17 = vld [vmem:[%s15288_s1 + $0x68] sm:$0xff] }
  0x4f   : > { %657 = vrot.lane.b32.xlu0 %v554_v18, %s9658_s17  ;;  %7882 = vmatprep.subr.bf16.mxu0 %v15301_v46  ;;  %v568_v18 = vld [vmem:[#allocation2 + $0xa8] sm:$0xff] }
  0x52   : > { %787 = vrot.lane.b32.xlu1 %v587_v19, %s9659_s18  ;;  %7884 = vmatpush1.bf16.msra.mxu0 %v7883_v9  ;;  %v7889_v19 = vpack.c.bf16 %v2351_v17, %v2350_v16 }
  0x53   : > { %659 = vrot.lane.b32.xlu0 %v555_v20, %s9658_s17  ;;  %7885 = vmatprep.subr.bf16.mxu0 %v15301_v46  ;;  %v600_v20 = vld [vmem:[#allocation3 + $0xa8] sm:$0xff] }
  0x56   : > { %789 = vrot.lane.b32.xlu1 %v588_v21, %s9659_s18  ;;  %7887 = vmatpush1.bf16.msra.mxu0 %v7886_v14  ;;  %v2352_v21 = vld [vmem:[%s15288_s1 + $0x70] sm:$0xff] }
  0x57   : > { %661 = vrot.lane.b32.xlu0 %v556_v22, %s9658_s17  ;;  %7888 = vmatprep.subr.bf16.mxu0 %v15301_v46  ;;  %v2353_v22 = vld [vmem:[%s15288_s1 + $0x78] sm:$0xff] }
  0x5a   : > { %791 = vrot.lane.b32.xlu1 %v589_v23, %s9659_s18  ;;  %7890 = vmatpush1.bf16.msra.mxu0 %v7889_v19  ;;  %v601_v23 = vld [vmem:[#allocation3 + $0xb0] sm:$0xff] }
  0x5b   : > { %663 = vrot.lane.b32.xlu0 %v557_v24, %s9658_s17  ;;  %7891 = vmatprep.subr.bf16.mxu0 %v15301_v46  ;;  %v7892_v24 = vpack.c.bf16 %v2353_v22, %v2352_v21 }
  0x5e   : > { %793 = vrot.lane.b32.xlu1 %v590_v25, %s9659_s18  ;;  %v569_v25 = vld [vmem:[#allocation2 + $0xb0] sm:$0xff]  ;;  %7893 = vmatpush1.bf16.msra.mxu0 %v7892_v24 }
  0x5f   : > { %665 = vrot.lane.b32.xlu0 %v558_v26, %s9658_s17  ;;  %7894 = vmatprep.subr.bf16.mxu0 %v15301_v46  ;;  %v2354_v26 = vld [vmem:[%s15288_s1 + $0x80] sm:$0xff] }
  0x62   : > { %795 = vrot.lane.b32.xlu1 %v591_v27, %s9659_s18  ;;  %v2355_v27 = vld [vmem:[%s15288_s1 + $0x88] sm:$0xff] }
  0x63   : > { %667 = vrot.lane.b32.xlu0 %v559_v30, %s9658_s17  ;;  %v602_v30 = vld [vmem:[#allocation3 + $0xb8] sm:$0xff] }
  0x66   : > { %797 = vrot.lane.b32.xlu1 %v592_v31, %s9659_s18  ;;  %v7895_v31 = vpack.c.bf16 %v2355_v27, %v2354_v26  ;;  %v519_v26 = vld [vmem:[%s9766_s12 + $0x20] sm:$0xff] }
  0x67   : > { %669 = vrot.lane.b32.xlu0 %v560_v34, %s9658_s17  ;;  %v2356_v34 = vld [vmem:[%s15288_s1 + $0x90] sm:$0xff] }
  0x68   : > { %7896 = vmatpush1.bf16.msra.mxu0 %v7895_v31 }
  0x69   : > { %7897 = vmatprep.subr.bf16.mxu0 %v15301_v46 }
  0x6a   : > { %799 = vrot.lane.b32.xlu1 %v593_v35, %s9659_s18  ;;  %v2357_v35 = vld [vmem:[%s15288_s1 + $0x98] sm:$0xff] }
  0x6b   : > { %671 = vrot.lane.b32.xlu0 %v561_v39, %s9658_s17  ;;  %v7898_v37 = vpack.c.bf16 %v2357_v35, %v2356_v34  ;;  %v2358_v39 = vld [vmem:[%s15288_s1 + $0xa0] sm:$0xff] }
  0x6c   : > { %v7901_v42 = vpack.c.bf16 %v2359_v40, %v2358_v39 }
  0x6d   : > { %7899 = vmatpush1.bf16.msra.mxu0 %v7898_v37 }
  0x6e   : > { %801 = vrot.lane.b32.xlu1 %v594_v43, %s9659_s18  ;;  %7900 = vmatprep.subr.bf16.mxu0 %v15301_v46  ;;  %v2360_v43 = vld [vmem:[%s15288_s1 + $0xb0] sm:$0xff] }
  0x6f   : > { %673 = vrot.lane.b32.xlu0 %v562_v47, %s9658_s17  ;;  %v2361_v47 = vld [vmem:[%s15288_s1 + $0xb8] sm:$0xff] }
  0x70   : > { %v7904_v51 = vpack.c.bf16 %v2361_v47, %v2360_v43 }
  0x71   : > { %7902 = vmatpush1.bf16.msra.mxu0 %v7901_v42 }
  0x72   : > { %8238 = vrot.lane.b32.xlu1 %v9963_v50, %s9662_s27  ;;  %7903 = vmatprep.subr.bf16.mxu0 %v15301_v46 }
  0x73   : > { %8233 = vrot.lane.b32.xlu0 %v8232_v54, %s9663_s14  ;;  %v7907_v54 = vpack.c.bf16 %v2363_v53, %v2362_v52  ;;  %v520_v53 = vld [vmem:[%s9766_s12 + $0x28] sm:$0xff] }
  0x75   : > { %7905 = vmatpush1.bf16.msra.mxu0 %v7904_v51 }
  0x76   : > { %675 = vrot.lane.b32.xlu1 %v563_v57, %s9658_s17  ;;  %7906 = vmatprep.subr.bf16.mxu0 %v15301_v46  ;;  %v7910_v57 = vpack.c.bf16 %v2365_v56, %v2364_v55 }
  0x77   : > { %803 = vrot.lane.b32.xlu0 %v595_v59, %s9659_s18  ;;  %v2367_v59 = vld [vmem:[%s15288_s1 + $0xe8] sm:$0xff] }
  0x78   : > { %v7913_v60 = vpack.c.bf16 %v2367_v59, %v2366_v58 }
  0x79   : > { %7908 = vmatpush1.bf16.msra.mxu0 %v7907_v54 }
  0x7a   : > { %677 = vrot.lane.b32.xlu1 %v564_v62, %s9658_s17  ;;  %7909 = vmatprep.subr.bf16.mxu0 %v15301_v46  ;;  %v517_v62 = vld [vmem:[%s9766_s12 + $0x10] sm:$0xff] }
  0x7b   : > { %805 = vrot.lane.b32.xlu0 %v596_v0, %s9659_s18  ;;  %v2368_v0 = vld [vmem:[%s15288_s1 + $0xf0] sm:$0xff] }
  0x7c   : > { %v7916_v2 = vpack.c.bf16 %v2369_v1, %v2368_v0  ;;  %v521_v0 = vld [vmem:[%s9766_s12 + $0x30] sm:$0xff] }
  0x7d   : > { %7911 = vmatpush1.bf16.msra.mxu0 %v7910_v57 }
  0x7e   : > { %807 = vrot.lane.b32.xlu1 %v597_v3, %s9659_s18  ;;  %7912 = vmatprep.subr.bf16.mxu0 %v15301_v46 }
  0x7f   : > { %679 = vrot.lane.b32.xlu0 %v565_v5, %s9658_s17 }
  0x81   : > { %7914 = vmatpush1.bf16.msra.mxu0 %v7913_v60 }
  0x82   : > { %809 = vrot.lane.b32.xlu1 %v598_v8, %s9659_s18  ;;  %7915 = vmatprep.subr.bf16.mxu0 %v15301_v46  ;;  %v516_v8 = vld [vmem:[%s9766_s12 + $0x8] sm:$0xff] }
  0x83   : > { %681 = vrot.lane.b32.xlu0 %v566_v10, %s9658_s17 }
  0x85   : > { %7917 = vmatpush1.bf16.msra.mxu0 %v7916_v2 }
  0x86   : > { %683 = vrot.lane.b32.xlu1 %v567_v13, %s9658_s17  ;;  %7918 = vmatprep.subr.bf16.mxu0 %v15301_v46 }
  0x87   : > { %811 = vrot.lane.b32.xlu0 %v599_v15, %s9659_s18  ;;  %v518_v15 = vld [vmem:[%s9766_s12 + $0x18] sm:$0xff] }
  0x8a   : > { %685 = vrot.lane.b32.xlu1 %v568_v18, %s9658_s17 }
  0x8b   : > { %813 = vrot.lane.b32.xlu0 %v600_v20, %s9659_s18 }
  0x8e   : > { %815 = vrot.lane.b32.xlu1 %v601_v23, %s9659_s18 }
  0x8f   : > { %687 = vrot.lane.b32.xlu0 %v569_v25, %s9658_s17 }
  0x92   : > { %817 = vrot.lane.b32.xlu1 %v602_v30, %s9659_s18 }
  0x93   : > { %689 = vrot.lane.b32.xlu0 %v570_v33, %s9658_s17 }
  0x96   : > { %691 = vrot.lane.b32.xlu1 %v571_v36, %s9658_s17 }
  0x97   : > { %819 = vrot.lane.b32.xlu0 %v603_v38, %s9659_s18 }
  0x9a   : > { %693 = vrot.lane.b32.xlu1 %v572_v41, %s9658_s17 }
  0xa8   : > { %v648_v61 = vpop.permute.xlu1 %647 }
  0xa9   : > { %v8224_v63 = vpop.permute.xlu0 %8223  ;;  %v870_v6 = vsel %vm867_vm4, %v517_v62, %v648_v61 }
  0xaa   : > { %v8226_v3 = vunpack.i.h.bf16 %v8224_v63  ;;  %v8225_v4 = vunpack.i.l.bf16 %v8224_v63 }
  0xac   : > { %v776_v5 = vpop.permute.xlu1 %775  ;;  %v868_v12 = vsel %vm867_vm4, %v515_v7, %v8225_v4  ;;  %v869_v13 = vsel %vm867_vm4, %v516_v8, %v8226_v3 }
  0xad   : > { %v8229_v9 = vpop.permute.xlu0 %8228  ;;  %v903_v14 = vsel %vm900_vm5, %v870_v6, %v776_v5 }
  0xae   : > { %v8231_v10 = vunpack.i.h.bf16 %v8229_v9  ;;  %v8230_v11 = vunpack.i.l.bf16 %v8229_v9  ;;  %v972_v22 = vrot.slane %v903_v14, 7  ;;  %v522_v9 = vld [vmem:[%s9766_s12 + $0x38] sm:$0xff] }
  0xb0   : > { %v778_v16 = vpop.permute.xlu1 %777  ;;  %v901_v17 = vsel %vm900_vm5, %v868_v12, %v8230_v11  ;;  %v902_v18 = vsel %vm900_vm5, %v869_v13, %v8231_v10  ;;  %v10129_v42 = vsel %vm966_vm1, 0.0, %v972_v22 }
  0xb1   : > { %v969_v19 = vrot.slane %v901_v17, 7  ;;  %v970_v20 = vrot.slane %v902_v18, 7  ;;  %v650_v21 = vpop.permute.xlu0 %649 }
  0xb2   : > { %v871_v23 = vsel %vm867_vm4, %v518_v15, %v650_v21 }
  0xb3   : > { %v1084_v24 = vsel %vm966_vm1, %v970_v20, 0.0  ;;  %v904_v25 = vsel %vm900_vm5, %v871_v23, %v778_v16  ;;  %v10117_v30 = vsel %vm966_vm1, %v969_v19, %v970_v20  ;;  %v10120_v31 = vsel %vm966_vm1, 0.0, %v969_v19  ;;  %v523_v16 = vld [vmem:[%s9766_s12 + $0x40] sm:$0xff] }
  0xb4   : > { %v780_v27 = vpop.permute.xlu1 %779  ;;  %v973_v33 = vrot.slane %v904_v25, 7  ;;  %v8242_v34 = vpack.i.bf16 %v10117_v30, %v10120_v31  ;;  %v1138_v35 = vrot.slane %v10120_v31, 1  ;;  %v1139_v36 = vrot.slane %v10117_v30, 1  ;;  %v524_v25 = vld [vmem:[%s9766_s12 + $0x48] sm:$0xff] }
  0xb5   : > { %v652_v37 = vpop.permute.xlu0 %651  ;;  %v1141_v38 = vrot.slane %v1084_v24, 1  ;;  %v1219_v39 = vrot.slane %v10120_v31, 2  ;;  %v1220_v40 = vrot.slane %v10117_v30, 2  ;;  %v1222_v41 = vrot.slane %v1084_v24, 2 }
  0xb6   : > { %v10132_v43 = vsel %vm966_vm1, %v972_v22, %v973_v33  ;;  %v872_v47 = vsel %vm867_vm4, %v519_v26, %v652_v37  ;;  %8243 = vrot.lane.b32.xlu0 %v8242_v34, %s9664_s24  ;;  %v1140_v51 = vsel %vm1132_vm3, %v1138_v35, %v1139_v36  ;;  %v1085_v19 = vsel %vm966_vm1, %v973_v33, 0.0 }
  0xb7   : > { %v905_v52 = vsel %vm900_vm5, %v872_v47, %v780_v27  ;;  %v10141_v54 = vpack.i.bf16 %v10132_v43, %v10129_v42  ;;  %v1142_v56 = vsel %vm1132_vm3, %v1139_v36, %v1141_v38  ;;  %v1221_v59 = vsel %vm1213_vm2, %v1219_v39, %v1220_v40 }
  0xb8   : > { %v782_v55 = vpop.permute.xlu1 %781  ;;  %v10146_v58 = vpack.i.bf16 %v1142_v56, %v1140_v51  ;;  %v1223_v60 = vsel %vm1213_vm2, %v1220_v40, %v1222_v41  ;;  %v975_v61 = vrot.slane %v905_v52, 7  ;;  %v1227_v34 = vrot.slane %v1085_v19, 2 }
  0xb9   : > { %v654_v57 = vpop.permute.xlu0 %653  ;;  %8248 = vrot.lane.b32.xlu1 %v10141_v54, %s9664_s24  ;;  %v10153_v3 = vpack.i.bf16 %v1223_v60, %v1221_v59  ;;  %v1225_v33 = vrot.slane %v10132_v43, 2  ;;  %v1224_v37 = vrot.slane %v10129_v42, 2  ;;  %v525_v60 = vld [vmem:[%s9766_s12 + $0x50] sm:$0xff] }
  0xba   : > { %v873_v62 = vsel %vm867_vm4, %v520_v53, %v654_v57  ;;  %v10156_v5 = vsel %vm966_vm1, 0.0, %v975_v61 }
  0xbb   : > { %v906_v63 = vsel %vm900_vm5, %v873_v62, %v782_v55  ;;  %v10196_v53 = vsel %vm1213_vm2, %v1224_v37, %v1225_v33  ;;  %v10199_v55 = vsel %vm1213_vm2, %v1225_v33, %v1227_v34  ;;  %v1148_v56 = vrot.slane %v10156_v5, 1 }
  0xbc   : > { %v784_v1 = vpop.permute.xlu1 %783  ;;  %v976_v2 = vrot.slane %v906_v63, 7  ;;  %15546 = vst [vmem:[#allocation14_spill] sm:$0xff] %v10196_v53  ;;  %15547 = vst [vmem:[#allocation15_spill] sm:$0xff] %v10199_v55  ;;  %v1146_v62 = vrot.slane %v1085_v19, 1 }
  0xbd   : > { %v656_v4 = vpop.permute.xlu0 %655 }
  0xbe   : > { %v10159_v6 = vsel %vm966_vm1, %v975_v61, %v976_v2  ;;  %v874_v7 = vsel %vm867_vm4, %v521_v0, %v656_v4  ;;  %v1086_v35 = vsel %vm966_vm1, %v976_v2, 0.0  ;;  %v1144_v61 = vrot.slane %v10132_v43, 1 }
  0xbf   : > { %v907_v8 = vsel %vm900_vm5, %v874_v7, %v784_v1  ;;  %v10166_v10 = vpack.i.bf16 %v10159_v6, %v10156_v5  ;;  %v1149_v41 = vrot.slane %v10159_v6, 1  ;;  %v1151_v51 = vrot.slane %v1086_v35, 1 }
  0xc0   : > { %v786_v11 = vpop.permute.xlu1 %785  ;;  %v978_v13 = vrot.slane %v907_v8, 7  ;;  %v1143_v1 = vrot.slane %v10129_v42, 1  ;;  %v10222_v4 = vpack.i.bf16 %v10199_v55, %v10196_v53  ;;  %v526_v8 = vld [vmem:[%s9766_s12 + $0x58] sm:$0xff]  ;;  %v1230_v34 = vrot.slane %v10159_v6, 2 }
  0xc1   : > { %v658_v12 = vpop.permute.xlu0 %657  ;;  %8253 = vrot.lane.b32.xlu0 %v10166_v10, %s9664_s24  ;;  %v10225_v7 = vsel %vm1132_vm3, %v1148_v56, %v1149_v41 }
  0xc2   : > { %v875_v14 = vsel %vm867_vm4, %v522_v9, %v658_v12  ;;  %v10175_v21 = vsel %vm966_vm1, 0.0, %v978_v13 }
  0xc3   : > { %v908_v15 = vsel %vm900_vm5, %v875_v14, %v786_v11  ;;  %v1234_v19 = vrot.slane %v10175_v21, 2 }
  0xc4   : > { %v788_v17 = vpop.permute.xlu1 %787  ;;  %v979_v18 = vrot.slane %v908_v15, 7 }
  0xc5   : > { %v660_v20 = vpop.permute.xlu0 %659 }
  0xc6   : > { %v10178_v22 = vsel %vm966_vm1, %v978_v13, %v979_v18  ;;  %v876_v23 = vsel %vm867_vm4, %v523_v16, %v660_v20  ;;  %v10203_v57 = vsel %vm966_vm1, %v979_v18, 0.0  ;;  %v10231_v13 = vsel %vm1132_vm3, %v1149_v41, %v1151_v51 }
  0xc7   : > { %v909_v24 = vsel %vm900_vm5, %v876_v23, %v788_v17  ;;  %v10185_v26 = vpack.i.bf16 %v10178_v22, %v10175_v21  ;;  %v1237_v11 = vrot.slane %v10203_v57, 2  ;;  %v1235_v14 = vrot.slane %v10178_v22, 2 }
  0xc8   : > { %v790_v27 = vpop.permute.xlu1 %789  ;;  %v981_v38 = vrot.slane %v909_v24, 7  ;;  %v10242_v17 = vsel %vm1132_vm3, %v1143_v1, %v1144_v61  ;;  %v1232_v18 = vrot.slane %v1086_v35, 2  ;;  %v10247_v23 = vsel %vm1132_vm3, %v1144_v61, %v1146_v62 }
  0xc9   : > { %15545 = vst [vmem:[#allocation13_spill] sm:$0xff] %v10185_v26  ;;  %v662_v36 = vpop.permute.xlu0 %661  ;;  %8258 = vrot.lane.b32.xlu1 %v10185_v26, %s9664_s24  ;;  %v10251_v24 = vpack.i.bf16 %v10231_v13, %v10225_v7  ;;  %v10261_v37 = vsel %vm1213_vm2, %v1235_v14, %v1237_v11  ;;  %v1156_v62 = vrot.slane %v10203_v57, 1 }
  0xca   : > { %v877_v39 = vsel %vm867_vm4, %v524_v25, %v662_v36  ;;  %v10210_v63 = vsel %vm966_vm1, 0.0, %v981_v38  ;;  %v10258_v36 = vsel %vm1213_vm2, %v1234_v19, %v1235_v14  ;;  %15550 = vst [vmem:[#allocation18_spill] sm:$0xff] %v10261_v37 }
  0xcb   : > { %v910_v40 = vsel %vm900_vm5, %v877_v39, %v790_v27  ;;  %15549 = vst [vmem:[#allocation17_spill] sm:$0xff] %v10258_v36  ;;  %v1229_v39 = vrot.slane %v10156_v5, 2  ;;  %v1158_v41 = vrot.slane %v10210_v63, 1  ;;  %v10276_v56 = vpack.i.bf16 %v10261_v37, %v10258_v36 }
  0xcc   : > { %v792_v47 = vpop.permute.xlu1 %791  ;;  %v982_v52 = vrot.slane %v910_v40, 7 }
  0xcd   : > { %8268 = vrot.lane.b32.xlu1 %v10146_v58, %s9663_s14  ;;  %v664_v59 = vpop.permute.xlu0 %663  ;;  %15551 = vst [vmem:[#allocation19_spill] sm:$0xff] %v10276_v56 }
  0xce   : > { %v10213_v0 = vsel %vm966_vm1, %v981_v38, %v982_v52  ;;  %v878_v12 = vsel %vm867_vm4, %v525_v60, %v664_v59  ;;  %v10235_v15 = vsel %vm966_vm1, %v982_v52, 0.0  ;;  %v10272_v52 = vpack.i.bf16 %v10247_v23, %v10242_v17 }
  0xcf   : > { %v10218_v2 = vpack.i.bf16 %v10213_v0, %v10210_v63  ;;  %v911_v25 = vsel %vm900_vm5, %v878_v12, %v792_v47  ;;  %v1161_v35 = vrot.slane %v10235_v15, 1  ;;  %v1159_v38 = vrot.slane %v10213_v0, 1 }
  0xd0   : > { %v794_v9 = vpop.permute.xlu1 %793  ;;  %v984_v47 = vrot.slane %v911_v25, 7  ;;  %v10279_v59 = vsel %vm1213_vm2, %v1229_v39, %v1230_v34  ;;  %v10282_v60 = vsel %vm1213_vm2, %v1230_v34, %v1232_v18  ;;  %v1153_v12 = vrot.slane %v10175_v21, 1 }
  0xd1   : > { %15548 = vst [vmem:[#allocation16_spill] sm:$0xff] %v10218_v2  ;;  %8263 = vrot.lane.b32.xlu0 %v10218_v2, %s9664_s24  ;;  %8283 = vrot.lane.b32.xlu1 %v10222_v4, %s9662_s27  ;;  %v666_v16 = vpop.permute.xlu0 %665  ;;  %15552 = vst [vmem:[#allocation20_spill] sm:$0xff] %v10279_v59  ;;  %v10286_v1 = vsel %vm1132_vm3, %v1158_v41, %v1159_v38  ;;  %v1242_v39 = vrot.slane %v10235_v15, 2 }
  0xd2   : > { %v879_v20 = vsel %vm867_vm4, %v526_v8, %v666_v16  ;;  %15553 = vst [vmem:[#allocation21_spill] sm:$0xff] %v10282_v60  ;;  %15554 = vst [vmem:[#allocation22_spill] sm:$0xff] %v10286_v1  ;;  %v10289_v8 = vsel %vm1132_vm3, %v1159_v38, %v1161_v35  ;;  %v10298_v57 = vsel %vm966_vm1, 0.0, %v984_v47  ;;  %v10305_v16 = vpack.i.bf16 %v10282_v60, %v10279_v59  ;;  %v527_v35 = vld [vmem:[%s9766_s12 + $0x60] sm:$0xff]  ;;  %v528_v38 = vld [vmem:[%s9766_s12 + $0x68] sm:$0xff] }
  0xd3   : > { %v912_v27 = vsel %vm900_vm5, %v879_v20, %v794_v9  ;;  %15555 = vst [vmem:[#allocation23_spill] sm:$0xff] %v10289_v8  ;;  %v1154_v9 = vrot.slane %v10178_v22, 1  ;;  %v10309_v18 = vpack.i.bf16 %v10289_v8, %v10286_v1  ;;  %v1244_v50 = vrot.slane %v10298_v57, 2 }
  0xd4   : > { %v796_v33 = vpop.permute.xlu1 %795  ;;  %v985_v51 = vrot.slane %v912_v27, 7 }
  0xd5   : > { %8273 = vrot.lane.b32.xlu0 %v10153_v3, %s9662_s27  ;;  %8288 = vrot.lane.b32.xlu1 %v10251_v24, %s9663_s14  ;;  %v668_v40 = vpop.permute.xlu0 %667  ;;  %15556 = vst [vmem:[#allocation24_spill] sm:$0xff] %v10309_v18  ;;  %v10314_v20 = vsel %vm1132_vm3, %v1153_v12, %v1154_v9  ;;  %v10317_v25 = vsel %vm1132_vm3, %v1154_v9, %v1156_v62  ;;  %v1239_v9 = vrot.slane %v10210_v63, 2 }
  0xd6   : > { %v10301_v14 = vsel %vm966_vm1, %v984_v47, %v985_v51  ;;  %15557 = vst [vmem:[#allocation25_spill] sm:$0xff] %v10314_v20  ;;  %v10332_v41 = vpack.i.bf16 %v10317_v25, %v10314_v20  ;;  %v1240_v47 = vrot.slane %v10213_v0, 2  ;;  %v1089_v12 = vsel %vm966_vm1, %v985_v51, 0.0 }
  0xd7   : > { %v10325_v27 = vpack.i.bf16 %v10301_v14, %v10298_v57  ;;  %v880_v28 = vsel %vm867_vm4, %v527_v35, %v668_v40  ;;  %v1247_v36 = vrot.slane %v1089_v12, 2  ;;  %v1164_v59 = vrot.slane %v10301_v14, 1 }
  0xd8   : > { %v798_v61 = vpop.permute.xlu1 %797  ;;  %15559 = vst [vmem:[#allocation27_spill] sm:$0xff] %v10332_v41  ;;  %v10345_v48 = vsel %vm1213_vm2, %v1239_v9, %v1240_v47  ;;  %v10348_v51 = vsel %vm1213_vm2, %v1240_v47, %v1242_v39  ;;  %v913_v37 = vsel %vm900_vm5, %v880_v28, %v796_v33 }
  0xd9   : > { %8278 = vrot.lane.b32.xlu0 %v10272_v52, %s9663_s14  ;;  %8303 = vrot.lane.b32.xlu1 %v10276_v56, %s9662_s27  ;;  %v670_v11 = vpop.permute.xlu0 %669  ;;  %15558 = vst [vmem:[#allocation26_spill] sm:$0xff] %v10325_v27  ;;  %15560 = vst [vmem:[#allocation28_spill] sm:$0xff] %v10345_v48  ;;  %v987_v39 = vrot.slane %v913_v37, 7  ;;  %v10361_v47 = vpack.i.bf16 %v10348_v51, %v10345_v48 }
  0xda   : > { %v881_v15 = vsel %vm867_vm4, %v528_v38, %v670_v11  ;;  %15561 = vst [vmem:[#allocation29_spill] sm:$0xff] %v10348_v51  ;;  %v1245_v11 = vrot.slane %v10301_v14, 2  ;;  %v606_v38 = vld [vmem:[#allocation3 + $0xd8] sm:$0xff]  ;;  %v1166_v51 = vrot.slane %v1089_v12, 1 }
  0xdb   : > { %v914_v40 = vsel %vm900_vm5, %v881_v15, %v798_v61  ;;  %15562 = vst [vmem:[#allocation30_spill] sm:$0xff] %v10361_v47  ;;  %v1163_v61 = vrot.slane %v10298_v57, 1  ;;  %v573_v15 = vld [vmem:[#allocation2 + $0xd0] sm:$0xff] }
  0xdc   : > { %v10311_v19 = vpop.permute.xlu1 %799  ;;  %v988_v9 = vrot.slane %v914_v40, 7  ;;  %v10364_v28 = vsel %vm1213_vm2, %v1244_v50, %v1245_v11  ;;  %v10367_v33 = vsel %vm1213_vm2, %v1245_v11, %v1247_v36  ;;  %v10376_v40 = vsel %vm966_vm1, 0.0, %v987_v39 }
  0xdd   : > { %8293 = vrot.lane.b32.xlu0 %v10305_v16, %s9662_s27  ;;  %8308 = vrot.lane.b32.xlu1 %v10309_v18, %s9663_s14  ;;  %v672_v34 = vpop.permute.xlu0 %671  ;;  %15563 = vst [vmem:[#allocation31_spill] sm:$0xff] %v10364_v28  ;;  %15564 = vst [vmem:[#allocation32_spill] sm:$0xff] %v10367_v33  ;;  %v10386_v11 = vpack.i.bf16 %v10367_v33, %v10364_v28  ;;  %v574_v33 = vld [vmem:[#allocation2 + $0xd8] sm:$0xff]  ;;  %v575_v28 = vld [vmem:[#allocation2 + $0xe0] sm:$0xff]  ;;  %v1168_v12 = vrot.slane %v10376_v40, 1  ;;  %v10404_v53 = vsel %vm1132_vm3, %v1164_v59, %v1166_v51 }
  0xde   : > { %v10379_v50 = vsel %vm966_vm1, %v987_v39, %v988_v9  ;;  %v10382_v36 = vsel %vm966_vm1, %v988_v9, 0.0  ;;  %15567 = vst [vmem:[#allocation35_spill] sm:$0xff] %v10404_v53 }
  0xdf   : > { %15565 = vst [vmem:[#allocation33_spill] sm:$0xff] %v10386_v11  ;;  %v1171_v9 = vrot.slane %v10382_v36, 1 }
  0xe0   : > { %v802_v62 = vpop.permute.xlu1 %801 }
  0xe1   : > { %8298 = vrot.lane.b32.xlu0 %v10332_v41, %s9663_s14  ;;  %8318 = vrot.lane.b32.xlu1 %v10325_v27, %s9664_s24  ;;  %v674_v46 = vpop.permute.xlu0 %673  ;;  %v532_v27 = vld [vmem:[%s9766_s12 + $0x88] sm:$0xff] }
  0xe4   : > { %v10350_v49 = vpop.permute.xlu1 %8238 }
  0xe5   : > { %821 = vrot.lane.b32.xlu0 %v604_v45, %s9659_s18  ;;  %823 = vrot.lane.b32.xlu1 %v605_v44, %s9659_s18  ;;  %v10357_v35 = vpop.permute.xlu0 %8233  ;;  %v529_v44 = vld [vmem:[%s9766_s12 + $0x70] sm:$0xff]  ;;  %v530_v45 = vld [vmem:[%s9766_s12 + $0x78] sm:$0xff] }
  0xe6   : > { %v882_v48 = vsel %vm867_vm4, %v529_v44, %v672_v34  ;;  %v883_v60 = vsel %vm867_vm4, %v530_v45, %v674_v46  ;;  %v1169_v34 = vrot.slane %v10379_v50, 1 }
  0xe7   : > { %v915_v46 = vsel %vm900_vm5, %v882_v48, %v10311_v19  ;;  %v916_v44 = vsel %vm900_vm5, %v883_v60, %v802_v62 }
  0xe8   : > { %v676_v55 = vpop.permute.xlu1 %675  ;;  %v990_v18 = vrot.slane %v915_v46, 7  ;;  %v991_v41 = vrot.slane %v916_v44, 7  ;;  %v10411_v48 = vsel %vm1132_vm3, %v1168_v12, %v1169_v34  ;;  %v10414_v60 = vsel %vm1132_vm3, %v1169_v34, %v1171_v9  ;;  %v534_v12 = vld [vmem:[%s9766_s12 + $0x98] sm:$0xff]  ;;  %v607_v44 = vld [vmem:[#allocation3 + $0xe0] sm:$0xff] }
  0xe9   : > { %8313 = vrot.lane.b32.xlu0 %v10361_v47, %s9662_s27  ;;  %825 = vrot.lane.b32.xlu1 %v606_v38, %s9659_s18  ;;  %v804_v37 = vpop.permute.xlu0 %803  ;;  %v576_v47 = vld [vmem:[#allocation2 + $0xe8] sm:$0xff]  ;;  %15568 = vst [vmem:[#allocation36_spill] sm:$0xff] %v10411_v48  ;;  %15569 = vst [vmem:[#allocation37_spill] sm:$0xff] %v10414_v60 }
  0xea   : > { %v10433_v9 = vsel %vm966_vm1, %v990_v18, %v991_v41 }
  0xec   : > { %v678_v38 = vpop.permute.xlu1 %677 }
  0xed   : > { %695 = vrot.lane.b32.xlu0 %v573_v15, %s9658_s17  ;;  %8328 = vrot.lane.b32.xlu1 %v10386_v11, %s9662_s27  ;;  %v806_v39 = vpop.permute.xlu0 %805  ;;  %v10401_v15 = vsel %vm1132_vm3, %v1163_v61, %v1164_v59  ;;  %v531_v11 = vld [vmem:[%s9766_s12 + $0x80] sm:$0xff]  ;;  %v885_v51 = vsel %vm867_vm4, %v532_v27, %v678_v38  ;;  %v10430_v61 = vsel %vm966_vm1, 0.0, %v990_v18  ;;  %v533_v38 = vld [vmem:[%s9766_s12 + $0x90] sm:$0xff] }
  0xee   : > { %15566 = vst [vmem:[#allocation34_spill] sm:$0xff] %v10401_v15  ;;  %v10418_v59 = vpack.i.bf16 %v10404_v53, %v10401_v15  ;;  %v884_v62 = vsel %vm867_vm4, %v531_v11, %v676_v55  ;;  %v10437_v55 = vpack.i.bf16 %v10379_v50, %v10376_v40  ;;  %v918_v11 = vsel %vm900_vm5, %v885_v51, %v806_v39 }
  0xef   : > { %v917_v27 = vsel %vm900_vm5, %v884_v62, %v804_v37  ;;  %v10447_v18 = vpack.i.bf16 %v10433_v9, %v10430_v61  ;;  %v994_v37 = vrot.slane %v918_v11, 7  ;;  %v1252_v39 = vrot.slane %v10382_v36, 2 }
  0xf0   : > { %v808_v45 = vpop.permute.xlu1 %807  ;;  %15570 = vst [vmem:[#allocation38_spill] sm:$0xff] %v10418_v59  ;;  %15572 = vst [vmem:[#allocation40_spill] sm:$0xff] %v10437_v55  ;;  %v993_v46 = vrot.slane %v917_v27, 7  ;;  %v1249_v62 = vrot.slane %v10376_v40, 2  ;;  %v1250_v51 = vrot.slane %v10379_v50, 2  ;;  %v535_v27 = vld [vmem:[%s9766_s12 + $0xa0] sm:$0xff] }
  0xf1   : > { %697 = vrot.lane.b32.xlu0 %v574_v33, %s9658_s17  ;;  %699 = vrot.lane.b32.xlu1 %v575_v28, %s9658_s17  ;;  %v680_v8 = vpop.permute.xlu0 %679  ;;  %v10427_v28 = vpack.i.bf16 %v10414_v60, %v10411_v48  ;;  %15573 = vst [vmem:[#allocation41_spill] sm:$0xff] %v10447_v18  ;;  %v10470_v48 = vsel %vm966_vm1, %v994_v37, 0.0  ;;  %v1255_v53 = vrot.slane %v10433_v9, 2 }
  0xf2   : > { %v886_v60 = vsel %vm867_vm4, %v533_v38, %v680_v8  ;;  %v10464_v11 = vsel %vm966_vm1, 0.0, %v993_v46  ;;  %v10467_v36 = vsel %vm966_vm1, %v993_v46, %v994_v37  ;;  %v608_v8 = vld [vmem:[#allocation3 + $0xe8] sm:$0xff]  ;;  %v10475_v15 = vsel %vm1213_vm2, %v1249_v62, %v1250_v51 }
  0xf3   : > { %15571 = vst [vmem:[#allocation39_spill] sm:$0xff] %v10427_v28  ;;  %15574 = vst [vmem:[#allocation42_spill] sm:$0xff] %v10475_v15  ;;  %v1254_v37 = vrot.slane %v10430_v61, 2  ;;  %v1178_v1 = vrot.slane %v10464_v11, 1  ;;  %v1262_v2 = vrot.slane %v10470_v48, 2 }
  0xf4   : > { %v810_v19 = vpop.permute.xlu1 %809 }
  0xf5   : > { %8323 = vrot.lane.b32.xlu0 %v10418_v59, %s9663_s14  ;;  %701 = vrot.lane.b32.xlu1 %v576_v47, %s9658_s17  ;;  %v682_v33 = vpop.permute.xlu0 %681  ;;  %v10457_v59 = vsel %vm966_vm1, %v991_v41, 0.0  ;;  %v536_v41 = vld [vmem:[%s9766_s12 + $0xa8] sm:$0xff] }
  0xf6   : > { %v1257_v46 = vrot.slane %v10457_v59, 2 }
  0xf8   : > { %v684_v47 = vpop.permute.xlu1 %683 }
  0xf9   : > { %8333 = vrot.lane.b32.xlu0 %v10437_v55, %s9664_s24  ;;  %8338 = vrot.lane.b32.xlu1 %v10427_v28, %s9663_s14  ;;  %v812_v34 = vpop.permute.xlu0 %811  ;;  %v887_v28 = vsel %vm867_vm4, %v534_v12, %v682_v33  ;;  %v609_v33 = vld [vmem:[#allocation3 + $0xf0] sm:$0xff]  ;;  %v888_v56 = vsel %vm867_vm4, %v535_v27, %v684_v47  ;;  %v10497_v27 = vsel %vm1213_vm2, %v1254_v37, %v1255_v53 }
  0xfa   : > { %v920_v55 = vsel %vm900_vm5, %v887_v28, %v810_v19  ;;  %v921_v47 = vsel %vm900_vm5, %v888_v56, %v812_v34  ;;  %15577 = vst [vmem:[#allocation45_spill] sm:$0xff] %v10497_v27  ;;  %v1173_v34 = vrot.slane %v10430_v61, 1 }
  0xfb   : > { %v997_v62 = vrot.slane %v920_v55, 7  ;;  %v999_v37 = vrot.slane %v921_v47, 7 }
  0xfc   : > { %v686_v38 = vpop.permute.xlu1 %685 }
  0xfd   : > { %827 = vrot.lane.b32.xlu0 %v607_v44, %s9659_s18  ;;  %8348 = vrot.lane.b32.xlu1 %v10447_v18, %s9664_s24  ;;  %v814_v12 = vpop.permute.xlu0 %813  ;;  %v919_v44 = vsel %vm900_vm5, %v886_v60, %v808_v45  ;;  %v10478_v18 = vsel %vm1213_vm2, %v1250_v51, %v1252_v39  ;;  %v1181_v45 = vrot.slane %v10470_v48, 1  ;;  %v1179_v60 = vrot.slane %v10467_v36, 1  ;;  %v610_v39 = vld [vmem:[#allocation3 + $0xf8] sm:$0xff] }
  0xfe   : > { %15575 = vst [vmem:[#allocation43_spill] sm:$0xff] %v10478_v18  ;;  %v889_v19 = vsel %vm867_vm4, %v536_v41, %v686_v38  ;;  %v996_v28 = vrot.slane %v919_v44, 7  ;;  %v10493_v20 = vpack.i.bf16 %v10478_v18, %v10475_v15  ;;  %v1093_v44 = vsel %vm966_vm1, %v997_v62, 0.0  ;;  %v538_v18 = vld [vmem:[%s9766_s12 + $0xb8] sm:$0xff] }
  0xff   : > { %v10507_v55 = vsel %vm1132_vm3, %v1178_v1, %v1179_v60  ;;  %v10510_v56 = vsel %vm1132_vm3, %v1179_v60, %v1181_v45  ;;  %v1176_v60 = vrot.slane %v10457_v59, 1  ;;  %v1267_v15 = vrot.slane %v1093_v44, 2  ;;  %v578_v59 = vld [vmem:[#allocation2 + $0xf8] sm:$0xff] }
 0x100   : > { %15576 = vst [vmem:[#allocation44_spill] sm:$0xff] %v10493_v20  ;;  %15579 = vst [vmem:[#allocation47_spill] sm:$0xff] %v10507_v55  ;;  %v816_v38 = vpop.permute.xlu1 %815  ;;  %v10515_v41 = vsel %vm966_vm1, 0.0, %v996_v28 }
 0x101   : > { %829 = vrot.lane.b32.xlu0 %v608_v8, %s9659_s18  ;;  %831 = vrot.lane.b32.xlu1 %v609_v33, %s9659_s18  ;;  %v688_v51 = vpop.permute.xlu0 %687  ;;  %v10500_v8 = vsel %vm1213_vm2, %v1255_v53, %v1257_v46  ;;  %v922_v33 = vsel %vm900_vm5, %v889_v19, %v814_v12  ;;  %15580 = vst [vmem:[#allocation48_spill] sm:$0xff] %v10510_v56  ;;  %v1174_v53 = vrot.slane %v10433_v9, 1  ;;  %v577_v46 = vld [vmem:[#allocation2 + $0xf0] sm:$0xff] }
 0x102   : > { %15578 = vst [vmem:[#allocation46_spill] sm:$0xff] %v10500_v8  ;;  %v10518_v12 = vsel %vm966_vm1, %v996_v28, %v997_v62  ;;  %v10523_v1 = vpack.i.bf16 %v10500_v8, %v10497_v27  ;;  %v1000_v45 = vrot.slane %v922_v33, 7  ;;  %v537_v19 = vld [vmem:[%s9766_s12 + $0xb0] sm:$0xff]  ;;  %v10533_v28 = vpack.i.bf16 %v10510_v56, %v10507_v55 }
 0x103   : > { %v1264_v62 = vrot.slane %v10515_v41, 2  ;;  %v1265_v47 = vrot.slane %v10518_v12, 2  ;;  %v10538_v33 = vsel %vm966_vm1, 0.0, %v999_v37  ;;  %v10541_v27 = vsel %vm1132_vm3, %v1173_v34, %v1174_v53 }
 0x104   : > { %15581 = vst [vmem:[#allocation49_spill] sm:$0xff] %v10523_v1  ;;  %15582 = vst [vmem:[#allocation50_spill] sm:$0xff] %v10533_v28  ;;  %v10547_v8 = vsel %vm966_vm1, %v1000_v45, 0.0  ;;  %v890_v56 = vsel %vm867_vm4, %v537_v19, %v688_v51  ;;  %v818_v55 = vpop.permute.xlu1 %817  ;;  %v10554_v26 = vsel %vm1132_vm3, %v1174_v53, %v1176_v60  ;;  %v1260_v34 = vrot.slane %v10467_v36, 2 }
 0x105   : > { %8343 = vrot.lane.b32.xlu0 %v10493_v20, %s9662_s27  ;;  %833 = vrot.lane.b32.xlu1 %v610_v39, %s9659_s18  ;;  %v690_v39 = vpop.permute.xlu0 %689  ;;  %15583 = vst [vmem:[#allocation51_spill] sm:$0xff] %v10541_v27  ;;  %v1259_v20 = vrot.slane %v10464_v11, 2  ;;  %15585 = vst [vmem:[#allocation53_spill] sm:$0xff] %v10554_v26  ;;  %v10566_v51 = vsel %vm1213_vm2, %v1264_v62, %v1265_v47  ;;  %v10569_v48 = vsel %vm1213_vm2, %v1265_v47, %v1267_v15 }
 0x106   : > { %15587 = vst [vmem:[#allocation55_spill] sm:$0xff] %v10566_v51  ;;  %15588 = vst [vmem:[#allocation56_spill] sm:$0xff] %v10569_v48  ;;  %v1191_v53 = vrot.slane %v10547_v8, 1  ;;  %v923_v60 = vsel %vm900_vm5, %v890_v56, %v816_v38  ;;  %v1183_v15 = vrot.slane %v10515_v41, 1  ;;  %v1184_v47 = vrot.slane %v10518_v12, 1 }
 0x107   : > { %v10584_v62 = vsel %vm1213_vm2, %v1259_v20, %v1260_v34  ;;  %v10597_v56 = vsel %vm1213_vm2, %v1260_v34, %v1262_v2  ;;  %v1002_v38 = vrot.slane %v923_v60, 7 }
 0x108   : > { %15591 = vst [vmem:[#allocation59_spill] sm:$0xff] %v10584_v62  ;;  %15593 = vst [vmem:[#allocation61_spill] sm:$0xff] %v10597_v56 }
 0x109   : > { %703 = vrot.lane.b32.xlu0 %v577_v46, %s9658_s17  ;;  %8358 = vrot.lane.b32.xlu1 %v10523_v1, %s9662_s27  ;;  %v10544_v46 = vsel %vm966_vm1, %v999_v37, %v1000_v45  ;;  %v891_v1 = vsel %vm867_vm4, %v538_v18, %v690_v39  ;;  %v1188_v37 = vrot.slane %v10538_v33, 1  ;;  %v10563_v18 = vpack.i.bf16 %v10518_v12, %v10515_v41 }
 0x10a   : > { %15584 = vst [vmem:[#allocation52_spill] sm:$0xff] %v10544_v46  ;;  %v1189_v45 = vrot.slane %v10544_v46, 1  ;;  %v924_v19 = vsel %vm900_vm5, %v891_v1, %v818_v55  ;;  %v10577_v39 = vpack.i.bf16 %v10554_v26, %v10541_v27  ;;  %v10594_v55 = vpack.i.bf16 %v10569_v48, %v10566_v51 }
 0x10b   : > { %15586 = vst [vmem:[#allocation54_spill] sm:$0xff] %v10563_v18  ;;  %v1003_v20 = vrot.slane %v924_v19, 7  ;;  %v1186_v1 = vrot.slane %v1093_v44, 1  ;;  %v10621_v44 = vsel %vm966_vm1, 0.0, %v1002_v38  ;;  %v10657_v51 = vpack.i.bf16 %v10544_v46, %v10538_v33 }
 0x10c   : > { %15589 = vst [vmem:[#allocation57_spill] sm:$0xff] %v10577_v39  ;;  %15592 = vst [vmem:[#allocation60_spill] sm:$0xff] %v10594_v55  ;;  %v10603_v27 = vsel %vm1132_vm3, %v1189_v45, %v1191_v53  ;;  %v1274_v53 = vrot.slane %v10621_v44, 2 }
 0x10d   : > { %705 = vrot.lane.b32.xlu0 %v578_v59, %s9658_s17  ;;  %8368 = vrot.lane.b32.xlu1 %v10533_v28, %s9663_s14  ;;  %v10581_v59 = vpack.i.bf16 %v10467_v36, %v10464_v11  ;;  %v10600_v28 = vsel %vm1132_vm3, %v1188_v37, %v1189_v45  ;;  %15595 = vst [vmem:[#allocation63_spill] sm:$0xff] %v10603_v27  ;;  %15599 = vst [vmem:[#allocation67_spill] sm:$0xff] %v10621_v44  ;;  %v1095_v37 = vsel %vm966_vm1, %v1003_v20, 0.0  ;;  %s9672_s17 = smov 96  }
 0x10e   : > { %15594 = vst [vmem:[#allocation62_spill] sm:$0xff] %v10600_v28  ;;  %v10618_v2 = vpack.i.bf16 %v10603_v27, %v10600_v28  ;;  %v10624_v34 = vsel %vm966_vm1, %v1002_v38, %v1003_v20  ;;  %v10629_v45 = vsel %vm1132_vm3, %v1184_v47, %v1186_v1  ;;  %v1277_v19 = vrot.slane %v1095_v37, 2  ;;  %15606 = vst [vmem:[#allocation74_spill] sm:$0xff] %v10657_v51 }
 0x10f   : > { %15590 = vst [vmem:[#allocation58_spill] sm:$0xff] %v10581_v59  ;;  %15600 = vst [vmem:[#allocation68_spill] sm:$0xff] %v10624_v34  ;;  %v1275_v60 = vrot.slane %v10624_v34, 2  ;;  %v1270_v20 = vrot.slane %v10544_v46, 2  ;;  %v1272_v1 = vrot.slane %v10547_v8, 2 }
 0x110   : > { %15598 = vst [vmem:[#allocation66_spill] sm:$0xff] %v10618_v2  ;;  %15601 = vst [vmem:[#allocation69_spill] sm:$0xff] %v10629_v45 }
 0x111   : > { %8353 = vrot.lane.b32.xlu0 %v10577_v39, %s9663_s14  ;;  %8378 = vrot.lane.b32.xlu1 %v10563_v18, %s9664_s24  ;;  %v10607_v39 = vpack.i.bf16 %v10597_v56, %v10584_v62  ;;  %v10610_v18 = vsel %vm1132_vm3, %v1183_v15, %v1184_v47  ;;  %v1269_v15 = vrot.slane %v10538_v33, 2  ;;  %v10644_v47 = vpack.i.bf16 %v10624_v34, %v10621_v44 }
 0x112   : > { %15597 = vst [vmem:[#allocation65_spill] sm:$0xff] %v10610_v18  ;;  %v10639_v38 = vpack.i.bf16 %v10629_v45, %v10610_v18  ;;  %v10648_v48 = vsel %vm1213_vm2, %v1275_v60, %v1277_v19  ;;  %v10651_v56 = vsel %vm1213_vm2, %v1274_v53, %v1275_v60  ;;  %v1193_v53 = vrot.slane %v10621_v44, 1 }
 0x113   : > { %15596 = vst [vmem:[#allocation64_spill] sm:$0xff] %v10607_v39  ;;  %15603 = vst [vmem:[#allocation71_spill] sm:$0xff] %v10644_v47  ;;  %v10660_v62 = vsel %vm1213_vm2, %v1269_v15, %v1270_v20  ;;  %v10666_v8 = vpack.i.bf16 %v10648_v48, %v10651_v56  ;;  %v1194_v60 = vrot.slane %v10624_v34, 1  ;;  %v1196_v19 = vrot.slane %v1095_v37, 1 }
 0x114   : > { %15602 = vst [vmem:[#allocation70_spill] sm:$0xff] %v10639_v38  ;;  %15604 = vst [vmem:[#allocation72_spill] sm:$0xff] %v10648_v48  ;;  %v10684_v48 = vpop.permute.xlu0 %819 }
 0x115   : > { %8363 = vrot.lane.b32.xlu0 %v10581_v59, %s9664_s24  ;;  %8388 = vrot.lane.b32.xlu1 %v10594_v55, %s9662_s27  ;;  %15605 = vst [vmem:[#allocation73_spill] sm:$0xff] %v10651_v56  ;;  %15607 = vst [vmem:[#allocation75_spill] sm:$0xff] %v10660_v62  ;;  %v10682_v56 = vsel %vm1132_vm3, %v1194_v60, %v1196_v19  ;;  %v10687_v37 = vsel %vm1132_vm3, %v1193_v53, %v1194_v60  ;;  %v8241_v19 = vunpack.i.h.bf16 %v10350_v49  ;;  %v539_v55 = vld [vmem:[%s9766_s12 + $0xc0] sm:$0xff] }
 0x116   : > { %15608 = vst [vmem:[#allocation76_spill] sm:$0xff] %v10666_v8  ;;  %15611 = vst [vmem:[#allocation79_spill] sm:$0xff] %v10682_v56 }
 0x117   : > { %15612 = vst [vmem:[#allocation80_spill] sm:$0xff] %v10687_v37 }
 0x119   : > { %8373 = vrot.lane.b32.xlu0 %v10607_v39, %s9662_s27  ;;  %8398 = vrot.lane.b32.xlu1 %v10618_v2, %s9663_s14  ;;  %v10671_v2 = vsel %vm1213_vm2, %v1270_v20, %v1272_v1  ;;  %v10693_v20 = vpack.i.bf16 %v10682_v56, %v10687_v37  ;;  %v8240_v1 = vunpack.i.l.bf16 %v10350_v49 }
 0x11a   : > { %15609 = vst [vmem:[#allocation77_spill] sm:$0xff] %v10671_v2  ;;  %v10677_v15 = vpack.i.bf16 %v10671_v2, %v10660_v62  ;;  %v8235_v2 = vunpack.i.l.bf16 %v10357_v35  ;;  %v8236_v62 = vunpack.i.h.bf16 %v10357_v35 }
 0x11b   : > { %15613 = vst [vmem:[#allocation81_spill] sm:$0xff] %v10693_v20 }
 0x11c   : > { %15610 = vst [vmem:[#allocation78_spill] sm:$0xff] %v10677_v15  ;;  %v2108_v56 = vsel %vm2107_vm6, %v8235_v2, %v8240_v1  ;;  %v2075_v35 = vsel %vm2074_vm8, %v9935_v32, %v8235_v2  ;;  %v2109_v37 = vsel %vm2107_vm6, %v8236_v62, %v8241_v19  ;;  %v2076_v1 = vsel %vm2074_vm8, %v9929_v29, %v8236_v62  ;;  %v2370_v62 = vld [vmem:[%s15288_s1 + $0x100] sm:$0xff] }
 0x11d   : > { %8383 = vrot.lane.b32.xlu0 %v10639_v38, %s9663_s14  ;;  %8408 = vrot.lane.b32.xlu1 %v10644_v47, %s9664_s24  ;;  %v692_v47 = vpop.permute.xlu1 %691 }
 0x121   : > { %8393 = vrot.lane.b32.xlu0 %v10657_v51, %s9664_s24  ;;  %8418 = vrot.lane.b32.xlu1 %v10666_v8, %s9662_s27  ;;  %v15617_v51 = vmov 0.0|0.0  }
 0x125   : > { %8403 = vrot.lane.b32.xlu0 %v10677_v15, %s9662_s27 }
 0x128   : > { %v10699_v8 = vpop.permute.xlu0 %8243 }
 0x129   : > { %15614 = vst [vmem:[#allocation82_spill] sm:$0xff] %v10699_v8  ;;  %v15370_v53 = vunpack.i.h.bf16 %v10699_v8  ;;  %v15369_v60 = vunpack.i.l.bf16 %v10699_v8  ;;  %8413 = vrot.lane.b32.xlu0 %v10693_v20, %s9663_s14  ;;  %v10717_v20 = vpop.permute.xlu1 %693 }
 0x12b   : > { %v2141_v49 = vsel %vm2140_vm7, %v2108_v56, %v15369_v60  ;;  %v2142_v15 = vsel %vm2140_vm7, %v2109_v37, %v15370_v53 }
 0x12c   : > { %2587 = vmatprep.mubr.f32.mxu0 %v2141_v49 }
 0x12d   : > { %2588 = vmatmul.mubr.f32.vlgmr.msra.gmra.mrb[0].mxu0 %v2075_v35  ;;  %v10719_v28 = vpop.permute.xlu1 %8248 }
 0x12e   : > { %2592 = vmatprep.mubr.f32.mxu0 %v2142_v15  ;;  %v2371_v15 = vld [vmem:[%s15288_s1 + $0x108] sm:$0xff]  ;;  %v15384_v8 = vunpack.i.l.bf16 %v10719_v28 }
 0x12f   : > { %v7919_v27 = vpack.c.bf16 %v2371_v15, %v2370_v62 }
 0x131   : > { %2593 = vmatmul.mubr.f32.gmra.mrb[2].mxu0 %v2076_v1 }
 0x132   : > { %7920 = vmatpush1.bf16.msra.mxu0 %v7919_v27  ;;  %v15618_v27 = vunpack.i.h.bf16 %v10719_v28 }
 0x133   : > { %v10723_v2 = vpop.permute.xlu0 %8253  ;;  %7921 = vmatprep.subr.bf16.mxu0 %v15617_v51 }
 0x13b   : > { %v10721_v56 = vpop.permute.xlu1 %8258 }
 0x13c   : > { %15615 = vst [vmem:[#allocation83_spill] sm:$0xff] %v10721_v56 }
 0x13f   : > { %v8269_v19 = vpop.permute.xlu1 %8268 }
 0x140   : > { %v8271_v1 = vunpack.i.h.bf16 %v8269_v19  ;;  %v8270_v53 = vunpack.i.l.bf16 %v8269_v19 }
 0x142   : > { %v2077_v15 = vsel %vm2074_vm8, %v10120_v31, %v8270_v53  ;;  %v2374_v31 = vld [vmem:[%s15288_s1 + $0x120] sm:$0xff] }
 0x143   : > { %v10725_v49 = vpop.permute.xlu0 %8263  ;;  %v8284_v35 = vpop.permute.xlu1 %8283 }
 0x144   : > { %15616 = vst [vmem:[#allocation84_spill] sm:$0xff] %v10725_v49 }
 0x147   : > { %v8274_v60 = vpop.permute.xlu0 %8273  ;;  %v10727_v37 = vpop.permute.xlu1 %8288 }
 0x148   : > { %v8276_v29 = vunpack.i.h.bf16 %v8274_v60  ;;  %v8275_v32 = vunpack.i.l.bf16 %v8274_v60  ;;  %v2372_v60 = vld [vmem:[%s15288_s1 + $0x110] sm:$0xff] }
 0x14a   : > { %v2110_v38 = vsel %vm2107_vm6, %v8270_v53, %v8275_v32  ;;  %v2111_v45 = vsel %vm2107_vm6, %v8271_v1, %v8276_v29  ;;  %v2373_v32 = vld [vmem:[%s15288_s1 + $0x118] sm:$0xff]  ;;  %v8285_v29 = vunpack.i.l.bf16 %v8284_v35 }
 0x14b   : > { %v10740_v18 = vpop.permute.xlu0 %8278  ;;  %v10742_v34 = vpop.permute.xlu1 %8303  ;;  %v2143_v19 = vsel %vm2140_vm7, %v2110_v38, %v15384_v8  ;;  %v892_v38 = vsel %vm867_vm4, %v539_v55, %v692_v47  ;;  %v2144_v8 = vsel %vm2140_vm7, %v2111_v45, %v15618_v27  ;;  %v7922_v44 = vpack.c.bf16 %v2373_v32, %v2372_v60  ;;  %v2375_v55 = vld [vmem:[%s15288_s1 + $0x128] sm:$0xff] }
 0x14c   : > { %v8280_v62 = vunpack.i.l.bf16 %v10740_v18  ;;  %2597 = vmatprep.mubr.f32.mxu0 %v2143_v19  ;;  %v8281_v39 = vunpack.i.h.bf16 %v10740_v18  ;;  %v15393_v19 = vunpack.i.l.bf16 %v10723_v2  ;;  %v925_v18 = vsel %vm900_vm5, %v892_v38, %v10684_v48 }
 0x14d   : > { %2598 = vmatmul.mubr.f32.gmra.mrb[4].mxu0 %v2077_v15  ;;  %v8286_v45 = vunpack.i.h.bf16 %v8284_v35  ;;  %v2078_v47 = vsel %vm2074_vm8, %v10117_v30, %v8271_v1  ;;  %v1005_v32 = vrot.slane %v925_v18, 7  ;;  %v15392_v48 = vunpack.i.h.bf16 %v10723_v2  ;;  %v2376_v30 = vld [vmem:[%s15288_s1 + $0x130] sm:$0xff]  ;;  %v540_v1 = vld [vmem:[%s9766_s12 + $0xc8] sm:$0xff] }
 0x14e   : > { %2602 = vmatprep.mubr.f32.mxu0 %v2144_v8  ;;  %v2112_v59 = vsel %vm2107_vm6, %v8280_v62, %v8285_v29  ;;  %7923 = vmatpush1.bf16.msra.mxu0 %v7922_v44  ;;  %v7925_v8 = vpack.c.bf16 %v2375_v55, %v2374_v31  ;;  %v8290_v15 = vunpack.i.l.bf16 %v10727_v37  ;;  %v2079_v27 = vsel %vm2074_vm8, %v10129_v42, %v8280_v62 }
 0x14f   : > { %v8294_v26 = vpop.permute.xlu0 %8293  ;;  %v10764_v46 = vpop.permute.xlu1 %8308  ;;  %7924 = vmatprep.subr.bf16.mxu0 %v15617_v51  ;;  %v2145_v44 = vsel %vm2140_vm7, %v2112_v59, %v15393_v19  ;;  %v2113_v60 = vsel %vm2107_vm6, %v8281_v39, %v8286_v45  ;;  %v2377_v59 = vld [vmem:[%s15288_s1 + $0x138] sm:$0xff]  ;;  %v8291_v18 = vunpack.i.h.bf16 %v10727_v37  ;;  %v15391_v42 = vunpack.i.l.bf16 %v10721_v56  ;;  %v2379_v37 = vld [vmem:[%s15288_s1 + $0x148] sm:$0xff] }
 0x150   : > { %v8295_v53 = vunpack.i.l.bf16 %v8294_v26  ;;  %v8296_v38 = vunpack.i.h.bf16 %v8294_v26  ;;  %v2146_v31 = vsel %vm2140_vm7, %v2113_v60, %v15392_v48  ;;  %v7928_v55 = vpack.c.bf16 %v2377_v59, %v2376_v30 }
 0x151   : > { %2603 = vmatmul.mubr.f32.gmra.mrb[6].mxu0 %v2078_v47  ;;  %v10803_v47 = vsel %vm966_vm1, 0.0, %v1005_v32  ;;  %v893_v26 = vsel %vm867_vm4, %v540_v1, %v10717_v20  ;;  %v2080_v60 = vsel %vm2074_vm8, %v10132_v43, %v8281_v39  ;;  %v15390_v59 = vunpack.i.h.bf16 %v10721_v56 }
 0x152   : > { %2607 = vmatprep.mubr.f32.mxu0 %v2145_v44  ;;  %7926 = vmatpush1.bf16.msra.mxu0 %v7925_v8  ;;  %v2114_v45 = vsel %vm2107_vm6, %v8290_v15, %v8295_v53  ;;  %v2378_v8 = vld [vmem:[%s15288_s1 + $0x140] sm:$0xff]  ;;  %v2115_v20 = vsel %vm2107_vm6, %v8291_v18, %v8296_v38  ;;  %v2081_v43 = vsel %vm2074_vm8, %v10156_v5, %v8290_v15  ;;  %v8305_v39 = vunpack.i.l.bf16 %v10742_v34  ;;  %v2380_v5 = vld [vmem:[%s15288_s1 + $0x150] sm:$0xff] }
 0x153   : > { %v10782_v35 = vpop.permute.xlu0 %8298  ;;  %v10784_v29 = vpop.permute.xlu1 %8318  ;;  %7927 = vmatprep.subr.bf16.mxu0 %v15617_v51  ;;  %v7931_v30 = vpack.c.bf16 %v2379_v37, %v2378_v8 }
 0x154   : > { %15619 = vst [vmem:[#allocation85_spill] sm:$0xff] %v10784_v29  ;;  %v8300_v1 = vunpack.i.l.bf16 %v10782_v35 }
 0x155   : > { %2608 = vmatmul.mubr.f32.gmra.mrb[8].mxu0 %v2079_v27 }
 0x156   : > { %2612 = vmatprep.mubr.f32.mxu0 %v2146_v31  ;;  %7929 = vmatpush1.bf16.msra.mxu0 %v7928_v55  ;;  %v2147_v31 = vsel %vm2140_vm7, %v2114_v45, %v15391_v42  ;;  %v1198_v55 = vrot.slane %v10803_v47, 1  ;;  %v2148_v45 = vsel %vm2140_vm7, %v2115_v20, %v15390_v59  ;;  %v2116_v59 = vsel %vm2107_vm6, %v8300_v1, %v8305_v39 }
 0x157   : > { %v822_v62 = vpop.permute.xlu0 %821  ;;  %v824_v44 = vpop.permute.xlu1 %823  ;;  %7930 = vmatprep.subr.bf16.mxu0 %v15617_v51 }
 0x158   : > { %v926_v53 = vsel %vm900_vm5, %v893_v26, %v822_v62  ;;  %v1279_v26 = vrot.slane %v10803_v47, 2 }
 0x159   : > { %v1006_v27 = vrot.slane %v926_v53, 7  ;;  %2613 = vmatmul.mubr.f32.gmra.mrb[10].mxu0 %v2080_v60 }
 0x15a   : > { %2617 = vmatprep.mubr.f32.mxu0 %v2147_v31  ;;  %7932 = vmatpush1.bf16.msra.mxu0 %v7931_v30  ;;  %v8301_v31 = vunpack.i.h.bf16 %v10782_v35  ;;  %v541_v30 = vld [vmem:[%s9766_s12 + $0xd0] sm:$0xff] }
 0x15b   : > { %v10830_v38 = vsel %vm966_vm1, %v1005_v32, %v1006_v27  ;;  %v1096_v62 = vsel %vm966_vm1, %v1006_v27, 0.0  ;;  %v10833_v8 = vpop.permute.xlu0 %8313  ;;  %v826_v37 = vpop.permute.xlu1 %825  ;;  %v2381_v32 = vld [vmem:[%s15288_s1 + $0x158] sm:$0xff]  ;;  %7933 = vmatprep.subr.bf16.mxu0 %v15617_v51 }
 0x15c   : > { %v1199_v15 = vrot.slane %v10830_v38, 1  ;;  %v1201_v53 = vrot.slane %v1096_v62, 1  ;;  %v1280_v60 = vrot.slane %v10830_v38, 2  ;;  %v1282_v27 = vrot.slane %v1096_v62, 2 }
 0x15d   : > { %2618 = vmatmul.mubr.f32.gmra.mrb[12].mxu0 %v2081_v43  ;;  %v10850_v20 = vpack.i.bf16 %v10830_v38, %v10803_v47  ;;  %v7934_v42 = vpack.c.bf16 %v2381_v32, %v2380_v5  ;;  %v15398_v43 = vunpack.i.l.bf16 %v10725_v49 }
 0x15e   : > { %v10855_v48 = vsel %vm1132_vm3, %v1199_v15, %v1201_v53  ;;  %v10858_v19 = vsel %vm1213_vm2, %v1280_v60, %v1282_v27  ;;  %2622 = vmatprep.mubr.f32.mxu0 %v2148_v45  ;;  %v10861_v62 = vsel %vm1132_vm3, %v1198_v55, %v1199_v15  ;;  %v10864_v35 = vsel %vm1213_vm2, %v1279_v26, %v1280_v60  ;;  %v2382_v26 = vld [vmem:[%s15288_s1 + $0x160] sm:$0xff]  ;;  %v2383_v45 = vld [vmem:[%s15288_s1 + $0x168] sm:$0xff] }
 0x15f   : > { %15620 = vst [vmem:[#allocation86_spill] sm:$0xff] %v10858_v19  ;;  %15621 = vst [vmem:[#allocation87_spill] sm:$0xff] %v10864_v35  ;;  %8423 = vrot.lane.b32.xlu0 %v10850_v20, %s9664_s24  ;;  %v696_v39 = vpop.permute.xlu0 %695  ;;  %v10869_v5 = vpop.permute.xlu1 %8328  ;;  %v10873_v32 = vpack.i.bf16 %v10855_v48, %v10861_v62  ;;  %v10877_v55 = vpack.i.bf16 %v10858_v19, %v10864_v35  ;;  %v8306_v15 = vunpack.i.h.bf16 %v10742_v34  ;;  %7935 = vmatpush1.bf16.msra.mxu0 %v7934_v42  ;;  %v542_v35 = vld [vmem:[%s9766_s12 + $0xd8] sm:$0xff] }
 0x160   : > { %v894_v53 = vsel %vm867_vm4, %v541_v30, %v696_v39  ;;  %v2082_v60 = vsel %vm2074_vm8, %v10159_v6, %v8291_v18  ;;  %v2149_v19 = vsel %vm2140_vm7, %v2116_v59, %v15398_v43  ;;  %v7937_v56 = vpack.c.bf16 %v2383_v45, %v2382_v26  ;;  %7936 = vmatprep.subr.bf16.mxu0 %v15617_v51  ;;  %v2385_v39 = vld [vmem:[%s15288_s1 + $0x178] sm:$0xff] }
 0x161   : > { %15622 = vst [vmem:[#allocation88_spill] sm:$0xff] %v10873_v32  ;;  %v927_v27 = vsel %vm900_vm5, %v894_v53, %v824_v44  ;;  %8428 = vrot.lane.b32.xlu1 %v10873_v32, %s9663_s14  ;;  %2623 = vmatmul.mubr.f32.gmra.mrb[14].mxu0 %v2082_v60  ;;  %v8315_v34 = vunpack.i.l.bf16 %v10833_v8  ;;  %v2117_v30 = vsel %vm2107_vm6, %v8301_v31, %v8306_v15  ;;  %v15400_v6 = vunpack.i.h.bf16 %v10725_v49  ;;  %v2388_v32 = vld [vmem:[%s15288_s1 + $0x190] sm:$0xff] }
 0x162   : > { %2627 = vmatprep.mubr.f32.mxu0 %v2149_v19  ;;  %v8310_v18 = vunpack.i.l.bf16 %v10764_v46  ;;  %v2083_v59 = vsel %vm2074_vm8, %v10175_v21, %v8300_v1  ;;  %v2384_v19 = vld [vmem:[%s15288_s1 + $0x170] sm:$0xff]  ;;  %v8316_v26 = vunpack.i.h.bf16 %v10833_v8  ;;  %v1008_v45 = vrot.slane %v927_v27, 7 }
 0x163   : > { %8433 = vrot.lane.b32.xlu0 %v10877_v55, %s9662_s27  ;;  %v698_v42 = vpop.permute.xlu0 %697  ;;  %v700_v44 = vpop.permute.xlu1 %699  ;;  %7938 = vmatpush1.bf16.msra.mxu0 %v7937_v56  ;;  %v7940_v53 = vpack.c.bf16 %v2385_v39, %v2384_v19  ;;  %v2150_v21 = vsel %vm2140_vm7, %v2117_v30, %v15400_v6  ;;  %v8311_v1 = vunpack.i.h.bf16 %v10764_v46  ;;  %v15399_v27 = vunpack.i.l.bf16 %v10784_v29  ;;  %v2387_v19 = vld [vmem:[%s15288_s1 + $0x188] sm:$0xff] }
 0x164   : > { %v895_v15 = vsel %vm867_vm4, %v542_v35, %v698_v42  ;;  %7939 = vmatprep.subr.bf16.mxu0 %v15617_v51  ;;  %v2118_v8 = vsel %vm2107_vm6, %v8310_v18, %v8315_v34  ;;  %v10928_v42 = vsel %vm966_vm1, 0.0, %v1008_v45  ;;  %v2386_v34 = vld [vmem:[%s15288_s1 + $0x180] sm:$0xff]  ;;  %v2085_v6 = vsel %vm2074_vm8, %v10210_v63, %v8310_v18 }
 0x165   : > { %v928_v60 = vsel %vm900_vm5, %v895_v15, %v826_v37  ;;  %2628 = vmatmul.mubr.f32.gmra.mrb[16].mxu0 %v2083_v59  ;;  %v2084_v37 = vsel %vm2074_vm8, %v10178_v22, %v8301_v31  ;;  %v2119_v59 = vsel %vm2107_vm6, %v8311_v1, %v8316_v26  ;;  %v2151_v39 = vsel %vm2140_vm7, %v2118_v8, %v15399_v27 }
 0x166   : > { %v1009_v43 = vrot.slane %v928_v60, 7  ;;  %2632 = vmatprep.mubr.f32.mxu0 %v2150_v21  ;;  %v15404_v26 = vunpack.i.h.bf16 %v10784_v29  ;;  %v1284_v60 = vrot.slane %v10928_v42, 2 }
 0x167   : > { %v10921_v35 = vpop.permute.xlu0 %8323  ;;  %v10923_v56 = vpop.permute.xlu1 %701  ;;  %7941 = vmatpush1.bf16.msra.mxu0 %v7940_v53  ;;  %v1203_v53 = vrot.slane %v10928_v42, 1 }
 0x168   : > { %v10931_v30 = vsel %vm966_vm1, %v1008_v45, %v1009_v43  ;;  %v1097_v46 = vsel %vm966_vm1, %v1009_v43, 0.0  ;;  %7942 = vmatprep.subr.bf16.mxu0 %v15617_v51  ;;  %v8325_v27 = vunpack.i.l.bf16 %v10921_v35  ;;  %v2152_v49 = vsel %vm2140_vm7, %v2119_v59, %v15404_v26 }
 0x169   : > { %v1206_v22 = vrot.slane %v1097_v46, 1  ;;  %v1287_v31 = vrot.slane %v1097_v46, 2  ;;  %2633 = vmatmul.mubr.f32.gmra.mrb[18].mxu0 %v2084_v37  ;;  %v10946_v43 = vpack.i.bf16 %v10931_v30, %v10928_v42  ;;  %v1204_v45 = vrot.slane %v10931_v30, 1  ;;  %v543_v46 = vld [vmem:[%s9766_s12 + $0xe0] sm:$0xff] }
 0x16a   : > { %2637 = vmatprep.mubr.f32.mxu0 %v2151_v39  ;;  %v1285_v15 = vrot.slane %v10931_v30, 2  ;;  %v7943_v37 = vpack.c.bf16 %v2387_v19, %v2386_v34  ;;  %v2389_v34 = vld [vmem:[%s15288_s1 + $0x198] sm:$0xff]  ;;  %v8330_v59 = vunpack.i.l.bf16 %v10869_v5 }
 0x16b   : > { %v10954_v21 = vpop.permute.xlu0 %8333  ;;  %8438 = vrot.lane.b32.xlu1 %v10946_v43, %s9664_s24  ;;  %v10958_v8 = vpop.permute.xlu1 %8338  ;;  %v10975_v19 = vsel %vm1132_vm3, %v1203_v53, %v1204_v45  ;;  %v10978_v39 = vsel %vm1132_vm3, %v1204_v45, %v1206_v22  ;;  %v896_v22 = vsel %vm867_vm4, %v543_v46, %v700_v44  ;;  %v544_v45 = vld [vmem:[%s9766_s12 + $0xe8] sm:$0xff] }
 0x16c   : > { %15623 = vst [vmem:[#allocation89_spill] sm:$0xff] %v10954_v21  ;;  %15624 = vst [vmem:[#allocation90_spill] sm:$0xff] %v10978_v39  ;;  %v10981_v63 = vsel %vm1213_vm2, %v1284_v60, %v1285_v15  ;;  %v10984_v18 = vsel %vm1213_vm2, %v1285_v15, %v1287_v31  ;;  %v10989_v26 = vpack.i.bf16 %v10978_v39, %v10975_v19  ;;  %7944 = vmatpush1.bf16.msra.mxu0 %v7943_v37  ;;  %v2390_v37 = vld [vmem:[%s15288_s1 + $0x1a0] sm:$0xff] }
 0x16d   : > { %2638 = vmatmul.mubr.f32.gmra.mrb[20].mxu0 %v2085_v6  ;;  %15625 = vst [vmem:[#allocation91_spill] sm:$0xff] %v10981_v63  ;;  %15626 = vst [vmem:[#allocation92_spill] sm:$0xff] %v10984_v18  ;;  %v10993_v6 = vpack.i.bf16 %v10984_v18, %v10981_v63  ;;  %v7946_v31 = vpack.c.bf16 %v2389_v34, %v2388_v32  ;;  %v8326_v15 = vunpack.i.h.bf16 %v10921_v35  ;;  %v2391_v32 = vld [vmem:[%s15288_s1 + $0x1a8] sm:$0xff]  ;;  %v15408_v35 = vunpack.i.h.bf16 %v10954_v21  ;;  %v545_v63 = vld [vmem:[%s9766_s12 + $0xf0] sm:$0xff] }
 0x16e   : > { %15627 = vst [vmem:[#allocation93_spill] sm:$0xff] %v10989_v26  ;;  %2642 = vmatprep.mubr.f32.mxu0 %v2152_v49  ;;  %8443 = vrot.lane.b32.xlu0 %v10989_v26, %s9663_s14  ;;  %v2086_v49 = vsel %vm2074_vm8, %v10213_v0, %v8311_v1  ;;  %v2120_v44 = vsel %vm2107_vm6, %v8325_v27, %v8330_v59  ;;  %v15629_v34 = vunpack.i.l.bf16 %v10954_v21  ;;  %v8331_v0 = vunpack.i.h.bf16 %v10869_v5  ;;  %v2392_v5 = vld [vmem:[%s15288_s1 + $0x1b0] sm:$0xff] }
 0x16f   : > { %15628 = vst [vmem:[#allocation94_spill] sm:$0xff] %v10993_v6  ;;  %v828_v53 = vpop.permute.xlu0 %827  ;;  %v10997_v60 = vpop.permute.xlu1 %8348  ;;  %8448 = vrot.lane.b32.xlu1 %v10993_v6, %s9662_s27  ;;  %7945 = vmatprep.subr.bf16.mxu0 %v15617_v51  ;;  %v897_v1 = vsel %vm867_vm4, %v544_v45, %v10923_v56  ;;  %v2393_v56 = vld [vmem:[%s15288_s1 + $0x1b8] sm:$0xff] }
 0x170   : > { %v929_v29 = vsel %vm900_vm5, %v896_v22, %v828_v53  ;;  %v2153_v22 = vsel %vm2140_vm7, %v2120_v44, %v15629_v34  ;;  %7947 = vmatpush1.bf16.msra.mxu0 %v7946_v31  ;;  %v2087_v44 = vsel %vm2074_vm8, %v10298_v57, %v8325_v27  ;;  %v2121_v34 = vsel %vm2107_vm6, %v8326_v15, %v8331_v0 }
 0x171   : > { %v1011_v46 = vrot.slane %v929_v29, 7  ;;  %2643 = vmatmul.mubr.f32.gmra.mrb[22].mxu0 %v2086_v49  ;;  %v7949_v29 = vpack.c.bf16 %v2391_v32, %v2390_v37  ;;  %7948 = vmatprep.subr.bf16.mxu0 %v15617_v51  ;;  %v2154_v31 = vsel %vm2140_vm7, %v2121_v34, %v15408_v35  ;;  %v8341_v57 = vunpack.i.h.bf16 %v10958_v8 }
 0x172   : > { %2647 = vmatprep.mubr.f32.mxu0 %v2153_v22  ;;  %v8340_v27 = vunpack.i.l.bf16 %v10958_v8  ;;  %v2088_v32 = vsel %vm2074_vm8, %v10301_v14, %v8326_v15 }
 0x173   : > { %v11023_v59 = vsel %vm966_vm1, 0.0, %v1011_v46  ;;  %v830_v53 = vpop.permute.xlu0 %829  ;;  %v832_v18 = vpop.permute.xlu1 %831 }
 0x174   : > { %v930_v49 = vsel %vm900_vm5, %v897_v1, %v830_v53  ;;  %v1208_v37 = vrot.slane %v11023_v59, 1  ;;  %v1289_v22 = vrot.slane %v11023_v59, 2  ;;  %7950 = vmatpush1.bf16.msra.mxu0 %v7949_v29  ;;  %v2394_v29 = vld [vmem:[%s15288_s1 + $0x1c0] sm:$0xff] }
 0x175   : > { %v1012_v45 = vrot.slane %v930_v49, 7  ;;  %2648 = vmatmul.mubr.f32.gmra.mrb[24].mxu0 %v2087_v44  ;;  %v7952_v44 = vpack.c.bf16 %v2393_v56, %v2392_v5  ;;  %7951 = vmatprep.subr.bf16.mxu0 %v15617_v51  ;;  %v2395_v5 = vld [vmem:[%s15288_s1 + $0x1c8] sm:$0xff] }
 0x176   : > { %2652 = vmatprep.mubr.f32.mxu0 %v2154_v31 }
 0x177   : > { %v11046_v0 = vsel %vm966_vm1, %v1011_v46, %v1012_v45  ;;  %v1098_v1 = vsel %vm966_vm1, %v1012_v45, 0.0  ;;  %v8344_v53 = vpop.permute.xlu0 %8343  ;;  %v834_v49 = vpop.permute.xlu1 %833 }
 0x178   : > { %v1209_v8 = vrot.slane %v11046_v0, 1  ;;  %v1211_v34 = vrot.slane %v1098_v1, 1  ;;  %v1290_v31 = vrot.slane %v11046_v0, 2  ;;  %v1292_v35 = vrot.slane %v1098_v1, 2  ;;  %7953 = vmatpush1.bf16.msra.mxu0 %v7952_v44 }
 0x179   : > { %v8346_v15 = vunpack.i.h.bf16 %v8344_v53  ;;  %v8345_v46 = vunpack.i.l.bf16 %v8344_v53  ;;  %2653 = vmatmul.mubr.f32.gmra.mrb[26].mxu0 %v2088_v32  ;;  %v11055_v45 = vpack.i.bf16 %v11046_v0, %v11023_v59  ;;  %7954 = vmatprep.subr.bf16.mxu0 %v15617_v51 }
 0x17a   : > { %v11065_v56 = vsel %vm1132_vm3, %v1209_v8, %v1211_v34  ;;  %v11068_v1 = vsel %vm1213_vm2, %v1290_v31, %v1292_v35  ;;  %v11071_v32 = vsel %vm1132_vm3, %v1208_v37, %v1209_v8  ;;  %v11074_v53 = vsel %vm1213_vm2, %v1289_v22, %v1290_v31 }
 0x17b   : > { %15630 = vst [vmem:[#allocation95_spill] sm:$0xff] %v11068_v1  ;;  %15631 = vst [vmem:[#allocation96_spill] sm:$0xff] %v11074_v53  ;;  %8453 = vrot.lane.b32.xlu0 %v11055_v45, %s9664_s24  ;;  %v704_v14 = vpop.permute.xlu0 %703  ;;  %v11078_v21 = vpop.permute.xlu1 %8358  ;;  %v2122_v6 = vsel %vm2107_vm6, %v8340_v27, %v8345_v46  ;;  %v11083_v34 = vpack.i.bf16 %v11065_v56, %v11071_v32  ;;  %v11087_v35 = vpack.i.bf16 %v11068_v1, %v11074_v53 }
 0x17c   : > { %v2123_v37 = vsel %vm2107_vm6, %v8341_v57, %v8346_v15  ;;  %v15416_v22 = vunpack.i.h.bf16 %v10997_v60  ;;  %v898_v8 = vsel %vm867_vm4, %v545_v63, %v704_v14  ;;  %v15633_v31 = vunpack.i.l.bf16 %v10997_v60  ;;  %v546_v15 = vld [vmem:[%s9766_s12 + $0xf8] sm:$0xff]  ;;  %v2396_v63 = vld [vmem:[%s15288_s1 + $0x1d0] sm:$0xff] }
 0x17d   : > { %15632 = vst [vmem:[#allocation97_spill] sm:$0xff] %v11083_v34  ;;  %v7955_v46 = vpack.c.bf16 %v2395_v5, %v2394_v29  ;;  %v931_v39 = vsel %vm900_vm5, %v898_v8, %v832_v18  ;;  %8458 = vrot.lane.b32.xlu1 %v11083_v34, %s9663_s14  ;;  %v2089_v1 = vsel %vm2074_vm8, %v10376_v40, %v8340_v27 }
 0x17e   : > { %v2155_v26 = vsel %vm2140_vm7, %v2122_v6, %v15633_v31  ;;  %v2397_v6 = vld [vmem:[%s15288_s1 + $0x1d8] sm:$0xff]  ;;  %v1014_v18 = vrot.slane %v931_v39, 7  ;;  %v2090_v5 = vsel %vm2074_vm8, %v10379_v50, %v8341_v57  ;;  %v2398_v39 = vld [vmem:[%s15288_s1 + $0x1e0] sm:$0xff] }
 0x17f   : > { %2657 = vmatprep.mubr.f32.mxu0 %v2155_v26  ;;  %v2156_v26 = vsel %vm2140_vm7, %v2123_v37, %v15416_v22  ;;  %8463 = vrot.lane.b32.xlu0 %v11087_v35, %s9662_s27  ;;  %v706_v40 = vpop.permute.xlu0 %705  ;;  %v7958_v44 = vpack.c.bf16 %v2397_v6, %v2396_v63  ;;  %v11115_v29 = vpop.permute.xlu1 %8368  ;;  %v8360_v63 = vunpack.i.l.bf16 %v11078_v21 }
 0x180   : > { %2658 = vmatmul.mubr.f32.gmra.mrb[28].mxu0 %v2089_v1  ;;  %v899_v27 = vsel %vm867_vm4, %v546_v15, %v706_v40  ;;  %v2399_v1 = vld [vmem:[%s15288_s1 + $0x1e8] sm:$0xff]  ;;  %v1082_v8 = vsel %vm966_vm1, 0.0, %v1014_v18  ;;  %vm3212_vm4 = vcmask 785408  }
 0x181   : > { %2662 = vmatprep.mubr.f32.mxu0 %v2156_v26  ;;  %7956 = vmatpush1.bf16.msra.mxu0 %v7955_v46  ;;  %v932_v14 = vsel %vm900_vm5, %v899_v27, %v834_v49  ;;  %v7961_v46 = vpack.c.bf16 %v2399_v1, %v2398_v39  ;;  %v1301_v27 = vrot.slane %v1082_v8, 2  ;;  %vm5339_vm5 = vcmask 523264  }
 0x182   : > { %7957 = vmatprep.subr.bf16.mxu0 %v15617_v51  ;;  %v1015_v37 = vrot.slane %v932_v14, 7 }
 0x183   : > { %8473 = vrot.lane.b32.xlu0 %v10153_v3, %s9665_s13  ;;  %v11129_v49 = vpop.permute.xlu0 %8353  ;;  %v2400_v3 = vld [vmem:[%s15288_s1 + $0x1f0] sm:$0xff] }
 0x184   : > { %2663 = vmatmul.mubr.f32.gmra.mrb[30].mxu0 %v2090_v5  ;;  %v1016_v50 = vsel %vm966_vm1, %v1014_v18, %v1015_v37  ;;  %v1099_v57 = vsel %vm966_vm1, %v1015_v37, 0.0  ;;  %v8355_v31 = vunpack.i.l.bf16 %v11129_v49  ;;  %v8356_v26 = vunpack.i.h.bf16 %v11129_v49  ;;  %v2401_v18 = vld [vmem:[%s15288_s1 + $0x1f8] sm:$0xff]  ;;  %v11146_v5 = vpop.permute.xlu1 %8378 }
 0x185   : > { %7959 = vmatpush1.bf16.msra.mxu0 %v7958_v44  ;;  %v1302_v15 = vrot.slane %v1016_v50, 2  ;;  %v1304_v6 = vrot.slane %v1099_v57, 2  ;;  %v11137_v40 = vpack.i.bf16 %v1016_v50, %v1082_v8  ;;  %v8361_v44 = vunpack.i.h.bf16 %v11078_v21 }
 0x186   : > { %7960 = vmatprep.subr.bf16.mxu0 %v15617_v51  ;;  %v1299_v14 = vrot.slane %v1099_v57, 1  ;;  %v2124_v49 = vsel %vm2107_vm6, %v8355_v31, %v8360_v63  ;;  %v1296_v21 = vrot.slane %v1082_v8, 1  ;;  %v7964_v57 = vpack.c.bf16 %v2401_v18, %v2400_v3 }
 0x187   : > { %8483 = vrot.lane.b32.xlu0 %v10146_v58, %s9666_s25  ;;  %v11150_v39 = vpop.permute.xlu0 %8363  ;;  %8468 = vrot.lane.b32.xlu1 %v11137_v40, %s9664_s24  ;;  %v1297_v22 = vrot.slane %v1016_v50, 1  ;;  %v11159_v34 = vsel %vm1213_vm2, %v1301_v27, %v1302_v15  ;;  %v2091_v1 = vsel %vm2074_vm8, %v10430_v61, %v8355_v31  ;;  %v2125_v53 = vsel %vm2107_vm6, %v8356_v26, %v8361_v44  ;;  %s9667_s24 = smov 92  }
 0x188   : > { %v8365_v37 = vunpack.i.l.bf16 %v11150_v39  ;;  %v11168_v63 = vsel %vm1213_vm2, %v1302_v15, %v1304_v6  ;;  %v8380_v8 = vunpack.i.l.bf16 %v11146_v5  ;;  %v8370_v31 = vunpack.i.l.bf16 %v11115_v29 }
 0x189   : > { %7962 = vmatpush1.bf16.msra.mxu0 %v7961_v46  ;;  %v11174_v46 = vsel %vm1132_vm3, %v1296_v21, %v1297_v22  ;;  %v11177_v3 = vsel %vm1132_vm3, %v1297_v22, %v1299_v14  ;;  %v8697_v61 = vpack.i.bf16 %v11168_v63, %v11159_v34  ;;  %v8371_v27 = vunpack.i.h.bf16 %v11115_v29  ;;  %v8389_v22 = vpop.permute.xlu1 %8388 }
 0x18a   : > { %7963 = vmatprep.subr.bf16.mxu0 %v15617_v51  ;;  %v2157_v58 = vsel %vm2140_vm7, %v2124_v49, %v8365_v37  ;;  %v8707_v44 = vpack.i.bf16 %v11177_v3, %v11174_v46  ;;  %v8381_v14 = vunpack.i.h.bf16 %v11146_v5 }
 0x18b   : > { %1884 = vrot.lane.b32.xlu0 %v10247_v23, %s9667_s24  ;;  %v8374_v50 = vpop.permute.xlu0 %8373  ;;  %2667 = vmatprep.mubr.f32.mxu0 %v2157_v58  ;;  %v15634_v23 = vunpack.i.h.bf16 %v11150_v39  ;;  %v8391_v58 = vunpack.i.h.bf16 %v8389_v22 }
 0x18c   : > { %v8376_v15 = vunpack.i.h.bf16 %v8374_v50  ;;  %v8375_v6 = vunpack.i.l.bf16 %v8374_v50  ;;  %8478 = vrot.lane.b32.xlu1 %v10141_v54, %s9668_s26  ;;  %2668 = vmatmul.mubr.f32.gmra.mrb[32].mxu0 %v2091_v1  ;;  %v8390_v54 = vunpack.i.l.bf16 %v8389_v22 }
 0x18d   : > { %v2158_v18 = vsel %vm2140_vm7, %v2125_v53, %v15634_v23  ;;  %7965 = vmatpush1.bf16.msra.mxu0 %v7964_v57  ;;  %v2092_v53 = vsel %vm2074_vm8, %v10433_v9, %v8356_v26  ;;  %v8399_v50 = vpop.permute.xlu1 %8398  ;;  %v2093_v26 = vsel %vm2074_vm8, %v10464_v11, %v8370_v31 }
 0x18e   : > { %2672 = vmatprep.mubr.f32.mxu0 %v2158_v18  ;;  %v2126_v49 = vsel %vm2107_vm6, %v8370_v31, %v8375_v6  ;;  %7990 = vmatprep.subr.bf16.mxu0 %v15617_v51  ;;  %v2127_v21 = vsel %vm2107_vm6, %v8371_v27, %v8376_v15  ;;  %v2094_v31 = vsel %vm2074_vm8, %v10467_v36, %v8371_v27 }
 0x18f   : > { %8493 = vrot.lane.b32.xlu0 %v10166_v10, %s9668_s26  ;;  %v8384_v1 = vpop.permute.xlu0 %8383  ;;  %v2159_v29 = vsel %vm2140_vm7, %v2126_v49, %v8380_v8  ;;  %v2160_v10 = vsel %vm2140_vm7, %v2127_v21, %v8381_v14  ;;  %v8400_v49 = vunpack.i.l.bf16 %v8399_v50  ;;  %v15635_v21 = vld [vmem:[#allocation13_spill] sm:$0xff] }
 0x190   : > { %1882 = vrot.lane.b32.xlu1 %v10242_v17, %s9667_s24  ;;  %2673 = vmatmul.mubr.f32.gmra.mrb[34].mxu0 %v2092_v53  ;;  %v8385_v57 = vunpack.i.l.bf16 %v8384_v1  ;;  %v8386_v6 = vunpack.i.h.bf16 %v8384_v1 }
 0x191   : > { %2677 = vmatprep.mubr.f32.mxu0 %v2159_v29  ;;  %v11224_v18 = vpop.permute.xlu1 %8408 }
 0x192   : > { %v2128_v15 = vsel %vm2107_vm6, %v8385_v57, %v8390_v54  ;;  %v8410_v54 = vunpack.i.l.bf16 %v11224_v18  ;;  %v2095_v36 = vsel %vm2074_vm8, %v10515_v41, %v8385_v57  ;;  %v8411_v53 = vunpack.i.h.bf16 %v11224_v18  ;;  %v15636_v57 = vld [vmem:[#allocation16_spill] sm:$0xff]  ;;  %v9607_v18 = vld [vmem:[#allocation3 + $0xa0] sm:$0xff] }
 0x193   : > { %1886 = vrot.lane.b32.xlu0 %v10225_v7, %s9667_s24  ;;  %v11208_v9 = vpop.permute.xlu0 %8393 }
 0x194   : > { %v8395_v17 = vunpack.i.l.bf16 %v11208_v9  ;;  %8488 = vrot.lane.b32.xlu1 %v10222_v4, %s9665_s13  ;;  %2678 = vmatmul.mubr.f32.gmra.mrb[36].mxu0 %v2093_v26  ;;  %v8396_v23 = vunpack.i.h.bf16 %v11208_v9  ;;  %v2129_v4 = vsel %vm2107_vm6, %v8386_v6, %v8391_v58  ;;  %v15639_v58 = vld [vmem:[#allocation52_spill] sm:$0xff]  ;;  %v15640_v26 = vld [vmem:[#allocation19_spill] sm:$0xff] }
 0x195   : > { %2682 = vmatprep.mubr.f32.mxu0 %v2160_v10  ;;  %v15637_v10 = vld [vmem:[#allocation25_spill] sm:$0xff] }
 0x196   : > { %v2161_v7 = vsel %vm2140_vm7, %v2128_v15, %v8395_v17  ;;  %v15641_v15 = vld [vmem:[#allocation30_spill] sm:$0xff] }
 0x197   : > { %8503 = vrot.lane.b32.xlu0 %v10305_v16, %s9665_s13  ;;  %v8404_v11 = vpop.permute.xlu0 %8403  ;;  %v2162_v16 = vsel %vm2140_vm7, %v2129_v4, %v8396_v23  ;;  %v15647_v4 = vld [vmem:[#allocation40_spill] sm:$0xff] }
 0x198   : > { %v8405_v22 = vunpack.i.l.bf16 %v8404_v11  ;;  %8498 = vrot.lane.b32.xlu1 %v10272_v52, %s9666_s25  ;;  %2683 = vmatmul.mubr.f32.gmra.mrb[38].mxu0 %v2094_v31  ;;  %v8406_v1 = vunpack.i.h.bf16 %v8404_v11  ;;  %v8401_v52 = vunpack.i.h.bf16 %v8399_v50  ;;  %v15645_v11 = vld [vmem:[#allocation35_spill] sm:$0xff]  ;;  %v15646_v31 = vld [vmem:[#allocation26_spill] sm:$0xff] }
 0x199   : > { %2687 = vmatprep.mubr.f32.mxu0 %v2161_v7  ;;  %v15644_v7 = vld [vmem:[#allocation23_spill] sm:$0xff] }
 0x19a   : > { %v2130_v27 = vsel %vm2107_vm6, %v8400_v49, %v8405_v22  ;;  %v2131_v41 = vsel %vm2107_vm6, %v8401_v52, %v8406_v1  ;;  %v2098_v50 = vsel %vm2074_vm8, %v15639_v58, %v8401_v52  ;;  %v15648_v22 = vld [vmem:[#allocation34_spill] sm:$0xff] }
 0x19b   : > { %8513 = vrot.lane.b32.xlu0 %v10251_v24, %s9666_s25  ;;  %v2163_v29 = vsel %vm2140_vm7, %v2130_v27, %v8410_v54  ;;  %v2096_v24 = vsel %vm2074_vm8, %v10518_v12, %v8386_v6  ;;  %v15638_v12 = vld [vmem:[#allocation22_spill] sm:$0xff]  ;;  %v15643_v6 = vld [vmem:[#allocation24_spill] sm:$0xff] }
 0x19c   : > { %1888 = vrot.lane.b32.xlu1 %v10231_v13, %s9667_s24  ;;  %2688 = vmatmul.mubr.f32.gmra.mrb[40].mxu0 %v2095_v36  ;;  %v2164_v13 = vsel %vm2140_vm7, %v2131_v41, %v8411_v53  ;;  %v2402_v1 = vld [vmem:[%s15288_s1 + $0x200] sm:$0xff]  ;;  %v2403_v36 = vld [vmem:[%s15288_s1 + $0x208] sm:$0xff]  ;;  %v15651_v27 = vld [vmem:[#allocation44_spill] sm:$0xff] }
 0x19d   : > { %2692 = vmatprep.mubr.f32.mxu0 %v2162_v16  ;;  %v15650_v16 = vld [vmem:[#allocation33_spill] sm:$0xff]  ;;  %v7966_v52 = vpack.c.bf16 %v2403_v36, %v2402_v1  ;;  %v15659_v1 = vld [vmem:[#allocation47_spill] sm:$0xff] }
 0x19e   : > { %v2405_v41 = vld [vmem:[%s15288_s1 + $0x218] sm:$0xff] }
 0x19f   : > { %1892 = vrot.lane.b32.xlu0 %v10317_v25, %s9667_s24  ;;  %v2097_v25 = vsel %vm2074_vm8, %v10538_v33, %v8400_v49  ;;  %v15642_v33 = vld [vmem:[#allocation27_spill] sm:$0xff]  ;;  %v15649_v49 = vld [vmem:[#allocation36_spill] sm:$0xff]  ;;  %7967 = vmatprep.subr.bf16.mxu1 %v7966_v52  ;;  %v15660_v36 = vld [vmem:[#allocation49_spill] sm:$0xff] }
 0x1a0   : > { %8508 = vrot.lane.b32.xlu1 %v15635_v21, %s9668_s26  ;;  %2693 = vmatmul.mubr.f32.gmra.mrb[42].mxu0 %v2096_v24  ;;  %v2404_v24 = vld [vmem:[%s15288_s1 + $0x210] sm:$0xff] }
 0x1a1   : > { %2697 = vmatprep.mubr.f32.mxu0 %v2163_v29  ;;  %v15652_v29 = vld [vmem:[#allocation38_spill] sm:$0xff]  ;;  %7969 = vmatpush3.bf16.msra.mxu1 %v7966_v52  ;;  %v7970_v21 = vpack.c.bf16 %v2405_v41, %v2404_v24 }
 0x1a3   : > { %8523 = vrot.lane.b32.xlu0 %v15636_v57, %s9668_s26  ;;  %v15654_v57 = vld [vmem:[#allocation37_spill] sm:$0xff]  ;;  %7971 = vmatprep.subr.bf16.mxu1 %v7970_v21 }
 0x1a4   : > { %1890 = vrot.lane.b32.xlu1 %v15637_v10, %s9667_s24  ;;  %2698 = vmatmul.mubr.f32.gmra.mrb[44].mxu0 %v2097_v25  ;;  %v2406_v25 = vld [vmem:[%s15288_s1 + $0x220] sm:$0xff]  ;;  %v2407_v10 = vld [vmem:[%s15288_s1 + $0x228] sm:$0xff] }
 0x1a5   : > { %2702 = vmatprep.mubr.f32.mxu0 %v2164_v13  ;;  %v15653_v13 = vld [vmem:[#allocation39_spill] sm:$0xff]  ;;  %7973 = vmatpush3.bf16.msra.mxu1 %v7970_v21  ;;  %v7974_v58 = vpack.c.bf16 %v2407_v10, %v2406_v25  ;;  %v2412_v21 = vld [vmem:[%s15288_s1 + $0x250] sm:$0xff] }
 0x1a6   : > { %v15661_v25 = vld [vmem:[#allocation64_spill] sm:$0xff] }
 0x1a7   : > { %1894 = vrot.lane.b32.xlu0 %v15638_v12, %s9667_s24  ;;  %v15655_v12 = vld [vmem:[#allocation53_spill] sm:$0xff]  ;;  %7975 = vmatprep.subr.bf16.mxu1 %v7974_v58 }
 0x1a8   : > { %8518 = vrot.lane.b32.xlu1 %v15640_v26, %s9665_s13  ;;  %2703 = vmatmul.mubr.f32.gmra.mrb[46].mxu0 %v2098_v50  ;;  %v15656_v50 = vld [vmem:[#allocation41_spill] sm:$0xff]  ;;  %v2408_v26 = vld [vmem:[%s15288_s1 + $0x230] sm:$0xff] }
 0x1a9   : > { %7977 = vmatpush3.bf16.msra.mxu1 %v7974_v58  ;;  %v15662_v58 = vld [vmem:[#allocation57_spill] sm:$0xff] }
 0x1ab   : > { %8533 = vrot.lane.b32.xlu0 %v15641_v15, %s9665_s13  ;;  %v2409_v15 = vld [vmem:[%s15288_s1 + $0x238] sm:$0xff] }
 0x1ac   : > { %8528 = vrot.lane.b32.xlu1 %v15642_v33, %s9666_s25  ;;  %v7978_v33 = vpack.c.bf16 %v2409_v15, %v2408_v26  ;;  %v15663_v26 = vld [vmem:[#allocation67_spill] sm:$0xff] }
 0x1ae   : > { %7979 = vmatprep.subr.bf16.mxu1 %v7978_v33 }
 0x1af   : > { %8543 = vrot.lane.b32.xlu0 %v15643_v6, %s9666_s25  ;;  %v15657_v6 = vld [vmem:[#allocation58_spill] sm:$0xff]  ;;  %7981 = vmatpush3.bf16.msra.mxu1 %v7978_v33 }
 0x1b0   : > { %1896 = vrot.lane.b32.xlu1 %v15644_v7, %s9667_s24  ;;  %v8419_v7 = vpop.permute.xlu1 %8418 }
 0x1b1   : > { %v8421_v52 = vunpack.i.h.bf16 %v8419_v7 }
 0x1b3   : > { %1900 = vrot.lane.b32.xlu0 %v15645_v11, %s9667_s24  ;;  %v15658_v11 = vld [vmem:[#allocation51_spill] sm:$0xff] }
 0x1b4   : > { %8538 = vrot.lane.b32.xlu1 %v15646_v31, %s9668_s26  ;;  %v8414_v31 = vpop.permute.xlu0 %8413 }
 0x1b7   : > { %8553 = vrot.lane.b32.xlu0 %v15647_v4, %s9668_s26  ;;  %v2410_v4 = vld [vmem:[%s15288_s1 + $0x240] sm:$0xff] }
 0x1b8   : > { %1898 = vrot.lane.b32.xlu1 %v15648_v22, %s9667_s24  ;;  %v2411_v22 = vld [vmem:[%s15288_s1 + $0x248] sm:$0xff] }
 0x1bb   : > { %1902 = vrot.lane.b32.xlu0 %v15649_v49, %s9667_s24  ;;  %v7982_v49 = vpack.c.bf16 %v2411_v22, %v2410_v4  ;;  %v15665_v22 = vld [vmem:[#allocation48_spill] sm:$0xff] }
 0x1bc   : > { %8548 = vrot.lane.b32.xlu1 %v15650_v16, %s9665_s13  ;;  %v8420_v16 = vunpack.i.l.bf16 %v8419_v7  ;;  %v2414_v7 = vld [vmem:[%s15288_s1 + $0x260] sm:$0xf] }
 0x1bd   : > { %7983 = vmatprep.subr.bf16.mxu1 %v7982_v49 }
 0x1be   : > { %7985 = vmatpush3.bf16.msra.mxu1 %v7982_v49  ;;  %v15666_v49 = vld [vmem:[#allocation68_spill] sm:$0xff] }
 0x1bf   : > { %8563 = vrot.lane.b32.xlu0 %v15651_v27, %s9665_s13  ;;  %v8415_v27 = vunpack.i.l.bf16 %v8414_v31 }
 0x1c0   : > { %8558 = vrot.lane.b32.xlu1 %v15652_v29, %s9666_s25 }
 0x1c1   : > { %v2132_v10 = vsel %vm2107_vm6, %v8415_v27, %v8420_v16  ;;  %v2099_v15 = vsel %vm2074_vm8, %v15663_v26, %v8415_v27  ;;  %v15667_v27 = vld [vmem:[#allocation65_spill] sm:$0xff] }
 0x1c3   : > { %8573 = vrot.lane.b32.xlu0 %v15653_v13, %s9666_s25  ;;  %v2413_v13 = vld [vmem:[%s15288_s1 + $0x258] sm:$0xff] }
 0x1c4   : > { %1904 = vrot.lane.b32.xlu1 %v15654_v57, %s9667_s24  ;;  %v8416_v57 = vunpack.i.h.bf16 %v8414_v31 }
 0x1c6   : > { %v2133_v33 = vsel %vm2107_vm6, %v8416_v57, %v8421_v52  ;;  %v2100_v16 = vsel %vm2074_vm8, %v15666_v49, %v8416_v57  ;;  %v15668_v52 = vld [vmem:[#allocation54_spill] sm:$0xff]  ;;  %v15674_v49 = vld [vmem:[#allocation69_spill] sm:$0xff] }
 0x1c7   : > { %1908 = vrot.lane.b32.xlu0 %v15655_v12, %s9667_s24  ;;  %v7986_v12 = vpack.c.bf16 %v2413_v13, %v2412_v21 }
 0x1c8   : > { %8568 = vrot.lane.b32.xlu1 %v15656_v50, %s9668_s26 }
 0x1c9   : > { %7987 = vmatprep.subr.bf16.mxu1 %v7986_v12 }
 0x1ca   : > { %7989 = vmatpush3.bf16.msra.mxu1 %v7986_v12  ;;  %v15669_v12 = vld [vmem:[#allocation20_spill] sm:$0xff] }
 0x1cb   : > { %8583 = vrot.lane.b32.xlu0 %v15657_v6, %s9668_s26  ;;  %7726 = vmatprep.subr.msk.mxu1 %vm2519_vm9, %v2414_v7 }
 0x1cc   : > { %1906 = vrot.lane.b32.xlu1 %v15658_v11, %s9667_s24  ;;  %v15664_v11 = vld [vmem:[#allocation14_spill] sm:$0xff] }
 0x1ce   : > { %7727 = vmatpush3.msk.msra.mxu1 %vm2519_vm9, %v2414_v7  ;;  %v15671_v7 = vld [vmem:[#allocation21_spill] sm:$0xff] }
 0x1cf   : > { %1910 = vrot.lane.b32.xlu0 %v15659_v1, %s9667_s24  ;;  %8008 = vmatprep.subr.bf16.mxu1 %v15617_v51 }
 0x1d0   : > { %8578 = vrot.lane.b32.xlu1 %v15660_v36, %s9665_s13 }
 0x1d1   : > { %v11336_v29 = vpop.permute.xlu0 %8423 }
 0x1d2   : > { %v8426_v24 = vunpack.i.h.bf16 %v11336_v29  ;;  %v8425_v41 = vunpack.i.l.bf16 %v11336_v29 }
 0x1d3   : > { %8593 = vrot.lane.b32.xlu0 %v15661_v25, %s9665_s13  ;;  %v8429_v31 = vpop.permute.xlu1 %8428 }
 0x1d4   : > { %8588 = vrot.lane.b32.xlu1 %v15662_v58, %s9666_s25  ;;  %v2165_v50 = vsel %vm2140_vm7, %v2132_v10, %v8425_v41  ;;  %v2166_v6 = vsel %vm2140_vm7, %v2133_v33, %v8426_v24  ;;  %v8430_v1 = vunpack.i.l.bf16 %v8429_v31  ;;  %v8431_v21 = vunpack.i.h.bf16 %v8429_v31 }
 0x1d5   : > { %2707 = vmatprep.mubr.f32.mxu0 %v2165_v50  ;;  %v8434_v4 = vpop.permute.xlu0 %8433  ;;  %v15670_v50 = vld [vmem:[#allocation50_spill] sm:$0xff] }
 0x1d6   : > { %2708 = vmatmul.mubr.f32.gmra.mrb[48].mxu0 %v2099_v15  ;;  %v8435_v36 = vunpack.i.l.bf16 %v8434_v4  ;;  %v8436_v13 = vunpack.i.h.bf16 %v8434_v4  ;;  %v2101_v15 = vsel %vm2074_vm8, %v10803_v47, %v8430_v1  ;;  %v2102_v31 = vsel %vm2074_vm8, %v10830_v38, %v8431_v21  ;;  %v15673_v47 = vld [vmem:[#allocation74_spill] sm:$0xff] }
 0x1d7   : > { %1978 = vrot.lane.b32.xlu0 %v15664_v11, %s9669_s16  ;;  %2712 = vmatprep.mubr.f32.mxu0 %v2166_v6  ;;  %v15672_v11 = vld [vmem:[#allocation15_spill] sm:$0xff] }
 0x1d8   : > { %1912 = vrot.lane.b32.xlu1 %v15665_v22, %s9667_s24  ;;  %v2134_v58 = vsel %vm2107_vm6, %v8430_v1, %v8435_v36  ;;  %v2135_v33 = vsel %vm2107_vm6, %v8431_v21, %v8436_v13  ;;  %v15675_v36 = vld [vmem:[#allocation70_spill] sm:$0xff] }
 0x1da   : > { %2713 = vmatmul.mubr.f32.gmra.mrb[50].mxu0 %v2100_v16 }
 0x1db   : > { %1914 = vrot.lane.b32.xlu0 %v15667_v27, %s9667_s24  ;;  %v15676_v27 = vld [vmem:[#allocation60_spill] sm:$0xff] }
 0x1dc   : > { %8598 = vrot.lane.b32.xlu1 %v15668_v52, %s9668_s26 }
 0x1dd   : > { %v11374_v25 = vpop.permute.xlu1 %8438 }
 0x1de   : > { %v8441_v10 = vunpack.i.h.bf16 %v11374_v25  ;;  %v8440_v57 = vunpack.i.l.bf16 %v11374_v25 }
 0x1df   : > { %1982 = vrot.lane.b32.xlu0 %v15669_v12, %s9669_s16 }
 0x1e0   : > { %8603 = vrot.lane.b32.xlu1 %v15670_v50, %s9666_s25  ;;  %v2167_v26 = vsel %vm2140_vm7, %v2134_v58, %v8440_v57  ;;  %v2168_v6 = vsel %vm2140_vm7, %v2135_v33, %v8441_v10  ;;  %v8444_v4 = vpop.permute.xlu0 %8443  ;;  %v15677_v58 = vld [vmem:[#allocation18_spill] sm:$0xff] }
 0x1e1   : > { %2717 = vmatprep.mubr.f32.mxu0 %v2167_v26  ;;  %v8449_v22 = vpop.permute.xlu1 %8448  ;;  %v8445_v16 = vunpack.i.l.bf16 %v8444_v4  ;;  %v8446_v52 = vunpack.i.h.bf16 %v8444_v4  ;;  %v15678_v26 = vld [vmem:[#allocation17_spill] sm:$0xff] }
 0x1e2   : > { %2718 = vmatmul.mubr.f32.gmra.mrb[52].mxu0 %v2101_v15  ;;  %v8450_v1 = vunpack.i.l.bf16 %v8449_v22  ;;  %v8451_v13 = vunpack.i.h.bf16 %v8449_v22 }
 0x1e3   : > { %1984 = vrot.lane.b32.xlu0 %v15671_v7, %s9669_s16  ;;  %2722 = vmatprep.mubr.f32.mxu0 %v2168_v6  ;;  %v2103_v6 = vsel %vm2074_vm8, %v10928_v42, %v8445_v16  ;;  %v2104_v42 = vsel %vm2074_vm8, %v10931_v30, %v8446_v52  ;;  %v15683_v30 = vld [vmem:[#allocation31_spill] sm:$0xff] }
 0x1e4   : > { %1980 = vrot.lane.b32.xlu1 %v15672_v11, %s9669_s16  ;;  %v2136_v50 = vsel %vm2107_vm6, %v8445_v16, %v8450_v1  ;;  %v2137_v7 = vsel %vm2107_vm6, %v8446_v52, %v8451_v13  ;;  %v15684_v52 = vld [vmem:[#allocation29_spill] sm:$0xff] }
 0x1e6   : > { %2723 = vmatmul.mubr.f32.gmra.mrb[54].mxu0 %v2102_v31  ;;  %v15679_v31 = vld [vmem:[#allocation63_spill] sm:$0xff] }
 0x1e7   : > { %8613 = vrot.lane.b32.xlu0 %v15673_v47, %s9668_s26  ;;  %v15680_v47 = vld [vmem:[#allocation62_spill] sm:$0xff] }
 0x1e8   : > { %1916 = vrot.lane.b32.xlu1 %v15674_v49, %s9667_s24  ;;  %v15681_v49 = vld [vmem:[#allocation78_spill] sm:$0xff] }
 0x1eb   : > { %8618 = vrot.lane.b32.xlu0 %v15675_v36, %s9666_s25  ;;  %v15682_v36 = vld [vmem:[#allocation28_spill] sm:$0xff] }
 0x1ec   : > { %8608 = vrot.lane.b32.xlu1 %v15676_v27, %s9665_s13 }
 0x1ed   : > { %v11406_v38 = vpop.permute.xlu0 %8453 }
 0x1ee   : > { %v8456_v21 = vunpack.i.h.bf16 %v11406_v38  ;;  %v8455_v12 = vunpack.i.l.bf16 %v11406_v38  ;;  %v3198_v38 = vld [vmem:[%s15290_s3] sm:$0xff] }
 0x1ef   : > { %1988 = vrot.lane.b32.xlu0 %v15677_v58, %s9669_s16  ;;  %v8459_v4 = vpop.permute.xlu1 %8458 }
 0x1f0   : > { %1986 = vrot.lane.b32.xlu1 %v15678_v26, %s9669_s16  ;;  %v2169_v15 = vsel %vm2140_vm7, %v2136_v50, %v8455_v12  ;;  %v2170_v11 = vsel %vm2140_vm7, %v2137_v7, %v8456_v21  ;;  %v8460_v16 = vunpack.i.l.bf16 %v8459_v4  ;;  %v8461_v13 = vunpack.i.h.bf16 %v8459_v4 }
 0x1f1   : > { %v8464_v33 = vpop.permute.xlu0 %8463  ;;  %2727 = vmatprep.mubr.f32.mxu0 %v2169_v15 }
 0x1f2   : > { %2728 = vmatmul.mubr.f32.gmra.mrb[56].mxu0 %v2103_v6  ;;  %v8465_v1 = vunpack.i.l.bf16 %v8464_v33  ;;  %v8466_v58 = vunpack.i.h.bf16 %v8464_v33 }
 0x1f3   : > { %1920 = vrot.lane.b32.xlu0 %v15679_v31, %s9667_s24  ;;  %2732 = vmatprep.mubr.f32.mxu0 %v2170_v11  ;;  %v2105_v31 = vsel %vm2074_vm8, %v11023_v59, %v8460_v16 }
 0x1f4   : > { %1918 = vrot.lane.b32.xlu1 %v15680_v47, %s9667_s24  ;;  %v2138_v6 = vsel %vm2107_vm6, %v8460_v16, %v8465_v1  ;;  %v2139_v47 = vsel %vm2107_vm6, %v8461_v13, %v8466_v58  ;;  %v15685_v1 = vld [vmem:[#allocation80_spill] sm:$0xff] }
 0x1f5   : > { %v11428_v22 = vpop.permute.xlu0 %8473 }
 0x1f6   : > { %2733 = vmatmul.mubr.f32.gmra.mrb[58].mxu0 %v2104_v42  ;;  %v8475_v4 = vunpack.i.l.bf16 %v11428_v22  ;;  %v8476_v58 = vunpack.i.h.bf16 %v11428_v22  ;;  %v15690_v22 = vld [vmem:[#allocation66_spill] sm:$0xff] }
 0x1f7   : > { %8623 = vrot.lane.b32.xlu0 %v15681_v49, %s9665_s13 }
 0x1f8   : > { %1990 = vrot.lane.b32.xlu1 %v15682_v36, %s9669_s16 }
 0x1f9   : > { %v8484_v27 = vpop.permute.xlu0 %8483  ;;  %v11436_v50 = vpop.permute.xlu1 %8468 }
 0x1fa   : > { %v15419_v26 = vunpack.i.h.bf16 %v11436_v50  ;;  %v15420_v15 = vunpack.i.l.bf16 %v11436_v50  ;;  %v8485_v42 = vunpack.i.l.bf16 %v8484_v27 }
 0x1fb   : > { %1994 = vrot.lane.b32.xlu0 %v15683_v30, %s9669_s16 }
 0x1fc   : > { %1992 = vrot.lane.b32.xlu1 %v15684_v52, %s9669_s16  ;;  %v2171_v33 = vsel %vm2140_vm7, %v2138_v6, %v15420_v15  ;;  %v2172_v36 = vsel %vm2140_vm7, %v2139_v47, %v15419_v26  ;;  %v15686_v52 = vld [vmem:[#allocation71_spill] sm:$0xff]  ;;  %v15687_v47 = vld [vmem:[#allocation42_spill] sm:$0xff] }
 0x1fd   : > { %v11445_v7 = vpop.permute.xlu0 %1884  ;;  %2737 = vmatprep.mubr.f32.mxu0 %v2171_v33  ;;  %v2106_v33 = vsel %vm2074_vm8, %v11046_v0, %v8461_v13 }
 0x1fe   : > { %v8479_v11 = vpop.permute.xlu1 %8478  ;;  %2738 = vmatmul.mubr.f32.gmra.mrb[60].mxu0 %v2105_v31  ;;  %v8486_v31 = vunpack.i.h.bf16 %v8484_v27 }
 0x1ff   : > { %v8480_v49 = vunpack.i.l.bf16 %v8479_v11  ;;  %1922 = vrot.lane.b32.xlu0 %v15685_v1, %s9667_s24  ;;  %v8481_v30 = vunpack.i.h.bf16 %v8479_v11  ;;  %2742 = vmatprep.mubr.f32.mxu0 %v2172_v36  ;;  %v15688_v1 = vld [vmem:[#allocation82_spill] sm:$0xff] }
 0x200   : > { %8628 = vrot.lane.b32.xlu1 %v15686_v52, %s9668_s26  ;;  %v15689_v36 = vunpack.i.l.bf16 %v15688_v1 }
 0x201   : > { %v8494_v59 = vpop.permute.xlu0 %8493  ;;  %v2240_v16 = vsel %vm2239_vm10, %v8475_v4, %v8480_v49  ;;  %v2241_v49 = vsel %vm2239_vm10, %v8476_v58, %v8481_v30  ;;  %v15693_v30 = vld [vmem:[#allocation32_spill] sm:$0xff] }
 0x202   : > { %v11463_v6 = vpop.permute.xlu1 %1882  ;;  %2743 = vmatmul.mubr.f32.gmra.mrb[62].mxu0 %v2106_v33  ;;  %v2174_v52 = vsel %vm2173_vm12, %v15689_v36, %v8485_v42  ;;  %v8495_v33 = vunpack.i.l.bf16 %v8494_v59  ;;  %v2274_v42 = vsel %vm2272_vm11, %v2241_v49, %v11445_v7  ;;  %v15692_v36 = vunpack.i.h.bf16 %v15688_v1  ;;  %v15694_v1 = vld [vmem:[#allocation79_spill] sm:$0xff] }
 0x203   : > { %1998 = vrot.lane.b32.xlu0 %v15687_v47, %s9669_s16  ;;  %v2273_v11 = vsel %vm2272_vm11, %v2240_v16, %v11463_v6  ;;  %v2207_v13 = vsel %vm2206_vm13, %v2174_v52, %v8475_v4  ;;  %v15691_v16 = vld [vmem:[#allocation43_spill] sm:$0xff] }
 0x204   : > { %8633 = vrot.lane.b32.xlu1 %v15690_v22, %s9666_s25  ;;  %2812 = vmatprep.mubr.f32.mxu0 %v2273_v11  ;;  %v2175_v11 = vsel %vm2173_vm12, %v15692_v36, %v8486_v31  ;;  %v8496_v31 = vunpack.i.h.bf16 %v8494_v59 }
 0x205   : > { %v11477_v0 = vpop.permute.xlu0 %1886  ;;  %v2208_v15 = vsel %vm2206_vm13, %v2175_v11, %v8476_v58  ;;  %v15696_v11 = vld [vmem:[#allocation81_spill] sm:$0xff] }
 0x206   : > { %v8489_v27 = vpop.permute.xlu1 %8488  ;;  %2813 = vmatmul.mubr.f32.vlgmr.msra.gmra.mrb[0].mxu0 %v2207_v13 }
 0x207   : > { %v8490_v47 = vunpack.i.l.bf16 %v8489_v27  ;;  %2000 = vrot.lane.b32.xlu0 %v15691_v16, %s9669_s16  ;;  %2817 = vmatprep.mubr.f32.mxu0 %v2274_v42  ;;  %v8491_v52 = vunpack.i.h.bf16 %v8489_v27  ;;  %v15695_v27 = vunpack.i.l.bf16 %v10719_v28 }
 0x208   : > { %1996 = vrot.lane.b32.xlu1 %v15693_v30, %s9669_s16  ;;  %v15698_v30 = vld [vmem:[#allocation76_spill] sm:$0xff] }
 0x209   : > { %v8504_v22 = vpop.permute.xlu0 %8503  ;;  %v2242_v4 = vsel %vm2239_vm10, %v8490_v47, %v8495_v33 }
 0x20a   : > { %v8499_v26 = vpop.permute.xlu1 %8498  ;;  %v2275_v13 = vsel %vm2272_vm11, %v2242_v4, %v11477_v0  ;;  %2818 = vmatmul.mubr.f32.gmra.mrb[2].mxu0 %v2208_v15  ;;  %v15697_v15 = vunpack.i.h.bf16 %v10719_v28  ;;  %v8506_v28 = vunpack.i.h.bf16 %v8504_v22 }
 0x20b   : > { %v8501_v16 = vunpack.i.h.bf16 %v8499_v26  ;;  %v8500_v49 = vunpack.i.l.bf16 %v8499_v26  ;;  %8643 = vrot.lane.b32.xlu0 %v10850_v20, %s9668_s26  ;;  %2822 = vmatprep.mubr.f32.mxu0 %v2275_v13  ;;  %v2243_v26 = vsel %vm2239_vm10, %v8491_v52, %v8496_v31  ;;  %v8505_v31 = vunpack.i.l.bf16 %v8504_v22 }
 0x20c   : > { %1924 = vrot.lane.b32.xlu1 %v15694_v1, %s9667_s24 }
 0x20d   : > { %v8514_v42 = vpop.permute.xlu0 %8513  ;;  %v2176_v33 = vsel %vm2173_vm12, %v15695_v27, %v8500_v49  ;;  %v2177_v59 = vsel %vm2173_vm12, %v15697_v15, %v8501_v16  ;;  %v15700_v16 = vld [vmem:[#allocation45_spill] sm:$0xff] }
 0x20e   : > { %v11500_v58 = vpop.permute.xlu1 %1888  ;;  %v2209_v36 = vsel %vm2206_vm13, %v2176_v33, %v8490_v47  ;;  %v8515_v4 = vunpack.i.l.bf16 %v8514_v42  ;;  %v2210_v49 = vsel %vm2206_vm13, %v2177_v59, %v8491_v52  ;;  %v15699_v33 = vld [vmem:[#allocation46_spill] sm:$0xff] }
 0x20f   : > { %8648 = vrot.lane.b32.xlu0 %v15696_v11, %s9666_s25  ;;  %2823 = vmatmul.mubr.f32.gmra.mrb[4].mxu0 %v2209_v36  ;;  %v2276_v20 = vsel %vm2272_vm11, %v2243_v26, %v11500_v58  ;;  %v8516_v36 = vunpack.i.h.bf16 %v8514_v42 }
 0x210   : > { %8638 = vrot.lane.b32.xlu1 %v15698_v30, %s9665_s13  ;;  %2827 = vmatprep.mubr.f32.mxu0 %v2276_v20  ;;  %v15701_v20 = vunpack.i.l.bf16 %v10723_v2 }
 0x211   : > { %v11513_v13 = vpop.permute.xlu0 %1892 }
 0x212   : > { %v8509_v47 = vpop.permute.xlu1 %8508  ;;  %v2178_v15 = vsel %vm2173_vm12, %v15701_v20, %v8515_v4 }
 0x213   : > { %v8511_v1 = vunpack.i.h.bf16 %v8509_v47  ;;  %v8510_v27 = vunpack.i.l.bf16 %v8509_v47  ;;  %2004 = vrot.lane.b32.xlu0 %v15699_v33, %s9669_s16  ;;  %2828 = vmatmul.mubr.f32.gmra.mrb[6].mxu0 %v2210_v49  ;;  %v2211_v42 = vsel %vm2206_vm13, %v2178_v15, %v8505_v31  ;;  %v15702_v47 = vunpack.i.h.bf16 %v10723_v2 }
 0x214   : > { %2002 = vrot.lane.b32.xlu1 %v15700_v16, %s9669_s16 }
 0x215   : > { %v8524_v26 = vpop.permute.xlu0 %8523  ;;  %v2244_v11 = vsel %vm2239_vm10, %v8505_v31, %v8510_v27  ;;  %v2245_v59 = vsel %vm2239_vm10, %v8506_v28, %v8511_v1  ;;  %v2179_v49 = vsel %vm2173_vm12, %v15702_v47, %v8516_v36 }
 0x216   : > { %v11524_v52 = vpop.permute.xlu1 %1890  ;;  %v2278_v4 = vsel %vm2272_vm11, %v2245_v59, %v11513_v13  ;;  %v8525_v1 = vunpack.i.l.bf16 %v8524_v26  ;;  %v2212_v31 = vsel %vm2206_vm13, %v2179_v49, %v8506_v28  ;;  %v15704_v59 = vld [vmem:[#allocation55_spill] sm:$0xff] }
 0x217   : > { %1928 = vrot.lane.b32.xlu0 %v10855_v48, %s9667_s24  ;;  %v2277_v22 = vsel %vm2272_vm11, %v2244_v11, %v11524_v52 }
 0x218   : > { %1926 = vrot.lane.b32.xlu1 %v10861_v62, %s9667_s24  ;;  %2832 = vmatprep.mubr.f32.mxu0 %v2277_v22  ;;  %v15703_v62 = vld [vmem:[#allocation59_spill] sm:$0xff]  ;;  %v15705_v22 = vld [vmem:[#allocation61_spill] sm:$0xff] }
 0x219   : > { %v11534_v30 = vpop.permute.xlu0 %1894  ;;  %2833 = vmatmul.mubr.f32.gmra.mrb[8].mxu0 %v2211_v42  ;;  %v15706_v42 = vld [vmem:[#allocation83_spill] sm:$0xff] }
 0x21a   : > { %v8519_v48 = vpop.permute.xlu1 %8518  ;;  %2837 = vmatprep.mubr.f32.mxu0 %v2278_v4  ;;  %v15707_v4 = vunpack.i.l.bf16 %v15706_v42 }
 0x21b   : > { %v8520_v27 = vunpack.i.l.bf16 %v8519_v48  ;;  %8653 = vrot.lane.b32.xlu0 %v10877_v55, %s9665_s13  ;;  %v8521_v11 = vunpack.i.h.bf16 %v8519_v48  ;;  %v8526_v55 = vunpack.i.h.bf16 %v8524_v26 }
 0x21c   : > { %2006 = vrot.lane.b32.xlu1 %v15703_v62, %s9669_s16  ;;  %v15708_v62 = vunpack.i.h.bf16 %v15706_v42 }
 0x21d   : > { %v8534_v33 = vpop.permute.xlu0 %8533  ;;  %2838 = vmatmul.mubr.f32.gmra.mrb[10].mxu0 %v2212_v31  ;;  %v2246_v16 = vsel %vm2239_vm10, %v8520_v27, %v8525_v1  ;;  %v2247_v1 = vsel %vm2239_vm10, %v8521_v11, %v8526_v55  ;;  %v15709_v55 = vld [vmem:[#allocation75_spill] sm:$0xff] }
 0x21e   : > { %v8529_v2 = vpop.permute.xlu1 %8528  ;;  %v2279_v36 = vsel %vm2272_vm11, %v2246_v16, %v11534_v30 }
 0x21f   : > { %v8531_v20 = vunpack.i.h.bf16 %v8529_v2  ;;  %v8530_v15 = vunpack.i.l.bf16 %v8529_v2  ;;  %2010 = vrot.lane.b32.xlu0 %v15704_v59, %s9669_s16  ;;  %2842 = vmatprep.mubr.f32.mxu0 %v2279_v36 }
 0x220   : > { %2008 = vrot.lane.b32.xlu1 %v15705_v22, %s9669_s16  ;;  %v8536_v22 = vunpack.i.h.bf16 %v8534_v33 }
 0x221   : > { %v8544_v28 = vpop.permute.xlu0 %8543  ;;  %v2180_v47 = vsel %vm2173_vm12, %v15707_v4, %v8530_v15  ;;  %v2181_v31 = vsel %vm2173_vm12, %v15708_v62, %v8531_v20  ;;  %v8535_v15 = vunpack.i.l.bf16 %v8534_v33  ;;  %v15710_v20 = vld [vmem:[#allocation88_spill] sm:$0xff]  ;;  %v15713_v62 = vld [vmem:[#allocation77_spill] sm:$0xff] }
 0x222   : > { %v11556_v49 = vpop.permute.xlu1 %1896  ;;  %v2213_v48 = vsel %vm2206_vm13, %v2180_v47, %v8520_v27  ;;  %v8545_v16 = vunpack.i.l.bf16 %v8544_v28  ;;  %v2214_v36 = vsel %vm2206_vm13, %v2181_v31, %v8521_v11  ;;  %v8546_v42 = vunpack.i.h.bf16 %v8544_v28  ;;  %v15711_v47 = vld [vmem:[#allocation84_spill] sm:$0xff] }
 0x223   : > { %1930 = vrot.lane.b32.xlu0 %v10975_v19, %s9667_s24  ;;  %2843 = vmatmul.mubr.f32.gmra.mrb[12].mxu0 %v2213_v48  ;;  %v2280_v26 = vsel %vm2272_vm11, %v2247_v1, %v11556_v49  ;;  %v15712_v48 = vunpack.i.l.bf16 %v15711_v47  ;;  %v15714_v31 = vld [vmem:[#allocation56_spill] sm:$0xff] }
 0x224   : > { %8658 = vrot.lane.b32.xlu1 %v10946_v43, %s9668_s26  ;;  %2847 = vmatprep.mubr.f32.mxu0 %v2280_v26 }
 0x225   : > { %v11569_v2 = vpop.permute.xlu0 %1900  ;;  %v2182_v1 = vsel %vm2173_vm12, %v15712_v48, %v8545_v16 }
 0x226   : > { %v8539_v27 = vpop.permute.xlu1 %8538  ;;  %v2215_v28 = vsel %vm2206_vm13, %v2182_v1, %v8535_v15 }
 0x227   : > { %v8541_v19 = vunpack.i.h.bf16 %v8539_v27  ;;  %v8540_v59 = vunpack.i.l.bf16 %v8539_v27  ;;  %2014 = vrot.lane.b32.xlu0 %v15709_v55, %s9669_s16  ;;  %2848 = vmatmul.mubr.f32.gmra.mrb[14].mxu0 %v2214_v36  ;;  %v15715_v36 = vunpack.i.h.bf16 %v15711_v47 }
 0x228   : > { %8663 = vrot.lane.b32.xlu1 %v15710_v20, %s9666_s25 }
 0x229   : > { %v8554_v43 = vpop.permute.xlu0 %8553  ;;  %v2248_v4 = vsel %vm2239_vm10, %v8535_v15, %v8540_v59  ;;  %v2249_v26 = vsel %vm2239_vm10, %v8536_v22, %v8541_v19  ;;  %v2183_v19 = vsel %vm2173_vm12, %v15715_v36, %v8546_v42 }
 0x22a   : > { %v11580_v11 = vpop.permute.xlu1 %1898  ;;  %v2282_v16 = vsel %vm2272_vm11, %v2249_v26, %v11569_v2  ;;  %v8555_v55 = vunpack.i.l.bf16 %v8554_v43  ;;  %v2216_v15 = vsel %vm2206_vm13, %v2183_v19, %v8536_v22 }
 0x22b   : > { %2016 = vrot.lane.b32.xlu0 %v15713_v62, %s9669_s16  ;;  %v2281_v33 = vsel %vm2272_vm11, %v2248_v4, %v11580_v11  ;;  %v15716_v4 = vld [vmem:[#allocation90_spill] sm:$0xff] }
 0x22c   : > { %2012 = vrot.lane.b32.xlu1 %v15714_v31, %s9669_s16  ;;  %2852 = vmatprep.mubr.f32.mxu0 %v2281_v33  ;;  %v15717_v31 = vld [vmem:[#allocation93_spill] sm:$0xff] }
 0x22d   : > { %v11590_v27 = vpop.permute.xlu0 %1902  ;;  %2853 = vmatmul.mubr.f32.gmra.mrb[16].mxu0 %v2215_v28  ;;  %v15718_v28 = vld [vmem:[#allocation94_spill] sm:$0xff] }
 0x22e   : > { %v8549_v59 = vpop.permute.xlu1 %8548  ;;  %2857 = vmatprep.mubr.f32.mxu0 %v2282_v16  ;;  %v15719_v16 = vld [vmem:[#allocation85_spill] sm:$0xff] }
 0x22f   : > { %v8550_v20 = vunpack.i.l.bf16 %v8549_v59  ;;  %8673 = vrot.lane.b32.xlu0 %v11055_v45, %s9668_s26  ;;  %v8551_v26 = vunpack.i.h.bf16 %v8549_v59  ;;  %v8556_v45 = vunpack.i.h.bf16 %v8554_v43  ;;  %v15720_v36 = vunpack.i.l.bf16 %v15719_v16 }
 0x230   : > { %1932 = vrot.lane.b32.xlu1 %v15716_v4, %s9667_s24 }
 0x231   : > { %v8564_v48 = vpop.permute.xlu0 %8563  ;;  %2858 = vmatmul.mubr.f32.gmra.mrb[18].mxu0 %v2216_v15  ;;  %v2250_v1 = vsel %vm2239_vm10, %v8550_v20, %v8555_v55  ;;  %v2251_v4 = vsel %vm2239_vm10, %v8551_v26, %v8556_v45  ;;  %v15721_v15 = vld [vmem:[#allocation72_spill] sm:$0xff] }
 0x232   : > { %v8559_v47 = vpop.permute.xlu1 %8558  ;;  %v2283_v42 = vsel %vm2272_vm11, %v2250_v1, %v11590_v27  ;;  %v15722_v1 = vunpack.i.h.bf16 %v15719_v16  ;;  %v8566_v16 = vunpack.i.h.bf16 %v8564_v48 }
 0x233   : > { %v8561_v62 = vunpack.i.h.bf16 %v8559_v47  ;;  %v8560_v33 = vunpack.i.l.bf16 %v8559_v47  ;;  %8678 = vrot.lane.b32.xlu0 %v15717_v31, %s9666_s25  ;;  %2862 = vmatprep.mubr.f32.mxu0 %v2283_v42  ;;  %v15723_v42 = vld [vmem:[#allocation73_spill] sm:$0xff] }
 0x234   : > { %8668 = vrot.lane.b32.xlu1 %v15718_v28, %s9665_s13  ;;  %v8565_v28 = vunpack.i.l.bf16 %v8564_v48 }
 0x235   : > { %v8574_v22 = vpop.permute.xlu0 %8573  ;;  %v2184_v19 = vsel %vm2173_vm12, %v15720_v36, %v8560_v33  ;;  %v2185_v47 = vsel %vm2173_vm12, %v15722_v1, %v8561_v62 }
 0x236   : > { %v11612_v59 = vpop.permute.xlu1 %1904  ;;  %v2217_v55 = vsel %vm2206_vm13, %v2184_v19, %v8550_v20  ;;  %v8575_v33 = vunpack.i.l.bf16 %v8574_v22  ;;  %v2218_v45 = vsel %vm2206_vm13, %v2185_v47, %v8551_v26  ;;  %v8576_v62 = vunpack.i.h.bf16 %v8574_v22 }
 0x237   : > { %2020 = vrot.lane.b32.xlu0 %v15721_v15, %s9669_s16  ;;  %2863 = vmatmul.mubr.f32.gmra.mrb[20].mxu0 %v2217_v55  ;;  %v2284_v43 = vsel %vm2272_vm11, %v2251_v4, %v11612_v59  ;;  %v15724_v15 = vld [vmem:[#allocation89_spill] sm:$0xff] }
 0x238   : > { %2018 = vrot.lane.b32.xlu1 %v15723_v42, %s9669_s16  ;;  %2867 = vmatprep.mubr.f32.mxu0 %v2284_v43  ;;  %v15725_v43 = vunpack.i.l.bf16 %v15724_v15 }
 0x239   : > { %v11625_v31 = vpop.permute.xlu0 %1908 }
 0x23a   : > { %v8569_v20 = vpop.permute.xlu1 %8568  ;;  %v2186_v1 = vsel %vm2173_vm12, %v15725_v43, %v8575_v33  ;;  %v15727_v33 = vunpack.i.h.bf16 %v15724_v15 }
 0x23b   : > { %v8571_v36 = vunpack.i.h.bf16 %v8569_v20  ;;  %v8570_v19 = vunpack.i.l.bf16 %v8569_v20  ;;  %1936 = vrot.lane.b32.xlu0 %v11065_v56, %s9667_s24  ;;  %2868 = vmatmul.mubr.f32.gmra.mrb[22].mxu0 %v2218_v45  ;;  %v2219_v48 = vsel %vm2206_vm13, %v2186_v1, %v8565_v28 }
 0x23c   : > { %1934 = vrot.lane.b32.xlu1 %v11071_v32, %s9667_s24  ;;  %v15726_v32 = vld [vmem:[#allocation87_spill] sm:$0xff]  ;;  %v2187_v20 = vsel %vm2173_vm12, %v15727_v33, %v8576_v62 }
 0x23d   : > { %v8584_v55 = vpop.permute.xlu0 %8583  ;;  %v2252_v4 = vsel %vm2239_vm10, %v8565_v28, %v8570_v19  ;;  %v2253_v47 = vsel %vm2239_vm10, %v8566_v16, %v8571_v36  ;;  %v15728_v19 = vld [vmem:[#allocation91_spill] sm:$0xff]  ;;  %v2220_v28 = vsel %vm2206_vm13, %v2187_v20, %v8566_v16 }
 0x23e   : > { %v11636_v26 = vpop.permute.xlu1 %1906  ;;  %v2286_v42 = vsel %vm2272_vm11, %v2253_v47, %v11625_v31  ;;  %v8585_v45 = vunpack.i.l.bf16 %v8584_v55 }
 0x23f   : > { %8683 = vrot.lane.b32.xlu0 %v11087_v35, %s9665_s13  ;;  %v2285_v56 = vsel %vm2272_vm11, %v2252_v4, %v11636_v26  ;;  %v15729_v4 = vld [vmem:[#allocation86_spill] sm:$0xff] }
 0x240   : > { %2022 = vrot.lane.b32.xlu1 %v15726_v32, %s9669_s16  ;;  %2872 = vmatprep.mubr.f32.mxu0 %v2285_v56 }
 0x241   : > { %v11646_v22 = vpop.permute.xlu0 %1910  ;;  %2873 = vmatmul.mubr.f32.gmra.mrb[24].mxu0 %v2219_v48  ;;  %v8586_v48 = vunpack.i.h.bf16 %v8584_v55  ;;  %v15731_v55 = vld [vmem:[#allocation96_spill] sm:$0xff] }
 0x242   : > { %v8579_v35 = vpop.permute.xlu1 %8578  ;;  %2877 = vmatprep.mubr.f32.mxu0 %v2286_v42  ;;  %v15730_v42 = vunpack.i.l.bf16 %v10997_v60 }
 0x243   : > { %v8580_v36 = vunpack.i.l.bf16 %v8579_v35  ;;  %2026 = vrot.lane.b32.xlu0 %v15728_v19, %s9669_s16  ;;  %v8581_v15 = vunpack.i.h.bf16 %v8579_v35 }
 0x244   : > { %2024 = vrot.lane.b32.xlu1 %v15729_v4, %s9669_s16  ;;  %v15732_v4 = vunpack.i.h.bf16 %v10997_v60  ;;  %v15735_v60 = vld [vmem:[#allocation7_spill] sm:$0xff] }
 0x245   : > { %v11658_v43 = vpop.permute.xlu0 %8593  ;;  %2878 = vmatmul.mubr.f32.gmra.mrb[26].mxu0 %v2220_v28  ;;  %v2254_v1 = vsel %vm2239_vm10, %v8580_v36, %v8585_v45  ;;  %v2255_v19 = vsel %vm2239_vm10, %v8581_v15, %v8586_v48  ;;  %v15734_v48 = vld [vmem:[#allocation95_spill] sm:$0xff] }
 0x246   : > { %v8589_v47 = vpop.permute.xlu1 %8588  ;;  %v2287_v62 = vsel %vm2272_vm11, %v2254_v1, %v11646_v22 }
 0x247   : > { %v8591_v56 = vunpack.i.h.bf16 %v8589_v47  ;;  %v8590_v32 = vunpack.i.l.bf16 %v8589_v47  ;;  %1938 = vrot.lane.b32.xlu0 %v11174_v46, %s9667_s24  ;;  %2882 = vmatprep.mubr.f32.mxu0 %v2287_v62  ;;  %v8595_v62 = vunpack.i.l.bf16 %v11658_v43 }
 0x248   : > { %8688 = vrot.lane.b32.xlu1 %v11137_v40, %s9668_s26 }
 0x249   : > { %v1979_v16 = vpop.permute.xlu0 %1978  ;;  %v2188_v33 = vsel %vm2173_vm12, %v15730_v42, %v8590_v32  ;;  %v2189_v28 = vsel %vm2173_vm12, %v15732_v4, %v8591_v56  ;;  %v15736_v56 = vld [vmem:[#allocation6_spill] sm:$0xff]  ;;  %v15737_v42 = vld [vmem:[#allocation92_spill] sm:$0xff] }
 0x24a   : > { %v11670_v20 = vpop.permute.xlu1 %1912  ;;  %v2221_v35 = vsel %vm2206_vm13, %v2188_v33, %v8580_v36  ;;  %v2306_v45 = vsel %vm2305_vm14, %v11463_v6, %v1979_v16  ;;  %v15733_v36 = vld [vmem:[#allocation97_spill] sm:$0xff]  ;;  %v2222_v47 = vsel %vm2206_vm13, %v2189_v28, %v8581_v15  ;;  %v8702_v16 = vpack.i.bf16 %v15736_v56, %v15735_v60 }
 0x24b   : > { %2030 = vrot.lane.b32.xlu0 %v15731_v55, %s9669_s16  ;;  %2883 = vmatmul.mubr.f32.gmra.mrb[28].mxu0 %v2221_v35  ;;  %v2288_v40 = vsel %vm2272_vm11, %v2255_v19, %v11670_v20 }
 0x24c   : > { %7728 = vmatprep.mubr.msk.f32.mxu1 %vm2422_vm15, %v2306_v45  ;;  %8693 = vrot.lane.b32.xlu1 %v15733_v36, %s9666_s25 }
 0x24d   : > { %2887 = vmatprep.mubr.f32.mxu0 %v2288_v40  ;;  %v11686_v6 = vpop.permute.xlu0 %1914 }
 0x24e   : > { %v8599_v1 = vpop.permute.xlu1 %8598 }
 0x24f   : > { %v8600_v32 = vunpack.i.l.bf16 %v8599_v1  ;;  %2032 = vrot.lane.b32.xlu0 %v15734_v48, %s9669_s16  ;;  %2888 = vmatmul.mubr.f32.gmra.mrb[30].mxu0 %v2222_v47  ;;  %v8601_v28 = vunpack.i.h.bf16 %v8599_v1  ;;  %v8596_v48 = vunpack.i.h.bf16 %v11658_v43 }
 0x250   : > { %2028 = vrot.lane.b32.xlu1 %v15737_v42, %s9669_s16 }
 0x251   : > { %v1983_v33 = vpop.permute.xlu0 %1982  ;;  %v2256_v35 = vsel %vm2239_vm10, %v8595_v62, %v8600_v32 }
 0x252   : > { %v8604_v45 = vpop.permute.xlu1 %8603  ;;  %v2289_v15 = vsel %vm2272_vm11, %v2256_v35, %v11686_v6 }
 0x253   : > { %v8605_v19 = vunpack.i.l.bf16 %v8604_v45  ;;  %8703 = vrot.lane.b32.xlu0 %v8702_v16, %s9668_s26  ;;  %2892 = vmatprep.mubr.f32.mxu0 %v2289_v15  ;;  %v8606_v55 = vunpack.i.h.bf16 %v8604_v45  ;;  %v2308_v16 = vsel %vm2305_vm14, %v11477_v0, %v1983_v33  ;;  %v9585_v45 = vld [vmem:[#allocation3 + $0x8] sm:$0xff] }
 0x254   : > { %1940 = vrot.lane.b32.xlu1 %v11177_v3, %s9667_s24 }
 0x255   : > { %v1985_v40 = vpop.permute.xlu0 %1984  ;;  %v2190_v4 = vsel %vm2173_vm12, %v8365_v37, %v8605_v19 }
 0x256   : > { %v1981_v36 = vpop.permute.xlu1 %1980  ;;  %v2223_v47 = vsel %vm2206_vm13, %v2190_v4, %v8595_v62  ;;  %v15739_v62 = vld [vmem:[#allocation11_spill] sm:$0xff] }
 0x257   : > { %v2307_v32 = vsel %vm2305_vm14, %v11445_v7, %v1981_v36  ;;  %8708 = vrot.lane.b32.xlu0 %v8707_v44, %s9666_s25  ;;  %2893 = vmatmul.mubr.f32.gmra.mrb[32].mxu0 %v2223_v47  ;;  %v15738_v7 = vunpack.i.h.bf16 %v11150_v39  ;;  %v2257_v44 = vsel %vm2239_vm10, %v8596_v48, %v8601_v28 }
 0x258   : > { %8698 = vrot.lane.b32.xlu1 %v8697_v61, %s9665_s13  ;;  %7729 = vmatmul.mubr.msk.f32.vlgmr.msra.gmra.mrb[0].mxu1 %vm2422_vm15, %v2307_v32  ;;  %v2309_v61 = vsel %vm2305_vm14, %v11500_v58, %v1985_v40  ;;  %v15741_v40 = vld [vmem:[#allocation12_spill] sm:$0xff] }
 0x259   : > { %v8614_v37 = vpop.permute.xlu0 %8613  ;;  %7731 = vmatprep.mubr.msk.f32.mxu1 %vm2422_vm15, %v2308_v16  ;;  %v2191_v46 = vsel %vm2173_vm12, %v15738_v7, %v8606_v55 }
 0x25a   : > { %v11724_v3 = vpop.permute.xlu1 %1916  ;;  %v2224_v39 = vsel %vm2206_vm13, %v2191_v46, %v8596_v48  ;;  %v8615_v15 = vunpack.i.l.bf16 %v8614_v37  ;;  %v8616_v36 = vunpack.i.h.bf16 %v8614_v37  ;;  %v9586_v48 = vld [vmem:[#allocation3 + $0x18] sm:$0xff]  ;;  %v9587_v46 = vld [vmem:[#allocation3] sm:$0xff] }
 0x25b   : > { %2036 = vrot.lane.b32.xlu0 %v11168_v63, %s9669_s16  ;;  %v2290_v0 = vsel %vm2272_vm11, %v2257_v44, %v11724_v3  ;;  %v15740_v63 = vld [vmem:[#allocation10_spill] sm:$0xff] }
 0x25c   : > { %2034 = vrot.lane.b32.xlu1 %v11159_v34, %s9669_s16  ;;  %2897 = vmatprep.mubr.f32.mxu0 %v2290_v0 }
 0x25d   : > { %7732 = vmatmul.mubr.msk.f32.gmra.mrb[2].mxu1 %vm2422_vm15, %v2309_v61  ;;  %v8619_v43 = vpop.permute.xlu0 %8618  ;;  %2898 = vmatmul.mubr.f32.gmra.mrb[34].mxu0 %v2224_v39  ;;  %v9588_v39 = vld [vmem:[#allocation3 + $0x28] sm:$0xff] }
 0x25e   : > { %v8609_v1 = vpop.permute.xlu1 %8608  ;;  %v8620_v42 = vunpack.i.l.bf16 %v8619_v43  ;;  %v8621_v4 = vunpack.i.h.bf16 %v8619_v43 }
 0x25f   : > { %1944 = vrot.lane.b32.xlu0 %v15739_v62, %s9667_s24  ;;  %v8610_v58 = vunpack.i.l.bf16 %v8609_v1  ;;  %v8611_v19 = vunpack.i.h.bf16 %v8609_v1  ;;  %v9589_v1 = vld [vmem:[#allocation3 + $0x10] sm:$0xff] }
 0x260   : > { %1942 = vrot.lane.b32.xlu1 %v15740_v63, %s9667_s24  ;;  %v2193_v44 = vsel %vm2173_vm12, %v8381_v14, %v8621_v4 }
 0x261   : > { %v1989_v33 = vpop.permute.xlu0 %1988  ;;  %v2258_v32 = vsel %vm2239_vm10, %v8610_v58, %v8615_v15  ;;  %v2259_v7 = vsel %vm2239_vm10, %v8611_v19, %v8616_v36  ;;  %v2226_v43 = vsel %vm2206_vm13, %v2193_v44, %v8611_v19  ;;  %v9593_v19 = vld [vmem:[#allocation3 + $0x30] sm:$0xff]  ;;  %v9594_v36 = vld [vmem:[#allocation3 + $0x58] sm:$0xff] }
 0x262   : > { %v1987_v35 = vpop.permute.xlu1 %1986  ;;  %v2311_v55 = vsel %vm2305_vm14, %v11513_v13, %v1989_v33  ;;  %v9590_v33 = vld [vmem:[#allocation3 + $0x38] sm:$0xff] }
 0x263   : > { %v2310_v34 = vsel %vm2305_vm14, %v11524_v52, %v1987_v35  ;;  %3838 = vrot.lane.b32.xlu0 %v9585_v45, %s9669_s16  ;;  %v2192_v52 = vsel %vm2173_vm12, %v8380_v8, %v8620_v42 }
 0x264   : > { %8713 = vrot.lane.b32.xlu1 %v15741_v40, %s9669_s16  ;;  %7734 = vmatprep.mubr.msk.f32.mxu1 %vm2422_vm15, %v2310_v34  ;;  %v2225_v16 = vsel %vm2206_vm13, %v2192_v52, %v8610_v58  ;;  %v9591_v58 = vld [vmem:[#allocation3 + $0x20] sm:$0xff] }
 0x265   : > { %v11749_v28 = vpop.permute.xlu0 %1920  ;;  %7735 = vmatmul.mubr.msk.f32.gmra.mrb[4].mxu1 %vm2422_vm15, %v2311_v55 }
 0x266   : > { %v11755_v47 = vpop.permute.xlu1 %1918  ;;  %v2292_v37 = vsel %vm2272_vm11, %v2259_v7, %v11749_v28 }
 0x267   : > { %v2291_v13 = vsel %vm2272_vm11, %v2258_v32, %v11755_v47  ;;  %3842 = vrot.lane.b32.xlu0 %v9586_v48, %s9669_s16  ;;  %v9595_v32 = vld [vmem:[#allocation3 + $0x40] sm:$0xff] }
 0x268   : > { %2902 = vmatprep.mubr.f32.mxu0 %v2291_v13  ;;  %3836 = vrot.lane.b32.xlu1 %v9587_v46, %s9669_s16 }
 0x269   : > { %v11764_v8 = vpop.permute.xlu0 %8623  ;;  %2903 = vmatmul.mubr.f32.gmra.mrb[36].mxu0 %v2225_v16 }
 0x26a   : > { %v1991_v0 = vpop.permute.xlu1 %1990  ;;  %2907 = vmatprep.mubr.f32.mxu0 %v2292_v37  ;;  %v8625_v45 = vunpack.i.l.bf16 %v11764_v8 }
 0x26b   : > { %v2312_v61 = vsel %vm2305_vm14, %v11534_v30, %v1991_v0  ;;  %3846 = vrot.lane.b32.xlu0 %v9588_v39, %s9669_s16  ;;  %v9596_v0 = vld [vmem:[#allocation3 + $0x68] sm:$0xff] }
 0x26c   : > { %7737 = vmatprep.mubr.msk.f32.mxu1 %vm2422_vm15, %v2312_v61  ;;  %3840 = vrot.lane.b32.xlu1 %v9589_v1, %s9669_s16  ;;  %v8626_v61 = vunpack.i.h.bf16 %v11764_v8 }
 0x26d   : > { %v1995_v42 = vpop.permute.xlu0 %1994  ;;  %2908 = vmatmul.mubr.f32.gmra.mrb[38].mxu0 %v2226_v43  ;;  %v9597_v43 = vld [vmem:[#allocation3 + $0x50] sm:$0xff] }
 0x26e   : > { %v1993_v5 = vpop.permute.xlu1 %1992  ;;  %v2314_v30 = vsel %vm2305_vm14, %v11580_v11, %v1995_v42 }
 0x26f   : > { %v2313_v14 = vsel %vm2305_vm14, %v11556_v49, %v1993_v5  ;;  %3850 = vrot.lane.b32.xlu0 %v9590_v33, %s9669_s16  ;;  %v9592_v49 = vld [vmem:[#allocation3 + $0x48] sm:$0xff]  ;;  %v9598_v5 = vld [vmem:[#allocation3 + $0x78] sm:$0xff] }
 0x270   : > { %7738 = vmatmul.mubr.msk.f32.gmra.mrb[6].mxu1 %vm2422_vm15, %v2313_v14  ;;  %3844 = vrot.lane.b32.xlu1 %v9591_v58, %s9669_s16 }
 0x271   : > { %v11784_v35 = vpop.permute.xlu0 %1922  ;;  %7740 = vmatprep.mubr.msk.f32.mxu1 %vm2422_vm15, %v2314_v30  ;;  %v9600_v30 = vld [vmem:[#allocation3 + $0x88] sm:$0xff] }
 0x272   : > { %v8629_v34 = vpop.permute.xlu1 %8628 }
 0x273   : > { %v8630_v15 = vunpack.i.l.bf16 %v8629_v34  ;;  %3854 = vrot.lane.b32.xlu0 %v9592_v49, %s9669_s16  ;;  %v8631_v7 = vunpack.i.h.bf16 %v8629_v34  ;;  %v9601_v34 = vld [vmem:[#allocation3 + $0x70] sm:$0xff] }
 0x274   : > { %3848 = vrot.lane.b32.xlu1 %v9593_v19, %s9669_s16  ;;  %v9602_v19 = vld [vmem:[#allocation3 + $0x98] sm:$0xff] }
 0x275   : > { %v1999_v11 = vpop.permute.xlu0 %1998  ;;  %v2260_v55 = vsel %vm2239_vm10, %v8625_v45, %v8630_v15  ;;  %v2261_v42 = vsel %vm2239_vm10, %v8626_v61, %v8631_v7 }
 0x276   : > { %v8634_v40 = vpop.permute.xlu1 %8633  ;;  %v2293_v4 = vsel %vm2272_vm11, %v2260_v55, %v11784_v35  ;;  %v2316_v39 = vsel %vm2305_vm14, %v11590_v27, %v1999_v11 }
 0x277   : > { %v8635_v52 = vunpack.i.l.bf16 %v8634_v40  ;;  %2912 = vmatprep.mubr.f32.mxu0 %v2293_v4  ;;  %3858 = vrot.lane.b32.xlu0 %v9594_v36, %s9669_s16  ;;  %v8636_v13 = vunpack.i.h.bf16 %v8634_v40 }
 0x278   : > { %3852 = vrot.lane.b32.xlu1 %v9595_v32, %s9669_s16 }
 0x279   : > { %v2001_v48 = vpop.permute.xlu0 %2000  ;;  %v2194_v16 = vsel %vm2173_vm12, %v8395_v17, %v8635_v52 }
 0x27a   : > { %v1997_v46 = vpop.permute.xlu1 %1996  ;;  %v2227_v37 = vsel %vm2206_vm13, %v2194_v16, %v8625_v45  ;;  %v2317_v8 = vsel %vm2305_vm14, %v11612_v59, %v2001_v48  ;;  %v9604_v16 = vld [vmem:[#allocation3 + $0xa8] sm:$0xff] }
 0x27b   : > { %v2315_v44 = vsel %vm2305_vm14, %v11569_v2, %v1997_v46  ;;  %2913 = vmatmul.mubr.f32.gmra.mrb[40].mxu0 %v2227_v37  ;;  %3862 = vrot.lane.b32.xlu0 %v9596_v0, %s9669_s16  ;;  %v2195_v2 = vsel %vm2173_vm12, %v8396_v23, %v8636_v13  ;;  %v9599_v23 = vld [vmem:[#allocation3 + $0x60] sm:$0xff]  ;;  %v9605_v0 = vld [vmem:[#allocation3 + $0x90] sm:$0xff] }
 0x27c   : > { %7741 = vmatmul.mubr.msk.f32.gmra.mrb[8].mxu1 %vm2422_vm15, %v2315_v44  ;;  %3856 = vrot.lane.b32.xlu1 %v9597_v43, %s9669_s16  ;;  %v2228_v9 = vsel %vm2206_vm13, %v2195_v2, %v8626_v61  ;;  %v9606_v43 = vld [vmem:[#allocation3 + $0xb8] sm:$0xff] }
 0x27d   : > { %v8644_v17 = vpop.permute.xlu0 %8643  ;;  %7743 = vmatprep.mubr.msk.f32.mxu1 %vm2422_vm15, %v2316_v39 }
 0x27e   : > { %v11811_v1 = vpop.permute.xlu1 %1924  ;;  %v8645_v11 = vunpack.i.l.bf16 %v8644_v17  ;;  %v8646_v32 = vunpack.i.h.bf16 %v8644_v17 }
 0x27f   : > { %v2294_v27 = vsel %vm2272_vm11, %v2261_v42, %v11811_v1  ;;  %3866 = vrot.lane.b32.xlu0 %v9598_v5, %s9669_s16  ;;  %v9609_v5 = vld [vmem:[#allocation3 + $0xb0] sm:$0xff] }
 0x280   : > { %2917 = vmatprep.mubr.f32.mxu0 %v2294_v27  ;;  %7744 = vmatmul.mubr.msk.f32.gmra.mrb[10].mxu1 %vm2422_vm15, %v2317_v8  ;;  %v9608_v8 = vld [vmem:[#allocation3 + $0xc8] sm:$0xff] }
 0x281   : > { %v8649_v14 = vpop.permute.xlu0 %8648  ;;  %2918 = vmatmul.mubr.f32.gmra.mrb[42].mxu0 %v2228_v9  ;;  %3860 = vrot.lane.b32.xlu1 %v9599_v23, %s9669_s16 }
 0x282   : > { %v8639_v33 = vpop.permute.xlu1 %8638  ;;  %v8650_v59 = vunpack.i.l.bf16 %v8649_v14  ;;  %v8651_v4 = vunpack.i.h.bf16 %v8649_v14 }
 0x283   : > { %3870 = vrot.lane.b32.xlu0 %v9600_v30, %s9669_s16  ;;  %v8640_v45 = vunpack.i.l.bf16 %v8639_v33  ;;  %v8641_v55 = vunpack.i.h.bf16 %v8639_v33 }
 0x284   : > { %v2196_v36 = vsel %vm2173_vm12, %v8410_v54, %v8650_v59  ;;  %v2197_v44 = vsel %vm2173_vm12, %v8411_v53, %v8651_v4 }
 0x285   : > { %v2005_v58 = vpop.permute.xlu0 %2004  ;;  %3864 = vrot.lane.b32.xlu1 %v9601_v34, %s9669_s16  ;;  %v2262_v48 = vsel %vm2239_vm10, %v8640_v45, %v8645_v11  ;;  %v2229_v7 = vsel %vm2206_vm13, %v2196_v36, %v8640_v45  ;;  %v2263_v46 = vsel %vm2239_vm10, %v8641_v55, %v8646_v32  ;;  %v2230_v17 = vsel %vm2206_vm13, %v2197_v44, %v8641_v55  ;;  %v9612_v45 = vld [vmem:[#allocation3 + $0xe8] sm:$0xff]  ;;  %v9613_v11 = vld [vmem:[#allocation3 + $0xd0] sm:$0xff] }
 0x286   : > { %v2003_v15 = vpop.permute.xlu1 %2002  ;;  %v2319_v40 = vsel %vm2305_vm14, %v11625_v31, %v2005_v58 }
 0x287   : > { %v2318_v49 = vsel %vm2305_vm14, %v11636_v26, %v2003_v15  ;;  %3874 = vrot.lane.b32.xlu0 %v9602_v19, %s9669_s16  ;;  %v9603_v26 = vld [vmem:[#allocation3 + $0x80] sm:$0xff] }
 0x288   : > { %7746 = vmatprep.mubr.msk.f32.mxu1 %vm2422_vm15, %v2318_v49 }
 0x289   : > { %v11830_v52 = vpop.permute.xlu0 %1928  ;;  %7747 = vmatmul.mubr.msk.f32.gmra.mrb[12].mxu1 %vm2422_vm15, %v2319_v40  ;;  %3868 = vrot.lane.b32.xlu1 %v9603_v26, %s9669_s16  ;;  %v9614_v26 = vld [vmem:[#allocation3 + $0xf8] sm:$0xff] }
 0x28a   : > { %v11837_v13 = vpop.permute.xlu1 %1926  ;;  %v2296_v37 = vsel %vm2272_vm11, %v2263_v46, %v11830_v52 }
 0x28b   : > { %v2295_v31 = vsel %vm2272_vm11, %v2262_v48, %v11837_v13  ;;  %3878 = vrot.lane.b32.xlu0 %v9604_v16, %s9669_s16  ;;  %v9615_v16 = vld [vmem:[#allocation3 + $0xe0] sm:$0xff] }
 0x28c   : > { %2922 = vmatprep.mubr.f32.mxu0 %v2295_v31 }
 0x28d   : > { %v11845_v54 = vpop.permute.xlu0 %8653  ;;  %2923 = vmatmul.mubr.f32.gmra.mrb[44].mxu0 %v2229_v7  ;;  %3872 = vrot.lane.b32.xlu1 %v9605_v0, %s9669_s16 }
 0x28e   : > { %v2007_v61 = vpop.permute.xlu1 %2006  ;;  %2927 = vmatprep.mubr.f32.mxu0 %v2296_v37  ;;  %v8655_v14 = vunpack.i.l.bf16 %v11845_v54  ;;  %v8656_v32 = vunpack.i.h.bf16 %v11845_v54 }
 0x28f   : > { %v2320_v39 = vsel %vm2305_vm14, %v11646_v22, %v2007_v61  ;;  %3882 = vrot.lane.b32.xlu0 %v9606_v43, %s9669_s16 }
 0x290   : > { %7749 = vmatprep.mubr.msk.f32.mxu1 %vm2422_vm15, %v2320_v39 }
 0x291   : > { %v2011_v2 = vpop.permute.xlu0 %2010  ;;  %2928 = vmatmul.mubr.f32.gmra.mrb[46].mxu0 %v2230_v17  ;;  %3876 = vrot.lane.b32.xlu1 %v9607_v18, %s9669_s16 }
 0x292   : > { %v2009_v53 = vpop.permute.xlu1 %2008  ;;  %v2322_v22 = vsel %vm2305_vm14, %v11686_v6, %v2011_v2  ;;  %v9611_v6 = vld [vmem:[#allocation3 + $0xc0] sm:$0xff] }
 0x293   : > { %v2321_v42 = vsel %vm2305_vm14, %v11670_v20, %v2009_v53  ;;  %3886 = vrot.lane.b32.xlu0 %v9608_v8, %s9669_s16  ;;  %v9610_v20 = vld [vmem:[#allocation3 + $0xd8] sm:$0xff] }
 0x294   : > { %7750 = vmatmul.mubr.msk.f32.gmra.mrb[14].mxu1 %vm2422_vm15, %v2321_v42 }
 0x295   : > { %v11865_v27 = vpop.permute.xlu0 %1930  ;;  %7752 = vmatprep.mubr.msk.f32.mxu1 %vm2422_vm15, %v2322_v22  ;;  %3880 = vrot.lane.b32.xlu1 %v9609_v5, %s9669_s16 }
 0x296   : > { %v8659_v9 = vpop.permute.xlu1 %8658 }
 0x297   : > { %v8660_v23 = vunpack.i.l.bf16 %v8659_v9  ;;  %3890 = vrot.lane.b32.xlu0 %v9610_v20, %s9669_s16  ;;  %v8661_v55 = vunpack.i.h.bf16 %v8659_v9 }
 0x299   : > { %v2015_v33 = vpop.permute.xlu0 %2014  ;;  %v2264_v30 = vsel %vm2239_vm10, %v8655_v14, %v8660_v23  ;;  %3884 = vrot.lane.b32.xlu1 %v9611_v6, %s9669_s16  ;;  %v2265_v7 = vsel %vm2239_vm10, %v8656_v32, %v8661_v55 }
 0x29a   : > { %v8664_v59 = vpop.permute.xlu1 %8663  ;;  %v2297_v58 = vsel %vm2272_vm11, %v2264_v30, %v11865_v27  ;;  %v2324_v48 = vsel %vm2305_vm14, %v11755_v47, %v2015_v33 }
 0x29b   : > { %v8665_v34 = vunpack.i.l.bf16 %v8664_v59  ;;  %2932 = vmatprep.mubr.f32.mxu0 %v2297_v58  ;;  %3894 = vrot.lane.b32.xlu0 %v9612_v45, %s9669_s16  ;;  %v8666_v15 = vunpack.i.h.bf16 %v8664_v59 }
 0x29d   : > { %v2017_v49 = vpop.permute.xlu0 %2016  ;;  %v2198_v19 = vsel %vm2173_vm12, %v8425_v41, %v8665_v34  ;;  %3888 = vrot.lane.b32.xlu1 %v9613_v11, %s9669_s16  ;;  %v2199_v31 = vsel %vm2173_vm12, %v8426_v24, %v8666_v15  ;;  %v9616_v24 = vld [vmem:[#allocation3 + $0xf0] sm:$0xff] }
 0x29e   : > { %v2013_v40 = vpop.permute.xlu1 %2012  ;;  %v2231_v4 = vsel %vm2206_vm13, %v2198_v19, %v8655_v14  ;;  %v2325_v46 = vsel %vm2305_vm14, %v11749_v28, %v2017_v49  ;;  %v2232_v29 = vsel %vm2206_vm13, %v2199_v31, %v8656_v32 }
 0x29f   : > { %v2323_v36 = vsel %vm2305_vm14, %v11724_v3, %v2013_v40  ;;  %2933 = vmatmul.mubr.f32.gmra.mrb[48].mxu0 %v2231_v4  ;;  %3898 = vrot.lane.b32.xlu0 %v9614_v26, %s9669_s16 }
 0x2a0   : > { %7753 = vmatmul.mubr.msk.f32.gmra.mrb[16].mxu1 %vm2422_vm15, %v2323_v36 }
 0x2a1   : > { %v8674_v41 = vpop.permute.xlu0 %8673  ;;  %7755 = vmatprep.mubr.msk.f32.mxu1 %vm2422_vm15, %v2324_v48  ;;  %3892 = vrot.lane.b32.xlu1 %v9615_v16, %s9669_s16 }
 0x2a2   : > { %v11893_v3 = vpop.permute.xlu1 %1932  ;;  %v8675_v43 = vunpack.i.l.bf16 %v8674_v41  ;;  %v8676_v8 = vunpack.i.h.bf16 %v8674_v41 }
 0x2a3   : > { %v2298_v47 = vsel %vm2272_vm11, %v2265_v7, %v11893_v3 }
 0x2a4   : > { %2937 = vmatprep.mubr.f32.mxu0 %v2298_v47  ;;  %7756 = vmatmul.mubr.msk.f32.gmra.mrb[18].mxu1 %vm2422_vm15, %v2325_v46 }
 0x2a5   : > { %v8679_v54 = vpop.permute.xlu0 %8678  ;;  %2938 = vmatmul.mubr.f32.gmra.mrb[50].mxu0 %v2232_v29  ;;  %3896 = vrot.lane.b32.xlu1 %v9616_v24, %s9669_s16 }
 0x2a6   : > { %v8669_v37 = vpop.permute.xlu1 %8668  ;;  %v8680_v44 = vunpack.i.l.bf16 %v8679_v54  ;;  %v8681_v18 = vunpack.i.h.bf16 %v8679_v54 }
 0x2a7   : > { %v8670_v61 = vunpack.i.l.bf16 %v8669_v37  ;;  %v8671_v17 = vunpack.i.h.bf16 %v8669_v37 }
 0x2a8   : > { %v2200_v42 = vsel %vm2173_vm12, %v8440_v57, %v8680_v44  ;;  %v2201_v20 = vsel %vm2173_vm12, %v8441_v10, %v8681_v18 }
 0x2a9   : > { %v2021_v0 = vpop.permute.xlu0 %2020  ;;  %v2266_v5 = vsel %vm2239_vm10, %v8670_v61, %v8675_v43  ;;  %v2233_v9 = vsel %vm2206_vm13, %v2200_v42, %v8670_v61  ;;  %v2234_v30 = vsel %vm2206_vm13, %v2201_v20, %v8671_v17 }
 0x2aa   : > { %v2019_v39 = vpop.permute.xlu1 %2018  ;;  %v2327_v2 = vsel %vm2305_vm14, %v11811_v1, %v2021_v0  ;;  %v2267_v1 = vsel %vm2239_vm10, %v8671_v17, %v8676_v8 }
 0x2ab   : > { %v2326_v28 = vsel %vm2305_vm14, %v11784_v35, %v2019_v39 }
 0x2ac   : > { %7758 = vmatprep.mubr.msk.f32.mxu1 %vm2422_vm15, %v2326_v28 }
 0x2ad   : > { %v1937_v53 = vpop.permute.xlu0 %1936  ;;  %7759 = vmatmul.mubr.msk.f32.gmra.mrb[20].mxu1 %vm2422_vm15, %v2327_v2 }
 0x2ae   : > { %v1935_v22 = vpop.permute.xlu1 %1934  ;;  %v2300_v23 = vsel %vm2272_vm11, %v2267_v1, %v1937_v53 }
 0x2af   : > { %v2299_v35 = vsel %vm2272_vm11, %v2266_v5, %v1935_v22 }
 0x2b0   : > { %2942 = vmatprep.mubr.f32.mxu0 %v2299_v35 }
 0x2b1   : > { %v8684_v14 = vpop.permute.xlu0 %8683  ;;  %2943 = vmatmul.mubr.f32.gmra.mrb[52].mxu0 %v2233_v9 }
 0x2b2   : > { %v2023_v57 = vpop.permute.xlu1 %2022  ;;  %2947 = vmatprep.mubr.f32.mxu0 %v2300_v23  ;;  %v8686_v48 = vunpack.i.h.bf16 %v8684_v14  ;;  %v15743_v23 = vunpack.i.h.bf16 %v11436_v50 }
 0x2b3   : > { %v2328_v33 = vsel %vm2305_vm14, %v11837_v13, %v2023_v57  ;;  %v8685_v13 = vunpack.i.l.bf16 %v8684_v14 }
 0x2b4   : > { %7761 = vmatprep.mubr.msk.f32.mxu1 %vm2422_vm15, %v2328_v33 }
 0x2b5   : > { %v2027_v6 = vpop.permute.xlu0 %2026  ;;  %2948 = vmatmul.mubr.f32.gmra.mrb[54].mxu0 %v2234_v30 }
 0x2b6   : > { %v2025_v59 = vpop.permute.xlu1 %2024  ;;  %v2330_v25 = vsel %vm2305_vm14, %v11865_v27, %v2027_v6 }
 0x2b7   : > { %v2329_v58 = vsel %vm2305_vm14, %v11830_v52, %v2025_v59 }
 0x2b8   : > { %7762 = vmatmul.mubr.msk.f32.gmra.mrb[22].mxu1 %vm2422_vm15, %v2329_v58 }
 0x2b9   : > { %v1939_v10 = vpop.permute.xlu0 %1938  ;;  %7764 = vmatprep.mubr.msk.f32.mxu1 %vm2422_vm15, %v2330_v25 }
 0x2ba   : > { %v8689_v34 = vpop.permute.xlu1 %8688 }
 0x2bb   : > { %v8690_v45 = vunpack.i.l.bf16 %v8689_v34  ;;  %v8691_v4 = vunpack.i.h.bf16 %v8689_v34 }
 0x2bd   : > { %v2031_v15 = vpop.permute.xlu0 %2030  ;;  %v2268_v49 = vsel %vm2239_vm10, %v8685_v13, %v8690_v45  ;;  %v2269_v7 = vsel %vm2239_vm10, %v8686_v48, %v8691_v4  ;;  %v3201_v45 = vld [vmem:[%s15290_s3 + $0x18] sm:$0xff]  ;;  %v3203_v4 = vld [vmem:[%s15290_s3 + $0x28] sm:$0xff] }
 0x2be   : > { %v8694_v19 = vpop.permute.xlu1 %8693  ;;  %v2301_v11 = vsel %vm2272_vm11, %v2268_v49, %v1939_v10  ;;  %v2332_v41 = vsel %vm2305_vm14, %v1935_v22, %v2031_v15 }
 0x2bf   : > { %v8695_v55 = vunpack.i.l.bf16 %v8694_v19  ;;  %2952 = vmatprep.mubr.f32.mxu0 %v2301_v11  ;;  %v8696_v52 = vunpack.i.h.bf16 %v8694_v19 }
 0x2c1   : > { %v2033_v40 = vpop.permute.xlu0 %2032  ;;  %v2202_v27 = vsel %vm2173_vm12, %v8455_v12, %v8695_v55  ;;  %v2203_v12 = vsel %vm2173_vm12, %v8456_v21, %v8696_v52  ;;  %v3199_v21 = vld [vmem:[%s15290_s3 + $0x8] sm:$0xff] }
 0x2c2   : > { %v2029_v36 = vpop.permute.xlu1 %2028  ;;  %v2235_v26 = vsel %vm2206_vm13, %v2202_v27, %v8685_v13  ;;  %v2333_v46 = vsel %vm2305_vm14, %v1937_v53, %v2033_v40  ;;  %v2236_v47 = vsel %vm2206_vm13, %v2203_v12, %v8686_v48  ;;  %v7991_v24 = vpack.c.bf16 %v3199_v21, %v3198_v38  ;;  %v3200_v13 = vld [vmem:[%s15290_s3 + $0x10] sm:$0xff]  ;;  %v3202_v27 = vld [vmem:[%s15290_s3 + $0x20] sm:$0xff] }
 0x2c3   : > { %v2331_v32 = vsel %vm2305_vm14, %v11893_v3, %v2029_v36  ;;  %2953 = vmatmul.mubr.f32.gmra.mrb[56].mxu0 %v2235_v26  ;;  %v15742_v53 = vunpack.i.l.bf16 %v11436_v50  ;;  %v7994_v49 = vpack.c.bf16 %v3201_v45, %v3200_v13  ;;  %v7997_v36 = vpack.c.bf16 %v3203_v4, %v3202_v27 }
 0x2c4   : > { %7765 = vmatmul.mubr.msk.f32.gmra.mrb[24].mxu1 %vm2422_vm15, %v2331_v32  ;;  %7992 = vmatpush3.bf16.msra.mxu0 %v7991_v24  ;;  %v15750_v27 = vmov 0.0  }
 0x2c5   : > { %v8704_v31 = vpop.permute.xlu0 %8703  ;;  %7767 = vmatprep.mubr.msk.f32.mxu1 %vm2422_vm15, %v2332_v41  ;;  %7993 = vmatprep.subr.bf16.mxu0 %v15617_v51 }
 0x2c6   : > { %v1941_v16 = vpop.permute.xlu1 %1940  ;;  %v8705_v0 = vunpack.i.l.bf16 %v8704_v31  ;;  %v8706_v43 = vunpack.i.h.bf16 %v8704_v31 }
 0x2c7   : > { %v2302_v3 = vsel %vm2272_vm11, %v2269_v7, %v1941_v16 }
 0x2c8   : > { %2957 = vmatprep.mubr.f32.mxu0 %v2302_v3  ;;  %7768 = vmatmul.mubr.msk.f32.gmra.mrb[26].mxu1 %vm2422_vm15, %v2333_v46 }
 0x2c9   : > { %v8709_v29 = vpop.permute.xlu0 %8708  ;;  %2958 = vmatmul.mubr.f32.gmra.mrb[58].mxu0 %v2236_v47  ;;  %v3204_v47 = vld [vmem:[%s15290_s3 + $0x30] sm:$0xff] }
 0x2ca   : > { %v8699_v54 = vpop.permute.xlu1 %8698  ;;  %v8710_v37 = vunpack.i.l.bf16 %v8709_v29  ;;  %v8711_v18 = vunpack.i.h.bf16 %v8709_v29  ;;  %7995 = vmatpush3.bf16.msra.mxu0 %v7994_v49  ;;  %v3205_v29 = vld [vmem:[%s15290_s3 + $0x38] sm:$0xff] }
 0x2cb   : > { %v8700_v61 = vunpack.i.l.bf16 %v8699_v54  ;;  %v8701_v17 = vunpack.i.h.bf16 %v8699_v54  ;;  %7996 = vmatprep.subr.bf16.mxu0 %v15617_v51  ;;  %v8000_v54 = vpack.c.bf16 %v3205_v29, %v3204_v47 }
 0x2cc   : > { %v2204_v42 = vsel %vm2173_vm12, %v15742_v53, %v8710_v37  ;;  %v2205_v20 = vsel %vm2173_vm12, %v15743_v23, %v8711_v18  ;;  %v3207_v18 = vld [vmem:[%s15290_s3 + $0x48] sm:$0xff] }
 0x2cd   : > { %v2037_v44 = vpop.permute.xlu0 %2036  ;;  %v2270_v5 = vsel %vm2239_vm10, %v8700_v61, %v8705_v0  ;;  %v2237_v9 = vsel %vm2206_vm13, %v2204_v42, %v8700_v61  ;;  %v2271_v1 = vsel %vm2239_vm10, %v8701_v17, %v8706_v43  ;;  %v2238_v6 = vsel %vm2206_vm13, %v2205_v20, %v8701_v17 }
 0x2ce   : > { %v2035_v39 = vpop.permute.xlu1 %2034  ;;  %v2335_v2 = vsel %vm2305_vm14, %v1941_v16, %v2037_v44  ;;  %7998 = vmatpush3.bf16.msra.mxu0 %v7997_v36 }
 0x2cf   : > { %v2334_v28 = vsel %vm2305_vm14, %v1939_v10, %v2035_v39  ;;  %7999 = vmatprep.subr.bf16.mxu0 %v15617_v51 }
 0x2d0   : > { %7770 = vmatprep.mubr.msk.f32.mxu1 %vm2422_vm15, %v2334_v28 }
 0x2d1   : > { %7771 = vmatmul.mubr.msk.f32.gmra.mrb[28].mxu1 %vm2422_vm15, %v2335_v2  ;;  %v1945_v8 = vpop.permute.xlu0 %1944  ;;  %v3206_v2 = vld [vmem:[%s15290_s3 + $0x40] sm:$0xff] }
 0x2d2   : > { %v1943_v22 = vpop.permute.xlu1 %1942  ;;  %v2304_v14 = vsel %vm2272_vm11, %v2271_v1, %v1945_v8  ;;  %8001 = vmatpush3.bf16.msra.mxu0 %v8000_v54  ;;  %v8003_v42 = vpack.c.bf16 %v3207_v18, %v3206_v2 }
 0x2d3   : > { %v2303_v35 = vsel %vm2272_vm11, %v2270_v5, %v1943_v22  ;;  %8002 = vmatprep.subr.bf16.mxu0 %v15617_v51 }
 0x2d4   : > { %2962 = vmatprep.mubr.f32.mxu0 %v2303_v35 }
 0x2d5   : > { %2963 = vmatmul.mubr.f32.gmra.mrb[60].mxu0 %v2237_v9 }
 0x2d6   : > { %v8714_v57 = vpop.permute.xlu1 %8713  ;;  %2967 = vmatprep.mubr.f32.mxu0 %v2304_v14  ;;  %8004 = vmatpush3.bf16.msra.mxu0 %v8003_v42 }
 0x2d7   : > { %v8716_v33 = vunpack.i.h.bf16 %v8714_v57  ;;  %v8715_v30 = vunpack.i.l.bf16 %v8714_v57  ;;  %8005 = vmatprep.subr.bf16.mxu0 %v15617_v51 }
 0x2d9   : > { %2968 = vmatmul.mubr.f32.gmra.mrb[62].mxu0 %v2238_v6  ;;  %v2336_v59 = vsel %vm2305_vm14, %v1943_v22, %v8715_v30  ;;  %v2337_v58 = vsel %vm2305_vm14, %v1945_v8, %v8716_v33  ;;  %v2814_v25 = vpop.f32.mrb[0].mxu0  ;;  %v12025_v8 = vld [vmem:[%s15289_s2] ss:$0 sm:$0xff] }
 0x2da   : > { %7773 = vmatprep.mubr.msk.f32.mxu1 %vm2422_vm15, %v2336_v59  ;;  %v2816_v10 = vpop.f32.mrb[1].mxu0  ;;  %v8070_v35 = vadd.f32 %v12025_v8, %v2814_v25  ;;  %7800 = vmatprep.mubr.msk.f32.mxu0 %vm9670_vm0, %v15750_v27 }
 0x2db   : > { %7774 = vmatmul.mubr.msk.f32.gmra.mrb[30].mxu1 %vm2422_vm15, %v2337_v58 }
 0x2dd   : > { %v2819_v50 = vpop.f32.mrb[2].mxu0 }
 0x2de   : > { %v2821_v34 = vpop.f32.mrb[3].mxu0  ;;  %v8071_v22 = vadd.f32 %v12025_v8, %v2819_v50 }
 0x2e2   : > { %v2824_v15 = vpop.f32.mrb[4].mxu0 }
 0x2e3   : > { %v2826_v19 = vpop.f32.mrb[5].mxu0  ;;  %v8072_v33 = vadd.f32 %v12025_v8, %v2824_v15  ;;  %v3208_v15 = vld [vmem:[%s15290_s3 + $0x50] sm:$0xff] }
 0x2e6   : > { %v2829_v11 = vpop.f32.mrb[6].mxu0 }
 0x2e7   : > { %v2831_v55 = vpop.f32.mrb[7].mxu0  ;;  %v8073_v57 = vadd.f32 %v12025_v8, %v2829_v11  ;;  %v3209_v11 = vld [vmem:[%s15290_s3 + $0x58] sm:$0xff] }
 0x2ec   : > { %v2834_v52 = vpop.f32.mrb[8].mxu0 }
 0x2ed   : > { %v2836_v40 = vpop.f32.mrb[9].mxu0  ;;  %v8074_v34 = vadd.f32 %v12025_v8, %v2834_v52 }
 0x2ee   : > { %v8006_v40 = vpack.c.bf16 %v3209_v11, %v3208_v15 }
 0x2f0   : > { %v2839_v26 = vpop.f32.mrb[10].mxu0  ;;  %8007 = vmatpush3.bf16.msra.mxu0 %v8006_v40 }
 0x2f1   : > { %v2841_v32 = vpop.f32.mrb[11].mxu0  ;;  %v8075_v25 = vadd.f32 %v12025_v8, %v2839_v26 }
 0x2f6   : > { %v11990_v48 = vpop.f32.mrb[12].mxu0 }
 0x2f7   : > { %v2846_v41 = vpop.f32.mrb[13].mxu0  ;;  %v8076_v32 = vadd.f32 %v12025_v8, %v11990_v48 }
 0x2fa   : > { %v2849_v31 = vpop.f32.mrb[14].mxu0 }
 0x2fb   : > { %v2851_v12 = vpop.f32.mrb[15].mxu0  ;;  %v8077_v26 = vadd.f32 %v12025_v8, %v2849_v31 }
 0x300   : > { %v11992_v16 = vpop.f32.mrb[16].mxu0 }
 0x301   : > { %v2856_v7 = vpop.f32.mrb[17].mxu0  ;;  %v8078_v54 = vadd.f32 %v12025_v8, %v11992_v16 }
 0x304   : > { %v11994_v46 = vpop.f32.mrb[18].mxu0 }
 0x305   : > { %v2861_v3 = vpop.f32.mrb[19].mxu0  ;;  %v8079_v47 = vadd.f32 %v12025_v8, %v11994_v46 }
 0x30a   : > { %v12002_v38 = vpop.f32.mrb[20].mxu0 }
 0x30b   : > { %v2866_v21 = vpop.f32.mrb[21].mxu0  ;;  %v8080_v16 = vadd.f32 %v12025_v8, %v12002_v38 }
 0x30e   : > { %v12005_v24 = vpop.f32.mrb[22].mxu0 }
 0x30f   : > { %v2871_v37 = vpop.f32.mrb[23].mxu0 }
 0x314   : > { %v12007_v44 = vpop.f32.mrb[24].mxu0 }
 0x315   : > { %v2876_v0 = vpop.f32.mrb[25].mxu0  ;;  %v8082_v15 = vadd.f32 %v12025_v8, %v12007_v44 }
 0x318   : > { %v12009_v61 = vpop.f32.mrb[26].mxu0 }
 0x319   : > { %v2881_v39 = vpop.f32.mrb[27].mxu0 }
 0x31a   : > { %v8081_v39 = vadd.f32 %v12025_v8, %v12005_v24 }
 0x31e   : > { %v12011_v28 = vpop.f32.mrb[28].mxu0 }
 0x31f   : > { %v2886_v43 = vpop.f32.mrb[29].mxu0 }
 0x322   : > { %v12013_v17 = vpop.f32.mrb[30].mxu0 }
 0x323   : > { %v2891_v53 = vpop.f32.mrb[31].mxu0 }
 0x32a   : > { %v12028_v5 = vpop.f32.mrb[32].mxu0 }
 0x32b   : > { %v2896_v9 = vpop.f32.mrb[33].mxu0  ;;  %v7730_v1 = vpop.f32.mrb[0].mxu1 }
 0x32c   : > { %v12031_v14 = vadd.f32 %v8071_v22, %v7730_v1  ;;  %v3039_v23 = vpop.f32.mrb[1].mxu1 }
 0x32d   : > { %v12033_v20 = vadd.f32 %v8070_v35, %v3039_v23 }
 0x32e   : > { %15744 = vst [vmem:[#allocation13_spill] sm:$0xff] %v12031_v14  ;;  %v3283_v43 = vmul.f32 %v12031_v14, %v12031_v14  ;;  %v3214_v18 = vsel %vm3212_vm4, %v12031_v14, 0.0 }
 0x32f   : > { %15745 = vst [vmem:[#allocation16_spill] sm:$0xff] %v12033_v20  ;;  %v3282_v46 = vmul.f32 %v12033_v20, %v12033_v20  ;;  %v3213_v53 = vsel %vm3212_vm4, %v12033_v20, 0.0 }
 0x330   : > { %v7733_v30 = vpop.f32.mrb[2].mxu1  ;;  %v12037_v6 = vpop.f32.mrb[34].mxu0  ;;  %v3315_v38 = vsel %vm3212_vm4, %v3283_v43, 0.0 }
 0x331   : > { %v12039_v59 = vadd.f32 %v8073_v57, %v7733_v30  ;;  %v3049_v58 = vpop.f32.mrb[3].mxu1  ;;  %v2901_v10 = vpop.f32.mrb[35].mxu0  ;;  %v3314_v23 = vsel %vm3212_vm4, %v3282_v46, 0.0 }
 0x332   : > { %v12041_v50 = vadd.f32 %v8072_v33, %v3049_v58  ;;  %v3215_v33 = vadd.f32 %v3214_v18, %v3213_v53  ;;  %v3316_v58 = vadd.f32 %v3315_v38, %v3314_v23  ;;  %v8085_v38 = vadd.f32 %v12025_v8, %v12013_v17 }
 0x333   : > { %15746 = vst [vmem:[#allocation25_spill] sm:$0xff] %v12039_v59  ;;  %v3218_v11 = vsel %vm3212_vm4, %v12039_v59, 0.0 }
 0x334   : > { %15747 = vst [vmem:[#allocation22_spill] sm:$0xff] %v12041_v50  ;;  %v3284_v42 = vmul.f32 %v12041_v50, %v12041_v50  ;;  %v3216_v57 = vsel %vm3212_vm4, %v12041_v50, 0.0 }
 0x335   : > { %v3217_v10 = vadd.f32 %v3216_v57, %v3215_v33  ;;  %v8084_v33 = vadd.f32 %v12025_v8, %v12011_v28 }
 0x336   : > { %v3317_v30 = vsel %vm3212_vm4, %v3284_v42, 0.0 }
 0x338   : > { %v7736_v13 = vpop.f32.mrb[4].mxu1 }
 0x339   : > { %v12045_v45 = vadd.f32 %v8075_v25, %v7736_v13  ;;  %v3059_v49 = vpop.f32.mrb[5].mxu1  ;;  %v3285_v25 = vmul.f32 %v12039_v59, %v12039_v59  ;;  %v8083_v13 = vadd.f32 %v12025_v8, %v12009_v61 }
 0x33a   : > { %v12047_v19 = vadd.f32 %v8074_v34, %v3059_v49  ;;  %v3318_v49 = vadd.f32 %v3317_v30, %v3316_v58 }
 0x33b   : > { %15748 = vst [vmem:[#allocation52_spill] sm:$0xff] %v12045_v45  ;;  %v3287_v44 = vmul.f32 %v12045_v45, %v12045_v45  ;;  %v3222_v43 = vsel %vm3212_vm4, %v12045_v45, 0.0 }
 0x33c   : > { %15749 = vst [vmem:[#allocation19_spill] sm:$0xff] %v12047_v19  ;;  %v12055_v55 = vpop.f32.mrb[36].mxu0  ;;  %v3286_v34 = vmul.f32 %v12047_v19, %v12047_v19  ;;  %v3220_v40 = vsel %vm3212_vm4, %v12047_v19, 0.0 }
 0x33d   : > { %v2906_v52 = vpop.f32.mrb[37].mxu0 }
 0x340   : > { %v12059_v4 = vpop.f32.mrb[38].mxu0 }
 0x341   : > { %v2911_v36 = vpop.f32.mrb[39].mxu0 }
 0x342   : > { %v3219_v36 = vadd.f32 %v3218_v11, %v3217_v10 }
 0x343   : > { %v7739_v41 = vpop.f32.mrb[6].mxu1 }
 0x344   : > { %v12064_v12 = vadd.f32 %v8077_v26, %v7739_v41  ;;  %v3069_v7 = vpop.f32.mrb[7].mxu1  ;;  %v3319_v41 = vsel %vm3212_vm4, %v3285_v25, 0.0 }
 0x345   : > { %v12066_v3 = vadd.f32 %v8076_v32, %v3069_v7  ;;  %v3321_v7 = vsel %vm3212_vm4, %v3286_v34, 0.0 }
 0x346   : > { %15751 = vst [vmem:[#allocation30_spill] sm:$0xff] %v12064_v12  ;;  %v3289_v23 = vmul.f32 %v12064_v12, %v12064_v12  ;;  %v3226_v10 = vsel %vm3212_vm4, %v12064_v12, 0.0 }
 0x347   : > { %15752 = vst [vmem:[#allocation27_spill] sm:$0xff] %v12066_v3  ;;  %v3224_v46 = vsel %vm3212_vm4, %v12066_v3, 0.0 }
 0x34e   : > { %v12070_v29 = vpop.f32.mrb[40].mxu0 }
 0x34f   : > { %v2916_v21 = vpop.f32.mrb[41].mxu0  ;;  %v7742_v37 = vpop.f32.mrb[8].mxu1 }
 0x350   : > { %v12074_v31 = vadd.f32 %v8079_v47, %v7742_v37  ;;  %v3079_v0 = vpop.f32.mrb[9].mxu1  ;;  %v3221_v47 = vadd.f32 %v3220_v40, %v3219_v36  ;;  %v3288_v21 = vmul.f32 %v12066_v3, %v12066_v3 }
 0x351   : > { %v12076_v48 = vadd.f32 %v8078_v54, %v3079_v0  ;;  %v3320_v54 = vadd.f32 %v3319_v41, %v3318_v49 }
 0x352   : > { %15753 = vst [vmem:[#allocation24_spill] sm:$0xff] %v12074_v31  ;;  %v3325_v18 = vsel %vm3212_vm4, %v3288_v21, 0.0  ;;  %v8087_v21 = vadd.f32 %v12025_v8, %v12037_v6 }
 0x353   : > { %15754 = vst [vmem:[#allocation23_spill] sm:$0xff] %v12076_v48  ;;  %v7745_v2 = vpop.f32.mrb[10].mxu1  ;;  %v3322_v0 = vadd.f32 %v3321_v7, %v3320_v54  ;;  %v3290_v57 = vmul.f32 %v12076_v48, %v12076_v48  ;;  %v3228_v25 = vsel %vm3212_vm4, %v12076_v48, 0.0 }
 0x354   : > { %v12092_v24 = vadd.f32 %v8081_v39, %v7745_v2  ;;  %v12094_v22 = vpop.f32.mrb[42].mxu0  ;;  %v3089_v35 = vpop.f32.mrb[11].mxu1  ;;  %v3323_v2 = vsel %vm3212_vm4, %v3287_v44, 0.0 }
 0x355   : > { %v12096_v9 = vadd.f32 %v8080_v16, %v3089_v35  ;;  %v2921_v1 = vpop.f32.mrb[43].mxu0  ;;  %v3223_v16 = vadd.f32 %v3222_v43, %v3221_v47  ;;  %v3324_v35 = vadd.f32 %v3323_v2, %v3322_v0  ;;  %v3329_v11 = vsel %vm3212_vm4, %v3290_v57, 0.0 }
 0x356   : > { %15755 = vst [vmem:[#allocation35_spill] sm:$0xff] %v12092_v24  ;;  %v8086_v43 = vadd.f32 %v12025_v8, %v12028_v5  ;;  %v3234_v5 = vsel %vm3212_vm4, %v12092_v24, 0.0 }
 0x357   : > { %15756 = vst [vmem:[#allocation26_spill] sm:$0xff] %v12096_v9  ;;  %v3225_v42 = vadd.f32 %v3224_v46, %v3223_v16  ;;  %v3326_v30 = vadd.f32 %v3325_v18, %v3324_v35  ;;  %v3292_v41 = vmul.f32 %v12096_v9, %v12096_v9  ;;  %v3232_v54 = vsel %vm3212_vm4, %v12096_v9, 0.0 }
 0x358   : > { %v3293_v18 = vmul.f32 %v12092_v24, %v12092_v24 }
 0x359   : > { %v3333_v0 = vsel %vm3212_vm4, %v3292_v41, 0.0 }
 0x35c   : > { %v7748_v52 = vpop.f32.mrb[12].mxu1 }
 0x35d   : > { %v12115_v26 = vadd.f32 %v8083_v13, %v7748_v52  ;;  %v3099_v32 = vpop.f32.mrb[13].mxu1  ;;  %v3227_v13 = vadd.f32 %v3226_v10, %v3225_v42  ;;  %v3291_v52 = vmul.f32 %v12074_v31, %v12074_v31  ;;  %v3335_v10 = vsel %vm3212_vm4, %v3293_v18, 0.0 }
 0x35e   : > { %v12119_v61 = vadd.f32 %v8082_v15, %v3099_v32  ;;  %v3327_v15 = vsel %vm3212_vm4, %v3289_v23, 0.0  ;;  %v3230_v32 = vsel %vm3212_vm4, %v12074_v31, 0.0  ;;  %v8089_v23 = vadd.f32 %v12025_v8, %v12059_v4 }
 0x35f   : > { %15757 = vst [vmem:[#allocation40_spill] sm:$0xff] %v12115_v26  ;;  %v3229_v40 = vadd.f32 %v3228_v25, %v3227_v13  ;;  %v3328_v28 = vadd.f32 %v3327_v15, %v3326_v30  ;;  %v3331_v47 = vsel %vm3212_vm4, %v3291_v52, 0.0  ;;  %v3295_v52 = vmul.f32 %v12115_v26, %v12115_v26 }
 0x360   : > { %15758 = vst [vmem:[#allocation34_spill] sm:$0xff] %v12119_v61  ;;  %v12125_v37 = vpop.f32.mrb[44].mxu0  ;;  %v3294_v42 = vmul.f32 %v12119_v61, %v12119_v61  ;;  %v3236_v57 = vsel %vm3212_vm4, %v12119_v61, 0.0 }
 0x361   : > { %v2926_v39 = vpop.f32.mrb[45].mxu0  ;;  %v3330_v36 = vadd.f32 %v3329_v11, %v3328_v28  ;;  %v3231_v7 = vadd.f32 %v3230_v32, %v3229_v40  ;;  %v3238_v32 = vsel %vm3212_vm4, %v12115_v26, 0.0 }
 0x362   : > { %v3337_v25 = vsel %vm3212_vm4, %v3294_v42, 0.0 }
 0x363   : > { %v3332_v44 = vadd.f32 %v3331_v47, %v3330_v36  ;;  %v3233_v46 = vadd.f32 %v3232_v54, %v3231_v7  ;;  %v3339_v47 = vsel %vm3212_vm4, %v3295_v52, 0.0 }
 0x364   : > { %v12133_v53 = vpop.f32.mrb[46].mxu0 }
 0x365   : > { %v2931_v1 = vpop.f32.mrb[47].mxu0  ;;  %v3334_v6 = vadd.f32 %v3333_v0, %v3332_v44  ;;  %v3235_v30 = vadd.f32 %v3234_v5, %v3233_v46  ;;  %v8091_v44 = vadd.f32 %v12025_v8, %v12094_v22 }
 0x367   : > { %v7751_v58 = vpop.f32.mrb[14].mxu1  ;;  %v3237_v15 = vadd.f32 %v3236_v57, %v3235_v30  ;;  %v3336_v11 = vadd.f32 %v3335_v10, %v3334_v6 }
 0x368   : > { %v12147_v34 = vadd.f32 %v8085_v38, %v7751_v58  ;;  %v3109_v17 = vpop.f32.mrb[15].mxu1 }
 0x369   : > { %v12149_v49 = vadd.f32 %v8084_v33, %v3109_v17  ;;  %v8088_v33 = vadd.f32 %v12025_v8, %v12055_v55  ;;  %v3338_v36 = vadd.f32 %v3337_v25, %v3336_v11  ;;  %v3239_v7 = vadd.f32 %v3238_v32, %v3237_v15 }
 0x36a   : > { %15759 = vst [vmem:[#allocation36_spill] sm:$0xff] %v12147_v34  ;;  %v3297_v46 = vmul.f32 %v12147_v34, %v12147_v34  ;;  %v3242_v6 = vsel %vm3212_vm4, %v12147_v34, 0.0 }
 0x36b   : > { %15760 = vst [vmem:[#allocation33_spill] sm:$0xff] %v12149_v49  ;;  %v3296_v55 = vmul.f32 %v12149_v49, %v12149_v49  ;;  %v3240_v41 = vsel %vm3212_vm4, %v12149_v49, 0.0  ;;  %v3340_v0 = vadd.f32 %v3339_v47, %v3338_v36  ;;  %v8093_v36 = vadd.f32 %v12025_v8, %v12133_v53 }
 0x36c   : > { %v3343_v5 = vsel %vm3212_vm4, %v3297_v46, 0.0 }
 0x36d   : > { %v3341_v54 = vsel %vm3212_vm4, %v3296_v55, 0.0 }
 0x36e   : > { %v3342_v18 = vadd.f32 %v3341_v54, %v3340_v0 }
 0x372   : > { %v12165_v39 = vpop.f32.mrb[48].mxu0 }
 0x373   : > { %v2936_v16 = vpop.f32.mrb[49].mxu0  ;;  %v7754_v2 = vpop.f32.mrb[16].mxu1 }
 0x374   : > { %v12173_v35 = vadd.f32 %v8087_v21, %v7754_v2  ;;  %v3119_v1 = vpop.f32.mrb[17].mxu1  ;;  %v3241_v21 = vadd.f32 %v3240_v41, %v3239_v7  ;;  %v8092_v7 = vadd.f32 %v12025_v8, %v12125_v37 }
 0x375   : > { %v12175_v38 = vadd.f32 %v8086_v43, %v3119_v1  ;;  %v8090_v43 = vadd.f32 %v12025_v8, %v12070_v29 }
 0x376   : > { %15761 = vst [vmem:[#allocation44_spill] sm:$0xff] %v12173_v35  ;;  %v3243_v29 = vadd.f32 %v3242_v6, %v3241_v21  ;;  %v3299_v25 = vmul.f32 %v12173_v35, %v12173_v35  ;;  %v3246_v15 = vsel %vm3212_vm4, %v12173_v35, 0.0 }
 0x377   : > { %15762 = vst [vmem:[#allocation38_spill] sm:$0xff] %v12175_v38  ;;  %v7757_v58 = vpop.f32.mrb[18].mxu1  ;;  %v3298_v16 = vmul.f32 %v12175_v38, %v12175_v38  ;;  %v3244_v22 = vsel %vm3212_vm4, %v12175_v38, 0.0 }
 0x378   : > { %v12187_v17 = vadd.f32 %v8089_v23, %v7757_v58  ;;  %v12189_v13 = vpop.f32.mrb[50].mxu0  ;;  %v3129_v4 = vpop.f32.mrb[19].mxu1  ;;  %v3245_v30 = vadd.f32 %v3244_v22, %v3243_v29  ;;  %v3344_v58 = vadd.f32 %v3343_v5, %v3342_v18  ;;  %v3347_v32 = vsel %vm3212_vm4, %v3299_v25, 0.0 }
 0x379   : > { %v12191_v40 = vadd.f32 %v8088_v33, %v3129_v4  ;;  %v2941_v28 = vpop.f32.mrb[51].mxu0  ;;  %v3345_v57 = vsel %vm3212_vm4, %v3298_v16, 0.0 }
 0x37a   : > { %15763 = vst [vmem:[#allocation39_spill] sm:$0xff] %v12187_v17  ;;  %v3346_v4 = vadd.f32 %v3345_v57, %v3344_v58  ;;  %v3247_v52 = vadd.f32 %v3246_v15, %v3245_v30  ;;  %v3301_v53 = vmul.f32 %v12187_v17, %v12187_v17  ;;  %v3250_v37 = vsel %vm3212_vm4, %v12187_v17, 0.0 }
 0x37b   : > { %15764 = vst [vmem:[#allocation37_spill] sm:$0xff] %v12191_v40  ;;  %v3300_v11 = vmul.f32 %v12191_v40, %v12191_v40  ;;  %v3248_v41 = vsel %vm3212_vm4, %v12191_v40, 0.0 }
 0x37c   : > { %v3348_v47 = vadd.f32 %v3347_v32, %v3346_v4  ;;  %v3351_v6 = vsel %vm3212_vm4, %v3301_v53, 0.0 }
 0x380   : > { %v7760_v2 = vpop.f32.mrb[20].mxu1 }
 0x381   : > { %v12211_v42 = vadd.f32 %v8091_v44, %v7760_v2  ;;  %v3139_v1 = vpop.f32.mrb[21].mxu1  ;;  %v3349_v44 = vsel %vm3212_vm4, %v3300_v11, 0.0  ;;  %v8094_v11 = vadd.f32 %v12025_v8, %v12165_v39 }
 0x382   : > { %v12217_v23 = vadd.f32 %v8090_v43, %v3139_v1  ;;  %v3249_v43 = vadd.f32 %v3248_v41, %v3247_v52  ;;  %v3350_v2 = vadd.f32 %v3349_v44, %v3348_v47 }
 0x383   : > { %15765 = vst [vmem:[#allocation53_spill] sm:$0xff] %v12211_v42  ;;  %v3303_v57 = vmul.f32 %v12211_v42, %v12211_v42  ;;  %v3254_v25 = vsel %vm3212_vm4, %v12211_v42, 0.0 }
 0x384   : > { %15766 = vst [vmem:[#allocation41_spill] sm:$0xff] %v12217_v23  ;;  %v2944_v33 = vpop.f32.mrb[52].mxu0  ;;  %v3302_v16 = vmul.f32 %v12217_v23, %v12217_v23  ;;  %v3252_v18 = vsel %vm3212_vm4, %v12217_v23, 0.0  ;;  %v3251_v1 = vadd.f32 %v3250_v37, %v3249_v43  ;;  %v3352_v5 = vadd.f32 %v3351_v6, %v3350_v2 }
 0x385   : > { %v2946_v10 = vpop.f32.mrb[53].mxu0  ;;  %v3355_v32 = vsel %vm3212_vm4, %v3303_v57, 0.0  ;;  %v8096_v39 = vadd.f32 %v12025_v8, %v2944_v33 }
 0x386   : > { %v3353_v22 = vsel %vm3212_vm4, %v3302_v16, 0.0  ;;  %v3253_v29 = vadd.f32 %v3252_v18, %v3251_v1  ;;  %v8095_v10 = vadd.f32 %v12025_v8, %v12189_v13 }
 0x387   : > { %v3354_v58 = vadd.f32 %v3353_v22, %v3352_v5 }
 0x388   : > { %v2949_v28 = vpop.f32.mrb[54].mxu0  ;;  %v3255_v52 = vadd.f32 %v3254_v25, %v3253_v29 }
 0x389   : > { %v2951_v55 = vpop.f32.mrb[55].mxu0 }
 0x38b   : > { %v7763_v54 = vpop.f32.mrb[22].mxu1 }
 0x38c   : > { %v12235_v21 = vadd.f32 %v8093_v36, %v7763_v54  ;;  %v3149_v0 = vpop.f32.mrb[23].mxu1  ;;  %v3356_v54 = vadd.f32 %v3355_v32, %v3354_v58 }
 0x38d   : > { %v12237_v46 = vadd.f32 %v8092_v7, %v3149_v0  ;;  %v8097_v0 = vadd.f32 %v12025_v8, %v2949_v28 }
 0x38e   : > { %15767 = vst [vmem:[#allocation58_spill] sm:$0xff] %v12235_v21  ;;  %v3305_v43 = vmul.f32 %v12235_v21, %v12235_v21  ;;  %v3258_v37 = vsel %vm3212_vm4, %v12235_v21, 0.0 }
 0x38f   : > { %15768 = vst [vmem:[#allocation51_spill] sm:$0xff] %v12237_v46  ;;  %v3304_v30 = vmul.f32 %v12237_v46, %v12237_v46  ;;  %v3256_v4 = vsel %vm3212_vm4, %v12237_v46, 0.0 }
 0x390   : > { %v3257_v47 = vadd.f32 %v3256_v4, %v3255_v52  ;;  %v3359_v33 = vsel %vm3212_vm4, %v3305_v43, 0.0 }
 0x391   : > { %v3357_v41 = vsel %vm3212_vm4, %v3304_v30, 0.0 }
 0x392   : > { %v3358_v53 = vadd.f32 %v3357_v41, %v3356_v54  ;;  %v3259_v22 = vadd.f32 %v3258_v37, %v3257_v47 }
 0x394   : > { %v3360_v58 = vadd.f32 %v3359_v33, %v3358_v53 }
 0x396   : > { %v2954_v15 = vpop.f32.mrb[56].mxu0 }
 0x397   : > { %v2956_v55 = vpop.f32.mrb[57].mxu0  ;;  %v7766_v36 = vpop.f32.mrb[24].mxu1 }
 0x398   : > { %v12263_v7 = vadd.f32 %v8095_v10, %v7766_v36  ;;  %v3159_v13 = vpop.f32.mrb[25].mxu1  ;;  %v8098_v36 = vadd.f32 %v12025_v8, %v2954_v15 }
 0x399   : > { %v12265_v44 = vadd.f32 %v8094_v11, %v3159_v13 }
 0x39a   : > { %15769 = vst [vmem:[#allocation47_spill] sm:$0xff] %v12263_v7  ;;  %v3307_v10 = vmul.f32 %v12263_v7, %v12263_v7  ;;  %v3262_v4 = vsel %vm3212_vm4, %v12263_v7, 0.0 }
 0x39b   : > { %15770 = vst [vmem:[#allocation49_spill] sm:$0xff] %v12265_v44  ;;  %v3306_v16 = vmul.f32 %v12265_v44, %v12265_v44  ;;  %v7769_v2 = vpop.f32.mrb[26].mxu1  ;;  %v3260_v18 = vsel %vm3212_vm4, %v12265_v44, 0.0 }
 0x39c   : > { %v12277_v1 = vadd.f32 %v8097_v0, %v7769_v2  ;;  %v2959_v6 = vpop.f32.mrb[58].mxu0  ;;  %v3169_v28 = vpop.f32.mrb[27].mxu1  ;;  %v3261_v30 = vadd.f32 %v3260_v18, %v3259_v22  ;;  %v3363_v32 = vsel %vm3212_vm4, %v3307_v10, 0.0 }
 0x39d   : > { %v12279_v29 = vadd.f32 %v8096_v39, %v3169_v28  ;;  %v2961_v5 = vpop.f32.mrb[59].mxu0  ;;  %v3361_v57 = vsel %vm3212_vm4, %v3306_v16, 0.0  ;;  %v8099_v52 = vadd.f32 %v12025_v8, %v2959_v6 }
 0x39e   : > { %15771 = vst [vmem:[#allocation64_spill] sm:$0xff] %v12277_v1  ;;  %v3362_v25 = vadd.f32 %v3361_v57, %v3360_v58  ;;  %v3263_v55 = vadd.f32 %v3262_v4, %v3261_v30  ;;  %v3309_v16 = vmul.f32 %v12277_v1, %v12277_v1  ;;  %v3266_v6 = vsel %vm3212_vm4, %v12277_v1, 0.0 }
 0x39f   : > { %15772 = vst [vmem:[#allocation57_spill] sm:$0xff] %v12279_v29  ;;  %v3308_v11 = vmul.f32 %v12279_v29, %v12279_v29  ;;  %v3264_v41 = vsel %vm3212_vm4, %v12279_v29, 0.0 }
 0x3a0   : > { %v3364_v47 = vadd.f32 %v3363_v32, %v3362_v25  ;;  %v3265_v53 = vadd.f32 %v3264_v41, %v3263_v55  ;;  %v3367_v5 = vsel %vm3212_vm4, %v3309_v16, 0.0 }
 0x3a1   : > { %v3365_v43 = vsel %vm3212_vm4, %v3308_v11, 0.0 }
 0x3a2   : > { %v3366_v37 = vadd.f32 %v3365_v43, %v3364_v47  ;;  %v3267_v22 = vadd.f32 %v3266_v6, %v3265_v53 }
 0x3a4   : > { %v7772_v13 = vpop.f32.mrb[28].mxu1  ;;  %v3368_v58 = vadd.f32 %v3367_v5, %v3366_v37 }
 0x3a5   : > { %v12294_v54 = vadd.f32 %v8099_v52, %v7772_v13  ;;  %v3179_v0 = vpop.f32.mrb[29].mxu1 }
 0x3a6   : > { %v12297_v39 = vadd.f32 %v8098_v36, %v3179_v0 }
 0x3a7   : > { %15773 = vst [vmem:[#allocation67_spill] sm:$0xff] %v12294_v54  ;;  %v3311_v4 = vmul.f32 %v12294_v54, %v12294_v54  ;;  %v3270_v41 = vsel %vm3212_vm4, %v12294_v54, 0.0 }
 0x3a8   : > { %15774 = vst [vmem:[#allocation14_spill] sm:$0xff] %v12297_v39  ;;  %v3310_v15 = vmul.f32 %v12297_v39, %v12297_v39  ;;  %v2964_v2 = vpop.f32.mrb[60].mxu0  ;;  %v3268_v28 = vsel %vm3212_vm4, %v12297_v39, 0.0 }
 0x3a9   : > { %v2966_v18 = vpop.f32.mrb[61].mxu0  ;;  %v3269_v30 = vadd.f32 %v3268_v28, %v3267_v22  ;;  %v8100_v11 = vadd.f32 %v12025_v8, %v2964_v2  ;;  %v3371_v0 = vsel %vm3212_vm4, %v3311_v4, 0.0 }
 0x3aa   : > { %v3369_v33 = vsel %vm3212_vm4, %v3310_v15, 0.0 }
 0x3ab   : > { %v3370_v55 = vadd.f32 %v3369_v33, %v3368_v58  ;;  %v3271_v47 = vadd.f32 %v3270_v41, %v3269_v30 }
 0x3ac   : > { %v2969_v57 = vpop.f32.mrb[62].mxu0 }
 0x3ad   : > { %v8101_v10 = vadd.f32 %v12025_v8, %v2969_v57  ;;  %v2971_v25 = vpop.f32.mrb[63].mxu0  ;;  %v3372_v15 = vadd.f32 %v3371_v0, %v3370_v55 }
 0x3ae   : > { %v7775_v52 = vpop.f32.mrb[30].mxu1 }
 0x3af   : > { %v12313_v36 = vadd.f32 %v8101_v10, %v7775_v52  ;;  %v3189_v32 = vpop.f32.mrb[31].mxu1 }
 0x3b0   : > { %v12317_v13 = vadd.f32 %v8100_v11, %v3189_v32 }
 0x3b1   : > { %15775 = vst [vmem:[#allocation48_spill] sm:$0xff] %v12313_v36  ;;  %v3313_v43 = vmul.f32 %v12313_v36, %v12313_v36  ;;  %v3274_v2 = vsel %vm3212_vm4, %v12313_v36, 0.0 }
 0x3b2   : > { %15776 = vst [vmem:[#allocation68_spill] sm:$0xff] %v12317_v13  ;;  %v3272_v53 = vsel %vm3212_vm4, %v12317_v13, 0.0  ;;  %v3312_v8 = vmul.f32 %v12317_v13, %v12317_v13 }
 0x3b3   : > { %v3273_v16 = vadd.f32 %v3272_v53, %v3271_v47  ;;  %v3375_v28 = vsel %vm3212_vm4, %v3313_v43, 0.0 }
 0x3b4   : > { %v3373_v37 = vsel %vm3212_vm4, %v3312_v8, 0.0 }
 0x3b5   : > { %v3275_v18 = vadd.f32 %v3274_v2, %v3273_v16  ;;  %v3374_v6 = vadd.f32 %v3373_v37, %v3372_v15  ;;  %v3462_v15 = vlaneseq }
 0x3b7   : > { %v3276_v22 = vrot.slane %v3275_v18, 4  ;;  %v3376_v5 = vadd.f32 %v3375_v28, %v3374_v6  ;;  %v12332_v2 = vshrl.u32 %v3462_v15, 7 }
 0x3b9   : > { %v3277_v33 = vadd.f32 %v3276_v22, %v3275_v18  ;;  %v3377_v57 = vrot.slane %v3376_v5, 4  ;;  %15777 = vst [vmem:[#allocation65_spill] sm:$0xff] %v12332_v2  ;;  %v15422_v37 = vsub.s32 0, %v12332_v2  ;;  %v15421_v18 = vsub.s32 1, %v12332_v2 }
 0x3bb   : > { %v3278_v30 = vrot.slane %v3277_v33, 2  ;;  %v3378_v58 = vadd.f32 %v3377_v57, %v3376_v5 }
 0x3bd   : > { %v3279_v10 = vadd.f32 %v3278_v30, %v3277_v33  ;;  %v3379_v25 = vrot.slane %v3378_v58, 2  ;;  %v12352_v30 = vld [vmem:[%s15291_s4] ss:$0 sm:$0xff] }
 0x3bf   : > { %v3280_v4 = vrot.slane %v3279_v10, 1  ;;  %v3380_v11 = vadd.f32 %v3379_v25, %v3378_v58 }
 0x3c1   : > { %v3381_v52 = vrot.slane %v3380_v11, 1  ;;  %v3281_v55 = vadd.f32 %v3280_v4, %v3279_v10 }
 0x3c3   : > { %v3382_v32 = vadd.f32 %v3381_v52, %v3380_v11  ;;  %v12364_v52 = vld [vmem:[%s15292_s5] ss:$0 sm:$0xff] }
 0x3c5   : > { %v3383_v41 = vsel %vm966_vm1, %v3281_v55, %v3382_v32 }
 0x3c6   : > { %7801 = vmatmul.mubr.msk.f32.vlgmr.msra.gmra.mrb[64].mxu0 %vm3212_vm4, %v3383_v41 }
 0x499   : > { %v3453_v47 = vpop.f32.mrb[64].mxu0 }
 0x49a   : > { %v7802_v0 = vpop.f32.mrb[65].mxu0  ;;  %v3457_v43 = vmul.f32 %v3453_v47, %v3453_v47  ;;  %v12338_v28 = vrot.slane %v3453_v47, %v15422_v37 }
 0x49c   : > { %v3459_v53 = vrot.slane %v3457_v43, 7  ;;  %v3466_v5 = vsub.f32 %v12033_v20, %v12338_v28  ;;  %v3467_v33 = vsub.f32 %v12031_v14, %v12338_v28  ;;  %v3468_v10 = vsub.f32 %v12041_v50, %v12338_v28 }
 0x49d   : > { %v3469_v25 = vsub.f32 %v12039_v59, %v12338_v28  ;;  %v3470_v41 = vsub.f32 %v12047_v19, %v12338_v28 }
 0x49e   : > { %v3461_v8 = vsub.f32 %v3453_v47, %v3459_v53  ;;  %v3471_v47 = vsub.f32 %v12045_v45, %v12338_v28 }
 0x4a0   : > { %v3498_v16 = vadd.f32 1e-05, %v3461_v8 }
 0x4a2   : > { %9197 = vrsqrt.f32 %v3498_v16 }
 0x4ac   : > { %v9198_v6 = vpop.eup %9197 }
 0x4ad   : > { %v12342_v22 = vrot.slane %v9198_v6, %v15421_v18  ;;  %v3472_v6 = vsub.f32 %v12066_v3, %v12338_v28 }
 0x4af   : > { %v3504_v57 = vmul.f32 %v12342_v22, %v3466_v5  ;;  %v3505_v58 = vmul.f32 %v12342_v22, %v3467_v33  ;;  %v3506_v4 = vmul.f32 %v12342_v22, %v3468_v10  ;;  %v3507_v55 = vmul.f32 %v12342_v22, %v3469_v25 }
 0x4b0   : > { %v3508_v0 = vmul.f32 %v12342_v22, %v3470_v41  ;;  %v3509_v8 = vmul.f32 %v12342_v22, %v3471_v47  ;;  %v3473_v5 = vsub.f32 %v12064_v12, %v12338_v28  ;;  %v3510_v33 = vmul.f32 %v12342_v22, %v3472_v6 }
 0x4b1   : > { %v3542_v11 = vmul.f32 %v12352_v30, %v3504_v57  ;;  %v3543_v32 = vmul.f32 %v12352_v30, %v3505_v58  ;;  %v3544_v43 = vmul.f32 %v12352_v30, %v3506_v4  ;;  %v3545_v16 = vmul.f32 %v12352_v30, %v3507_v55 }
 0x4b2   : > { %v3546_v57 = vmul.f32 %v12352_v30, %v3508_v0  ;;  %v3547_v10 = vmul.f32 %v12352_v30, %v3509_v8  ;;  %v3511_v25 = vmul.f32 %v12342_v22, %v3473_v5  ;;  %v3475_v55 = vsub.f32 %v12074_v31, %v12338_v28 }
 0x4b3   : > { %v12375_v53 = vadd.f32 %v12364_v52, %v3542_v11  ;;  %v12380_v15 = vadd.f32 %v12364_v52, %v3543_v32  ;;  %v12389_v58 = vadd.f32 %v12364_v52, %v3544_v43  ;;  %v12395_v4 = vadd.f32 %v12364_v52, %v3545_v16 }
 0x4b4   : > { %v3474_v11 = vsub.f32 %v12076_v48, %v12338_v28  ;;  %v12404_v41 = vadd.f32 %v12364_v52, %v3546_v57  ;;  %v3548_v47 = vmul.f32 %v12352_v30, %v3510_v33  ;;  %v12409_v0 = vadd.f32 %v12364_v52, %v3547_v10 }
 0x4b5   : > { %9199 = vtanh.f32 %v12375_v53  ;;  %v3513_v43 = vmul.f32 %v12342_v22, %v3475_v55  ;;  %v3549_v8 = vmul.f32 %v12352_v30, %v3511_v25  ;;  %v3476_v16 = vsub.f32 %v12096_v9, %v12338_v28 }
 0x4b6   : > { %9201 = vtanh.f32 %v12380_v15  ;;  %v3512_v32 = vmul.f32 %v12342_v22, %v3474_v11  ;;  %v3477_v6 = vsub.f32 %v12092_v24, %v12338_v28  ;;  %v12422_v57 = vadd.f32 %v12364_v52, %v3548_v47 }
 0x4b7   : > { %9203 = vtanh.f32 %v12389_v58  ;;  %v3514_v5 = vmul.f32 %v12342_v22, %v3476_v16  ;;  %v3551_v25 = vmul.f32 %v12352_v30, %v3513_v43  ;;  %v12428_v11 = vadd.f32 %v12364_v52, %v3549_v8 }
 0x4b8   : > { %9205 = vtanh.f32 %v12395_v4  ;;  %v3550_v33 = vmul.f32 %v12352_v30, %v3512_v32  ;;  %v3515_v10 = vmul.f32 %v12342_v22, %v3477_v6  ;;  %v3478_v16 = vsub.f32 %v12119_v61, %v12338_v28 }
 0x4b9   : > { %9207 = vtanh.f32 %v12404_v41  ;;  %v3479_v32 = vsub.f32 %v12115_v26, %v12338_v28  ;;  %v3552_v6 = vmul.f32 %v12352_v30, %v3514_v5  ;;  %v12445_v2 = vadd.f32 %v12364_v52, %v3551_v25 }
 0x4ba   : > { %9209 = vtanh.f32 %v12409_v0  ;;  %v3516_v47 = vmul.f32 %v12342_v22, %v3478_v16  ;;  %v12438_v43 = vadd.f32 %v12364_v52, %v3550_v33  ;;  %v3553_v37 = vmul.f32 %v12352_v30, %v3515_v10 }
 0x4bb   : > { %9211 = vtanh.f32 %v12422_v57  ;;  %v3517_v8 = vmul.f32 %v12342_v22, %v3479_v32  ;;  %v3480_v5 = vsub.f32 %v12149_v49, %v12338_v28  ;;  %v3481_v33 = vsub.f32 %v12147_v34, %v12338_v28 }
 0x4bc   : > { %9213 = vtanh.f32 %v12428_v11  ;;  %v3554_v32 = vmul.f32 %v12352_v30, %v3516_v47  ;;  %v12456_v10 = vadd.f32 %v12364_v52, %v3552_v6  ;;  %v12463_v61 = vadd.f32 %v12364_v52, %v3553_v37 }
 0x4bd   : > { %9215 = vtanh.f32 %v12438_v43  ;;  %v3519_v25 = vmul.f32 %v12342_v22, %v3481_v33  ;;  %v3555_v49 = vmul.f32 %v12352_v30, %v3517_v8  ;;  %v3482_v47 = vsub.f32 %v12175_v38, %v12338_v28 }
 0x4be   : > { %9217 = vtanh.f32 %v12445_v2  ;;  %v3483_v6 = vsub.f32 %v12173_v35, %v12338_v28  ;;  %v12474_v8 = vadd.f32 %v12364_v52, %v3554_v32  ;;  %v3485_v32 = vsub.f32 %v12187_v17, %v12338_v28 }
 0x4bf   : > { %v9200_v55 = vpop.eup %9199  ;;  %9219 = vtanh.f32 %v12456_v10  ;;  %v3557_v38 = vmul.f32 %v12352_v30, %v3519_v25  ;;  %v12481_v34 = vadd.f32 %v12364_v52, %v3555_v49  ;;  %v7504_v14 = vmul.f32 -1.442695, %v12389_v58 }
 0x4c0   : > { %v9202_v18 = vpop.eup %9201  ;;  %3996 = vrot.lane.b32.xlu1 %v9200_v55, %s9671_s23  ;;  %v3521_v37 = vmul.f32 %v12342_v22, %v3483_v6  ;;  %9221 = vtanh.f32 %v12463_v61  ;;  %v3523_v49 = vmul.f32 %v12342_v22, %v3485_v32  ;;  %v7505_v56 = vmul.f32 -1.442695, %v12395_v4 }
 0x4c1   : > { %3998 = vrot.lane.b32.xlu0 %v9202_v18, %s9671_s23  ;;  %v9204_v55 = vpop.eup %9203  ;;  %v3518_v18 = vmul.f32 %v12342_v22, %v3480_v5  ;;  %9223 = vtanh.f32 %v12474_v8  ;;  %v12499_v35 = vadd.f32 %v12364_v52, %v3557_v38  ;;  %v7507_v60 = vmul.f32 -1.442695, %v12409_v0 }
 0x4c2   : > { %v9206_v16 = vpop.eup %9205  ;;  %9225 = vtanh.f32 %v12481_v34  ;;  %v7506_v63 = vmul.f32 -1.442695, %v12404_v41  ;;  %v7509_v62 = vmul.f32 -1.442695, %v12428_v11  ;;  %v7508_v58 = vmul.f32 -1.442695, %v12422_v57 }
 0x4c3   : > { %v3556_v33 = vmul.f32 %v12352_v30, %v3518_v18  ;;  %v3484_v18 = vsub.f32 %v12191_v40, %v12338_v28  ;;  %v3559_v40 = vmul.f32 %v12352_v30, %v3521_v37  ;;  %v7511_v4 = vmul.f32 -1.442695, %v12445_v2 }
 0x4c4   : > { %4000 = vrot.lane.b32.xlu1 %v9204_v55, %s9671_s23  ;;  %v9208_v55 = vpop.eup %9207  ;;  %v7510_v0 = vmul.f32 -1.442695, %v12438_v43  ;;  %v7515_v2 = vmul.f32 -1.442695, %v12481_v34  ;;  %v7514_v43 = vmul.f32 -1.442695, %v12474_v8 }
 0x4c5   : > { %4002 = vrot.lane.b32.xlu0 %v9206_v16, %s9671_s23  ;;  %v9210_v5 = vpop.eup %9209  ;;  %v3520_v16 = vmul.f32 %v12342_v22, %v3482_v47  ;;  %v12492_v25 = vadd.f32 %v12364_v52, %v3556_v33  ;;  %v3487_v33 = vsub.f32 %v12211_v42, %v12338_v28  ;;  %v12517_v17 = vadd.f32 %v12364_v52, %v3559_v40 }
 0x4c6   : > { %v3489_v42 = vsub.f32 %v12235_v21, %v12338_v28 }
 0x4c7   : > { %v3558_v6 = vmul.f32 %v12352_v30, %v3520_v16  ;;  %v3486_v16 = vsub.f32 %v12217_v23, %v12338_v28  ;;  %9227 = vtanh.f32 %v12492_v25  ;;  %v3525_v38 = vmul.f32 %v12342_v22, %v3487_v33 }
 0x4c8   : > { %4004 = vrot.lane.b32.xlu1 %v9208_v55, %s9671_s23  ;;  %v9212_v55 = vpop.eup %9211  ;;  %v3561_v23 = vmul.f32 %v12352_v30, %v3523_v49  ;;  %9229 = vtanh.f32 %v12499_v35 }
 0x4c9   : > { %4006 = vrot.lane.b32.xlu0 %v9210_v5, %s9671_s23  ;;  %v9214_v47 = vpop.eup %9213  ;;  %v3522_v5 = vmul.f32 %v12342_v22, %v3484_v18  ;;  %v12510_v37 = vadd.f32 %v12364_v52, %v3558_v6  ;;  %v12522_v6 = vpop.permute.xlu1 %3836  ;;  %v3563_v26 = vmul.f32 %v12352_v30, %v3525_v38 }
 0x4ca   : > { %v12539_v21 = vadd.f32 %v12364_v52, %v3561_v23 }
 0x4cb   : > { %v3560_v32 = vmul.f32 %v12352_v30, %v3522_v5  ;;  %v3488_v5 = vsub.f32 %v12237_v46, %v12338_v28  ;;  %9231 = vtanh.f32 %v12510_v37  ;;  %v3527_v46 = vmul.f32 %v12342_v22, %v3489_v42 }
 0x4cc   : > { %4008 = vrot.lane.b32.xlu1 %v9212_v55, %s9671_s23  ;;  %v9216_v55 = vpop.eup %9215  ;;  %9233 = vtanh.f32 %v12517_v17 }
 0x4cd   : > { %4010 = vrot.lane.b32.xlu0 %v9214_v47, %s9671_s23  ;;  %v9218_v18 = vpop.eup %9217  ;;  %v3524_v47 = vmul.f32 %v12342_v22, %v3486_v16  ;;  %v3526_v49 = vmul.f32 %v12342_v22, %v3488_v5  ;;  %v12532_v33 = vadd.f32 %v12364_v52, %v3560_v32  ;;  %v3491_v32 = vsub.f32 %v12263_v7, %v12338_v28  ;;  %v12554_v23 = vpop.permute.xlu1 %3840 }
 0x4ce   : > { %v3565_v9 = vmul.f32 %v12352_v30, %v3527_v46  ;;  %v12559_v7 = vadd.f32 %v12364_v52, %v3563_v26 }
 0x4cf   : > { %v3562_v40 = vmul.f32 %v12352_v30, %v3524_v47  ;;  %v3490_v47 = vsub.f32 %v12265_v44, %v12338_v28  ;;  %v3564_v42 = vmul.f32 %v12352_v30, %v3526_v49  ;;  %9235 = vtanh.f32 %v12532_v33 }
 0x4d0   : > { %4012 = vrot.lane.b32.xlu1 %v9216_v55, %s9671_s23  ;;  %v9220_v55 = vpop.eup %9219  ;;  %v3529_v44 = vmul.f32 %v12342_v22, %v3491_v32  ;;  %9237 = vtanh.f32 %v12539_v21  ;;  %v12579_v48 = vadd.f32 %v12364_v52, %v3565_v9 }
 0x4d1   : > { %4014 = vrot.lane.b32.xlu0 %v9218_v18, %s9671_s23  ;;  %v9222_v16 = vpop.eup %9221  ;;  %v12527_v18 = vpop.permute.xlu0 %3838  ;;  %v12550_v38 = vadd.f32 %v12364_v52, %v3562_v40  ;;  %v3492_v40 = vsub.f32 %v12279_v29, %v12338_v28  ;;  %v12572_v26 = vadd.f32 %v12364_v52, %v3564_v42  ;;  %v3495_v42 = vsub.f32 %v12294_v54, %v12338_v28 }
 0x4d2   : > { %v3567_v29 = vmul.f32 %v12352_v30, %v3529_v44 }
 0x4d3   : > { %v3530_v32 = vmul.f32 %v12342_v22, %v3492_v40  ;;  %9239 = vtanh.f32 %v12550_v38 }
 0x4d4   : > { %4016 = vrot.lane.b32.xlu1 %v9220_v55, %s9671_s23  ;;  %v9224_v55 = vpop.eup %9223  ;;  %9241 = vtanh.f32 %v12559_v7  ;;  %v12601_v31 = vadd.f32 %v12364_v52, %v3567_v29 }
 0x4d5   : > { %4018 = vrot.lane.b32.xlu0 %v9222_v16, %s9671_s23  ;;  %v9226_v5 = vpop.eup %9225  ;;  %v3528_v16 = vmul.f32 %v12342_v22, %v3490_v47  ;;  %v12562_v49 = vpop.permute.xlu0 %3842  ;;  %v3568_v9 = vmul.f32 %v12352_v30, %v3530_v32  ;;  %9243 = vtanh.f32 %v12572_v26  ;;  %v3496_v32 = vsub.f32 %v12317_v13, %v12338_v28 }
 0x4d6   : > { %9245 = vtanh.f32 %v12579_v48 }
 0x4d7   : > { %v3566_v46 = vmul.f32 %v12352_v30, %v3528_v16  ;;  %v3494_v16 = vsub.f32 %v12297_v39, %v12338_v28  ;;  %v3533_v39 = vmul.f32 %v12342_v22, %v3495_v42 }
 0x4d8   : > { %4020 = vrot.lane.b32.xlu1 %v9224_v55, %s9671_s23  ;;  %v9228_v55 = vpop.eup %9227 }
 0x4d9   : > { %4022 = vrot.lane.b32.xlu0 %v9226_v5, %s9671_s23  ;;  %v9230_v47 = vpop.eup %9229  ;;  %v3493_v5 = vsub.f32 %v12277_v1, %v12338_v28  ;;  %v12586_v1 = vpop.permute.xlu1 %3844  ;;  %v3532_v44 = vmul.f32 %v12342_v22, %v3494_v16  ;;  %v3571_v13 = vmul.f32 %v12352_v30, %v3533_v39 }
 0x4db   : > { %v3531_v24 = vmul.f32 %v12342_v22, %v3493_v5  ;;  %v12594_v5 = vadd.f32 %v12364_v52, %v3566_v46  ;;  %v3497_v46 = vsub.f32 %v12313_v36, %v12338_v28  ;;  %v3570_v42 = vmul.f32 %v12352_v30, %v3532_v44 }
 0x4dc   : > { %4024 = vrot.lane.b32.xlu1 %v9228_v55, %s9671_s23  ;;  %v9232_v55 = vpop.eup %9231  ;;  %v12635_v39 = vadd.f32 %v12364_v52, %v3571_v13 }
 0x4dd   : > { %4026 = vrot.lane.b32.xlu0 %v9230_v47, %s9671_s23  ;;  %v9234_v40 = vpop.eup %9233  ;;  %v12589_v47 = vpop.permute.xlu0 %3846  ;;  %v3569_v54 = vmul.f32 %v12352_v30, %v3531_v24  ;;  %v12612_v24 = vadd.f32 %v12364_v52, %v3568_v9  ;;  %9247 = vtanh.f32 %v12594_v5  ;;  %v3535_v29 = vmul.f32 %v12342_v22, %v3497_v46 }
 0x4de   : > { %9249 = vtanh.f32 %v12601_v31  ;;  %v12622_v28 = vpop.permute.xlu1 %3848 }
 0x4df   : > { %v12619_v3 = vadd.f32 %v12364_v52, %v3569_v54  ;;  %9251 = vtanh.f32 %v12612_v24  ;;  %v3573_v54 = vmul.f32 %v12352_v30, %v3535_v29 }
 0x4e0   : > { %4028 = vrot.lane.b32.xlu1 %v9232_v55, %s9671_s23  ;;  %v9236_v55 = vpop.eup %9235 }
 0x4e1   : > { %4030 = vrot.lane.b32.xlu0 %v9234_v40, %s9671_s23  ;;  %v9238_v16 = vpop.eup %9237  ;;  %v3534_v40 = vmul.f32 %v12342_v22, %v3496_v32  ;;  %v12624_v44 = vpop.permute.xlu0 %3850  ;;  %9253 = vtanh.f32 %v12619_v3  ;;  %v12649_v13 = vadd.f32 %v12364_v52, %v3573_v54 }
 0x4e2   : > { %v12638_v36 = vpop.permute.xlu1 %3852 }
 0x4e3   : > { %v3572_v32 = vmul.f32 %v12352_v30, %v3534_v40 }
 0x4e4   : > { %4032 = vrot.lane.b32.xlu1 %v9236_v55, %s9671_s23  ;;  %v9240_v55 = vpop.eup %9239 }
 0x4e5   : > { %4034 = vrot.lane.b32.xlu0 %v9238_v16, %s9671_s23  ;;  %v9242_v9 = vpop.eup %9241  ;;  %v12629_v16 = vadd.f32 %v12364_v52, %v3570_v42  ;;  %v12642_v40 = vadd.f32 %v12364_v52, %v3572_v32  ;;  %v12645_v42 = vpop.permute.xlu0 %3854 }
 0x4e6   : > { %v9244_v22 = vpop.eup %9243 }
 0x4e7   : > { %v9246_v46 = vpop.eup %9245  ;;  %9255 = vtanh.f32 %v12629_v16 }
 0x4e8   : > { %4036 = vrot.lane.b32.xlu1 %v9240_v55, %s9671_s23  ;;  %9257 = vtanh.f32 %v12635_v39  ;;  %v9248_v30 = vpop.eup %9247  ;;  %v12656_v55 = vpop.permute.xlu1 %3856 }
 0x4e9   : > { %4038 = vrot.lane.b32.xlu0 %v9242_v9, %s9671_s23  ;;  %v9250_v29 = vpop.eup %9249  ;;  %9259 = vtanh.f32 %v12642_v40  ;;  %v12658_v32 = vpop.permute.xlu0 %3858 }
 0x4ea   : > { %9261 = vtanh.f32 %v12649_v13  ;;  %v9252_v9 = vpop.eup %9251 }
 0x4ec   : > { %4040 = vrot.lane.b32.xlu1 %v9244_v22, %s9671_s23  ;;  %v9254_v22 = vpop.eup %9253 }
 0x4ed   : > { %4042 = vrot.lane.b32.xlu0 %v9246_v46, %s9671_s23  ;;  %v12662_v46 = vpop.permute.xlu1 %3860 }
 0x4f0   : > { %4044 = vrot.lane.b32.xlu1 %v9248_v30, %s9671_s23  ;;  %v12665_v30 = vpop.permute.xlu0 %3862 }
 0x4f1   : > { %4046 = vrot.lane.b32.xlu0 %v9250_v29, %s9671_s23  ;;  %v9256_v52 = vpop.eup %9255  ;;  %v12670_v19 = vpop.permute.xlu1 %3864 }
 0x4f2   : > { %v9258_v54 = vpop.eup %9257 }
 0x4f3   : > { %v9260_v29 = vpop.eup %9259 }
 0x4f4   : > { %4048 = vrot.lane.b32.xlu1 %v9252_v9, %s9671_s23  ;;  %v9262_v12 = vpop.eup %9261  ;;  %v12672_v9 = vpop.permute.xlu0 %3866 }
 0x4f5   : > { %4050 = vrot.lane.b32.xlu0 %v9254_v22, %s9671_s23  ;;  %v12674_v22 = vpop.permute.xlu1 %3868 }
 0x4f8   : > { %4052 = vrot.lane.b32.xlu1 %v9256_v52, %s9671_s23  ;;  %v12676_v45 = vpop.permute.xlu0 %3870 }
 0x4f9   : > { %4054 = vrot.lane.b32.xlu0 %v9258_v54, %s9671_s23  ;;  %v12678_v50 = vpop.permute.xlu1 %3872 }
 0x4fc   : > { %4056 = vrot.lane.b32.xlu1 %v9260_v29, %s9671_s23  ;;  %v12680_v52 = vpop.permute.xlu0 %3874  ;;  %v7502_v29 = vmul.f32 -1.442695, %v12375_v53 }
 0x4fd   : > { %4058 = vrot.lane.b32.xlu0 %v9262_v12, %s9671_s23  ;;  %v12682_v59 = vpop.permute.xlu1 %3876  ;;  %v7503_v12 = vmul.f32 -1.442695, %v12380_v15 }
 0x4fe   : > { %9263 = vpow2.f32 %v7502_v29 }
 0x4ff   : > { %9265 = vpow2.f32 %v7503_v12 }
 0x500   : > { %v12684_v54 = vpop.permute.xlu0 %3878  ;;  %9267 = vpow2.f32 %v7504_v14  ;;  %v7513_v14 = vmul.f32 -1.442695, %v12463_v61 }
 0x501   : > { %v12688_v20 = vpop.permute.xlu1 %3880  ;;  %9269 = vpow2.f32 %v7505_v56  ;;  %v7512_v56 = vmul.f32 -1.442695, %v12456_v10 }
 0x502   : > { %9271 = vpow2.f32 %v7507_v60 }
 0x503   : > { %9273 = vpow2.f32 %v7506_v63 }
 0x504   : > { %v12691_v27 = vpop.permute.xlu0 %3882  ;;  %9275 = vpow2.f32 %v7509_v62 }
 0x505   : > { %v12697_v53 = vpop.permute.xlu1 %3884  ;;  %9277 = vpow2.f32 %v7508_v58 }
 0x506   : > { %9279 = vpow2.f32 %v7511_v4 }
 0x507   : > { %9281 = vpow2.f32 %v7510_v0 }
 0x508   : > { %v12699_v15 = vpop.permute.xlu0 %3886  ;;  %v9264_v29 = vpop.eup %9263  ;;  %9283 = vpow2.f32 %v7513_v14 }
 0x509   : > { %15778 = vst [vmem:[#allocation54_spill] sm:$0xff] %v12699_v15  ;;  %v9266_v12 = vpop.eup %9265  ;;  %v12705_v41 = vpop.permute.xlu1 %3888  ;;  %v3708_v60 = vadd.f32 1.0, %v9264_v29  ;;  %9285 = vpow2.f32 %v7512_v56  ;;  %v7516_v56 = vmul.f32 -1.442695, %v12492_v25 }
 0x50a   : > { %15779 = vst [vmem:[#allocation20_spill] sm:$0xff] %v12705_v41  ;;  %v9268_v63 = vpop.eup %9267  ;;  %v3709_v57 = vadd.f32 1.0, %v9266_v12 }
 0x50b   : > { %v9270_v62 = vpop.eup %9269  ;;  %v3710_v51 = vadd.f32 1.0, %v9268_v63  ;;  %9287 = vrcp.f32 %v3708_v60 }
 0x50c   : > { %v12708_v11 = vpop.permute.xlu0 %3890  ;;  %v9272_v61 = vpop.eup %9271  ;;  %v3711_v41 = vadd.f32 1.0, %v9270_v62  ;;  %9289 = vrcp.f32 %v3709_v57  ;;  %v7517_v57 = vmul.f32 -1.442695, %v12499_v35 }
 0x50d   : > { %15780 = vst [vmem:[#allocation50_spill] sm:$0xff] %v12708_v11  ;;  %v12712_v58 = vpop.permute.xlu1 %3892  ;;  %v9274_v10 = vpop.eup %9273  ;;  %9291 = vpow2.f32 %v7515_v2  ;;  %v3713_v0 = vadd.f32 1.0, %v9272_v61 }
 0x50e   : > { %15781 = vst [vmem:[#allocation21_spill] sm:$0xff] %v12712_v58  ;;  %v9276_v29 = vpop.eup %9275  ;;  %9293 = vpow2.f32 %v7514_v43  ;;  %v3712_v12 = vadd.f32 1.0, %v9274_v10 }
 0x50f   : > { %9295 = vrcp.f32 %v3710_v51  ;;  %v9278_v34 = vpop.eup %9277  ;;  %v3715_v14 = vadd.f32 1.0, %v9276_v29  ;;  %v7518_v29 = vmul.f32 -1.442695, %v12510_v37 }
 0x510   : > { %v12714_v4 = vpop.permute.xlu0 %3894  ;;  %9297 = vrcp.f32 %v3711_v41  ;;  %v9280_v8 = vpop.eup %9279  ;;  %v3714_v2 = vadd.f32 1.0, %v9278_v34 }
 0x511   : > { %15782 = vst [vmem:[#allocation15_spill] sm:$0xff] %v12714_v4  ;;  %v12717_v60 = vpop.permute.xlu1 %3896  ;;  %v9282_v63 = vpop.eup %9281  ;;  %9299 = vrcp.f32 %v3713_v0  ;;  %v3717_v51 = vadd.f32 1.0, %v9280_v8 }
 0x512   : > { %15783 = vst [vmem:[#allocation74_spill] sm:$0xff] %v12717_v60  ;;  %v9284_v4 = vpop.eup %9283  ;;  %9301 = vrcp.f32 %v3712_v12  ;;  %v3716_v41 = vadd.f32 1.0, %v9282_v63  ;;  %v7519_v12 = vmul.f32 -1.442695, %v12517_v17 }
 0x513   : > { %v9286_v43 = vpop.eup %9285  ;;  %9303 = vrcp.f32 %v3715_v14  ;;  %v3719_v8 = vadd.f32 1.0, %v9284_v4  ;;  %v7521_v4 = vmul.f32 -1.442695, %v12539_v21  ;;  %v7522_v21 = vmul.f32 -1.442695, %v12550_v38 }
 0x514   : > { %v12720_v62 = vpop.permute.xlu0 %3898  ;;  %9305 = vpow2.f32 %v7516_v56  ;;  %v3718_v63 = vadd.f32 1.0, %v9286_v43 }
 0x515   : > { %15784 = vst [vmem:[#allocation69_spill] sm:$0xff] %v12720_v62  ;;  %v12722_v61 = vpop.eup %9287  ;;  %9307 = vpow2.f32 %v7517_v57 }
 0x516   : > { %v12724_v25 = vpop.eup %9289  ;;  %9309 = vrcp.f32 %v3714_v2  ;;  %v7520_v2 = vmul.f32 -1.442695, %v12532_v33 }
 0x517   : > { %v9292_v62 = vpop.eup %9291  ;;  %9311 = vrcp.f32 %v3717_v51 }
 0x518   : > { %v9294_v14 = vpop.eup %9293  ;;  %9313 = vrcp.f32 %v3716_v41  ;;  %v3721_v43 = vadd.f32 1.0, %v9292_v62  ;;  %v7523_v62 = vmul.f32 -1.442695, %v12559_v7 }
 0x519   : > { %v12731_v56 = vpop.eup %9295  ;;  %9315 = vpow2.f32 %v7518_v29  ;;  %v3720_v29 = vadd.f32 1.0, %v9294_v14  ;;  %v7524_v14 = vmul.f32 -1.442695, %v12572_v26  ;;  %v7525_v26 = vmul.f32 -1.442695, %v12579_v48 }
 0x51a   : > { %v12734_v57 = vpop.eup %9297  ;;  %9317 = vpow2.f32 %v7519_v12 }
 0x51b   : > { %9319 = vrcp.f32 %v3719_v8 }
 0x51c   : > { %9321 = vrcp.f32 %v3718_v63 }
 0x51d   : > { %9323 = vpow2.f32 %v7520_v2 }
 0x51e   : > { %9325 = vpow2.f32 %v7521_v4 }
 0x51f   : > { %9327 = vrcp.f32 %v3721_v43 }
 0x520   : > { %9329 = vrcp.f32 %v3720_v29 }
 0x532   : > { %v3997_v10 = vpop.permute.xlu1 %3996 }
 0x533   : > { %v3999_v0 = vpop.permute.xlu0 %3998  ;;  %v4092_v35 = vmul.f32 %v12722_v61, %v3997_v10 }
 0x534   : > { %v4093_v34 = vmul.f32 %v12724_v25, %v3999_v0  ;;  %v12740_v0 = vpop.eup %9299  ;;  %9331 = vpow2.f32 %v7522_v21 }
 0x535   : > { %4156 = vrot.lane.b32.xlu1 %v4092_v35, %s9669_s16  ;;  %v12743_v41 = vpop.eup %9301  ;;  %9333 = vpow2.f32 %v7523_v62  ;;  %v7526_v62 = vmul.f32 -1.442695, %v12594_v5 }
 0x536   : > { %4158 = vrot.lane.b32.xlu0 %v4093_v34, %s9669_s16  ;;  %v4001_v37 = vpop.permute.xlu1 %4000  ;;  %v12746_v35 = vpop.eup %9303  ;;  %9335 = vpow2.f32 %v7524_v14 }
 0x537   : > { %v4003_v17 = vpop.permute.xlu0 %4002  ;;  %v4094_v10 = vmul.f32 %v12731_v56, %v4001_v37  ;;  %v9306_v37 = vpop.eup %9305 }
 0x538   : > { %v4095_v51 = vmul.f32 %v12734_v57, %v4003_v17  ;;  %v9308_v17 = vpop.eup %9307 }
 0x539   : > { %4160 = vrot.lane.b32.xlu1 %v4094_v10, %s9669_s16  ;;  %v12754_v63 = vpop.eup %9309  ;;  %v3722_v10 = vadd.f32 1.0, %v9306_v37 }
 0x53a   : > { %4162 = vrot.lane.b32.xlu0 %v4095_v51, %s9669_s16  ;;  %v4005_v33 = vpop.permute.xlu1 %4004  ;;  %v12757_v2 = vpop.eup %9311 }
 0x53b   : > { %v4007_v12 = vpop.permute.xlu0 %4006  ;;  %v4096_v34 = vmul.f32 %v12743_v41, %v4005_v33  ;;  %v12760_v51 = vpop.eup %9313  ;;  %9337 = vrcp.f32 %v3722_v10  ;;  %v7529_v10 = vmul.f32 -1.442695, %v12619_v3 }
 0x53c   : > { %v4097_v8 = vmul.f32 %v12740_v0, %v4007_v12  ;;  %v9316_v33 = vpop.eup %9315  ;;  %v3723_v12 = vadd.f32 1.0, %v9308_v17  ;;  %9339 = vpow2.f32 %v7525_v26 }
 0x53d   : > { %4164 = vrot.lane.b32.xlu1 %v4096_v34, %s9669_s16  ;;  %v9318_v29 = vpop.eup %9317  ;;  %v7527_v34 = vmul.f32 -1.442695, %v12601_v31  ;;  %v3724_v17 = vadd.f32 1.0, %v9316_v33  ;;  %v7528_v33 = vmul.f32 -1.442695, %v12612_v24 }
 0x53e   : > { %4166 = vrot.lane.b32.xlu0 %v4097_v8, %s9669_s16  ;;  %v4009_v38 = vpop.permute.xlu1 %4008  ;;  %v12767_v37 = vpop.eup %9319  ;;  %9341 = vrcp.f32 %v3723_v12  ;;  %v3725_v31 = vadd.f32 1.0, %v9318_v29 }
 0x53f   : > { %v4011_v4 = vpop.permute.xlu0 %4010  ;;  %v4098_v7 = vmul.f32 %v12754_v63, %v4009_v38  ;;  %v12771_v38 = vpop.eup %9321  ;;  %9343 = vpow2.f32 %v7527_v34 }
 0x540   : > { %v4099_v43 = vmul.f32 %v12746_v35, %v4011_v4  ;;  %v9324_v4 = vpop.eup %9323  ;;  %9345 = vpow2.f32 %v7526_v62  ;;  %v7531_v62 = vmul.f32 -1.442695, %v12635_v39 }
 0x541   : > { %4168 = vrot.lane.b32.xlu1 %v4098_v7, %s9669_s16  ;;  %v9326_v7 = vpop.eup %9325  ;;  %9347 = vrcp.f32 %v3724_v17  ;;  %v3726_v12 = vadd.f32 1.0, %v9324_v4 }
 0x542   : > { %4170 = vrot.lane.b32.xlu0 %v4099_v43, %s9669_s16  ;;  %v4013_v21 = vpop.permute.xlu1 %4012  ;;  %v12777_v43 = vpop.eup %9327  ;;  %9349 = vrcp.f32 %v3725_v31  ;;  %v3727_v3 = vadd.f32 1.0, %v9326_v7 }
 0x543   : > { %v4015_v8 = vpop.permute.xlu0 %4014  ;;  %v4100_v48 = vmul.f32 %v12760_v51, %v4013_v21  ;;  %9351 = vpow2.f32 %v7529_v10 }
 0x544   : > { %v4101_v14 = vmul.f32 %v12757_v2, %v4015_v8  ;;  %v12781_v8 = vpop.eup %9329  ;;  %9353 = vpow2.f32 %v7528_v33 }
 0x545   : > { %4172 = vrot.lane.b32.xlu1 %v4100_v48, %s9669_s16  ;;  %v9332_v34 = vpop.eup %9331  ;;  %9355 = vrcp.f32 %v3726_v12  ;;  %v7532_v12 = vmul.f32 -1.442695, %v12642_v40 }
 0x546   : > { %4174 = vrot.lane.b32.xlu0 %v4101_v14, %s9669_s16  ;;  %v4017_v5 = vpop.permute.xlu1 %4016  ;;  %v9334_v48 = vpop.eup %9333  ;;  %9357 = vrcp.f32 %v3727_v3  ;;  %v7533_v3 = vmul.f32 -1.442695, %v12649_v13 }
 0x547   : > { %v4019_v26 = vpop.permute.xlu0 %4018  ;;  %v4102_v21 = vmul.f32 %v12771_v38, %v4017_v5  ;;  %v9336_v14 = vpop.eup %9335  ;;  %v7530_v5 = vmul.f32 -1.442695, %v12629_v16  ;;  %v3729_v10 = vadd.f32 1.0, %v9334_v48  ;;  %9359 = vpow2.f32 %v7531_v62 }
 0x548   : > { %v4103_v29 = vmul.f32 %v12767_v37, %v4019_v26  ;;  %v3728_v26 = vadd.f32 1.0, %v9332_v34  ;;  %v12790_v7 = vpop.eup %9337 }
 0x549   : > { %4176 = vrot.lane.b32.xlu1 %v4102_v21, %s9669_s16  ;;  %v9340_v39 = vpop.eup %9339  ;;  %v3730_v21 = vadd.f32 1.0, %v9336_v14  ;;  %9361 = vpow2.f32 %v7530_v5 }
 0x54a   : > { %4178 = vrot.lane.b32.xlu0 %v4103_v29, %s9669_s16  ;;  %v4021_v24 = vpop.permute.xlu1 %4020  ;;  %v12794_v16 = vpop.eup %9341  ;;  %9363 = vrcp.f32 %v3728_v26  ;;  %v3731_v62 = vadd.f32 1.0, %v9340_v39 }
 0x54b   : > { %v4023_v17 = vpop.permute.xlu0 %4022  ;;  %v4104_v4 = vmul.f32 %v12781_v8, %v4021_v24  ;;  %v9344_v24 = vpop.eup %9343  ;;  %9365 = vrcp.f32 %v3729_v10 }
 0x54c   : > { %v4105_v31 = vmul.f32 %v12777_v43, %v4023_v17  ;;  %v9346_v17 = vpop.eup %9345  ;;  %9367 = vrcp.f32 %v3730_v21 }
 0x54d   : > { %4180 = vrot.lane.b32.xlu1 %v4104_v4, %s9669_s16  ;;  %v12801_v14 = vpop.eup %9347  ;;  %9369 = vpow2.f32 %v7532_v12 }
 0x54e   : > { %4182 = vrot.lane.b32.xlu0 %v4105_v31, %s9669_s16  ;;  %v4025_v33 = vpop.permute.xlu1 %4024  ;;  %v12804_v5 = vpop.eup %9349  ;;  %v3732_v31 = vadd.f32 1.0, %v9346_v17  ;;  %9371 = vpow2.f32 %v7533_v3 }
 0x54f   : > { %v4027_v29 = vpop.permute.xlu0 %4026  ;;  %v4106_v34 = vmul.f32 %v12790_v7, %v4025_v33  ;;  %v9352_v13 = vpop.eup %9351  ;;  %9373 = vrcp.f32 %v3731_v62  ;;  %v3733_v33 = vadd.f32 1.0, %v9344_v24 }
 0x550   : > { %v4107_v48 = vmul.f32 %v12794_v16, %v4027_v29  ;;  %v9354_v39 = vpop.eup %9353  ;;  %9375 = vrcp.f32 %v3732_v31  ;;  %v3735_v24 = vadd.f32 1.0, %v9352_v13 }
 0x551   : > { %4184 = vrot.lane.b32.xlu1 %v4106_v34, %s9669_s16  ;;  %v12809_v21 = vpop.eup %9355  ;;  %v3734_v3 = vadd.f32 1.0, %v9354_v39  ;;  %9377 = vrcp.f32 %v3733_v33 }
 0x552   : > { %4186 = vrot.lane.b32.xlu0 %v4107_v48, %s9669_s16  ;;  %v4029_v40 = vpop.permute.xlu1 %4028  ;;  %v12812_v34 = vpop.eup %9357 }
 0x553   : > { %v4031_v4 = vpop.permute.xlu0 %4030  ;;  %v4108_v26 = vmul.f32 %v12801_v14, %v4029_v40  ;;  %v9360_v40 = vpop.eup %9359  ;;  %9379 = vrcp.f32 %v3734_v3 }
 0x554   : > { %v4109_v10 = vmul.f32 %v12804_v5, %v4031_v4  ;;  %v9362_v4 = vpop.eup %9361  ;;  %9381 = vrcp.f32 %v3735_v24  ;;  %v3737_v13 = vadd.f32 1.0, %v9360_v40 }
 0x555   : > { %4188 = vrot.lane.b32.xlu1 %v4108_v26, %s9669_s16  ;;  %v12817_v62 = vpop.eup %9363  ;;  %v3736_v31 = vadd.f32 1.0, %v9362_v4 }
 0x556   : > { %4190 = vrot.lane.b32.xlu0 %v4109_v10, %s9669_s16  ;;  %v4033_v29 = vpop.permute.xlu1 %4032  ;;  %v12820_v10 = vpop.eup %9365 }
 0x557   : > { %v4035_v12 = vpop.permute.xlu0 %4034  ;;  %v4110_v48 = vmul.f32 %v12809_v21, %v4033_v29  ;;  %v12823_v58 = vpop.eup %9367  ;;  %9383 = vrcp.f32 %v3736_v31 }
 0x558   : > { %v4111_v17 = vmul.f32 %v12812_v34, %v4035_v12  ;;  %v9370_v33 = vpop.eup %9369  ;;  %9385 = vrcp.f32 %v3737_v13 }
 0x559   : > { %4192 = vrot.lane.b32.xlu1 %v4110_v48, %s9669_s16  ;;  %v9372_v12 = vpop.eup %9371  ;;  %v3738_v15 = vadd.f32 1.0, %v9370_v33 }
 0x55a   : > { %4194 = vrot.lane.b32.xlu0 %v4111_v17, %s9669_s16  ;;  %v4037_v26 = vpop.permute.xlu1 %4036  ;;  %v12828_v17 = vpop.eup %9373 }
 0x55b   : > { %v4039_v60 = vpop.permute.xlu0 %4038  ;;  %v4112_v29 = vmul.f32 %v12817_v62, %v4037_v26  ;;  %v12833_v40 = vpop.eup %9375  ;;  %9387 = vrcp.f32 %v3738_v15 }
 0x55c   : > { %v4113_v39 = vmul.f32 %v12820_v10, %v4039_v60  ;;  %v3739_v60 = vadd.f32 1.0, %v9372_v12  ;;  %v12836_v24 = vpop.eup %9377 }
 0x55d   : > { %4196 = vrot.lane.b32.xlu1 %v4112_v29, %s9669_s16 }
 0x55e   : > { %4198 = vrot.lane.b32.xlu0 %v4113_v39, %s9669_s16  ;;  %v4041_v48 = vpop.permute.xlu1 %4040  ;;  %9389 = vrcp.f32 %v3739_v60 }
 0x55f   : > { %v4043_v11 = vpop.permute.xlu0 %4042  ;;  %v4114_v26 = vmul.f32 %v12823_v58, %v4041_v48 }
 0x560   : > { %v4115_v3 = vmul.f32 %v12828_v17, %v4043_v11  ;;  %v12841_v11 = vpop.eup %9379 }
 0x561   : > { %4200 = vrot.lane.b32.xlu1 %v4114_v26, %s9669_s16  ;;  %v12844_v13 = vpop.eup %9381 }
 0x562   : > { %4202 = vrot.lane.b32.xlu0 %v4115_v3, %s9669_s16  ;;  %v4045_v4 = vpop.permute.xlu1 %4044  ;;  %15785 = vst [vmem:[#allocation70_spill] sm:$0xff] %v12844_v13  ;;  %v12849_v15 = vpop.eup %9383 }
 0x563   : > { %v4047_v29 = vpop.permute.xlu0 %4046  ;;  %v4116_v39 = vmul.f32 %v12833_v40, %v4045_v4  ;;  %15786 = vst [vmem:[#allocation60_spill] sm:$0xff] %v12849_v15  ;;  %v12852_v60 = vpop.eup %9385 }
 0x564   : > { %v4117_v31 = vmul.f32 %v12836_v24, %v4047_v29  ;;  %15787 = vst [vmem:[#allocation18_spill] sm:$0xff] %v12852_v60 }
 0x565   : > { %4204 = vrot.lane.b32.xlu1 %v4116_v39, %s9669_s16 }
 0x566   : > { %4206 = vrot.lane.b32.xlu0 %v4117_v31, %s9669_s16  ;;  %v4049_v33 = vpop.permute.xlu1 %4048  ;;  %v12857_v31 = vpop.eup %9387 }
 0x567   : > { %v4051_v12 = vpop.permute.xlu0 %4050  ;;  %v4118_v48 = vmul.f32 %v12841_v11, %v4049_v33 }
 0x568   : > { %v4119_v26 = vmul.f32 %v12844_v13, %v4051_v12  ;;  %v12860_v12 = vpop.eup %9389 }
 0x569   : > { %4208 = vrot.lane.b32.xlu1 %v4118_v48, %s9669_s16 }
 0x56a   : > { %4210 = vrot.lane.b32.xlu0 %v4119_v26, %s9669_s16  ;;  %v4053_v3 = vpop.permute.xlu1 %4052 }
 0x56b   : > { %v4055_v4 = vpop.permute.xlu0 %4054  ;;  %v4120_v29 = vmul.f32 %v12849_v15, %v4053_v3  ;;  %v3932_v3 = vmul.f32 %v12722_v61, %v12522_v6 }
 0x56c   : > { %v4121_v39 = vmul.f32 %v12852_v60, %v4055_v4  ;;  %v3933_v4 = vmul.f32 %v12724_v25, %v12527_v18 }
 0x56d   : > { %4212 = vrot.lane.b32.xlu1 %v4120_v29, %s9669_s16 }
 0x56e   : > { %4214 = vrot.lane.b32.xlu0 %v4121_v39, %s9669_s16  ;;  %v4057_v33 = vpop.permute.xlu1 %4056 }
 0x56f   : > { %v4059_v48 = vpop.permute.xlu0 %4058  ;;  %v4122_v26 = vmul.f32 %v12857_v31, %v4057_v33  ;;  %v3934_v33 = vmul.f32 %v12731_v56, %v12554_v23  ;;  %v3937_v23 = vmul.f32 %v12740_v0, %v12589_v47 }
 0x570   : > { %v4123_v13 = vmul.f32 %v12860_v12, %v4059_v48  ;;  %v3936_v48 = vmul.f32 %v12743_v41, %v12586_v1  ;;  %v3939_v1 = vmul.f32 %v12746_v35, %v12624_v44 }
 0x571   : > { %4216 = vrot.lane.b32.xlu1 %v4122_v26, %s9669_s16 }
 0x572   : > { %4218 = vrot.lane.b32.xlu0 %v4123_v13, %s9669_s16  ;;  %v3935_v13 = vmul.f32 %v12734_v57, %v12562_v49 }
 0x5a7   : > { %v4157_v29 = vpop.permute.xlu1 %4156 }
 0x5a8   : > { %v4159_v39 = vpop.permute.xlu0 %4158  ;;  %v12870_v60 = vadd.f32 %v4157_v29, %v3932_v3  ;;  %v3938_v3 = vmul.f32 %v12754_v63, %v12622_v28  ;;  %v3940_v29 = vmul.f32 %v12760_v51, %v12638_v36  ;;  %v3941_v28 = vmul.f32 %v12757_v2, %v12645_v42 }
 0x5a9   : > { %v12872_v15 = vadd.f32 %v4159_v39, %v3933_v4  ;;  %v3943_v36 = vmul.f32 %v12767_v37, %v12658_v32 }
 0x5aa   : > { %15788 = vst [vmem:[#allocation17_spill] sm:$0xff] %v12870_v60  ;;  %4316 = vrot.lane.b32.xlu1 %v12870_v60, %s9672_s17 }
 0x5ab   : > { %15789 = vst [vmem:[#allocation63_spill] sm:$0xff] %v12872_v15  ;;  %4318 = vrot.lane.b32.xlu0 %v12872_v15, %s9672_s17  ;;  %v4161_v6 = vpop.permute.xlu1 %4160 }
 0x5ac   : > { %v4163_v18 = vpop.permute.xlu0 %4162  ;;  %v12882_v61 = vadd.f32 %v4161_v6, %v3934_v33  ;;  %v3942_v33 = vmul.f32 %v12771_v38, %v12656_v55  ;;  %v3944_v6 = vmul.f32 %v12781_v8, %v12662_v46  ;;  %v3945_v55 = vmul.f32 %v12777_v43, %v12665_v30 }
 0x5ad   : > { %v12884_v25 = vadd.f32 %v4163_v18, %v3935_v13  ;;  %v3947_v46 = vmul.f32 %v12794_v16, %v12672_v9 }
 0x5ae   : > { %15790 = vst [vmem:[#allocation62_spill] sm:$0xff] %v12882_v61  ;;  %4320 = vrot.lane.b32.xlu1 %v12882_v61, %s9672_s17 }
 0x5af   : > { %15791 = vst [vmem:[#allocation78_spill] sm:$0xff] %v12884_v25  ;;  %4322 = vrot.lane.b32.xlu0 %v12884_v25, %s9672_s17  ;;  %v4165_v49 = vpop.permute.xlu1 %4164 }
 0x5b0   : > { %v4167_v56 = vpop.permute.xlu0 %4166  ;;  %v12894_v57 = vadd.f32 %v4165_v49, %v3936_v48  ;;  %v3946_v48 = vmul.f32 %v12790_v7, %v12670_v19  ;;  %v3948_v49 = vmul.f32 %v12801_v14, %v12674_v22  ;;  %v3949_v19 = vmul.f32 %v12804_v5, %v12676_v45 }
 0x5b1   : > { %v12896_v26 = vadd.f32 %v4167_v56, %v3937_v23  ;;  %v3951_v22 = vmul.f32 %v12812_v34, %v12680_v52 }
 0x5b2   : > { %15792 = vst [vmem:[#allocation28_spill] sm:$0xff] %v12894_v57  ;;  %4324 = vrot.lane.b32.xlu1 %v12894_v57, %s9672_s17 }
 0x5b3   : > { %15793 = vst [vmem:[#allocation31_spill] sm:$0xff] %v12896_v26  ;;  %4326 = vrot.lane.b32.xlu0 %v12896_v26, %s9672_s17  ;;  %v4169_v47 = vpop.permute.xlu1 %4168 }
 0x5b4   : > { %v4171_v0 = vpop.permute.xlu0 %4170  ;;  %v12906_v41 = vadd.f32 %v4169_v47, %v3938_v3  ;;  %v3950_v3 = vmul.f32 %v12809_v21, %v12678_v50  ;;  %v3952_v47 = vmul.f32 %v12817_v62, %v12682_v59  ;;  %v3953_v50 = vmul.f32 %v12820_v10, %v12684_v54 }
 0x5b5   : > { %v12908_v4 = vadd.f32 %v4171_v0, %v3939_v1  ;;  %v3955_v59 = vmul.f32 %v12828_v17, %v12691_v27 }
 0x5b6   : > { %15794 = vst [vmem:[#allocation29_spill] sm:$0xff] %v12906_v41  ;;  %4328 = vrot.lane.b32.xlu1 %v12906_v41, %s9672_s17 }
 0x5b7   : > { %15795 = vst [vmem:[#allocation80_spill] sm:$0xff] %v12908_v4  ;;  %4330 = vrot.lane.b32.xlu0 %v12908_v4, %s9672_s17  ;;  %v4173_v44 = vpop.permute.xlu1 %4172 }
 0x5b8   : > { %v4175_v35 = vpop.permute.xlu0 %4174  ;;  %v12918_v63 = vadd.f32 %v4173_v44, %v3940_v29  ;;  %v3954_v29 = vmul.f32 %v12823_v58, %v12688_v20  ;;  %v3956_v44 = vmul.f32 %v12833_v40, %v12697_v53  ;;  %v15812_v20 = vld [vmem:[#allocation54_spill] sm:$0xff] }
 0x5b9   : > { %v12920_v39 = vadd.f32 %v4175_v35, %v3941_v28  ;;  %v3957_v58 = vmul.f32 %v12836_v24, %v15812_v20  ;;  %v15816_v53 = vld [vmem:[#allocation50_spill] sm:$0xff] }
 0x5ba   : > { %15796 = vst [vmem:[#allocation71_spill] sm:$0xff] %v12918_v63  ;;  %4332 = vrot.lane.b32.xlu1 %v12918_v63, %s9672_s17  ;;  %v15817_v40 = vld [vmem:[#allocation70_spill] sm:$0xff] }
 0x5bb   : > { %15797 = vst [vmem:[#allocation42_spill] sm:$0xff] %v12920_v39  ;;  %4334 = vrot.lane.b32.xlu0 %v12920_v39, %s9672_s17  ;;  %v4177_v42 = vpop.permute.xlu1 %4176  ;;  %v5504_v20 = vld [vmem:[%s15293_s6 + $0x20] sm:$0xff] }
 0x5bc   : > { %v4179_v2 = vpop.permute.xlu0 %4178  ;;  %v12930_v51 = vadd.f32 %v4177_v42, %v3942_v33 }
 0x5bd   : > { %v12932_v13 = vadd.f32 %v4179_v2, %v3943_v36  ;;  %v15815_v36 = vld [vmem:[#allocation20_spill] sm:$0xff]  ;;  %v3959_v2 = vmul.f32 %v15817_v40, %v15816_v53  ;;  %v5508_v53 = vld [vmem:[%s15293_s6 + $0x40] sm:$0xff]  ;;  %v5509_v40 = vld [vmem:[%s15293_s6 + $0x48] sm:$0xff] }
 0x5be   : > { %15798 = vst [vmem:[#allocation82_spill] sm:$0xff] %v12930_v51  ;;  %4336 = vrot.lane.b32.xlu1 %v12930_v51, %s9672_s17  ;;  %v3958_v42 = vmul.f32 %v12841_v11, %v15815_v36  ;;  %v15822_v11 = vld [vmem:[#allocation15_spill] sm:$0xff]  ;;  %v5507_v36 = vld [vmem:[%s15293_s6 + $0x38] sm:$0xff] }
 0x5bf   : > { %15799 = vst [vmem:[#allocation66_spill] sm:$0xff] %v12932_v13  ;;  %4338 = vrot.lane.b32.xlu0 %v12932_v13, %s9672_s17  ;;  %v4181_v32 = vpop.permute.xlu1 %4180 }
 0x5c0   : > { %v4183_v37 = vpop.permute.xlu0 %4182  ;;  %v12942_v38 = vadd.f32 %v4181_v32, %v3944_v6 }
 0x5c1   : > { %v12944_v18 = vadd.f32 %v4183_v37, %v3945_v55  ;;  %v15820_v37 = vld [vmem:[#allocation21_spill] sm:$0xff] }
 0x5c2   : > { %15800 = vst [vmem:[#allocation43_spill] sm:$0xff] %v12942_v38  ;;  %4340 = vrot.lane.b32.xlu1 %v12942_v38, %s9672_s17 }
 0x5c3   : > { %15801 = vst [vmem:[#allocation32_spill] sm:$0xff] %v12944_v18  ;;  %4342 = vrot.lane.b32.xlu0 %v12944_v18, %s9672_s17  ;;  %v4185_v30 = vpop.permute.xlu1 %4184 }
 0x5c4   : > { %v4187_v43 = vpop.permute.xlu0 %4186  ;;  %v12954_v8 = vadd.f32 %v4185_v30, %v3946_v48  ;;  %v15821_v48 = vld [vmem:[#allocation60_spill] sm:$0xff]  ;;  %v15823_v30 = vld [vmem:[#allocation18_spill] sm:$0xff] }
 0x5c5   : > { %v12956_v23 = vadd.f32 %v4187_v43, %v3947_v46  ;;  %v3960_v46 = vmul.f32 %v15821_v48, %v15820_v37  ;;  %v3961_v43 = vmul.f32 %v15823_v30, %v15822_v11  ;;  %v5512_v48 = vld [vmem:[%s15293_s6 + $0x60] sm:$0xff]  ;;  %v5514_v30 = vld [vmem:[%s15293_s6 + $0x70] sm:$0xff] }
 0x5c6   : > { %15802 = vst [vmem:[#allocation79_spill] sm:$0xff] %v12954_v8  ;;  %4344 = vrot.lane.b32.xlu1 %v12954_v8, %s9672_s17 }
 0x5c7   : > { %15803 = vst [vmem:[#allocation81_spill] sm:$0xff] %v12956_v23  ;;  %4346 = vrot.lane.b32.xlu0 %v12956_v23, %s9672_s17  ;;  %v4189_v9 = vpop.permute.xlu1 %4188 }
 0x5c8   : > { %v4191_v7 = vpop.permute.xlu0 %4190  ;;  %v12966_v16 = vadd.f32 %v4189_v9, %v3948_v49 }
 0x5c9   : > { %v12968_v56 = vadd.f32 %v4191_v7, %v3949_v19 }
 0x5ca   : > { %15804 = vst [vmem:[#allocation76_spill] sm:$0xff] %v12966_v16  ;;  %4348 = vrot.lane.b32.xlu1 %v12966_v16, %s9672_s17 }
 0x5cb   : > { %15805 = vst [vmem:[#allocation46_spill] sm:$0xff] %v12968_v56  ;;  %4350 = vrot.lane.b32.xlu0 %v12968_v56, %s9672_s17  ;;  %v4193_v45 = vpop.permute.xlu1 %4192 }
 0x5cc   : > { %v4195_v14 = vpop.permute.xlu0 %4194  ;;  %v12978_v5 = vadd.f32 %v4193_v45, %v3950_v3  ;;  %v15826_v3 = vld [vmem:[#allocation74_spill] sm:$0xff]  ;;  %v15827_v45 = vld [vmem:[#allocation69_spill] sm:$0xff] }
 0x5cd   : > { %v12980_v1 = vadd.f32 %v4195_v14, %v3951_v22  ;;  %v3962_v22 = vmul.f32 %v12857_v31, %v15826_v3  ;;  %v3963_v14 = vmul.f32 %v12860_v12, %v15827_v45  ;;  %v5501_v31 = vld [vmem:[%s15293_s6 + $0x8] sm:$0xff]  ;;  %v15830_v12 = vmov 0.0|0.0   ;;  %v5518_v45 = vld [vmem:[%s15293_s6 + $0x90] sm:$0xff] }
 0x5ce   : > { %15806 = vst [vmem:[#allocation45_spill] sm:$0xff] %v12978_v5  ;;  %4352 = vrot.lane.b32.xlu1 %v12978_v5, %s9672_s17  ;;  %v5517_v3 = vld [vmem:[%s15293_s6 + $0x88] sm:$0xff] }
 0x5cf   : > { %15807 = vst [vmem:[#allocation59_spill] sm:$0xff] %v12980_v1  ;;  %4354 = vrot.lane.b32.xlu0 %v12980_v1, %s9672_s17  ;;  %v4197_v52 = vpop.permute.xlu1 %4196 }
 0x5d0   : > { %v4199_v21 = vpop.permute.xlu0 %4198  ;;  %v12990_v34 = vadd.f32 %v4197_v52, %v3952_v47 }
 0x5d1   : > { %v12992_v0 = vadd.f32 %v4199_v21, %v3953_v50  ;;  %v5500_v21 = vld [vmem:[%s15293_s6] sm:$0xff] }
 0x5d2   : > { %15808 = vst [vmem:[#allocation55_spill] sm:$0xff] %v12990_v34  ;;  %4356 = vrot.lane.b32.xlu1 %v12990_v34, %s9672_s17 }
 0x5d3   : > { %15809 = vst [vmem:[#allocation61_spill] sm:$0xff] %v12992_v0  ;;  %4358 = vrot.lane.b32.xlu0 %v12992_v0, %s9672_s17  ;;  %v4201_v54 = vpop.permute.xlu1 %4200 }
 0x5d4   : > { %v4203_v62 = vpop.permute.xlu0 %4202  ;;  %v13002_v10 = vadd.f32 %v4201_v54, %v3954_v29  ;;  %v5502_v54 = vld [vmem:[%s15293_s6 + $0x10] sm:$0xff] }
 0x5d5   : > { %v13004_v28 = vadd.f32 %v4203_v62, %v3955_v59  ;;  %v8009_v59 = vpack.c.bf16 %v5501_v31, %v5500_v21  ;;  %v5503_v62 = vld [vmem:[%s15293_s6 + $0x18] sm:$0xff]  ;;  %v5521_v21 = vld [vmem:[%s15293_s6 + $0xa8] sm:$0xff] }
 0x5d6   : > { %15810 = vst [vmem:[#allocation83_spill] sm:$0xff] %v13002_v10  ;;  %4360 = vrot.lane.b32.xlu1 %v13002_v10, %s9672_s17 }
 0x5d7   : > { %15811 = vst [vmem:[#allocation75_spill] sm:$0xff] %v13004_v28  ;;  %4362 = vrot.lane.b32.xlu0 %v13004_v28, %s9672_s17  ;;  %v4205_v27 = vpop.permute.xlu1 %4204  ;;  %8010 = vmatpush1.bf16.msra.mxu1 %v8009_v59  ;;  %v5522_v59 = vld [vmem:[%s15293_s6 + $0xb0] sm:$0xff] }
 0x5d8   : > { %v4207_v17 = vpop.permute.xlu0 %4206  ;;  %v13014_v35 = vadd.f32 %v4205_v27, %v3956_v44  ;;  %8011 = vmatprep.subr.bf16.mxu1 %v15830_v12  ;;  %v8012_v44 = vpack.c.bf16 %v5503_v62, %v5502_v54  ;;  %v5523_v54 = vld [vmem:[%s15293_s6 + $0xb8] sm:$0xff] }
 0x5d9   : > { %v13016_v33 = vadd.f32 %v4207_v17, %v3957_v58  ;;  %v5505_v58 = vld [vmem:[%s15293_s6 + $0x28] sm:$0xff]  ;;  %v5506_v17 = vld [vmem:[%s15293_s6 + $0x30] sm:$0xff]  ;;  %v8042_v62 = vpack.c.bf16 %v5523_v54, %v5522_v59 }
 0x5da   : > { %15813 = vst [vmem:[#allocation88_spill] sm:$0xff] %v13014_v35  ;;  %4364 = vrot.lane.b32.xlu1 %v13014_v35, %s9672_s17  ;;  %v8015_v27 = vpack.c.bf16 %v5505_v58, %v5504_v20  ;;  %v5525_v20 = vld [vmem:[%s15293_s6 + $0xc8] sm:$0xff]  ;;  %v15831_v59 = vld [vmem:[#allocation8_spill] sm:$0xff] }
 0x5db   : > { %15814 = vst [vmem:[#allocation84_spill] sm:$0xff] %v13016_v33  ;;  %4366 = vrot.lane.b32.xlu0 %v13016_v33, %s9672_s17  ;;  %v4209_v24 = vpop.permute.xlu1 %4208  ;;  %8013 = vmatpush1.bf16.msra.mxu1 %v8012_v44  ;;  %v5524_v44 = vld [vmem:[%s15293_s6 + $0xc0] sm:$0xff] }
 0x5dc   : > { %v4211_v6 = vpop.permute.xlu0 %4210  ;;  %v13026_v55 = vadd.f32 %v4209_v24, %v3958_v42  ;;  %8014 = vmatprep.subr.bf16.mxu1 %v15830_v12  ;;  %v8018_v42 = vpack.c.bf16 %v5507_v36, %v5506_v17  ;;  %v5510_v24 = vld [vmem:[%s15293_s6 + $0x50] sm:$0xff]  ;;  %v8045_v58 = vpack.c.bf16 %v5525_v20, %v5524_v44  ;;  %v5527_v17 = vld [vmem:[%s15293_s6 + $0xd8] sm:$0xff] }
 0x5dd   : > { %v13028_v32 = vadd.f32 %v4211_v6, %v3959_v2  ;;  %v8021_v2 = vpack.c.bf16 %v5509_v40, %v5508_v53  ;;  %v5511_v6 = vld [vmem:[%s15293_s6 + $0x58] sm:$0xff] }
 0x5de   : > { %15818 = vst [vmem:[#allocation77_spill] sm:$0xff] %v13026_v55  ;;  %4368 = vrot.lane.b32.xlu1 %v13026_v55, %s9672_s17  ;;  %v8024_v37 = vpack.c.bf16 %v5511_v6, %v5510_v24  ;;  %v15832_v44 = vld [vmem:[#allocation9_spill] sm:$0xff] }
 0x5df   : > { %15819 = vst [vmem:[#allocation56_spill] sm:$0xff] %v13028_v32  ;;  %4370 = vrot.lane.b32.xlu0 %v13028_v32, %s9672_s17  ;;  %v4213_v49 = vpop.permute.xlu1 %4212  ;;  %8016 = vmatpush1.bf16.msra.mxu1 %v8015_v27  ;;  %v5526_v27 = vld [vmem:[%s15293_s6 + $0xd0] sm:$0xff] }
 0x5e0   : > { %v4215_v19 = vpop.permute.xlu0 %4214  ;;  %v13038_v9 = vadd.f32 %v4213_v49, %v3960_v46  ;;  %8017 = vmatprep.subr.bf16.mxu1 %v15830_v12  ;;  %v5513_v46 = vld [vmem:[%s15293_s6 + $0x68] sm:$0xff] }
 0x5e1   : > { %v13040_v7 = vadd.f32 %v4215_v19, %v3961_v43  ;;  %v8027_v11 = vpack.c.bf16 %v5513_v46, %v5512_v48  ;;  %v5515_v43 = vld [vmem:[%s15293_s6 + $0x78] sm:$0xff]  ;;  %v5516_v19 = vld [vmem:[%s15293_s6 + $0x80] sm:$0xff] }
 0x5e2   : > { %15824 = vst [vmem:[#allocation90_spill] sm:$0xff] %v13038_v9  ;;  %4372 = vrot.lane.b32.xlu1 %v13038_v9, %s9672_s17  ;;  %v8030_v49 = vpack.c.bf16 %v5515_v43, %v5514_v30  ;;  %v5528_v30 = vld [vmem:[%s15293_s6 + $0xe0] sm:$0xff]  ;;  %v5529_v43 = vld [vmem:[%s15293_s6 + $0xe8] sm:$0xff] }
 0x5e3   : > { %15825 = vst [vmem:[#allocation93_spill] sm:$0xff] %v13040_v7  ;;  %4374 = vrot.lane.b32.xlu0 %v13040_v7, %s9672_s17  ;;  %v4217_v47 = vpop.permute.xlu1 %4216  ;;  %8019 = vmatpush1.bf16.msra.mxu1 %v8018_v42  ;;  %v8048_v42 = vpack.c.bf16 %v5527_v17, %v5526_v27 }
 0x5e4   : > { %v4219_v50 = vpop.permute.xlu0 %4218  ;;  %v13050_v52 = vadd.f32 %v4217_v47, %v3962_v22  ;;  %8020 = vmatprep.subr.bf16.mxu1 %v15830_v12  ;;  %v8033_v22 = vpack.c.bf16 %v5517_v3, %v5516_v19 }
 0x5e5   : > { %v13058_v29 = vadd.f32 %v4219_v50, %v3963_v14  ;;  %v5519_v14 = vld [vmem:[%s15293_s6 + $0x98] sm:$0xff]  ;;  %v5520_v50 = vld [vmem:[%s15293_s6 + $0xa0] sm:$0xff] }
 0x5e6   : > { %15828 = vst [vmem:[#allocation94_spill] sm:$0xff] %v13050_v52  ;;  %4376 = vrot.lane.b32.xlu1 %v13050_v52, %s9672_s17  ;;  %v8036_v47 = vpack.c.bf16 %v5519_v14, %v5518_v45  ;;  %v8039_v31 = vpack.c.bf16 %v5521_v21, %v5520_v50 }
 0x5e7   : > { %15829 = vst [vmem:[#allocation85_spill] sm:$0xff] %v13058_v29  ;;  %4378 = vrot.lane.b32.xlu0 %v13058_v29, %s9672_s17  ;;  %8022 = vmatpush1.bf16.msra.mxu1 %v8021_v2 }
 0x5e8   : > { %8023 = vmatprep.subr.bf16.mxu1 %v15830_v12 }
 0x5eb   : > { %8025 = vmatpush1.bf16.msra.mxu1 %v8024_v37 }
 0x5ec   : > { %8026 = vmatprep.subr.bf16.mxu1 %v15830_v12 }
 0x5ef   : > { %8028 = vmatpush1.bf16.msra.mxu1 %v8027_v11 }
 0x5f0   : > { %8029 = vmatprep.subr.bf16.mxu1 %v15830_v12 }
 0x5f3   : > { %8031 = vmatpush1.bf16.msra.mxu1 %v8030_v49 }
 0x5f4   : > { %8032 = vmatprep.subr.bf16.mxu1 %v15830_v12 }
 0x5f7   : > { %8034 = vmatpush1.bf16.msra.mxu1 %v8033_v22  ;;  %v8051_v22 = vpack.c.bf16 %v5529_v43, %v5528_v30 }
 0x5f8   : > { %8035 = vmatprep.subr.bf16.mxu1 %v15830_v12 }
 0x5fb   : > { %8037 = vmatpush1.bf16.msra.mxu1 %v8036_v47 }
 0x5fc   : > { %8038 = vmatprep.subr.bf16.mxu1 %v15830_v12 }
 0x5ff   : > { %8040 = vmatpush1.bf16.msra.mxu1 %v8039_v31 }
 0x600   : > { %8041 = vmatprep.subr.bf16.mxu1 %v15830_v12 }
 0x603   : > { %8043 = vmatpush1.bf16.msra.mxu1 %v8042_v62 }
 0x604   : > { %8044 = vmatprep.subr.bf16.mxu1 %v15830_v12 }
 0x607   : > { %8046 = vmatpush1.bf16.msra.mxu1 %v8045_v58 }
 0x608   : > { %8047 = vmatprep.subr.bf16.mxu1 %v15830_v12 }
 0x60b   : > { %8049 = vmatpush1.bf16.msra.mxu1 %v8048_v42 }
 0x60c   : > { %8050 = vmatprep.subr.bf16.mxu1 %v15830_v12 }
 0x60f   : > { %8052 = vmatpush1.bf16.msra.mxu1 %v8051_v22 }
 0x610   : > { %8053 = vmatprep.subr.bf16.mxu1 %v15830_v12 }
 0x61c   : > { %v4317_v36 = vpop.permute.xlu1 %4316 }
 0x61d   : > { %v4319_v53 = vpop.permute.xlu0 %4318  ;;  %v4380_v40 = vrot.slane %v4317_v36, 7  ;;  %7206 = vst.msk [vmem:[#allocation3] sm:$0xff] %vm2305_vm14, %v4317_v36  ;;  %7270 = vst.msk [vmem:[%s9776_s22] sm:$0xff] %vm2305_vm14, %v4317_v36 }
 0x61e   : > { %v4381_v2 = vrot.slane %v4319_v53, 7  ;;  %7207 = vst.msk [vmem:[#allocation3 + $0x8] sm:$0xff] %vm2305_vm14, %v4319_v53  ;;  %7271 = vst.msk [vmem:[%s9776_s22 + $0x8] sm:$0xff] %vm2305_vm14, %v4319_v53 }
 0x61f   : > { %v13169_v37 = vsel %vm966_vm1, 0.0, %v4380_v40 }
 0x620   : > { %v13163_v24 = vsel %vm966_vm1, %v4381_v2, 0.0  ;;  %v13166_v6 = vsel %vm966_vm1, %v4380_v40, %v4381_v2  ;;  %v4321_v48 = vpop.permute.xlu1 %4320  ;;  %v4612_v45 = vrot.slane %v13169_v37, 2 }
 0x621   : > { %v4323_v46 = vpop.permute.xlu0 %4322  ;;  %v4383_v11 = vrot.slane %v4321_v48, 7  ;;  %7208 = vst.msk [vmem:[#allocation3 + $0x10] sm:$0xff] %vm2305_vm14, %v4321_v48  ;;  %7272 = vst.msk [vmem:[%s9776_s22 + $0x10] sm:$0xff] %vm2305_vm14, %v4321_v48  ;;  %v4615_v49 = vrot.slane %v13163_v24, 2  ;;  %v4613_v3 = vrot.slane %v13166_v6, 2  ;;  %v15833_v48 = vld [vmem:[#allocation11_spill] sm:$0xff] }
 0x622   : > { %v4384_v19 = vrot.slane %v4323_v46, 7  ;;  %7209 = vst.msk [vmem:[#allocation3 + $0x18] sm:$0xff] %vm2305_vm14, %v4323_v46  ;;  %7273 = vst.msk [vmem:[%s9776_s22 + $0x18] sm:$0xff] %vm2305_vm14, %v4323_v46  ;;  %v4540_v29 = vrot.slane %v13163_v24, 1 }
 0x623   : > { %v13187_v14 = vsel %vm966_vm1, 0.0, %v4383_v11  ;;  %v13208_v58 = vsel %vm1213_vm2, %v4613_v3, %v4615_v49  ;;  %v4614_v17 = vsel %vm1213_vm2, %v4612_v45, %v4613_v3 }
 0x624   : > { %v13190_v47 = vsel %vm966_vm1, %v4384_v19, 0.0  ;;  %v13193_v50 = vsel %vm966_vm1, %v4383_v11, %v4384_v19  ;;  %v4325_v21 = vpop.permute.xlu1 %4324  ;;  %v8717_v54 = vpack.i.bf16 %v15831_v59, %v13187_v14  ;;  %v4542_v27 = vrot.slane %v13187_v14, 1  ;;  %v15834_v11 = vld [vmem:[#allocation10_spill] sm:$0xff] }
 0x625   : > { %v4327_v31 = vpop.permute.xlu0 %4326  ;;  %7210 = vst.msk [vmem:[#allocation3 + $0x20] sm:$0xff] %vm2305_vm14, %v4325_v21  ;;  %7274 = vst.msk [vmem:[%s9776_s22 + $0x20] sm:$0xff] %vm2305_vm14, %v4325_v21  ;;  %v4545_v62 = vrot.slane %v13190_v47, 1  ;;  %v8722_v20 = vpack.i.bf16 %v15832_v44, %v13193_v50  ;;  %v4543_v36 = vrot.slane %v13193_v50, 1  ;;  %v4386_v53 = vrot.slane %v4325_v21, 7 }
 0x626   : > { %7211 = vst.msk [vmem:[#allocation3 + $0x28] sm:$0xff] %vm2305_vm14, %v4327_v31  ;;  %7275 = vst.msk [vmem:[%s9776_s22 + $0x28] sm:$0xff] %vm2305_vm14, %v4327_v31  ;;  %8718 = vrot.lane.b32.xlu0 %v8717_v54, %s9671_s23  ;;  %v4387_v42 = vrot.slane %v4327_v31, 7  ;;  %v8737_v46 = vpack.i.bf16 %v15833_v48, %v13208_v58  ;;  %v8727_v30 = vpack.i.bf16 %v15834_v11, %v4614_v17  ;;  %v4617_v49 = vrot.slane %v13187_v14, 2 }
 0x627   : > { %8723 = vrot.lane.b32.xlu1 %v8722_v20, %s9671_s23  ;;  %v13233_v43 = vsel %vm1132_vm3, %v4543_v36, %v4545_v62  ;;  %v13238_v19 = vsel %vm1132_vm3, %v4542_v27, %v4543_v36  ;;  %v4618_v3 = vrot.slane %v13193_v50, 2  ;;  %v13245_v45 = vsel %vm966_vm1, 0.0, %v4386_v53 }
 0x628   : > { %v13215_v40 = vpop.permute.xlu1 %4328  ;;  %v13242_v22 = vsel %vm966_vm1, %v4386_v53, %v4387_v42  ;;  %v4537_v31 = vrot.slane %v13169_v37, 1  ;;  %v8742_v62 = vpack.i.bf16 %v13166_v6, %v13233_v43  ;;  %v4538_v20 = vrot.slane %v13166_v6, 1 }
 0x629   : > { %v13217_v2 = vpop.permute.xlu0 %4330  ;;  %7212 = vst.msk [vmem:[#allocation3 + $0x30] sm:$0xff] %vm2305_vm14, %v13215_v40  ;;  %7276 = vst.msk [vmem:[%s9776_s22 + $0x30] sm:$0xff] %vm2305_vm14, %v13215_v40  ;;  %v4620_v27 = vrot.slane %v13190_v47, 2  ;;  %v8732_v36 = vpack.i.bf16 %v13169_v37, %v13238_v19  ;;  %v13270_v53 = vsel %vm966_vm1, %v4387_v42, 0.0  ;;  %v4548_v47 = vrot.slane %v13242_v22, 1 }
 0x62a   : > { %7213 = vst.msk [vmem:[#allocation3 + $0x38] sm:$0xff] %vm2305_vm14, %v13217_v2  ;;  %7277 = vst.msk [vmem:[%s9776_s22 + $0x38] sm:$0xff] %vm2305_vm14, %v13217_v2  ;;  %8738 = vrot.lane.b32.xlu0 %v8737_v46, %s9669_s16  ;;  %v4547_v46 = vrot.slane %v13245_v45, 1  ;;  %v13290_v42 = vsel %vm1132_vm3, %v4537_v31, %v4538_v20  ;;  %v4550_v24 = vrot.slane %v13270_v53, 1  ;;  %v4389_v33 = vrot.slane %v13215_v40, 7 }
 0x62b   : > { %8728 = vrot.lane.b32.xlu1 %v8727_v30, %s9669_s16  ;;  %v13275_v30 = vsel %vm1213_vm2, %v4617_v49, %v4618_v3  ;;  %v8752_v49 = vpack.i.bf16 %v4614_v17, %v13245_v45  ;;  %v4390_v17 = vrot.slane %v13217_v2, 7  ;;  %v13314_v28 = vsel %vm1132_vm3, %v4538_v20, %v4540_v29 }
 0x62c   : > { %v13248_v21 = vpop.permute.xlu1 %4332  ;;  %15835 = vst [vmem:[#allocation72_spill] sm:$0xff] %v13275_v30  ;;  %v13306_v31 = vsel %vm1132_vm3, %v4547_v46, %v4548_v47  ;;  %v13333_v40 = vsel %vm1132_vm3, %v4548_v47, %v4550_v24  ;;  %v4623_v20 = vrot.slane %v13242_v22, 2  ;;  %v13342_v46 = vsel %vm966_vm1, 0.0, %v4389_v33 }
 0x62d   : > { %v13251_v54 = vpop.permute.xlu0 %4334  ;;  %7214 = vst.msk [vmem:[#allocation3 + $0x40] sm:$0xff] %vm2305_vm14, %v13248_v21  ;;  %7278 = vst.msk [vmem:[%s9776_s22 + $0x40] sm:$0xff] %vm2305_vm14, %v13248_v21  ;;  %v8757_v29 = vpack.i.bf16 %v13187_v14, %v13306_v31  ;;  %v8772_v47 = vpack.i.bf16 %v13193_v50, %v13333_v40  ;;  %v4625_v24 = vrot.slane %v13270_v53, 2  ;;  %v4392_v10 = vrot.slane %v13248_v21, 7 }
 0x62e   : > { %7215 = vst.msk [vmem:[#allocation3 + $0x48] sm:$0xff] %vm2305_vm14, %v13251_v54  ;;  %7279 = vst.msk [vmem:[%s9776_s22 + $0x48] sm:$0xff] %vm2305_vm14, %v13251_v54  ;;  %8743 = vrot.lane.b32.xlu0 %v8742_v62, %s9672_s17  ;;  %v8747_v62 = vpack.i.bf16 %v13290_v42, %v13275_v30  ;;  %v4393_v35 = vrot.slane %v13251_v54, 7 }
 0x62f   : > { %8733 = vrot.lane.b32.xlu1 %v8732_v36, %s9672_s17  ;;  %v13302_v36 = vsel %vm1213_vm2, %v4618_v3, %v4620_v27  ;;  %v4622_v3 = vrot.slane %v13245_v45, 2  ;;  %v13339_v27 = vsel %vm966_vm1, %v4389_v33, %v4390_v17  ;;  %v8767_v33 = vpack.i.bf16 %v13208_v58, %v13242_v22 }
 0x630   : > { %v13280_v7 = vpop.permute.xlu1 %4336  ;;  %15836 = vst [vmem:[#allocation73_spill] sm:$0xff] %v13302_v36  ;;  %v8762_v2 = vpack.i.bf16 %v13314_v28, %v13302_v36  ;;  %15837 = vst [vmem:[#allocation89_spill] sm:$0xff] %v13339_v27  ;;  %v4553_v53 = vrot.slane %v13339_v27, 1  ;;  %v8782_v58 = vpack.i.bf16 %v13275_v30, %v13342_v46 }
 0x631   : > { %v13282_v32 = vpop.permute.xlu0 %4338  ;;  %7216 = vst.msk [vmem:[#allocation3 + $0x50] sm:$0xff] %vm2305_vm14, %v13280_v7  ;;  %7280 = vst.msk [vmem:[%s9776_s22 + $0x50] sm:$0xff] %vm2305_vm14, %v13280_v7  ;;  %v13368_v0 = vsel %vm1213_vm2, %v4622_v3, %v4623_v20  ;;  %v4395_v26 = vrot.slane %v13280_v7, 7 }
 0x632   : > { %7217 = vst.msk [vmem:[#allocation3 + $0x58] sm:$0xff] %vm2305_vm14, %v13282_v32  ;;  %7281 = vst.msk [vmem:[%s9776_s22 + $0x58] sm:$0xff] %vm2305_vm14, %v13282_v32  ;;  %8753 = vrot.lane.b32.xlu0 %v8752_v49, %s9671_s23  ;;  %v8777_v3 = vpack.i.bf16 %v13238_v19, %v13368_v0  ;;  %v4396_v4 = vrot.slane %v13282_v32, 7 }
 0x633   : > { %8748 = vrot.lane.b32.xlu1 %v8747_v62, %s9669_s16  ;;  %15838 = vst [vmem:[#allocation87_spill] sm:$0xff] %v13368_v0 }
 0x634   : > { %v13311_v52 = vpop.permute.xlu1 %4340 }
 0x635   : > { %v13316_v9 = vpop.permute.xlu0 %4342  ;;  %7218 = vst.msk [vmem:[#allocation3 + $0x60] sm:$0xff] %vm2305_vm14, %v13311_v52  ;;  %7282 = vst.msk [vmem:[%s9776_s22 + $0x60] sm:$0xff] %vm2305_vm14, %v13311_v52  ;;  %v4398_v60 = vrot.slane %v13311_v52, 7 }
 0x636   : > { %7219 = vst.msk [vmem:[#allocation3 + $0x68] sm:$0xff] %vm2305_vm14, %v13316_v9  ;;  %7283 = vst.msk [vmem:[%s9776_s22 + $0x68] sm:$0xff] %vm2305_vm14, %v13316_v9  ;;  %8763 = vrot.lane.b32.xlu0 %v8762_v2, %s9669_s16  ;;  %v4494_v2 = vsel %vm966_vm1, %v4390_v17, 0.0  ;;  %v4399_v61 = vrot.slane %v13316_v9, 7 }
 0x637   : > { %8758 = vrot.lane.b32.xlu1 %v8757_v29, %s9672_s17  ;;  %v4552_v29 = vrot.slane %v13342_v46, 1  ;;  %v4555_v17 = vrot.slane %v4494_v2, 1 }
 0x638   : > { %v13345_v49 = vpop.permute.xlu1 %4344 }
 0x639   : > { %v13347_v62 = vpop.permute.xlu0 %4346  ;;  %7220 = vst.msk [vmem:[#allocation3 + $0x70] sm:$0xff] %vm2305_vm14, %v13345_v49  ;;  %7284 = vst.msk [vmem:[%s9776_s22 + $0x70] sm:$0xff] %vm2305_vm14, %v13345_v49  ;;  %v13419_v54 = vsel %vm1132_vm3, %v4553_v53, %v4555_v17  ;;  %v4630_v17 = vrot.slane %v4494_v2, 2 }
 0x63a   : > { %7221 = vst.msk [vmem:[#allocation3 + $0x78] sm:$0xff] %vm2305_vm14, %v13347_v62  ;;  %7285 = vst.msk [vmem:[%s9776_s22 + $0x78] sm:$0xff] %vm2305_vm14, %v13347_v62  ;;  %8773 = vrot.lane.b32.xlu0 %v8772_v47, %s9672_s17  ;;  %v13391_v47 = vsel %vm1213_vm2, %v4623_v20, %v4625_v24  ;;  %v4627_v24 = vrot.slane %v13342_v46, 2 }
 0x63b   : > { %8768 = vrot.lane.b32.xlu1 %v8767_v33, %s9671_s23  ;;  %15839 = vst [vmem:[#allocation91_spill] sm:$0xff] %v13391_v47  ;;  %v13395_v33 = vsel %vm1132_vm3, %v4552_v29, %v4553_v53  ;;  %v8792_v20 = vpack.i.bf16 %v13233_v43, %v13391_v47  ;;  %v4628_v29 = vrot.slane %v13339_v27, 2  ;;  %v8802_v53 = vpack.i.bf16 %v13242_v22, %v13419_v54 }
 0x63c   : > { %v13372_v55 = vpop.permute.xlu1 %4348  ;;  %v8787_v21 = vpack.i.bf16 %v13245_v45, %v13395_v33 }
 0x63d   : > { %v13374_v1 = vpop.permute.xlu0 %4350  ;;  %7222 = vst.msk [vmem:[#allocation3 + $0x80] sm:$0xff] %vm2305_vm14, %v13372_v55  ;;  %7286 = vst.msk [vmem:[%s9776_s22 + $0x80] sm:$0xff] %vm2305_vm14, %v13372_v55  ;;  %v13453_v23 = vsel %vm1213_vm2, %v4627_v24, %v4628_v29 }
 0x63e   : > { %7223 = vst.msk [vmem:[#allocation3 + $0x88] sm:$0xff] %vm2305_vm14, %v13374_v1  ;;  %7287 = vst.msk [vmem:[%s9776_s22 + $0x88] sm:$0xff] %vm2305_vm14, %v13374_v1  ;;  %8783 = vrot.lane.b32.xlu0 %v8782_v58, %s9671_s23  ;;  %v13425_v58 = vsel %vm966_vm1, %v4392_v10, %v4393_v35 }
 0x63f   : > { %8778 = vrot.lane.b32.xlu1 %v8777_v3, %s9669_s16  ;;  %15840 = vst [vmem:[#allocation86_spill] sm:$0xff] %v13425_v58  ;;  %v13428_v3 = vsel %vm966_vm1, 0.0, %v4392_v10  ;;  %v8797_v10 = vpack.i.bf16 %v13302_v36, %v13339_v27  ;;  %15842 = vst [vmem:[#allocation97_spill] sm:$0xff] %v13453_v23  ;;  %v4558_v2 = vrot.slane %v13425_v58, 1 }
 0x640   : > { %v13400_v34 = vpop.permute.xlu1 %4352  ;;  %15841 = vst [vmem:[#allocation96_spill] sm:$0xff] %v13428_v3 }
 0x641   : > { %v13402_v5 = vpop.permute.xlu0 %4354  ;;  %7224 = vst.msk [vmem:[#allocation3 + $0x90] sm:$0xff] %vm2305_vm14, %v13400_v34  ;;  %7288 = vst.msk [vmem:[%s9776_s22 + $0x90] sm:$0xff] %vm2305_vm14, %v13400_v34 }
 0x642   : > { %7225 = vst.msk [vmem:[#allocation3 + $0x98] sm:$0xff] %vm2305_vm14, %v13402_v5  ;;  %7289 = vst.msk [vmem:[%s9776_s22 + $0x98] sm:$0xff] %vm2305_vm14, %v13402_v5  ;;  %8793 = vrot.lane.b32.xlu0 %v8792_v20, %s9669_s16  ;;  %v4495_v20 = vsel %vm966_vm1, %v4393_v35, 0.0  ;;  %v8812_v35 = vpack.i.bf16 %v13368_v0, %v13428_v3 }
 0x643   : > { %8788 = vrot.lane.b32.xlu1 %v8787_v21, %s9672_s17  ;;  %v4557_v21 = vrot.slane %v13428_v3, 1  ;;  %v4560_v24 = vrot.slane %v4495_v20, 1 }
 0x644   : > { %v13431_v16 = vpop.permute.xlu1 %4356 }
 0x645   : > { %v13433_v56 = vpop.permute.xlu0 %4358  ;;  %7226 = vst.msk [vmem:[#allocation3 + $0xa0] sm:$0xff] %vm2305_vm14, %v13431_v16  ;;  %7290 = vst.msk [vmem:[%s9776_s22 + $0xa0] sm:$0xff] %vm2305_vm14, %v13431_v16  ;;  %v13480_v39 = vsel %vm1132_vm3, %v4557_v21, %v4558_v2  ;;  %v13504_v7 = vsel %vm1132_vm3, %v4558_v2, %v4560_v24  ;;  %v4633_v21 = vrot.slane %v13425_v58, 2  ;;  %v4635_v24 = vrot.slane %v4495_v20, 2 }
 0x646   : > { %7227 = vst.msk [vmem:[#allocation3 + $0xa8] sm:$0xff] %vm2305_vm14, %v13433_v56  ;;  %7291 = vst.msk [vmem:[%s9776_s22 + $0xa8] sm:$0xff] %vm2305_vm14, %v13433_v56  ;;  %8803 = vrot.lane.b32.xlu0 %v8802_v53, %s9672_s17  ;;  %v8807_v53 = vpack.i.bf16 %v13306_v31, %v13453_v23  ;;  %v8817_v32 = vpack.i.bf16 %v13342_v46, %v13480_v39  ;;  %v8832_v2 = vpack.i.bf16 %v13339_v27, %v13504_v7 }
 0x647   : > { %8798 = vrot.lane.b32.xlu1 %v8797_v10, %s9671_s23  ;;  %v13476_v10 = vsel %vm1213_vm2, %v4628_v29, %v4630_v17  ;;  %v4632_v17 = vrot.slane %v13428_v3, 2 }
 0x648   : > { %v13457_v18 = vpop.permute.xlu1 %4360  ;;  %15843 = vst [vmem:[#allocation95_spill] sm:$0xff] %v13476_v10  ;;  %v8822_v29 = vpack.i.bf16 %v13333_v40, %v13476_v10 }
 0x649   : > { %v13459_v13 = vpop.permute.xlu0 %4362  ;;  %7228 = vst.msk [vmem:[#allocation3 + $0xb0] sm:$0xff] %vm2305_vm14, %v13457_v18  ;;  %7292 = vst.msk [vmem:[%s9776_s22 + $0xb0] sm:$0xff] %vm2305_vm14, %v13457_v18  ;;  %v13538_v51 = vsel %vm1213_vm2, %v4632_v17, %v4633_v21 }
 0x64a   : > { %7229 = vst.msk [vmem:[#allocation3 + $0xb8] sm:$0xff] %vm2305_vm14, %v13459_v13  ;;  %7293 = vst.msk [vmem:[%s9776_s22 + $0xb8] sm:$0xff] %vm2305_vm14, %v13459_v13  ;;  %8813 = vrot.lane.b32.xlu0 %v8812_v35, %s9671_s23  ;;  %v13510_v35 = vsel %vm966_vm1, %v4395_v26, %v4396_v4 }
 0x64b   : > { %8808 = vrot.lane.b32.xlu1 %v8807_v53, %s9669_s16  ;;  %15844 = vst [vmem:[#allocation92_spill] sm:$0xff] %v13510_v35  ;;  %v13513_v53 = vsel %vm966_vm1, 0.0, %v4395_v26  ;;  %v8827_v26 = vpack.i.bf16 %v13391_v47, %v13425_v58  ;;  %15846 = vst [vmem:[#allocation54_spill] sm:$0xff] %v13538_v51  ;;  %v4563_v20 = vrot.slane %v13510_v35, 1 }
 0x64c   : > { %v13485_v25 = vpop.permute.xlu1 %4364  ;;  %15845 = vst [vmem:[#allocation12_spill] sm:$0xff] %v13513_v53 }
 0x64d   : > { %v13487_v15 = vpop.permute.xlu0 %4366  ;;  %7230 = vst.msk [vmem:[#allocation3 + $0xc0] sm:$0xff] %vm2305_vm14, %v13485_v25  ;;  %7294 = vst.msk [vmem:[%s9776_s22 + $0xc0] sm:$0xff] %vm2305_vm14, %v13485_v25 }
 0x64e   : > { %7231 = vst.msk [vmem:[#allocation3 + $0xc8] sm:$0xff] %vm2305_vm14, %v13487_v15  ;;  %7295 = vst.msk [vmem:[%s9776_s22 + $0xc8] sm:$0xff] %vm2305_vm14, %v13487_v15  ;;  %8823 = vrot.lane.b32.xlu0 %v8822_v29, %s9669_s16  ;;  %v4496_v29 = vsel %vm966_vm1, %v4396_v4, 0.0  ;;  %v8842_v4 = vpack.i.bf16 %v13453_v23, %v13513_v53 }
 0x64f   : > { %8818 = vrot.lane.b32.xlu1 %v8817_v32, %s9672_s17  ;;  %v4562_v32 = vrot.slane %v13513_v53, 1  ;;  %v4565_v17 = vrot.slane %v4496_v29, 1  ;;  %v4640_v47 = vrot.slane %v4496_v29, 2 }
 0x650   : > { %v13516_v8 = vpop.permute.xlu1 %4368 }
 0x651   : > { %v13518_v38 = vpop.permute.xlu0 %4370  ;;  %7232 = vst.msk [vmem:[#allocation3 + $0xd0] sm:$0xff] %vm2305_vm14, %v13516_v8  ;;  %7296 = vst.msk [vmem:[%s9776_s22 + $0xd0] sm:$0xff] %vm2305_vm14, %v13516_v8  ;;  %v13565_v57 = vsel %vm1132_vm3, %v4562_v32, %v4563_v20  ;;  %v13589_v52 = vsel %vm1132_vm3, %v4563_v20, %v4565_v17  ;;  %v4638_v32 = vrot.slane %v13510_v35, 2  ;;  %v8857_v20 = vpack.i.bf16 %v13476_v10, %v13510_v35  ;;  %v5530_v17 = vld [vmem:[%s15293_s6 + $0xf0] sm:$0xff] }
 0x652   : > { %7233 = vst.msk [vmem:[#allocation3 + $0xd8] sm:$0xff] %vm2305_vm14, %v13518_v38  ;;  %7297 = vst.msk [vmem:[%s9776_s22 + $0xd8] sm:$0xff] %vm2305_vm14, %v13518_v38  ;;  %8833 = vrot.lane.b32.xlu0 %v8832_v2, %s9672_s17  ;;  %v8837_v2 = vpack.i.bf16 %v13395_v33, %v13538_v51  ;;  %v8847_v9 = vpack.i.bf16 %v13428_v3, %v13565_v57  ;;  %v8862_v23 = vpack.i.bf16 %v13425_v58, %v13589_v52 }
 0x653   : > { %8828 = vrot.lane.b32.xlu1 %v8827_v26, %s9671_s23  ;;  %v13561_v26 = vsel %vm1213_vm2, %v4633_v21, %v4635_v24  ;;  %15848 = vst [vmem:[#allocation50_spill] sm:$0xff] %v13565_v57  ;;  %15849 = vst [vmem:[#allocation70_spill] sm:$0xff] %v13589_v52  ;;  %v4637_v24 = vrot.slane %v13513_v53, 2 }
 0x654   : > { %v13542_v63 = vpop.permute.xlu1 %4372  ;;  %15847 = vst [vmem:[#allocation20_spill] sm:$0xff] %v13561_v26  ;;  %v8852_v21 = vpack.i.bf16 %v13419_v54, %v13561_v26 }
 0x655   : > { %v13544_v41 = vpop.permute.xlu0 %4374  ;;  %7234 = vst.msk [vmem:[#allocation3 + $0xe0] sm:$0xff] %vm2305_vm14, %v13542_v63  ;;  %7298 = vst.msk [vmem:[%s9776_s22 + $0xe0] sm:$0xff] %vm2305_vm14, %v13542_v63 }
 0x656   : > { %7235 = vst.msk [vmem:[#allocation3 + $0xe8] sm:$0xff] %vm2305_vm14, %v13544_v41  ;;  %7299 = vst.msk [vmem:[%s9776_s22 + $0xe8] sm:$0xff] %vm2305_vm14, %v13544_v41  ;;  %8843 = vrot.lane.b32.xlu0 %v8842_v4, %s9671_s23  ;;  %v13595_v4 = vsel %vm966_vm1, %v4398_v60, %v4399_v61 }
 0x657   : > { %8838 = vrot.lane.b32.xlu1 %v8837_v2, %s9669_s16  ;;  %15850 = vst [vmem:[#allocation21_spill] sm:$0xff] %v13595_v4  ;;  %v13598_v2 = vsel %vm966_vm1, 0.0, %v4398_v60  ;;  %v4497_v60 = vsel %vm966_vm1, %v4399_v61, 0.0  ;;  %v4568_v29 = vrot.slane %v13595_v4, 1  ;;  %v13624_v61 = vsel %vm1213_vm2, %v4638_v32, %v4640_v47 }
 0x658   : > { %v13570_v44 = vpop.permute.xlu1 %4376  ;;  %15851 = vst [vmem:[#allocation60_spill] sm:$0xff] %v13598_v2  ;;  %v4567_v0 = vrot.slane %v13598_v2, 1  ;;  %v8872_v10 = vpack.i.bf16 %v13538_v51, %v13598_v2  ;;  %v4570_v30 = vrot.slane %v4497_v60, 1  ;;  %15853 = vst [vmem:[#allocation18_spill] sm:$0xff] %v13624_v61  ;;  %v4404_v51 = vrot.slane %v13372_v55, 7 }
 0x659   : > { %v13572_v59 = vpop.permute.xlu0 %4378  ;;  %7236 = vst.msk [vmem:[#allocation3 + $0xf0] sm:$0xff] %vm2305_vm14, %v13570_v44  ;;  %7300 = vst.msk [vmem:[%s9776_s22 + $0xf0] sm:$0xff] %vm2305_vm14, %v13570_v44 }
 0x65a   : > { %7237 = vst.msk [vmem:[#allocation3 + $0xf8] sm:$0xff] %vm2305_vm14, %v13572_v59  ;;  %7301 = vst.msk [vmem:[%s9776_s22 + $0xf8] sm:$0xff] %vm2305_vm14, %v13572_v59  ;;  %8853 = vrot.lane.b32.xlu0 %v8852_v21, %s9669_s16  ;;  %v5531_v21 = vld [vmem:[%s15293_s6 + $0xf8] sm:$0xff]  ;;  %v13638_v47 = vsel %vm1132_vm3, %v4568_v29, %v4570_v30  ;;  %v8887_v30 = vpack.i.bf16 %v13561_v26, %v13595_v4 }
 0x65b   : > { %8848 = vrot.lane.b32.xlu1 %v8847_v9, %s9672_s17  ;;  %v13615_v9 = vsel %vm1213_vm2, %v4637_v24, %v4638_v32  ;;  %v8054_v36 = vpack.c.bf16 %v5531_v21, %v5530_v17  ;;  %v4402_v24 = vrot.slane %v13347_v62, 7  ;;  %v8882_v17 = vpack.i.bf16 %v13504_v7, %v13624_v61  ;;  %15855 = vst [vmem:[#allocation69_spill] sm:$0xff] %v13638_v47 }
 0x65c   : > { %15852 = vst [vmem:[#allocation15_spill] sm:$0xff] %v13615_v9  ;;  %v8867_v48 = vpack.i.bf16 %v13480_v39, %v13615_v9  ;;  %v4645_v62 = vrot.slane %v4497_v60, 2 }
 0x65d   : > { %8055 = vmatpush1.bf16.msra.mxu1 %v8054_v36  ;;  %v8892_v36 = vpack.i.bf16 %v13510_v35, %v13638_v47  ;;  %v4498_v32 = vsel %vm966_vm1, %v4402_v24, 0.0  ;;  %v13698_v35 = vsel %vm966_vm1, 0.0, %v4404_v51 }
 0x65e   : > { %8863 = vrot.lane.b32.xlu0 %v8862_v23, %s9672_s17  ;;  %v13628_v23 = vsel %vm1132_vm3, %v4567_v0, %v4568_v29  ;;  %v4643_v0 = vrot.slane %v13595_v4, 2  ;;  %v4575_v60 = vrot.slane %v4498_v32, 1  ;;  %15863 = vst [vmem:[#allocation105_spill] sm:$0xff] %v13698_v35 }
 0x65f   : > { %8858 = vrot.lane.b32.xlu1 %v8857_v20, %s9671_s23  ;;  %15854 = vst [vmem:[#allocation74_spill] sm:$0xff] %v13628_v23  ;;  %v4401_v20 = vrot.slane %v13345_v49, 7  ;;  %v8877_v21 = vpack.i.bf16 %v13513_v53, %v13628_v23 }
 0x661   : > { %v13644_v49 = vsel %vm966_vm1, %v4401_v20, %v4402_v24  ;;  %v13667_v24 = vsel %vm1213_vm2, %v4643_v0, %v4645_v62 }
 0x662   : > { %8873 = vrot.lane.b32.xlu0 %v8872_v10, %s9671_s23  ;;  %v4642_v10 = vrot.slane %v13598_v2, 2  ;;  %15856 = vst [vmem:[#allocation98_spill] sm:$0xff] %v13644_v49  ;;  %15859 = vst [vmem:[#allocation101_spill] sm:$0xff] %v13667_v24  ;;  %v8912_v62 = vpack.i.bf16 %v13589_v52, %v13667_v24 }
 0x663   : > { %8868 = vrot.lane.b32.xlu1 %v8867_v48, %s9669_s16  ;;  %v13647_v48 = vsel %vm966_vm1, 0.0, %v4401_v20  ;;  %v4573_v20 = vrot.slane %v13644_v49, 1 }
 0x664   : > { %15857 = vst [vmem:[#allocation99_spill] sm:$0xff] %v13647_v48  ;;  %v4572_v29 = vrot.slane %v13647_v48, 1  ;;  %v4647_v55 = vrot.slane %v13647_v48, 2 }
 0x666   : > { %8883 = vrot.lane.b32.xlu0 %v8882_v17, %s9669_s16  ;;  %v13658_v17 = vsel %vm1213_vm2, %v4642_v10, %v4643_v0  ;;  %v4405_v10 = vrot.slane %v13374_v1, 7  ;;  %v5533_v0 = vld [vmem:[%s15293_s6 + $0x108] sm:$0xff]  ;;  %v13687_v1 = vsel %vm1132_vm3, %v4573_v20, %v4575_v60  ;;  %v4650_v60 = vrot.slane %v4498_v32, 2 }
 0x667   : > { %8878 = vrot.lane.b32.xlu1 %v8877_v21, %s9672_s17  ;;  %15858 = vst [vmem:[#allocation100_spill] sm:$0xff] %v13658_v17  ;;  %v8902_v21 = vpack.i.bf16 %v13615_v9, %v13647_v48  ;;  %v8897_v26 = vpack.i.bf16 %v13565_v57, %v13658_v17  ;;  %15861 = vst [vmem:[#allocation103_spill] sm:$0xff] %v13687_v1 }
 0x668   : > { %v13695_v9 = vsel %vm966_vm1, %v4404_v51, %v4405_v10 }
 0x669   : > { %15862 = vst [vmem:[#allocation104_spill] sm:$0xff] %v13695_v9 }
 0x66a   : > { %8893 = vrot.lane.b32.xlu0 %v8892_v36, %s9672_s17  ;;  %v13671_v36 = vsel %vm1132_vm3, %v4572_v29, %v4573_v20  ;;  %v8922_v20 = vpack.i.bf16 %v13595_v4, %v13687_v1  ;;  %v8932_v4 = vpack.i.bf16 %v13658_v17, %v13698_v35 }
 0x66b   : > { %8888 = vrot.lane.b32.xlu1 %v8887_v30, %s9671_s23  ;;  %15860 = vst [vmem:[#allocation102_spill] sm:$0xff] %v13671_v36  ;;  %v5532_v30 = vld [vmem:[%s15293_s6 + $0x100] sm:$0xff]  ;;  %v8907_v29 = vpack.i.bf16 %v13598_v2, %v13671_v36  ;;  %v4407_v2 = vrot.slane %v13400_v34, 7 }
 0x66d   : > { %v13742_v34 = vsel %vm966_vm1, 0.0, %v4407_v2 }
 0x66e   : > { %8903 = vrot.lane.b32.xlu0 %v8902_v21, %s9671_s23  ;;  %v13692_v21 = vpack.c.bf16 %v5533_v0, %v5532_v30  ;;  %v4499_v30 = vsel %vm966_vm1, %v4405_v10, 0.0  ;;  %v4577_v0 = vrot.slane %v13698_v35, 1  ;;  %15869 = vst [vmem:[#allocation111_spill] sm:$0xff] %v13742_v34 }
 0x66f   : > { %8898 = vrot.lane.b32.xlu1 %v8897_v26, %s9669_s16  ;;  %v4648_v26 = vrot.slane %v13644_v49, 2  ;;  %v4580_v32 = vrot.slane %v4499_v30, 1 }
 0x670   : > { %8057 = vmatprep.subr.bf16.mxu1 %v13692_v21 }
 0x671   : > { %v13710_v51 = vsel %vm1213_vm2, %v4647_v55, %v4648_v26  ;;  %v13719_v10 = vsel %vm1213_vm2, %v4648_v26, %v4650_v60  ;;  %v4408_v55 = vrot.slane %v13402_v5, 7  ;;  %v4653_v60 = vrot.slane %v13695_v9, 2 }
 0x672   : > { %8913 = vrot.lane.b32.xlu0 %v8912_v62, %s9669_s16  ;;  %v8917_v62 = vpack.i.bf16 %v13624_v61, %v13644_v49  ;;  %15864 = vst [vmem:[#allocation106_spill] sm:$0xff] %v13710_v51  ;;  %v8927_v61 = vpack.i.bf16 %v13628_v23, %v13710_v51  ;;  %15865 = vst [vmem:[#allocation107_spill] sm:$0xff] %v13719_v10 }
 0x673   : > { %8908 = vrot.lane.b32.xlu1 %v8907_v29, %s9672_s17  ;;  %v4578_v29 = vrot.slane %v13695_v9, 1  ;;  %v13739_v5 = vsel %vm966_vm1, %v4407_v2, %v4408_v55 }
 0x674   : > { %15868 = vst [vmem:[#allocation110_spill] sm:$0xff] %v13739_v5  ;;  %v4583_v2 = vrot.slane %v13739_v5, 1 }
 0x675   : > { %v13733_v26 = vsel %vm1132_vm3, %v4578_v29, %v4580_v32  ;;  %v4500_v32 = vsel %vm966_vm1, %v4408_v55, 0.0 }
 0x676   : > { %8923 = vrot.lane.b32.xlu0 %v8922_v20, %s9672_s17  ;;  %v13723_v20 = vsel %vm1132_vm3, %v4577_v0, %v4578_v29  ;;  %15867 = vst [vmem:[#allocation109_spill] sm:$0xff] %v13733_v26  ;;  %v4655_v0 = vrot.slane %v4499_v30, 2  ;;  %v8947_v29 = vpack.i.bf16 %v13667_v24, %v13695_v9  ;;  %v4585_v30 = vrot.slane %v4500_v32, 1 }
 0x677   : > { %8918 = vrot.lane.b32.xlu1 %v8917_v62, %s9671_s23  ;;  %15866 = vst [vmem:[#allocation108_spill] sm:$0xff] %v13723_v20  ;;  %v8942_v62 = vpack.i.bf16 %v13638_v47, %v13719_v10  ;;  %v8937_v17 = vpack.i.bf16 %v13647_v48, %v13723_v20 }
 0x678   : > { %v13762_v55 = vsel %vm1213_vm2, %v4653_v60, %v4655_v0  ;;  %v4657_v0 = vrot.slane %v13742_v34, 2 }
 0x679   : > { %15871 = vst [vmem:[#allocation113_spill] sm:$0xff] %v13762_v55 }
 0x67a   : > { %8933 = vrot.lane.b32.xlu0 %v8932_v4, %s9671_s23  ;;  %v4652_v4 = vrot.slane %v13698_v35, 2 }
 0x67b   : > { %8928 = vrot.lane.b32.xlu1 %v8927_v61, %s9669_s16  ;;  %v8952_v61 = vpack.i.bf16 %v13644_v49, %v13733_v26  ;;  %v4410_v49 = vrot.slane %v13431_v16, 7 }
 0x67c   : > { %v13753_v48 = vsel %vm1213_vm2, %v4652_v4, %v4653_v60  ;;  %v4411_v4 = vrot.slane %v13433_v56, 7  ;;  %v13776_v60 = vsel %vm1132_vm3, %v4583_v2, %v4585_v30  ;;  %v8977_v30 = vpack.i.bf16 %v13719_v10, %v13739_v5 }
 0x67d   : > { %15870 = vst [vmem:[#allocation112_spill] sm:$0xff] %v13753_v48  ;;  %v8957_v24 = vpack.i.bf16 %v13671_v36, %v13753_v48  ;;  %15873 = vst [vmem:[#allocation115_spill] sm:$0xff] %v13776_v60  ;;  %v13785_v16 = vsel %vm966_vm1, 0.0, %v4410_v49 }
 0x67e   : > { %8943 = vrot.lane.b32.xlu0 %v8942_v62, %s9669_s16  ;;  %v4582_v62 = vrot.slane %v13742_v34, 1  ;;  %v13782_v56 = vsel %vm966_vm1, %v4410_v49, %v4411_v4  ;;  %15875 = vst [vmem:[#allocation117_spill] sm:$0xff] %v13785_v16 }
 0x67f   : > { %8938 = vrot.lane.b32.xlu1 %v8937_v17, %s9672_s17  ;;  %v8962_v17 = vpack.i.bf16 %v13710_v51, %v13742_v34  ;;  %15874 = vst [vmem:[#allocation116_spill] sm:$0xff] %v13782_v56  ;;  %v4588_v49 = vrot.slane %v13782_v56, 1 }
 0x682   : > { %8953 = vrot.lane.b32.xlu0 %v8952_v61, %s9672_s17  ;;  %v13766_v61 = vsel %vm1132_vm3, %v4582_v62, %v4583_v2  ;;  %v4658_v62 = vrot.slane %v13739_v5, 2  ;;  %v4501_v2 = vsel %vm966_vm1, %v4411_v4, 0.0  ;;  %v4414_v4 = vrot.slane %v13459_v13, 7 }
 0x683   : > { %8948 = vrot.lane.b32.xlu1 %v8947_v29, %s9671_s23  ;;  %15872 = vst [vmem:[#allocation114_spill] sm:$0xff] %v13766_v61  ;;  %v8972_v29 = vpack.i.bf16 %v13687_v1, %v13762_v55  ;;  %v8967_v51 = vpack.i.bf16 %v13698_v35, %v13766_v61 }
 0x684   : > { %v13796_v35 = vsel %vm1213_vm2, %v4657_v0, %v4658_v62 }
 0x685   : > { %15876 = vst [vmem:[#allocation118_spill] sm:$0xff] %v13796_v35  ;;  %v8987_v10 = vpack.i.bf16 %v13723_v20, %v13796_v35 }
 0x686   : > { %8963 = vrot.lane.b32.xlu0 %v8962_v17, %s9671_s23  ;;  %v4660_v17 = vrot.slane %v4500_v32, 2  ;;  %v8992_v32 = vpack.i.bf16 %v13753_v48, %v13785_v16  ;;  %v13831_v48 = vsel %vm966_vm1, %v4414_v4, 0.0 }
 0x687   : > { %8958 = vrot.lane.b32.xlu1 %v8957_v24, %s9669_s16  ;;  %v8982_v24 = vpack.i.bf16 %v13695_v9, %v13776_v60  ;;  %v4413_v9 = vrot.slane %v13457_v18, 7 }
 0x689   : > { %v13817_v13 = vsel %vm966_vm1, %v4413_v9, %v4414_v4  ;;  %v13820_v18 = vsel %vm966_vm1, 0.0, %v4413_v9 }
 0x68a   : > { %8973 = vrot.lane.b32.xlu0 %v8972_v29, %s9669_s16  ;;  %v4587_v29 = vrot.slane %v13785_v16, 1  ;;  %v4592_v9 = vrot.slane %v13820_v18, 1 }
 0x68b   : > { %8968 = vrot.lane.b32.xlu1 %v8967_v51, %s9672_s17  ;;  %v4590_v51 = vrot.slane %v4501_v2, 1 }
 0x68c   : > { %v13811_v0 = vsel %vm1132_vm3, %v4587_v29, %v4588_v49  ;;  %v4662_v29 = vrot.slane %v13785_v16, 2 }
 0x68e   : > { %8983 = vrot.lane.b32.xlu0 %v8982_v24, %s9672_s17  ;;  %v13807_v24 = vsel %vm1213_vm2, %v4658_v62, %v4660_v17  ;;  %v8997_v62 = vpack.i.bf16 %v13742_v34, %v13811_v0  ;;  %v13825_v17 = vsel %vm1132_vm3, %v4588_v49, %v4590_v51  ;;  %v4593_v51 = vrot.slane %v13817_v13, 1 }
 0x68f   : > { %8978 = vrot.lane.b32.xlu1 %v8977_v30, %s9671_s23  ;;  %15877 = vst [vmem:[#allocation119_spill] sm:$0xff] %v13807_v24  ;;  %v9002_v30 = vpack.i.bf16 %v13733_v26, %v13807_v24  ;;  %v4416_v26 = vrot.slane %v13485_v25, 7  ;;  %v9012_v49 = vpack.i.bf16 %v13739_v5, %v13825_v17  ;;  %v4595_v25 = vrot.slane %v13831_v48, 1 }
 0x692   : > { %8993 = vrot.lane.b32.xlu0 %v8992_v32, %s9671_s23  ;;  %v4665_v32 = vrot.slane %v4501_v2, 2  ;;  %v9007_v2 = vpack.i.bf16 %v13762_v55, %v13782_v56  ;;  %v13859_v55 = vsel %vm1132_vm3, %v4592_v9, %v4593_v51  ;;  %v4668_v9 = vrot.slane %v13817_v13, 2 }
 0x693   : > { %8988 = vrot.lane.b32.xlu1 %v8987_v10, %s9669_s16  ;;  %v4663_v10 = vrot.slane %v13782_v56, 2  ;;  %v9027_v23 = vpack.i.bf16 %v13785_v16, %v13859_v55  ;;  %v9037_v16 = vpack.i.bf16 %v13807_v24, %v13817_v13 }
 0x695   : > { %v13846_v4 = vsel %vm1213_vm2, %v4662_v29, %v4663_v10  ;;  %v13856_v1 = vsel %vm1213_vm2, %v4663_v10, %v4665_v32 }
 0x696   : > { %9003 = vrot.lane.b32.xlu0 %v9002_v30, %s9669_s16  ;;  %v4417_v30 = vrot.slane %v13487_v15, 7  ;;  %v9022_v15 = vpack.i.bf16 %v13796_v35, %v13820_v18  ;;  %v9017_v47 = vpack.i.bf16 %v13766_v61, %v13846_v4  ;;  %v9032_v29 = vpack.i.bf16 %v13776_v60, %v13856_v1  ;;  %v15878_v61 = vld [vmem:[#allocation7_spill] sm:$0xff] }
 0x697   : > { %8998 = vrot.lane.b32.xlu1 %v8997_v62, %s9672_s17  ;;  %v13851_v62 = vsel %vm966_vm1, 0.0, %v4416_v26 }
 0x698   : > { %v8719_v34 = vpop.permute.xlu0 %8718  ;;  %v13864_v36 = vsel %vm966_vm1, %v4417_v30, 0.0  ;;  %v13869_v53 = vsel %vm966_vm1, %v4416_v26, %v4417_v30 }
 0x699   : > { %v13840_v20 = vpop.permute.xlu1 %8723  ;;  %v8720_v58 = vunpack.i.l.bf16 %v8719_v34  ;;  %v4598_v24 = vrot.slane %v13869_v53, 1 }
 0x69a   : > { %9013 = vrot.lane.b32.xlu0 %v9012_v49, %s9672_s17  ;;  %v4667_v49 = vrot.slane %v13820_v18, 2 }
 0x69b   : > { %9008 = vrot.lane.b32.xlu1 %v9007_v2, %s9671_s23 }
 0x69c   : > { %v8739_v5 = vpop.permute.xlu0 %8738 }
 0x69d   : > { %v8729_v2 = vpop.permute.xlu1 %8728  ;;  %v8740_v35 = vunpack.i.l.bf16 %v8739_v5  ;;  %v8741_v52 = vunpack.i.h.bf16 %v8739_v5  ;;  %v5535_v5 = vld [vmem:[%s15293_s6 + $0x118] sm:$0xff] }
 0x69e   : > { %v8731_v10 = vunpack.i.h.bf16 %v8729_v2  ;;  %v8730_v32 = vunpack.i.l.bf16 %v8729_v2  ;;  %9023 = vrot.lane.b32.xlu0 %v9022_v15, %s9671_s23  ;;  %v13883_v15 = vsel %vm1132_vm3, %v4593_v51, %v4595_v25  ;;  %v5534_v51 = vld [vmem:[%s15293_s6 + $0x110] sm:$0xff] }
 0x69f   : > { %9018 = vrot.lane.b32.xlu1 %v9017_v47, %s9669_s16  ;;  %v8721_v47 = vunpack.i.h.bf16 %v8719_v34  ;;  %v8725_v34 = vunpack.i.l.bf16 %v13840_v20 }
 0x6a0   : > { %v5307_v26 = vsel %vm2305_vm14, %v15878_v61, %v8731_v10  ;;  %v8744_v30 = vpop.permute.xlu0 %8743  ;;  %v5404_v2 = vsel %vm2305_vm14, %v13290_v42, %v8730_v32  ;;  %v5405_v42 = vsel %vm2305_vm14, %v13314_v28, %v8740_v35  ;;  %v13906_v32 = vsel %vm1213_vm2, %v4667_v49, %v4668_v9 }
 0x6a1   : > { %v8734_v60 = vpop.permute.xlu1 %8733  ;;  %v8745_v11 = vunpack.i.l.bf16 %v8744_v30  ;;  %v5436_v25 = vsel %vm5339_vm5, %v5404_v2, %v8720_v58  ;;  %v8746_v61 = vunpack.i.h.bf16 %v8744_v30  ;;  %v5437_v58 = vsel %vm5339_vm5, %v5405_v42, %v8725_v34 }
 0x6a2   : > { %v8736_v3 = vunpack.i.h.bf16 %v8734_v60  ;;  %v8735_v57 = vunpack.i.l.bf16 %v8734_v60  ;;  %9033 = vrot.lane.b32.xlu0 %v9032_v29, %s9669_s16  ;;  %v5340_v60 = vsel %vm5339_vm5, %v5307_v26, %v8721_v47  ;;  %v9042_v29 = vpack.i.bf16 %v13782_v56, %v13883_v15 }
 0x6a3   : > { %9028 = vrot.lane.b32.xlu1 %v9027_v23, %s9672_s17  ;;  %v15879_v23 = vld [vmem:[#allocation6_spill] sm:$0xff]  ;;  %v8060_v2 = vpack.c.bf16 %v5535_v5, %v5534_v51  ;;  %v8726_v47 = vunpack.i.h.bf16 %v13840_v20  ;;  %v4600_v49 = vrot.slane %v13864_v36, 1  ;;  %v9052_v20 = vpack.i.bf16 %v13846_v4, %v13851_v62 }
 0x6a4   : > { %v8754_v28 = vpop.permute.xlu0 %8753  ;;  %v5468_v35 = vsel %vm3212_vm4, %v5436_v25, %v8735_v57  ;;  %v5372_v10 = vsel %vm3212_vm4, %v5340_v60, %v8736_v3  ;;  %v5308_v26 = vsel %vm2305_vm14, %v15879_v23, %v8741_v52  ;;  %v5469_v3 = vsel %vm3212_vm4, %v5437_v58, %v8745_v11 }
 0x6a5   : > { %v8749_v27 = vpop.permute.xlu1 %8748  ;;  %5664 = vmatprep.mubr.f32.mxu1 %v5468_v35  ;;  %v8756_v30 = vunpack.i.h.bf16 %v8754_v28  ;;  %v8755_v25 = vunpack.i.l.bf16 %v8754_v28  ;;  %v5341_v52 = vsel %vm5339_vm5, %v5308_v26, %v8726_v47  ;;  %v4419_v11 = vrot.slane %v13516_v8, 7 }
 0x6a6   : > { %v8751_v56 = vunpack.i.h.bf16 %v8749_v27  ;;  %v8750_v57 = vunpack.i.l.bf16 %v8749_v27  ;;  %5665 = vmatmul.mubr.f32.vlgmr.msra.gmra.mrb[32].mxu1 %v5372_v10  ;;  %9043 = vrot.lane.b32.xlu0 %v9042_v29, %s9672_s17  ;;  %v9047_v34 = vpack.i.bf16 %v13811_v0, %v13906_v32  ;;  %v15880_v60 = vrot.slane %v13831_v48, 2 }
 0x6a7   : > { %9038 = vrot.lane.b32.xlu1 %v9037_v16, %s9671_s23  ;;  %5669 = vmatprep.mubr.f32.mxu1 %v5469_v3  ;;  %v5373_v16 = vsel %vm3212_vm4, %v5341_v52, %v8746_v61  ;;  %v15881_v8 = vrot.slane %v13851_v62, 1 }
 0x6a8   : > { %v8764_v42 = vpop.permute.xlu0 %8763  ;;  %v5406_v27 = vsel %vm2305_vm14, %v13238_v19, %v8750_v57  ;;  %v5309_v51 = vsel %vm2305_vm14, %v13169_v37, %v8751_v56  ;;  %8059 = vmatpush3.bf16.msra.mxu1 %v13692_v21  ;;  %v13932_v29 = vsel %vm1213_vm2, %v4668_v9, %v15880_v60  ;;  %v4420_v19 = vrot.slane %v13518_v38, 7 }
 0x6a9   : > { %v8759_v5 = vpop.permute.xlu1 %8758  ;;  %8061 = vmatprep.subr.bf16.mxu1 %v8060_v2  ;;  %v13939_v21 = vsel %vm1132_vm3, %v15881_v8, %v4598_v24  ;;  %v8766_v61 = vunpack.i.h.bf16 %v8764_v42  ;;  %v8765_v56 = vunpack.i.l.bf16 %v8764_v42  ;;  %v5438_v48 = vsel %vm5339_vm5, %v5406_v27, %v8755_v25 }
 0x6aa   : > { %v8761_v28 = vunpack.i.h.bf16 %v8759_v5  ;;  %v8760_v37 = vunpack.i.l.bf16 %v8759_v5  ;;  %5670 = vmatmul.mubr.f32.gmra.mrb[34].mxu1 %v5373_v16  ;;  %9053 = vrot.lane.b32.xlu0 %v9052_v20, %s9671_s23  ;;  %v5342_v9 = vsel %vm5339_vm5, %v5309_v51, %v8756_v30  ;;  %v4672_v38 = vrot.slane %v13851_v62, 2 }
 0x6ab   : > { %9048 = vrot.lane.b32.xlu1 %v9047_v34, %s9669_s16  ;;  %v9062_v26 = vpack.i.bf16 %v13825_v17, %v13932_v29  ;;  %v9057_v25 = vpack.i.bf16 %v13820_v18, %v13939_v21  ;;  %v13952_v30 = vsel %vm1132_vm3, %v4598_v24, %v4600_v49  ;;  %v13956_v42 = vsel %vm966_vm1, 0.0, %v4419_v11 }
 0x6ac   : > { %v8774_v35 = vpop.permute.xlu0 %8773  ;;  %v5470_v10 = vsel %vm3212_vm4, %v5438_v48, %v8760_v37  ;;  %v5374_v58 = vsel %vm3212_vm4, %v5342_v9, %v8761_v28  ;;  %8063 = vmatpush3.bf16.msra.mxu1 %v8060_v2  ;;  %v4673_v2 = vrot.slane %v13869_v53, 2  ;;  %v4675_v27 = vrot.slane %v13864_v36, 2 }
 0x6ad   : > { %v8776_v47 = vunpack.i.h.bf16 %v8774_v35  ;;  %v8775_v57 = vunpack.i.l.bf16 %v8774_v35  ;;  %v8769_v3 = vpop.permute.xlu1 %8768  ;;  %5674 = vmatprep.mubr.f32.mxu1 %v5470_v10  ;;  %8064 = vmatprep.subr.bf16.mxu1 %v15830_v12  ;;  %v13962_v51 = vsel %vm966_vm1, %v4419_v11, %v4420_v19  ;;  %v5407_v24 = vsel %vm2305_vm14, %v13233_v43, %v8765_v56 }
 0x6ae   : > { %v8771_v52 = vunpack.i.h.bf16 %v8769_v3  ;;  %v8770_v20 = vunpack.i.l.bf16 %v8769_v3  ;;  %5675 = vmatmul.mubr.f32.gmra.mrb[36].mxu1 %v5374_v58  ;;  %9063 = vrot.lane.b32.xlu0 %v9062_v26, %s9669_s16  ;;  %v5310_v49 = vsel %vm2305_vm14, %v13166_v6, %v8766_v61  ;;  %v13970_v5 = vsel %vm966_vm1, %v4420_v19, 0.0 }
 0x6af   : > { %9058 = vrot.lane.b32.xlu1 %v9057_v25, %s9672_s17  ;;  %v9072_v36 = vpack.i.bf16 %v13817_v13, %v13952_v30  ;;  %v4602_v60 = vrot.slane %v13956_v42, 1  ;;  %v9067_v43 = vpack.i.bf16 %v13856_v1, %v13869_v53  ;;  %v13983_v61 = vsel %vm1213_vm2, %v4672_v38, %v4673_v2 }
 0x6b0   : > { %v8784_v16 = vpop.permute.xlu0 %8783  ;;  %v5439_v34 = vsel %vm5339_vm5, %v5407_v24, %v8770_v20  ;;  %v5343_v11 = vsel %vm5339_vm5, %v5310_v49, %v8771_v52  ;;  %v4603_v56 = vrot.slane %v13962_v51, 1  ;;  %v9082_v10 = vpack.i.bf16 %v13906_v32, %v13956_v42 }
 0x6b1   : > { %v8779_v28 = vpop.permute.xlu1 %8778  ;;  %v5471_v37 = vsel %vm3212_vm4, %v5439_v34, %v8775_v57  ;;  %v5375_v6 = vsel %vm3212_vm4, %v5343_v11, %v8776_v47  ;;  %v8786_v48 = vunpack.i.h.bf16 %v8784_v16  ;;  %v8785_v9 = vunpack.i.l.bf16 %v8784_v16 }
 0x6b2   : > { %v8781_v19 = vunpack.i.h.bf16 %v8779_v28  ;;  %v8780_v8 = vunpack.i.l.bf16 %v8779_v28  ;;  %5679 = vmatprep.mubr.f32.mxu1 %v5471_v37  ;;  %9073 = vrot.lane.b32.xlu0 %v9072_v36, %s9672_s17  ;;  %v4605_v38 = vrot.slane %v13970_v5, 1  ;;  %v4422_v47 = vrot.slane %v13542_v63, 7 }
 0x6b3   : > { %9068 = vrot.lane.b32.xlu1 %v9067_v43, %s9671_s23  ;;  %5680 = vmatmul.mubr.f32.gmra.mrb[38].mxu1 %v5375_v6  ;;  %v9077_v3 = vpack.i.bf16 %v13859_v55, %v13983_v61  ;;  %v13998_v25 = vsel %vm1213_vm2, %v4673_v2, %v4675_v27  ;;  %v4423_v52 = vrot.slane %v13544_v41, 7  ;;  %v4677_v2 = vrot.slane %v13956_v42, 2 }
 0x6b4   : > { %v8794_v35 = vpop.permute.xlu0 %8793  ;;  %v5408_v58 = vsel %vm2305_vm14, %v13306_v31, %v8780_v8  ;;  %v5311_v26 = vsel %vm2305_vm14, %v13187_v14, %v8781_v19  ;;  %v14003_v31 = vsel %vm1132_vm3, %v4602_v60, %v4603_v56  ;;  %v9092_v36 = vpack.i.bf16 %v13883_v15, %v13998_v25 }
 0x6b5   : > { %v8789_v57 = vpop.permute.xlu1 %8788  ;;  %v8796_v14 = vunpack.i.h.bf16 %v8794_v35  ;;  %v8795_v49 = vunpack.i.l.bf16 %v8794_v35  ;;  %v5440_v63 = vsel %vm5339_vm5, %v5408_v58, %v8785_v9  ;;  %v5344_v16 = vsel %vm5339_vm5, %v5311_v26, %v8786_v48 }
 0x6b6   : > { %v8791_v20 = vunpack.i.h.bf16 %v8789_v57  ;;  %v8790_v24 = vunpack.i.l.bf16 %v8789_v57  ;;  %9083 = vrot.lane.b32.xlu0 %v9082_v10, %s9671_s23  ;;  %v9087_v37 = vpack.i.bf16 %v13851_v62, %v14003_v31  ;;  %v14016_v43 = vsel %vm1132_vm3, %v4603_v56, %v4605_v38 }
 0x6b7   : > { %9078 = vrot.lane.b32.xlu1 %v9077_v3, %s9669_s16  ;;  %v14019_v6 = vsel %vm966_vm1, 0.0, %v4422_v47  ;;  %v4678_v48 = vrot.slane %v13962_v51, 2  ;;  %v4680_v9 = vrot.slane %v13970_v5, 2  ;;  %v14025_v35 = vsel %vm966_vm1, %v4422_v47, %v4423_v52 }
 0x6b8   : > { %v8804_v27 = vpop.permute.xlu0 %8803  ;;  %v5472_v41 = vsel %vm3212_vm4, %v5440_v63, %v8790_v24  ;;  %v5376_v34 = vsel %vm3212_vm4, %v5344_v16, %v8791_v20  ;;  %v5409_v56 = vsel %vm2305_vm14, %v13333_v40, %v8795_v49  ;;  %v5312_v10 = vsel %vm2305_vm14, %v13193_v50, %v8796_v14 }
 0x6b9   : > { %v8806_v11 = vunpack.i.h.bf16 %v8804_v27  ;;  %v8805_v60 = vunpack.i.l.bf16 %v8804_v27  ;;  %v8799_v28 = vpop.permute.xlu1 %8798  ;;  %5684 = vmatprep.mubr.f32.mxu1 %v5472_v41  ;;  %v14033_v58 = vsel %vm966_vm1, %v4423_v52, 0.0  ;;  %v9102_v5 = vpack.i.bf16 %v13869_v53, %v14016_v43 }
 0x6ba   : > { %v8801_v19 = vunpack.i.h.bf16 %v8799_v28  ;;  %v8800_v8 = vunpack.i.l.bf16 %v8799_v28  ;;  %5685 = vmatmul.mubr.f32.gmra.mrb[40].mxu1 %v5376_v34  ;;  %9093 = vrot.lane.b32.xlu0 %v9092_v36, %s9669_s16  ;;  %v4607_v57 = vrot.slane %v14019_v6, 1  ;;  %v9097_v40 = vpack.i.bf16 %v13932_v29, %v13962_v51 }
 0x6bb   : > { %9088 = vrot.lane.b32.xlu1 %v9087_v37, %s9672_s17  ;;  %v14046_v14 = vsel %vm1213_vm2, %v4677_v2, %v4678_v48  ;;  %v4608_v49 = vrot.slane %v14025_v35, 1  ;;  %v9112_v41 = vpack.i.bf16 %v13983_v61, %v14019_v6  ;;  %v4610_v2 = vrot.slane %v14033_v58, 1 }
 0x6bc   : > { %v8814_v26 = vpop.permute.xlu0 %8813  ;;  %v5441_v38 = vsel %vm5339_vm5, %v5409_v56, %v8800_v8  ;;  %v5345_v47 = vsel %vm5339_vm5, %v5312_v10, %v8801_v19  ;;  %v9107_v28 = vpack.i.bf16 %v13939_v21, %v14046_v14  ;;  %v14061_v37 = vsel %vm1213_vm2, %v4678_v48, %v4680_v9 }
 0x6bd   : > { %v8809_v3 = vpop.permute.xlu1 %8808  ;;  %v5473_v20 = vsel %vm3212_vm4, %v5441_v38, %v8805_v60  ;;  %v5377_v50 = vsel %vm3212_vm4, %v5345_v47, %v8806_v11  ;;  %v8816_v63 = vunpack.i.h.bf16 %v8814_v26  ;;  %v8815_v16 = vunpack.i.l.bf16 %v8814_v26 }
 0x6be   : > { %v8811_v52 = vunpack.i.h.bf16 %v8809_v3  ;;  %v8810_v24 = vunpack.i.l.bf16 %v8809_v3  ;;  %5689 = vmatprep.mubr.f32.mxu1 %v5473_v20  ;;  %9103 = vrot.lane.b32.xlu0 %v9102_v5, %s9672_s17  ;;  %v4425_v11 = vrot.slane %v13570_v44, 7  ;;  %v4426_v19 = vrot.slane %v13572_v59, 7 }
 0x6bf   : > { %9098 = vrot.lane.b32.xlu1 %v9097_v40, %s9671_s23  ;;  %5690 = vmatmul.mubr.f32.gmra.mrb[42].mxu1 %v5377_v50  ;;  %v4682_v48 = vrot.slane %v14019_v6, 2  ;;  %v9122_v5 = vpack.i.bf16 %v13952_v30, %v14061_v37  ;;  %v14079_v40 = vsel %vm1132_vm3, %v4608_v49, %v4610_v2 }
 0x6c0   : > { %v8824_v27 = vpop.permute.xlu0 %8823  ;;  %v5410_v34 = vsel %vm2305_vm14, %v13395_v33, %v8810_v24  ;;  %v5313_v36 = vsel %vm2305_vm14, %v13245_v45, %v8811_v52  ;;  %v14066_v33 = vsel %vm1132_vm3, %v4607_v57, %v4608_v49  ;;  %v14082_v50 = vsel %vm966_vm1, 0.0, %v4425_v11 }
 0x6c1   : > { %v8819_v60 = vpop.permute.xlu1 %8818  ;;  %v8826_v45 = vunpack.i.h.bf16 %v8824_v27  ;;  %v8825_v10 = vunpack.i.l.bf16 %v8824_v27  ;;  %v5442_v44 = vsel %vm5339_vm5, %v5410_v34, %v8815_v16  ;;  %v5346_v26 = vsel %vm5339_vm5, %v5313_v36, %v8816_v63 }
 0x6c2   : > { %v8821_v8 = vunpack.i.h.bf16 %v8819_v60  ;;  %v8820_v56 = vunpack.i.l.bf16 %v8819_v60  ;;  %9113 = vrot.lane.b32.xlu0 %v9112_v41, %s9671_s23  ;;  %v9117_v20 = vpack.i.bf16 %v13956_v42, %v14066_v33  ;;  %v4683_v63 = vrot.slane %v14025_v35, 2 }
 0x6c3   : > { %9108 = vrot.lane.b32.xlu1 %v9107_v28, %s9669_s16  ;;  %v4685_v16 = vrot.slane %v14033_v58, 2  ;;  %v14088_v27 = vsel %vm966_vm1, %v4425_v11, %v4426_v19  ;;  %v5411_v49 = vsel %vm2305_vm14, %v13419_v54, %v8825_v10  ;;  %v5314_v41 = vsel %vm2305_vm14, %v13242_v22, %v8826_v45 }
 0x6c4   : > { %v8834_v9 = vpop.permute.xlu0 %8833  ;;  %v5474_v59 = vsel %vm3212_vm4, %v5442_v44, %v8820_v56  ;;  %v5378_v38 = vsel %vm3212_vm4, %v5346_v26, %v8821_v8  ;;  %v14096_v34 = vsel %vm966_vm1, %v4426_v19, 0.0  ;;  %v9132_v58 = vpack.i.bf16 %v13962_v51, %v14079_v40 }
 0x6c5   : > { %v8836_v47 = vunpack.i.h.bf16 %v8834_v9  ;;  %v8835_v57 = vunpack.i.l.bf16 %v8834_v9  ;;  %v8829_v3 = vpop.permute.xlu1 %8828  ;;  %5694 = vmatprep.mubr.f32.mxu1 %v5474_v59  ;;  %v4689_v60 = vrot.slane %v14082_v50, 1  ;;  %v9127_v54 = vpack.i.bf16 %v13998_v25, %v14025_v35 }
 0x6c6   : > { %v8831_v52 = vunpack.i.h.bf16 %v8829_v3  ;;  %v8830_v24 = vunpack.i.l.bf16 %v8829_v3  ;;  %5695 = vmatmul.mubr.f32.gmra.mrb[44].mxu1 %v5378_v38  ;;  %9123 = vrot.lane.b32.xlu0 %v9122_v5, %s9669_s16  ;;  %v14109_v45 = vsel %vm1213_vm2, %v4682_v48, %v4683_v63  ;;  %v4690_v10 = vrot.slane %v14088_v27, 1 }
 0x6c7   : > { %9118 = vrot.lane.b32.xlu1 %v9117_v20, %s9672_s17  ;;  %v9142_v59 = vpack.i.bf16 %v14046_v14, %v14082_v50  ;;  %v4692_v48 = vrot.slane %v14096_v34, 1  ;;  %v14123_v3 = vsel %vm1213_vm2, %v4683_v63, %v4685_v16 }
 0x6c8   : > { %v8844_v36 = vpop.permute.xlu0 %8843  ;;  %v5443_v2 = vsel %vm5339_vm5, %v5411_v49, %v8830_v24  ;;  %v5347_v11 = vsel %vm5339_vm5, %v5314_v41, %v8831_v52  ;;  %v14127_v24 = vsel %vm1132_vm3, %v4689_v60, %v4690_v10  ;;  %v9152_v16 = vpack.i.bf16 %v14016_v43, %v14123_v3 }
 0x6c9   : > { %v8839_v28 = vpop.permute.xlu1 %8838  ;;  %v5475_v8 = vsel %vm3212_vm4, %v5443_v2, %v8835_v57  ;;  %v5379_v22 = vsel %vm3212_vm4, %v5347_v11, %v8836_v47  ;;  %v8846_v44 = vunpack.i.h.bf16 %v8844_v36  ;;  %v8845_v26 = vunpack.i.l.bf16 %v8844_v36 }
 0x6ca   : > { %v8841_v19 = vunpack.i.h.bf16 %v8839_v28  ;;  %v8840_v56 = vunpack.i.l.bf16 %v8839_v28  ;;  %5699 = vmatprep.mubr.f32.mxu1 %v5475_v8  ;;  %9133 = vrot.lane.b32.xlu0 %v9132_v58, %s9672_s17  ;;  %v9137_v57 = vpack.i.bf16 %v14003_v31, %v14109_v45  ;;  %v9147_v28 = vpack.i.bf16 %v14019_v6, %v14127_v24 }
 0x6cb   : > { %9128 = vrot.lane.b32.xlu1 %v9127_v54, %s9671_s23  ;;  %5700 = vmatmul.mubr.f32.gmra.mrb[46].mxu1 %v5379_v22  ;;  %v14139_v8 = vsel %vm1132_vm3, %v4690_v10, %v4692_v48  ;;  %v4726_v54 = vrot.slane %v14082_v50, 2  ;;  %v4729_v48 = vrot.slane %v14096_v34, 2 }
 0x6cc   : > { %v8854_v9 = vpop.permute.xlu0 %8853  ;;  %v5412_v38 = vsel %vm2305_vm14, %v13480_v39, %v8840_v56  ;;  %v5315_v5 = vsel %vm2305_vm14, %v13342_v46, %v8841_v19  ;;  %v4727_v56 = vrot.slane %v14088_v27, 2 }
 0x6cd   : > { %v8849_v47 = vpop.permute.xlu1 %8848  ;;  %v8856_v39 = vunpack.i.h.bf16 %v8854_v9  ;;  %v8855_v49 = vunpack.i.l.bf16 %v8854_v9  ;;  %v5444_v46 = vsel %vm5339_vm5, %v5412_v38, %v8845_v26  ;;  %v5348_v41 = vsel %vm5339_vm5, %v5315_v5, %v8846_v44  ;;  %v15882_v26 = vld [vmem:[#allocation89_spill] sm:$0xff] }
 0x6ce   : > { %v8851_v20 = vunpack.i.h.bf16 %v8849_v47  ;;  %v8850_v52 = vunpack.i.l.bf16 %v8849_v47  ;;  %9143 = vrot.lane.b32.xlu0 %v9142_v59, %s9671_s23  ;;  %v9162_v38 = vpack.i.bf16 %v14025_v35, %v14139_v8 }
 0x6cf   : > { %9138 = vrot.lane.b32.xlu1 %v9137_v57, %s9669_s16  ;;  %v5413_v44 = vsel %vm2305_vm14, %v13504_v7, %v8855_v49  ;;  %v5316_v9 = vsel %vm2305_vm14, %v15882_v26, %v8856_v39  ;;  %v14160_v49 = vsel %vm1213_vm2, %v4726_v54, %v4727_v56  ;;  %v14172_v54 = vsel %vm1213_vm2, %v4727_v56, %v4729_v48 }
 0x6d0   : > { %v8864_v36 = vpop.permute.xlu0 %8863  ;;  %v5476_v2 = vsel %vm3212_vm4, %v5444_v46, %v8850_v52  ;;  %v5380_v63 = vsel %vm3212_vm4, %v5348_v41, %v8851_v20  ;;  %v9157_v20 = vpack.i.bf16 %v14061_v37, %v14088_v27  ;;  %v9182_v56 = vpack.i.bf16 %v14079_v40, %v14172_v54 }
 0x6d1   : > { %v8866_v58 = vunpack.i.h.bf16 %v8864_v36  ;;  %v8865_v11 = vunpack.i.l.bf16 %v8864_v36  ;;  %v8859_v60 = vpop.permute.xlu1 %8858  ;;  %5704 = vmatprep.mubr.f32.mxu1 %v5476_v2  ;;  %v15883_v36 = vld [vmem:[#allocation7_spill] sm:$0xff]  ;;  %vm6216_vm2 = vcmask 1048320  }
 0x6d2   : > { %v8861_v22 = vunpack.i.h.bf16 %v8859_v60  ;;  %v8860_v19 = vunpack.i.l.bf16 %v8859_v60  ;;  %5705 = vmatmul.mubr.f32.gmra.mrb[48].mxu1 %v5380_v63  ;;  %9153 = vrot.lane.b32.xlu0 %v9152_v16, %s9669_s16  ;;  %v9177_v2 = vpack.i.bf16 %v14109_v45, %v15883_v36  ;;  %v15884_v63 = vld [vmem:[#allocation50_spill] sm:$0xff] }
 0x6d3   : > { %9148 = vrot.lane.b32.xlu1 %v9147_v28, %s9672_s17  ;;  %v9167_v28 = vpack.i.bf16 %v14066_v33, %v14160_v49 }
 0x6d4   : > { %v8874_v59 = vpop.permute.xlu0 %8873  ;;  %v5445_v10 = vsel %vm5339_vm5, %v5413_v44, %v8860_v19  ;;  %v5349_v5 = vsel %vm5339_vm5, %v5316_v9, %v8861_v22 }
 0x6d5   : > { %v8869_v47 = vpop.permute.xlu1 %8868  ;;  %v5477_v57 = vsel %vm3212_vm4, %v5445_v10, %v8865_v11  ;;  %v5381_v7 = vsel %vm3212_vm4, %v5349_v5, %v8866_v58  ;;  %v8876_v46 = vunpack.i.h.bf16 %v8874_v59  ;;  %v8875_v41 = vunpack.i.l.bf16 %v8874_v59  ;;  %v15885_v58 = vld [vmem:[#allocation96_spill] sm:$0xff] }
 0x6d6   : > { %v8871_v52 = vunpack.i.h.bf16 %v8869_v47  ;;  %v8870_v39 = vunpack.i.l.bf16 %v8869_v47  ;;  %5709 = vmatprep.mubr.f32.mxu1 %v5477_v57  ;;  %9163 = vrot.lane.b32.xlu0 %v9162_v38, %s9672_s17 }
 0x6d7   : > { %9158 = vrot.lane.b32.xlu1 %v9157_v20, %s9671_s23  ;;  %5710 = vmatmul.mubr.f32.gmra.mrb[50].mxu1 %v5381_v7  ;;  %v15886_v20 = vld [vmem:[#allocation10_spill] sm:$0xff] }
 0x6d8   : > { %v8884_v34 = vpop.permute.xlu0 %8883  ;;  %v5414_v16 = vsel %vm2305_vm14, %v15884_v63, %v8870_v39  ;;  %v5317_v11 = vsel %vm2305_vm14, %v15885_v58, %v8871_v52  ;;  %v9172_v7 = vpack.i.bf16 %v14082_v50, %v15886_v20 }
 0x6d9   : > { %v8879_v60 = vpop.permute.xlu1 %8878  ;;  %v8886_v44 = vunpack.i.h.bf16 %v8884_v34  ;;  %v8885_v26 = vunpack.i.l.bf16 %v8884_v34  ;;  %v5446_v9 = vsel %vm5339_vm5, %v5414_v16, %v8875_v41  ;;  %v5350_v59 = vsel %vm5339_vm5, %v5317_v11, %v8876_v46  ;;  %v15887_v46 = vld [vmem:[#allocation70_spill] sm:$0xff]  ;;  %v15889_v16 = vld [vmem:[#allocation11_spill] sm:$0xff] }
 0x6da   : > { %v8881_v22 = vunpack.i.h.bf16 %v8879_v60  ;;  %v8880_v19 = vunpack.i.l.bf16 %v8879_v60  ;;  %9178 = vrot.lane.b32.xlu0 %v9177_v2, %s9671_s23  ;;  %v15888_v34 = vld [vmem:[#allocation86_spill] sm:$0xff]  ;;  %v9192_v58 = vpack.i.bf16 %v14088_v27, %v15889_v16  ;;  %v15892_v16 = vld [vmem:[#allocation69_spill] sm:$0xff] }
 0x6db   : > { %9168 = vrot.lane.b32.xlu1 %v9167_v28, %s9669_s16  ;;  %v5415_v41 = vsel %vm2305_vm14, %v15887_v46, %v8885_v26  ;;  %v5318_v36 = vsel %vm2305_vm14, %v15888_v34, %v8886_v44  ;;  %v9187_v28 = vpack.i.bf16 %v14123_v3, %v15879_v23 }
 0x6dc   : > { %v8894_v10 = vpop.permute.xlu0 %8893  ;;  %v5478_v38 = vsel %vm3212_vm4, %v5446_v9, %v8880_v19  ;;  %v5382_v5 = vsel %vm3212_vm4, %v5350_v59, %v8881_v22  ;;  %v15890_v59 = vld [vmem:[#allocation74_spill] sm:$0xff] }
 0x6dd   : > { %v8896_v48 = vunpack.i.h.bf16 %v8894_v10  ;;  %v8895_v47 = vunpack.i.l.bf16 %v8894_v10  ;;  %v8889_v57 = vpop.permute.xlu1 %8888  ;;  %5714 = vmatprep.mubr.f32.mxu1 %v5478_v38  ;;  %v15891_v38 = vld [vmem:[#allocation12_spill] sm:$0xff] }
 0x6de   : > { %v8891_v52 = vunpack.i.h.bf16 %v8889_v57  ;;  %v8890_v39 = vunpack.i.l.bf16 %v8889_v57  ;;  %5715 = vmatmul.mubr.f32.gmra.mrb[52].mxu1 %v5382_v5  ;;  %9183 = vrot.lane.b32.xlu0 %v9182_v56, %s9669_s16 }
 0x6df   : > { %9173 = vrot.lane.b32.xlu1 %v9172_v7, %s9672_s17 }
 0x6e0   : > { %v8904_v2 = vpop.permute.xlu0 %8903  ;;  %v5447_v63 = vsel %vm5339_vm5, %v5415_v41, %v8890_v39  ;;  %v5351_v50 = vsel %vm5339_vm5, %v5318_v36, %v8891_v52 }
 0x6e1   : > { %v8899_v11 = vpop.permute.xlu1 %8898  ;;  %v5479_v60 = vsel %vm3212_vm4, %v5447_v63, %v8895_v47  ;;  %v5383_v22 = vsel %vm3212_vm4, %v5351_v50, %v8896_v48  ;;  %v8906_v44 = vunpack.i.h.bf16 %v8904_v2  ;;  %v8905_v9 = vunpack.i.l.bf16 %v8904_v2  ;;  %v15893_v50 = vld [vmem:[#allocation92_spill] sm:$0xff] }
 0x6e2   : > { %v8901_v19 = vunpack.i.h.bf16 %v8899_v11  ;;  %v8900_v26 = vunpack.i.l.bf16 %v8899_v11  ;;  %5719 = vmatprep.mubr.f32.mxu1 %v5479_v60  ;;  %9193 = vrot.lane.b32.xlu0 %v9192_v58, %s9672_s17 }
 0x6e3   : > { %9188 = vrot.lane.b32.xlu1 %v9187_v28, %s9671_s23  ;;  %5720 = vmatmul.mubr.f32.gmra.mrb[54].mxu1 %v5383_v22 }
 0x6e4   : > { %v8914_v27 = vpop.permute.xlu0 %8913  ;;  %v5416_v10 = vsel %vm2305_vm14, %v15890_v59, %v8900_v26  ;;  %v5319_v5 = vsel %vm2305_vm14, %v15891_v38, %v8901_v19 }
 0x6e5   : > { %v8909_v23 = vpop.permute.xlu1 %8908  ;;  %v8916_v47 = vunpack.i.h.bf16 %v8914_v27  ;;  %v8915_v57 = vunpack.i.l.bf16 %v8914_v27  ;;  %v5448_v20 = vsel %vm5339_vm5, %v5416_v10, %v8905_v9  ;;  %v5352_v7 = vsel %vm5339_vm5, %v5319_v5, %v8906_v44  ;;  %v15894_v5 = vld [vmem:[#allocation102_spill] sm:$0xff] }
 0x6e6   : > { %v8911_v56 = vunpack.i.h.bf16 %v8909_v23  ;;  %v8910_v48 = vunpack.i.l.bf16 %v8909_v23 }
 0x6e7   : > { %v5417_v58 = vsel %vm2305_vm14, %v15892_v16, %v8915_v57  ;;  %v5320_v11 = vsel %vm2305_vm14, %v15893_v50, %v8916_v47 }
 0x6e8   : > { %v8924_v52 = vpop.permute.xlu0 %8923  ;;  %v5480_v39 = vsel %vm3212_vm4, %v5448_v20, %v8910_v48  ;;  %v5384_v46 = vsel %vm3212_vm4, %v5352_v7, %v8911_v56  ;;  %v15895_v56 = vld [vmem:[#allocation60_spill] sm:$0xff] }
 0x6e9   : > { %v8926_v41 = vunpack.i.h.bf16 %v8924_v52  ;;  %v8925_v34 = vunpack.i.l.bf16 %v8924_v52  ;;  %v8919_v36 = vpop.permute.xlu1 %8918  ;;  %5724 = vmatprep.mubr.f32.mxu1 %v5480_v39 }
 0x6ea   : > { %v8921_v2 = vunpack.i.h.bf16 %v8919_v36  ;;  %v8920_v63 = vunpack.i.l.bf16 %v8919_v36  ;;  %5725 = vmatmul.mubr.f32.gmra.mrb[56].mxu1 %v5384_v46 }
 0x6ec   : > { %v8934_v60 = vpop.permute.xlu0 %8933  ;;  %v5449_v28 = vsel %vm5339_vm5, %v5417_v58, %v8920_v63  ;;  %v5353_v22 = vsel %vm5339_vm5, %v5320_v11, %v8921_v2  ;;  %v15896_v11 = vld [vmem:[#allocation103_spill] sm:$0xff] }
 0x6ed   : > { %v8929_v19 = vpop.permute.xlu1 %8928  ;;  %v5481_v26 = vsel %vm3212_vm4, %v5449_v28, %v8925_v34  ;;  %v5385_v44 = vsel %vm3212_vm4, %v5353_v22, %v8926_v41  ;;  %v8936_v59 = vunpack.i.h.bf16 %v8934_v60  ;;  %v8935_v10 = vunpack.i.l.bf16 %v8934_v60  ;;  %v15897_v28 = vld [vmem:[#allocation21_spill] sm:$0xff] }
 0x6ee   : > { %v8931_v9 = vunpack.i.h.bf16 %v8929_v19  ;;  %v8930_v27 = vunpack.i.l.bf16 %v8929_v19  ;;  %5729 = vmatprep.mubr.f32.mxu1 %v5481_v26 }
 0x6ef   : > { %5730 = vmatmul.mubr.f32.gmra.mrb[58].mxu1 %v5385_v44 }
 0x6f0   : > { %v8944_v38 = vpop.permute.xlu0 %8943  ;;  %v5418_v23 = vsel %vm2305_vm14, %v15894_v5, %v8930_v27  ;;  %v5321_v48 = vsel %vm2305_vm14, %v15895_v56, %v8931_v9 }
 0x6f1   : > { %v8939_v47 = vpop.permute.xlu1 %8938  ;;  %v8946_v7 = vunpack.i.h.bf16 %v8944_v38  ;;  %v8945_v52 = vunpack.i.l.bf16 %v8944_v38  ;;  %v5450_v39 = vsel %vm5339_vm5, %v5418_v23, %v8935_v10  ;;  %v5354_v46 = vsel %vm5339_vm5, %v5321_v48, %v8936_v59  ;;  %v15898_v48 = vld [vmem:[#allocation108_spill] sm:$0xff] }
 0x6f2   : > { %v8941_v57 = vunpack.i.h.bf16 %v8939_v47  ;;  %v8940_v20 = vunpack.i.l.bf16 %v8939_v47 }
 0x6f3   : > { %v5419_v60 = vsel %vm2305_vm14, %v15896_v11, %v8945_v52  ;;  %v5322_v22 = vsel %vm2305_vm14, %v15897_v28, %v8946_v7 }
 0x6f4   : > { %v8954_v41 = vpop.permute.xlu0 %8953  ;;  %v5482_v34 = vsel %vm3212_vm4, %v5450_v39, %v8940_v20  ;;  %v5386_v36 = vsel %vm3212_vm4, %v5354_v46, %v8941_v57  ;;  %v15899_v57 = vld [vmem:[#allocation99_spill] sm:$0xff] }
 0x6f5   : > { %v8956_v2 = vunpack.i.h.bf16 %v8954_v41  ;;  %v8955_v63 = vunpack.i.l.bf16 %v8954_v41  ;;  %v8949_v16 = vpop.permute.xlu1 %8948  ;;  %5734 = vmatprep.mubr.f32.mxu1 %v5482_v34 }
 0x6f6   : > { %v8951_v58 = vunpack.i.h.bf16 %v8949_v16  ;;  %v8950_v50 = vunpack.i.l.bf16 %v8949_v16  ;;  %5735 = vmatmul.mubr.f32.gmra.mrb[60].mxu1 %v5386_v36 }
 0x6f8   : > { %v8964_v19 = vpop.permute.xlu0 %8963  ;;  %v5451_v26 = vsel %vm5339_vm5, %v5419_v60, %v8950_v50  ;;  %v5355_v44 = vsel %vm5339_vm5, %v5322_v22, %v8951_v58  ;;  %v15900_v22 = vld [vmem:[#allocation109_spill] sm:$0xff] }
 0x6f9   : > { %v8959_v9 = vpop.permute.xlu1 %8958  ;;  %v5483_v27 = vsel %vm3212_vm4, %v5451_v26, %v8955_v63  ;;  %v5387_v59 = vsel %vm3212_vm4, %v5355_v44, %v8956_v2  ;;  %v8966_v5 = vunpack.i.h.bf16 %v8964_v19  ;;  %v8965_v23 = vunpack.i.l.bf16 %v8964_v19  ;;  %v15901_v26 = vld [vmem:[#allocation98_spill] sm:$0xff] }
 0x6fa   : > { %v8961_v10 = vunpack.i.h.bf16 %v8959_v9  ;;  %v8960_v38 = vunpack.i.l.bf16 %v8959_v9  ;;  %5739 = vmatprep.mubr.f32.mxu1 %v5483_v27 }
 0x6fb   : > { %5740 = vmatmul.mubr.f32.gmra.mrb[62].mxu1 %v5387_v59 }
 0x6fc   : > { %v8974_v56 = vpop.permute.xlu0 %8973  ;;  %v5420_v47 = vsel %vm2305_vm14, %v15898_v48, %v8960_v38  ;;  %v5323_v20 = vsel %vm2305_vm14, %v15899_v57, %v8961_v10 }
 0x6fd   : > { %v8969_v7 = vpop.permute.xlu1 %8968  ;;  %v8976_v46 = vunpack.i.h.bf16 %v8974_v56  ;;  %v8975_v41 = vunpack.i.l.bf16 %v8974_v56  ;;  %v5452_v34 = vsel %vm5339_vm5, %v5420_v47, %v8965_v23  ;;  %v5356_v36 = vsel %vm5339_vm5, %v5323_v20, %v8966_v5  ;;  %v15902_v20 = vld [vmem:[#allocation114_spill] sm:$0xff] }
 0x6fe   : > { %v8971_v52 = vunpack.i.h.bf16 %v8969_v7  ;;  %v8970_v39 = vunpack.i.l.bf16 %v8969_v7 }
 0x6ff   : > { %v5421_v19 = vsel %vm2305_vm14, %v15900_v22, %v8975_v41  ;;  %v5324_v44 = vsel %vm2305_vm14, %v15901_v26, %v8976_v46 }
 0x700   : > { %v8984_v2 = vpop.permute.xlu0 %8983  ;;  %v5484_v63 = vsel %vm3212_vm4, %v5452_v34, %v8970_v39  ;;  %v5388_v16 = vsel %vm3212_vm4, %v5356_v36, %v8971_v52  ;;  %v15903_v52 = vld [vmem:[#allocation105_spill] sm:$0xff] }
 0x701   : > { %v8986_v58 = vunpack.i.h.bf16 %v8984_v2  ;;  %v8985_v50 = vunpack.i.l.bf16 %v8984_v2  ;;  %v8979_v11 = vpop.permute.xlu1 %8978  ;;  %5744 = vmatprep.mubr.f32.mxu1 %v5484_v63 }
 0x702   : > { %v8981_v60 = vunpack.i.h.bf16 %v8979_v11  ;;  %v8980_v28 = vunpack.i.l.bf16 %v8979_v11  ;;  %5745 = vmatmul.mubr.f32.gmra.mrb[64].mxu1 %v5388_v16 }
 0x704   : > { %v8994_v9 = vpop.permute.xlu0 %8993  ;;  %v5453_v27 = vsel %vm5339_vm5, %v5421_v19, %v8980_v28  ;;  %v5357_v59 = vsel %vm5339_vm5, %v5324_v44, %v8981_v60  ;;  %v15904_v44 = vld [vmem:[#allocation115_spill] sm:$0xff] }
 0x705   : > { %v8989_v10 = vpop.permute.xlu1 %8988  ;;  %v5485_v38 = vsel %vm3212_vm4, %v5453_v27, %v8985_v50  ;;  %v5389_v5 = vsel %vm3212_vm4, %v5357_v59, %v8986_v58  ;;  %v8996_v48 = vunpack.i.h.bf16 %v8994_v9  ;;  %v8995_v47 = vunpack.i.l.bf16 %v8994_v9  ;;  %v15905_v27 = vld [vmem:[#allocation104_spill] sm:$0xff] }
 0x706   : > { %v8991_v23 = vunpack.i.h.bf16 %v8989_v10  ;;  %v8990_v56 = vunpack.i.l.bf16 %v8989_v10  ;;  %5749 = vmatprep.mubr.f32.mxu1 %v5485_v38 }
 0x707   : > { %5750 = vmatmul.mubr.f32.gmra.mrb[66].mxu1 %v5389_v5 }
 0x708   : > { %v9004_v57 = vpop.permute.xlu0 %9003  ;;  %v5422_v7 = vsel %vm2305_vm14, %v15902_v20, %v8990_v56  ;;  %v5325_v39 = vsel %vm2305_vm14, %v15903_v52, %v8991_v23 }
 0x709   : > { %v8999_v46 = vpop.permute.xlu1 %8998  ;;  %v9006_v36 = vunpack.i.h.bf16 %v9004_v57  ;;  %v9005_v2 = vunpack.i.l.bf16 %v9004_v57  ;;  %v5454_v63 = vsel %vm5339_vm5, %v5422_v7, %v8995_v47  ;;  %v5358_v16 = vsel %vm5339_vm5, %v5325_v39, %v8996_v48 }
 0x70a   : > { %v9001_v41 = vunpack.i.h.bf16 %v8999_v46  ;;  %v9000_v34 = vunpack.i.l.bf16 %v8999_v46  ;;  %v15906_v46 = vld [vmem:[#allocation111_spill] sm:$0xff] }
 0x70b   : > { %v5423_v9 = vsel %vm2305_vm14, %v15904_v44, %v9005_v2  ;;  %v5326_v59 = vsel %vm2305_vm14, %v15905_v27, %v9006_v36  ;;  %v15907_v27 = vld [vmem:[#allocation110_spill] sm:$0xff] }
 0x70c   : > { %v9014_v58 = vpop.permute.xlu0 %9013  ;;  %v5486_v50 = vsel %vm3212_vm4, %v5454_v63, %v9000_v34  ;;  %v5390_v11 = vsel %vm3212_vm4, %v5358_v16, %v9001_v41 }
 0x70d   : > { %v9016_v60 = vunpack.i.h.bf16 %v9014_v58  ;;  %v9015_v28 = vunpack.i.l.bf16 %v9014_v58  ;;  %v9009_v22 = vpop.permute.xlu1 %9008  ;;  %5754 = vmatprep.mubr.f32.mxu1 %v5486_v50 }
 0x70e   : > { %v9011_v19 = vunpack.i.h.bf16 %v9009_v22  ;;  %v9010_v26 = vunpack.i.l.bf16 %v9009_v22  ;;  %5755 = vmatmul.mubr.f32.gmra.mrb[68].mxu1 %v5390_v11 }
 0x710   : > { %v9024_v10 = vpop.permute.xlu0 %9023  ;;  %v5455_v38 = vsel %vm5339_vm5, %v5423_v9, %v9010_v26  ;;  %v5359_v5 = vsel %vm5339_vm5, %v5326_v59, %v9011_v19 }
 0x711   : > { %v9019_v23 = vpop.permute.xlu1 %9018  ;;  %v5487_v56 = vsel %vm3212_vm4, %v5455_v38, %v9015_v28  ;;  %v5391_v48 = vsel %vm3212_vm4, %v5359_v5, %v9016_v60  ;;  %v9026_v20 = vunpack.i.h.bf16 %v9024_v10  ;;  %v9025_v7 = vunpack.i.l.bf16 %v9024_v10 }
 0x712   : > { %v9021_v47 = vunpack.i.h.bf16 %v9019_v23  ;;  %v9020_v57 = vunpack.i.l.bf16 %v9019_v23  ;;  %5759 = vmatprep.mubr.f32.mxu1 %v5487_v56 }
 0x713   : > { %5760 = vmatmul.mubr.f32.gmra.mrb[70].mxu1 %v5391_v48 }
 0x714   : > { %v9034_v52 = vpop.permute.xlu0 %9033  ;;  %v5424_v39 = vsel %vm2305_vm14, %v13811_v0, %v9020_v57  ;;  %v5327_v41 = vsel %vm2305_vm14, %v15906_v46, %v9021_v47 }
 0x715   : > { %v9029_v34 = vpop.permute.xlu1 %9028  ;;  %v9036_v63 = vunpack.i.h.bf16 %v9034_v52  ;;  %v9035_v16 = vunpack.i.l.bf16 %v9034_v52  ;;  %v5456_v58 = vsel %vm5339_vm5, %v5424_v39, %v9025_v7  ;;  %v5360_v50 = vsel %vm5339_vm5, %v5327_v41, %v9026_v20  ;;  %v15908_v39 = vld [vmem:[#allocation117_spill] sm:$0xff] }
 0x716   : > { %v9031_v36 = vunpack.i.h.bf16 %v9029_v34  ;;  %v9030_v2 = vunpack.i.l.bf16 %v9029_v34 }
 0x717   : > { %v5425_v9 = vsel %vm2305_vm14, %v13825_v17, %v9035_v16  ;;  %v5328_v59 = vsel %vm2305_vm14, %v15907_v27, %v9036_v63 }
 0x718   : > { %v9044_v11 = vpop.permute.xlu0 %9043  ;;  %v5488_v60 = vsel %vm3212_vm4, %v5456_v58, %v9030_v2  ;;  %v5392_v28 = vsel %vm3212_vm4, %v5360_v50, %v9031_v36 }
 0x719   : > { %v9046_v22 = vunpack.i.h.bf16 %v9044_v11  ;;  %v9045_v19 = vunpack.i.l.bf16 %v9044_v11  ;;  %v9039_v0 = vpop.permute.xlu1 %9038  ;;  %5764 = vmatprep.mubr.f32.mxu1 %v5488_v60 }
 0x71a   : > { %v9041_v26 = vunpack.i.h.bf16 %v9039_v0  ;;  %v9040_v44 = vunpack.i.l.bf16 %v9039_v0  ;;  %5765 = vmatmul.mubr.f32.gmra.mrb[72].mxu1 %v5392_v28 }
 0x71c   : > { %v9054_v10 = vpop.permute.xlu0 %9053  ;;  %v5457_v38 = vsel %vm5339_vm5, %v5425_v9, %v9040_v44  ;;  %v5361_v5 = vsel %vm5339_vm5, %v5328_v59, %v9041_v26  ;;  %v15909_v44 = vld [vmem:[#allocation116_spill] sm:$0xff] }
 0x71d   : > { %v9049_v23 = vpop.permute.xlu1 %9048  ;;  %v5489_v56 = vsel %vm3212_vm4, %v5457_v38, %v9045_v19  ;;  %v5393_v48 = vsel %vm3212_vm4, %v5361_v5, %v9046_v22  ;;  %v9056_v20 = vunpack.i.h.bf16 %v9054_v10  ;;  %v9055_v7 = vunpack.i.l.bf16 %v9054_v10 }
 0x71e   : > { %v9051_v47 = vunpack.i.h.bf16 %v9049_v23  ;;  %v9050_v57 = vunpack.i.l.bf16 %v9049_v23  ;;  %5769 = vmatprep.mubr.f32.mxu1 %v5489_v56 }
 0x71f   : > { %5770 = vmatmul.mubr.f32.gmra.mrb[74].mxu1 %v5393_v48 }
 0x720   : > { %v9064_v17 = vpop.permute.xlu0 %9063  ;;  %v5426_v52 = vsel %vm2305_vm14, %v13859_v55, %v9050_v57  ;;  %v5329_v46 = vsel %vm2305_vm14, %v15908_v39, %v9051_v47 }
 0x721   : > { %v9059_v41 = vpop.permute.xlu1 %9058  ;;  %v9066_v2 = vunpack.i.h.bf16 %v9064_v17  ;;  %v9065_v63 = vunpack.i.l.bf16 %v9064_v17  ;;  %v5458_v16 = vsel %vm5339_vm5, %v5426_v52, %v9055_v7  ;;  %v5362_v58 = vsel %vm5339_vm5, %v5329_v46, %v9056_v20 }
 0x722   : > { %v9061_v34 = vunpack.i.h.bf16 %v9059_v41  ;;  %v9060_v36 = vunpack.i.l.bf16 %v9059_v41 }
 0x723   : > { %v5427_v26 = vsel %vm2305_vm14, %v13883_v15, %v9065_v63  ;;  %v5330_v9 = vsel %vm2305_vm14, %v15909_v44, %v9066_v2 }
 0x724   : > { %v9074_v50 = vpop.permute.xlu0 %9073  ;;  %v5490_v11 = vsel %vm3212_vm4, %v5458_v16, %v9060_v36  ;;  %v5394_v60 = vsel %vm3212_vm4, %v5362_v58, %v9061_v34 }
 0x725   : > { %v9076_v28 = vunpack.i.h.bf16 %v9074_v50  ;;  %v9075_v22 = vunpack.i.l.bf16 %v9074_v50  ;;  %v9069_v55 = vpop.permute.xlu1 %9068  ;;  %5774 = vmatprep.mubr.f32.mxu1 %v5490_v11 }
 0x726   : > { %v9071_v19 = vunpack.i.h.bf16 %v9069_v55  ;;  %v9070_v0 = vunpack.i.l.bf16 %v9069_v55  ;;  %5775 = vmatmul.mubr.f32.gmra.mrb[76].mxu1 %v5394_v60 }
 0x728   : > { %v9084_v27 = vpop.permute.xlu0 %9083  ;;  %v5459_v59 = vsel %vm5339_vm5, %v5427_v26, %v9070_v0  ;;  %v5363_v10 = vsel %vm5339_vm5, %v5330_v9, %v9071_v19 }
 0x729   : > { %v9079_v38 = vpop.permute.xlu1 %9078  ;;  %v5491_v5 = vsel %vm3212_vm4, %v5459_v59, %v9075_v22  ;;  %v5395_v23 = vsel %vm3212_vm4, %v5363_v10, %v9076_v28  ;;  %v9086_v47 = vunpack.i.h.bf16 %v9084_v27  ;;  %v9085_v57 = vunpack.i.l.bf16 %v9084_v27 }
 0x72a   : > { %v9081_v56 = vunpack.i.h.bf16 %v9079_v38  ;;  %v9080_v48 = vunpack.i.l.bf16 %v9079_v38  ;;  %5779 = vmatprep.mubr.f32.mxu1 %v5491_v5 }
 0x72b   : > { %5780 = vmatmul.mubr.f32.gmra.mrb[78].mxu1 %v5395_v23 }
 0x72c   : > { %v9094_v15 = vpop.permute.xlu0 %9093  ;;  %v5428_v20 = vsel %vm2305_vm14, %v13939_v21, %v9080_v48  ;;  %v5331_v7 = vsel %vm2305_vm14, %v13820_v18, %v9081_v56 }
 0x72d   : > { %v9089_v17 = vpop.permute.xlu1 %9088  ;;  %v9096_v46 = vunpack.i.h.bf16 %v9094_v15  ;;  %v9095_v41 = vunpack.i.l.bf16 %v9094_v15  ;;  %v5460_v34 = vsel %vm5339_vm5, %v5428_v20, %v9085_v57  ;;  %v5364_v36 = vsel %vm5339_vm5, %v5331_v7, %v9086_v47 }
 0x72e   : > { %v9091_v52 = vunpack.i.h.bf16 %v9089_v17  ;;  %v9090_v39 = vunpack.i.l.bf16 %v9089_v17 }
 0x72f   : > { %v5429_v60 = vsel %vm2305_vm14, %v13952_v30, %v9095_v41  ;;  %v5332_v28 = vsel %vm2305_vm14, %v13817_v13, %v9096_v46 }
 0x730   : > { %v9104_v2 = vpop.permute.xlu0 %9103  ;;  %v5492_v63 = vsel %vm3212_vm4, %v5460_v34, %v9090_v39  ;;  %v5396_v16 = vsel %vm3212_vm4, %v5364_v36, %v9091_v52 }
 0x731   : > { %v9106_v58 = vunpack.i.h.bf16 %v9104_v2  ;;  %v9105_v50 = vunpack.i.l.bf16 %v9104_v2  ;;  %v9099_v21 = vpop.permute.xlu1 %9098  ;;  %5784 = vmatprep.mubr.f32.mxu1 %v5492_v63 }
 0x732   : > { %v9101_v11 = vunpack.i.h.bf16 %v9099_v21  ;;  %v9100_v18 = vunpack.i.l.bf16 %v9099_v21  ;;  %5785 = vmatmul.mubr.f32.gmra.mrb[80].mxu1 %v5396_v16 }
 0x734   : > { %v9114_v22 = vpop.permute.xlu0 %9113  ;;  %v5461_v55 = vsel %vm5339_vm5, %v5429_v60, %v9100_v18  ;;  %v5365_v19 = vsel %vm5339_vm5, %v5332_v28, %v9101_v11 }
 0x735   : > { %v9109_v0 = vpop.permute.xlu1 %9108  ;;  %v5493_v26 = vsel %vm3212_vm4, %v5461_v55, %v9105_v50  ;;  %v5397_v44 = vsel %vm3212_vm4, %v5365_v19, %v9106_v58  ;;  %v9116_v59 = vunpack.i.h.bf16 %v9114_v22  ;;  %v9115_v10 = vunpack.i.l.bf16 %v9114_v22 }
 0x736   : > { %v9111_v9 = vunpack.i.h.bf16 %v9109_v0  ;;  %v9110_v27 = vunpack.i.l.bf16 %v9109_v0  ;;  %5789 = vmatprep.mubr.f32.mxu1 %v5493_v26 }
 0x737   : > { %5790 = vmatmul.mubr.f32.gmra.mrb[82].mxu1 %v5397_v44 }
 0x738   : > { %v9124_v30 = vpop.permute.xlu0 %9123  ;;  %v5430_v13 = vsel %vm2305_vm14, %v14003_v31, %v9110_v27  ;;  %v5333_v38 = vsel %vm2305_vm14, %v13851_v62, %v9111_v9 }
 0x739   : > { %v9119_v5 = vpop.permute.xlu1 %9118  ;;  %v9126_v48 = vunpack.i.h.bf16 %v9124_v30  ;;  %v9125_v47 = vunpack.i.l.bf16 %v9124_v30  ;;  %v5462_v57 = vsel %vm5339_vm5, %v5430_v13, %v9115_v10  ;;  %v5366_v15 = vsel %vm5339_vm5, %v5333_v38, %v9116_v59 }
 0x73a   : > { %v9121_v23 = vunpack.i.h.bf16 %v9119_v5  ;;  %v9120_v56 = vunpack.i.l.bf16 %v9119_v5 }
 0x73b   : > { %v5431_v41 = vsel %vm2305_vm14, %v14016_v43, %v9125_v47  ;;  %v5334_v34 = vsel %vm2305_vm14, %v13869_v53, %v9126_v48 }
 0x73c   : > { %v9134_v20 = vpop.permute.xlu0 %9133  ;;  %v5494_v7 = vsel %vm3212_vm4, %v5462_v57, %v9120_v56  ;;  %v5398_v17 = vsel %vm3212_vm4, %v5366_v15, %v9121_v23 }
 0x73d   : > { %v9136_v52 = vunpack.i.h.bf16 %v9134_v20  ;;  %v9135_v39 = vunpack.i.l.bf16 %v9134_v20  ;;  %v9129_v31 = vpop.permute.xlu1 %9128  ;;  %5794 = vmatprep.mubr.f32.mxu1 %v5494_v7 }
 0x73e   : > { %v9131_v46 = vunpack.i.h.bf16 %v9129_v31  ;;  %v9130_v62 = vunpack.i.l.bf16 %v9129_v31  ;;  %5795 = vmatmul.mubr.f32.gmra.mrb[84].mxu1 %v5398_v17 }
 0x740   : > { %v9144_v36 = vpop.permute.xlu0 %9143  ;;  %v5463_v2 = vsel %vm5339_vm5, %v5431_v41, %v9130_v62  ;;  %v5367_v63 = vsel %vm5339_vm5, %v5334_v34, %v9131_v46 }
 0x741   : > { %v9139_v16 = vpop.permute.xlu1 %9138  ;;  %v5495_v58 = vsel %vm3212_vm4, %v5463_v2, %v9135_v39  ;;  %v5399_v50 = vsel %vm3212_vm4, %v5367_v63, %v9136_v52  ;;  %v9146_v18 = vunpack.i.h.bf16 %v9144_v36  ;;  %v9145_v60 = vunpack.i.l.bf16 %v9144_v36 }
 0x742   : > { %v9141_v21 = vunpack.i.h.bf16 %v9139_v16  ;;  %v9140_v11 = vunpack.i.l.bf16 %v9139_v16  ;;  %5799 = vmatprep.mubr.f32.mxu1 %v5495_v58 }
 0x743   : > { %5800 = vmatmul.mubr.f32.gmra.mrb[86].mxu1 %v5399_v50 }
 0x744   : > { %v9154_v43 = vpop.permute.xlu0 %9153  ;;  %v5432_v53 = vsel %vm2305_vm14, %v14066_v33, %v9140_v11  ;;  %v5335_v28 = vsel %vm2305_vm14, %v13956_v42, %v9141_v21 }
 0x745   : > { %v9149_v22 = vpop.permute.xlu1 %9148  ;;  %v9156_v0 = vunpack.i.h.bf16 %v9154_v43  ;;  %v9155_v26 = vunpack.i.l.bf16 %v9154_v43  ;;  %v5464_v44 = vsel %vm5339_vm5, %v5432_v53, %v9145_v60  ;;  %v5368_v9 = vsel %vm5339_vm5, %v5335_v28, %v9146_v18 }
 0x746   : > { %v9151_v55 = vunpack.i.h.bf16 %v9149_v22  ;;  %v9150_v19 = vunpack.i.l.bf16 %v9149_v22 }
 0x747   : > { %v5433_v5 = vsel %vm2305_vm14, %v14079_v40, %v9155_v26  ;;  %v5336_v23 = vsel %vm2305_vm14, %v13962_v51, %v9156_v0  ;;  %v15911_v0 = vld [vmem:[#allocation73_spill] sm:$0xff] }
 0x748   : > { %v9164_v27 = vpop.permute.xlu0 %9163  ;;  %v5496_v59 = vsel %vm3212_vm4, %v5464_v44, %v9150_v19  ;;  %v5400_v10 = vsel %vm3212_vm4, %v5368_v9, %v9151_v55  ;;  %v15910_v19 = vld [vmem:[#allocation72_spill] sm:$0xff]  ;;  %v15914_v26 = vld [vmem:[#allocation97_spill] sm:$0xff]  ;;  %v15915_v44 = vld [vmem:[#allocation95_spill] sm:$0xff] }
 0x749   : > { %v9166_v30 = vunpack.i.h.bf16 %v9164_v27  ;;  %v9165_v13 = vunpack.i.l.bf16 %v9164_v27  ;;  %v9159_v33 = vpop.permute.xlu1 %9158  ;;  %5804 = vmatprep.mubr.f32.mxu1 %v5496_v59  ;;  %v15916_v9 = vld [vmem:[#allocation54_spill] sm:$0xff]  ;;  %v15917_v27 = vld [vmem:[#allocation20_spill] sm:$0xff]  ;;  %v15918_v59 = vld [vmem:[#allocation15_spill] sm:$0xff] }
 0x74a   : > { %v9161_v38 = vunpack.i.h.bf16 %v9159_v33  ;;  %v9160_v42 = vunpack.i.l.bf16 %v9159_v33  ;;  %5805 = vmatmul.mubr.f32.gmra.mrb[88].mxu1 %v5400_v10  ;;  %v15919_v10 = vld [vmem:[#allocation18_spill] sm:$0xff] }
 0x74b   : > { %v15922_v33 = vld [vmem:[#allocation106_spill] sm:$0xff] }
 0x74c   : > { %v9179_v56 = vpop.permute.xlu0 %9178  ;;  %v5465_v48 = vsel %vm5339_vm5, %v5433_v5, %v9160_v42  ;;  %v5369_v47 = vsel %vm5339_vm5, %v5336_v23, %v9161_v38  ;;  %v15923_v38 = vld [vmem:[#allocation107_spill] sm:$0xff]  ;;  %v15924_v42 = vld [vmem:[#allocation112_spill] sm:$0xff] }
 0x74d   : > { %v9169_v57 = vpop.permute.xlu1 %9168  ;;  %v5497_v15 = vsel %vm3212_vm4, %v5465_v48, %v9165_v13  ;;  %v5401_v20 = vsel %vm3212_vm4, %v5369_v47, %v9166_v30  ;;  %v9181_v52 = vunpack.i.h.bf16 %v9179_v56  ;;  %v9180_v39 = vunpack.i.l.bf16 %v9179_v56  ;;  %v15920_v30 = vld [vmem:[#allocation100_spill] sm:$0xff]  ;;  %v15921_v13 = vld [vmem:[#allocation101_spill] sm:$0xff]  ;;  %v15926_v48 = vld [vmem:[#allocation118_spill] sm:$0xff] }
 0x74e   : > { %v9171_v7 = vunpack.i.h.bf16 %v9169_v57  ;;  %v9170_v17 = vunpack.i.l.bf16 %v9169_v57  ;;  %5809 = vmatprep.mubr.f32.mxu1 %v5497_v15  ;;  %v15925_v56 = vld [vmem:[#allocation113_spill] sm:$0xff]  ;;  %v15927_v15 = vld [vmem:[#allocation119_spill] sm:$0xff] }
 0x74f   : > { %5810 = vmatmul.mubr.f32.gmra.mrb[90].mxu1 %v5401_v20 }
 0x750   : > { %v9184_v40 = vpop.permute.xlu0 %9183  ;;  %v5434_v51 = vsel %vm2305_vm14, %v14127_v24, %v9170_v17  ;;  %v5337_v31 = vsel %vm2305_vm14, %v14019_v6, %v9171_v7 }
 0x751   : > { %v9174_v46 = vpop.permute.xlu1 %9173  ;;  %v9186_v34 = vunpack.i.h.bf16 %v9184_v40  ;;  %v9185_v36 = vunpack.i.l.bf16 %v9184_v40  ;;  %v5466_v2 = vsel %vm5339_vm5, %v5434_v51, %v9180_v39  ;;  %v5370_v63 = vsel %vm5339_vm5, %v5337_v31, %v9181_v52 }
 0x752   : > { %v9176_v62 = vunpack.i.h.bf16 %v9174_v46  ;;  %v9175_v41 = vunpack.i.l.bf16 %v9174_v46 }
 0x753   : > { %v5435_v60 = vsel %vm2305_vm14, %v14139_v8, %v9185_v36  ;;  %v5338_v43 = vsel %vm2305_vm14, %v14025_v35, %v9186_v34  ;;  %v15912_v8 = vld [vmem:[#allocation87_spill] sm:$0xff] }
 0x754   : > { %v9194_v16 = vpop.permute.xlu0 %9193  ;;  %v5498_v58 = vsel %vm3212_vm4, %v5466_v2, %v9175_v41  ;;  %v5402_v50 = vsel %vm3212_vm4, %v5370_v63, %v9176_v62  ;;  %v15913_v35 = vld [vmem:[#allocation91_spill] sm:$0xff] }
 0x755   : > { %v9196_v21 = vunpack.i.h.bf16 %v9194_v16  ;;  %v9195_v11 = vunpack.i.l.bf16 %v9194_v16  ;;  %v9189_v24 = vpop.permute.xlu1 %9188  ;;  %5814 = vmatprep.mubr.f32.mxu1 %v5498_v58 }
 0x756   : > { %v9191_v18 = vunpack.i.h.bf16 %v9189_v24  ;;  %v9190_v6 = vunpack.i.l.bf16 %v9189_v24  ;;  %5815 = vmatmul.mubr.f32.gmra.mrb[92].mxu1 %v5402_v50 }
 0x758   : > { %v5467_v53 = vsel %vm5339_vm5, %v5435_v60, %v9190_v6  ;;  %v5371_v28 = vsel %vm5339_vm5, %v5338_v43, %v9191_v18 }
 0x759   : > { %v5499_v22 = vsel %vm3212_vm4, %v5467_v53, %v9195_v11  ;;  %v5403_v55 = vsel %vm3212_vm4, %v5371_v28, %v9196_v21 }
 0x75a   : > { %5819 = vmatprep.mubr.f32.mxu1 %v5499_v22 }
 0x75b   : > { %5820 = vmatmul.mubr.f32.gmra.mrb[94].mxu1 %v5403_v55 }
 0x75c   : > { %7811 = vmatprep.mubr.msk.f32.mxu1 %vm2305_vm14, %v15910_v19 }
 0x75f   : > { %7812 = vmatmul.mubr.msk.f32.vlgmr.msra.gmra.mrb[96].mxu1 %vm2305_vm14, %v15911_v0 }
 0x760   : > { %7814 = vmatprep.mubr.msk.f32.mxu1 %vm2305_vm14, %v15912_v8 }
 0x763   : > { %7815 = vmatmul.mubr.msk.f32.gmra.mrb[98].mxu1 %vm2305_vm14, %v15913_v35 }
 0x764   : > { %7817 = vmatprep.mubr.msk.f32.mxu1 %vm2305_vm14, %v15914_v26 }
 0x767   : > { %7818 = vmatmul.mubr.msk.f32.gmra.mrb[100].mxu1 %vm2305_vm14, %v15915_v44 }
 0x768   : > { %7820 = vmatprep.mubr.msk.f32.mxu1 %vm2305_vm14, %v15916_v9 }
 0x76b   : > { %7821 = vmatmul.mubr.msk.f32.gmra.mrb[102].mxu1 %vm2305_vm14, %v15917_v27 }
 0x76c   : > { %7823 = vmatprep.mubr.msk.f32.mxu1 %vm2305_vm14, %v15918_v59 }
 0x76f   : > { %7824 = vmatmul.mubr.msk.f32.gmra.mrb[104].mxu1 %vm2305_vm14, %v15919_v10 }
 0x770   : > { %7826 = vmatprep.mubr.msk.f32.mxu1 %vm2305_vm14, %v15920_v30 }
 0x773   : > { %7827 = vmatmul.mubr.msk.f32.gmra.mrb[106].mxu1 %vm2305_vm14, %v15921_v13 }
 0x774   : > { %7829 = vmatprep.mubr.msk.f32.mxu1 %vm2305_vm14, %v15922_v33 }
 0x777   : > { %7830 = vmatmul.mubr.msk.f32.gmra.mrb[108].mxu1 %vm2305_vm14, %v15923_v38 }
 0x778   : > { %7832 = vmatprep.mubr.msk.f32.mxu1 %vm2305_vm14, %v15924_v42 }
 0x779   : > { %v14390_v5 = vpop.f32.mrb[32].mxu1 }
 0x77a   : > { %v5668_v23 = vpop.f32.mrb[33].mxu1 }
 0x77b   : > { %7833 = vmatmul.mubr.msk.f32.gmra.mrb[110].mxu1 %vm2305_vm14, %v15925_v56 }
 0x77c   : > { %7835 = vmatprep.mubr.msk.f32.mxu1 %vm2305_vm14, %v15926_v48 }
 0x77d   : > { %v14396_v47 = vpop.f32.mrb[34].mxu1 }
 0x77e   : > { %v5673_v57 = vpop.f32.mrb[35].mxu1 }
 0x77f   : > { %7836 = vmatmul.mubr.msk.f32.gmra.mrb[112].mxu1 %vm2305_vm14, %v15927_v15 }
 0x780   : > { %7838 = vmatprep.mubr.msk.f32.mxu1 %vm2305_vm14, %v13846_v4 }
 0x781   : > { %v14402_v20 = vpop.f32.mrb[36].mxu1 }
 0x782   : > { %v5678_v7 = vpop.f32.mrb[37].mxu1 }
 0x783   : > { %7839 = vmatmul.mubr.msk.f32.gmra.mrb[114].mxu1 %vm2305_vm14, %v13856_v1 }
 0x784   : > { %7841 = vmatprep.mubr.msk.f32.mxu1 %vm2305_vm14, %v13906_v32 }
 0x786   : > { %v14408_v17 = vpop.f32.mrb[38].mxu1 }
 0x787   : > { %v5683_v52 = vpop.f32.mrb[39].mxu1  ;;  %7842 = vmatmul.mubr.msk.f32.gmra.mrb[116].mxu1 %vm2305_vm14, %v13932_v29 }
 0x788   : > { %7844 = vmatprep.mubr.msk.f32.mxu1 %vm2305_vm14, %v13983_v61  ;;  %v15928_v61 = vld [vmem:[#allocation8_spill] sm:$0xff] }
 0x78b   : > { %7845 = vmatmul.mubr.msk.f32.gmra.mrb[118].mxu1 %vm2305_vm14, %v13998_v25 }
 0x78c   : > { %7847 = vmatprep.mubr.msk.f32.mxu1 %vm2305_vm14, %v14046_v14 }
 0x78d   : > { %v14418_v4 = vpop.f32.mrb[40].mxu1 }
 0x78e   : > { %v5688_v1 = vpop.f32.mrb[41].mxu1 }
 0x78f   : > { %7848 = vmatmul.mubr.msk.f32.gmra.mrb[120].mxu1 %vm2305_vm14, %v14061_v37  ;;  %v15929_v37 = vld [vmem:[#allocation9_spill] sm:$0xff] }
 0x790   : > { %7850 = vmatprep.mubr.msk.f32.mxu1 %vm2305_vm14, %v14109_v45  ;;  %v15930_v45 = vmov 0.0  }
 0x792   : > { %v14424_v32 = vpop.f32.mrb[42].mxu1 }
 0x793   : > { %v5693_v29 = vpop.f32.mrb[43].mxu1  ;;  %7851 = vmatmul.mubr.msk.f32.gmra.mrb[122].mxu1 %vm2305_vm14, %v14123_v3 }
 0x794   : > { %7853 = vmatprep.mubr.msk.f32.mxu1 %vm2305_vm14, %v14160_v49 }
 0x797   : > { %7854 = vmatmul.mubr.msk.f32.gmra.mrb[124].mxu1 %vm2305_vm14, %v14172_v54 }
 0x798   : > { %7856 = vmatprep.mubr.msk.f32.mxu1 %vm2305_vm14, %v15928_v61 }
 0x799   : > { %v14434_v25 = vpop.f32.mrb[44].mxu1 }
 0x79a   : > { %v5698_v14 = vpop.f32.mrb[45].mxu1 }
 0x79b   : > { %7857 = vmatmul.mubr.msk.f32.gmra.mrb[126].mxu1 %vm2305_vm14, %v15929_v37 }
 0x79c   : > { %7867 = vmatprep.mubr.msk.f32.mxu1 %vm9670_vm0, %v15930_v45 }
 0x79e   : > { %v14440_v39 = vpop.f32.mrb[46].mxu1 }
 0x79f   : > { %v5703_v3 = vpop.f32.mrb[47].mxu1 }
 0x7a5   : > { %v14442_v40 = vpop.f32.mrb[48].mxu1 }
 0x7a6   : > { %v5708_v49 = vpop.f32.mrb[49].mxu1 }
 0x7aa   : > { %v14444_v51 = vpop.f32.mrb[50].mxu1 }
 0x7ab   : > { %v5713_v54 = vpop.f32.mrb[51].mxu1 }
 0x7b1   : > { %v14446_v31 = vpop.f32.mrb[52].mxu1 }
 0x7b2   : > { %v5718_v46 = vpop.f32.mrb[53].mxu1 }
 0x7b6   : > { %v14448_v62 = vpop.f32.mrb[54].mxu1 }
 0x7b7   : > { %v5723_v41 = vpop.f32.mrb[55].mxu1 }
 0x7bd   : > { %v14450_v34 = vpop.f32.mrb[56].mxu1 }
 0x7be   : > { %v5728_v36 = vpop.f32.mrb[57].mxu1 }
 0x7c2   : > { %v14452_v2 = vpop.f32.mrb[58].mxu1 }
 0x7c3   : > { %v5733_v63 = vpop.f32.mrb[59].mxu1 }
 0x7c9   : > { %v14454_v16 = vpop.f32.mrb[60].mxu1 }
 0x7ca   : > { %v5738_v58 = vpop.f32.mrb[61].mxu1 }
 0x7ce   : > { %v14456_v50 = vpop.f32.mrb[62].mxu1 }
 0x7cf   : > { %v5743_v21 = vpop.f32.mrb[63].mxu1 }
 0x7d5   : > { %v14458_v11 = vpop.f32.mrb[64].mxu1 }
 0x7d6   : > { %v5748_v24 = vpop.f32.mrb[65].mxu1 }
 0x7da   : > { %v14460_v18 = vpop.f32.mrb[66].mxu1 }
 0x7db   : > { %v5753_v6 = vpop.f32.mrb[67].mxu1 }
 0x7e1   : > { %v14462_v60 = vpop.f32.mrb[68].mxu1 }
 0x7e2   : > { %v5758_v43 = vpop.f32.mrb[69].mxu1 }
 0x7e6   : > { %v14464_v53 = vpop.f32.mrb[70].mxu1 }
 0x7e7   : > { %v5763_v28 = vpop.f32.mrb[71].mxu1 }
 0x7ed   : > { %v14466_v22 = vpop.f32.mrb[72].mxu1 }
 0x7ee   : > { %v5768_v55 = vpop.f32.mrb[73].mxu1 }
 0x7f2   : > { %v14468_v19 = vpop.f32.mrb[74].mxu1 }
 0x7f3   : > { %v5773_v0 = vpop.f32.mrb[75].mxu1 }
 0x7f9   : > { %v14470_v8 = vpop.f32.mrb[76].mxu1 }
 0x7fa   : > { %v5778_v35 = vpop.f32.mrb[77].mxu1 }
 0x7fe   : > { %v14472_v26 = vpop.f32.mrb[78].mxu1 }
 0x7ff   : > { %v5783_v44 = vpop.f32.mrb[79].mxu1 }
 0x805   : > { %v14474_v9 = vpop.f32.mrb[80].mxu1 }
 0x806   : > { %v5788_v27 = vpop.f32.mrb[81].mxu1 }
 0x80a   : > { %v14476_v59 = vpop.f32.mrb[82].mxu1 }
 0x80b   : > { %v5793_v10 = vpop.f32.mrb[83].mxu1 }
 0x811   : > { %v14478_v30 = vpop.f32.mrb[84].mxu1 }
 0x812   : > { %v5798_v13 = vpop.f32.mrb[85].mxu1 }
 0x816   : > { %v14480_v33 = vpop.f32.mrb[86].mxu1 }
 0x817   : > { %v5803_v38 = vpop.f32.mrb[87].mxu1 }
 0x81d   : > { %v14482_v42 = vpop.f32.mrb[88].mxu1 }
 0x81e   : > { %v5808_v23 = vpop.f32.mrb[89].mxu1 }
 0x822   : > { %v14484_v56 = vpop.f32.mrb[90].mxu1 }
 0x823   : > { %v5813_v48 = vpop.f32.mrb[91].mxu1 }
 0x829   : > { %v14486_v57 = vpop.f32.mrb[92].mxu1 }
 0x82a   : > { %v5818_v15 = vpop.f32.mrb[93].mxu1 }
 0x82e   : > { %v14488_v7 = vpop.f32.mrb[94].mxu1 }
 0x82f   : > { %v5823_v52 = vpop.f32.mrb[95].mxu1 }
 0x832   : > { %v7813_v1 = vpop.f32.mrb[96].mxu1 }
 0x833   : > { %v5897_v29 = vadd.f32 %v7813_v1, %v14396_v47  ;;  %v5891_v61 = vpop.f32.mrb[97].mxu1 }
 0x834   : > { %v5892_v14 = vadd.f32 %v5891_v61, %v14390_v5 }
 0x835   : > { %6084 = vrot.lane.b32.xlu0 %v5897_v29, %s9672_s17 }
 0x836   : > { %v7816_v37 = vpop.f32.mrb[98].mxu1  ;;  %6082 = vrot.lane.b32.xlu1 %v5892_v14, %s9672_s17  ;;  %v15931_v14 = vld [vmem:[#allocation17_spill] sm:$0xff] }
 0x837   : > { %v5907_v45 = vadd.f32 %v7816_v37, %v14408_v17  ;;  %v5901_v3 = vpop.f32.mrb[99].mxu1  ;;  %9391 = vtanh.f32 %v15931_v14 }
 0x838   : > { %v5902_v49 = vadd.f32 %v5901_v3, %v14402_v20  ;;  %v15932_v3 = vld [vmem:[#allocation62_spill] sm:$0xff] }
 0x839   : > { %6088 = vrot.lane.b32.xlu0 %v5907_v45, %s9672_s17  ;;  %9393 = vtanh.f32 %v15932_v3 }
 0x83a   : > { %v7819_v54 = vpop.f32.mrb[100].mxu1  ;;  %6086 = vrot.lane.b32.xlu1 %v5902_v49, %s9672_s17 }
 0x83b   : > { %v5917_v47 = vadd.f32 %v7819_v54, %v14424_v32  ;;  %v5911_v46 = vpop.f32.mrb[101].mxu1  ;;  %v15935_v54 = vld [vmem:[#allocation71_spill] sm:$0xff] }
 0x83c   : > { %v5912_v5 = vadd.f32 %v5911_v46, %v14418_v4  ;;  %v15936_v46 = vld [vmem:[#allocation82_spill] sm:$0xff] }
 0x83d   : > { %6092 = vrot.lane.b32.xlu0 %v5917_v47, %s9672_s17 }
 0x83e   : > { %v7822_v41 = vpop.f32.mrb[102].mxu1  ;;  %6090 = vrot.lane.b32.xlu1 %v5912_v5, %s9672_s17 }
 0x83f   : > { %v5927_v17 = vadd.f32 %v7822_v41, %v14440_v39  ;;  %v5921_v36 = vpop.f32.mrb[103].mxu1  ;;  %v15937_v41 = vld [vmem:[#allocation43_spill] sm:$0xff] }
 0x840   : > { %v5922_v20 = vadd.f32 %v5921_v36, %v14434_v25  ;;  %v15938_v36 = vld [vmem:[#allocation79_spill] sm:$0xff] }
 0x841   : > { %6096 = vrot.lane.b32.xlu0 %v5927_v17, %s9672_s17  ;;  %v9392_v49 = vpop.eup %9391 }
 0x842   : > { %v7825_v63 = vpop.f32.mrb[104].mxu1  ;;  %6094 = vrot.lane.b32.xlu1 %v5922_v20, %s9672_s17 }
 0x843   : > { %v5937_v32 = vadd.f32 %v7825_v63, %v14444_v51  ;;  %v5931_v58 = vpop.f32.mrb[105].mxu1 }
 0x844   : > { %v5932_v4 = vadd.f32 %v5931_v58, %v14442_v40  ;;  %v6210_v58 = vld [vmem:[%s15294_s7] sm:$0xff] }
 0x845   : > { %6100 = vrot.lane.b32.xlu0 %v5937_v32, %s9672_s17 }
 0x846   : > { %v7828_v21 = vpop.f32.mrb[106].mxu1  ;;  %6098 = vrot.lane.b32.xlu1 %v5932_v4, %s9672_s17  ;;  %v6211_v4 = vld [vmem:[%s15294_s7 + $0x8] sm:$0xff] }
 0x847   : > { %v5947_v39 = vadd.f32 %v7828_v21, %v14448_v62  ;;  %v5941_v24 = vpop.f32.mrb[107].mxu1  ;;  %v6212_v21 = vld [vmem:[%s15294_s7 + $0x10] sm:$0xff] }
 0x848   : > { %v5942_v25 = vadd.f32 %v5941_v24, %v14446_v31  ;;  %v6213_v24 = vld [vmem:[%s15294_s7 + $0x18] sm:$0xff] }
 0x849   : > { %6104 = vrot.lane.b32.xlu0 %v5947_v39, %s9672_s17  ;;  %v8065_v39 = vpack.c.bf16 %v6211_v4, %v6210_v58 }
 0x84a   : > { %v7831_v6 = vpop.f32.mrb[108].mxu1  ;;  %6102 = vrot.lane.b32.xlu1 %v5942_v25, %s9672_s17  ;;  %v8068_v25 = vpack.c.bf16 %v6213_v24, %v6212_v21  ;;  %v15948_v24 = vld [vmem:[#allocation23_spill] sm:$0xff] }
 0x84b   : > { %v5957_v51 = vadd.f32 %v7831_v6, %v14452_v2  ;;  %v5951_v43 = vpop.f32.mrb[109].mxu1  ;;  %8066 = vmatpush3.bf16.msra.mxu1 %v8065_v39 }
 0x84c   : > { %v5952_v40 = vadd.f32 %v5951_v43, %v14450_v34  ;;  %8067 = vmatprep.subr.bf16.mxu1 %v15830_v12 }
 0x84d   : > { %6108 = vrot.lane.b32.xlu0 %v5957_v51, %s9672_s17  ;;  %v15939_v51 = vld [vmem:[#allocation13_spill] sm:$0xff] }
 0x84e   : > { %v7834_v28 = vpop.f32.mrb[110].mxu1  ;;  %6106 = vrot.lane.b32.xlu1 %v5952_v40, %s9672_s17 }
 0x84f   : > { %v5967_v62 = vadd.f32 %v7834_v28, %v14456_v50  ;;  %v5961_v55 = vpop.f32.mrb[111].mxu1  ;;  %v15940_v28 = vld [vmem:[#allocation16_spill] sm:$0xff]  ;;  %8069 = vmatpush3.bf16.msra.mxu1 %v8068_v25 }
 0x850   : > { %v5962_v31 = vadd.f32 %v5961_v55, %v14454_v16 }
 0x851   : > { %6112 = vrot.lane.b32.xlu0 %v5967_v62, %s9672_s17 }
 0x852   : > { %v7837_v0 = vpop.f32.mrb[112].mxu1  ;;  %6110 = vrot.lane.b32.xlu1 %v5962_v31, %s9672_s17 }
 0x853   : > { %v5977_v2 = vadd.f32 %v7837_v0, %v14460_v18  ;;  %v5971_v35 = vpop.f32.mrb[113].mxu1 }
 0x854   : > { %v5972_v34 = vadd.f32 %v5971_v35, %v14458_v11  ;;  %v15941_v35 = vld [vmem:[#allocation25_spill] sm:$0xff] }
 0x855   : > { %6116 = vrot.lane.b32.xlu0 %v5977_v2, %s9672_s17 }
 0x856   : > { %v7840_v44 = vpop.f32.mrb[114].mxu1  ;;  %6114 = vrot.lane.b32.xlu1 %v5972_v34, %s9672_s17 }
 0x857   : > { %v5987_v50 = vadd.f32 %v7840_v44, %v14464_v53  ;;  %v5981_v27 = vpop.f32.mrb[115].mxu1 }
 0x858   : > { %v5982_v16 = vadd.f32 %v5981_v27, %v14462_v60 }
 0x859   : > { %6120 = vrot.lane.b32.xlu0 %v5987_v50, %s9672_s17 }
 0x85a   : > { %v7843_v10 = vpop.f32.mrb[116].mxu1  ;;  %6118 = vrot.lane.b32.xlu1 %v5982_v16, %s9672_s17  ;;  %v15942_v16 = vld [vmem:[#allocation22_spill] sm:$0xff] }
 0x85b   : > { %v5997_v18 = vadd.f32 %v7843_v10, %v14468_v19  ;;  %v5991_v13 = vpop.f32.mrb[117].mxu1 }
 0x85c   : > { %v5992_v11 = vadd.f32 %v5991_v13, %v14466_v22 }
 0x85d   : > { %6124 = vrot.lane.b32.xlu0 %v5997_v18, %s9672_s17 }
 0x85e   : > { %v7846_v38 = vpop.f32.mrb[118].mxu1  ;;  %6122 = vrot.lane.b32.xlu1 %v5992_v11, %s9672_s17 }
 0x85f   : > { %v6007_v53 = vadd.f32 %v7846_v38, %v14472_v26  ;;  %v6001_v23 = vpop.f32.mrb[119].mxu1 }
 0x860   : > { %v6002_v60 = vadd.f32 %v6001_v23, %v14470_v8 }
 0x861   : > { %6128 = vrot.lane.b32.xlu0 %v6007_v53, %s9672_s17 }
 0x862   : > { %v7849_v48 = vpop.f32.mrb[120].mxu1  ;;  %6126 = vrot.lane.b32.xlu1 %v6002_v60, %s9672_s17 }
 0x863   : > { %v6017_v19 = vadd.f32 %v7849_v48, %v14476_v59  ;;  %v6011_v15 = vpop.f32.mrb[121].mxu1  ;;  %v15943_v48 = vld [vmem:[#allocation52_spill] sm:$0xff] }
 0x864   : > { %v6012_v22 = vadd.f32 %v6011_v15, %v14474_v9 }
 0x865   : > { %6132 = vrot.lane.b32.xlu0 %v6017_v19, %s9672_s17 }
 0x866   : > { %v7852_v52 = vpop.f32.mrb[122].mxu1  ;;  %6130 = vrot.lane.b32.xlu1 %v6012_v22, %s9672_s17 }
 0x867   : > { %v6027_v26 = vadd.f32 %v7852_v52, %v14480_v33  ;;  %v6021_v1 = vpop.f32.mrb[123].mxu1 }
 0x868   : > { %v6022_v8 = vadd.f32 %v6021_v1, %v14478_v30 }
 0x869   : > { %6136 = vrot.lane.b32.xlu0 %v6027_v26, %s9672_s17  ;;  %v15944_v26 = vld [vmem:[#allocation19_spill] sm:$0xff] }
 0x86a   : > { %v7855_v29 = vpop.f32.mrb[124].mxu1  ;;  %6134 = vrot.lane.b32.xlu1 %v6022_v8, %s9672_s17 }
 0x86b   : > { %v6037_v59 = vadd.f32 %v7855_v29, %v14484_v56  ;;  %v6031_v61 = vpop.f32.mrb[125].mxu1  ;;  %v15933_v56 = vld [vmem:[#allocation28_spill] sm:$0xff] }
 0x86c   : > { %v6032_v9 = vadd.f32 %v6031_v61, %v14482_v42  ;;  %v7567_v42 = vld [vmem:[%s15295_s8] ss:$0 sm:$0xff]  ;;  %9395 = vtanh.f32 %v15933_v56 }
 0x86d   : > { %6140 = vrot.lane.b32.xlu0 %v6037_v59, %s9672_s17 }
 0x86e   : > { %v7858_v37 = vpop.f32.mrb[126].mxu1  ;;  %6138 = vrot.lane.b32.xlu1 %v6032_v9, %s9672_s17 }
 0x86f   : > { %v6047_v33 = vadd.f32 %v7858_v37, %v14488_v7  ;;  %v6041_v30 = vpop.f32.mrb[127].mxu1  ;;  %v15934_v7 = vld [vmem:[#allocation29_spill] sm:$0xff] }
 0x870   : > { %v6042_v45 = vadd.f32 %v6041_v30, %v14486_v57  ;;  %9397 = vtanh.f32 %v15934_v7  ;;  %v9394_v57 = vpop.eup %9393  ;;  %v15946_v7 = vld [vmem:[#allocation27_spill] sm:$0xff] }
 0x871   : > { %6144 = vrot.lane.b32.xlu0 %v6047_v33, %s9672_s17  ;;  %9399 = vtanh.f32 %v15935_v54 }
 0x872   : > { %6142 = vrot.lane.b32.xlu1 %v6042_v45, %s9672_s17  ;;  %9401 = vtanh.f32 %v15936_v46  ;;  %v15945_v45 = vld [vmem:[#allocation30_spill] sm:$0xff] }
 0x873   : > { %9403 = vtanh.f32 %v15937_v41 }
 0x874   : > { %9405 = vtanh.f32 %v15938_v36 }
 0x875   : > { %6555 = vrot.lane.b32.xlu0 %v7567_v42, %s9672_s17 }
 0x876   : > { %v9396_v47 = vpop.eup %9395 }
 0x879   : > { %6886 = vrot.lane.b32.xlu0 %v9392_v49, %s9671_s23 }
 0x87a   : > { %v9398_v5 = vpop.eup %9397 }
 0x87b   : > { %v9400_v17 = vpop.eup %9399 }
 0x87c   : > { %v9402_v20 = vpop.eup %9401 }
 0x87d   : > { %6890 = vrot.lane.b32.xlu0 %v9394_v57, %s9671_s23  ;;  %v9404_v63 = vpop.eup %9403 }
 0x87e   : > { %v9406_v32 = vpop.eup %9405 }
 0x881   : > { %6894 = vrot.lane.b32.xlu0 %v9396_v47, %s9671_s23 }
 0x885   : > { %6898 = vrot.lane.b32.xlu0 %v9398_v5, %s9671_s23 }
 0x889   : > { %6902 = vrot.lane.b32.xlu0 %v9400_v17, %s9671_s23 }
 0x88d   : > { %6906 = vrot.lane.b32.xlu0 %v9402_v20, %s9671_s23 }
 0x891   : > { %6910 = vrot.lane.b32.xlu0 %v9404_v63, %s9671_s23 }
 0x895   : > { %6914 = vrot.lane.b32.xlu0 %v9406_v32, %s9671_s23  ;;  %v15947_v32 = vld [vmem:[#allocation24_spill] sm:$0xff] }
 0x8a7   : > { %v6085_v6 = vpop.permute.xlu0 %6084 }
 0x8a8   : > { %v14588_v43 = vadd.f32 %v6085_v6, %v15939_v51  ;;  %v6083_v40 = vpop.permute.xlu1 %6082 }
 0x8a9   : > { %v14591_v62 = vadd.f32 %v6083_v40, %v15940_v28 }
 0x8aa   : > { %v6287_v55 = vmul.f32 %v14588_v43, %v14588_v43  ;;  %v6218_v31 = vsel %vm6216_vm2, %v14588_v43, 0.0 }
 0x8ab   : > { %v6217_v0 = vsel %vm6216_vm2, %v14591_v62, 0.0  ;;  %v6286_v12 = vmul.f32 %v14591_v62, %v14591_v62  ;;  %v6089_v2 = vpop.permute.xlu0 %6088 }
 0x8ac   : > { %v14602_v34 = vadd.f32 %v6089_v2, %v15941_v35  ;;  %v6087_v44 = vpop.permute.xlu1 %6086  ;;  %v6319_v50 = vsel %vm6216_vm2, %v6287_v55, 0.0  ;;  %v6219_v18 = vadd.f32 %v6218_v31, %v6217_v0  ;;  %v15949_v35 = vld [vmem:[#allocation35_spill] sm:$0xff] }
 0x8ad   : > { %v6318_v27 = vsel %vm6216_vm2, %v6286_v12, 0.0  ;;  %v14607_v10 = vadd.f32 %v6087_v44, %v15942_v16 }
 0x8ae   : > { %v6289_v13 = vmul.f32 %v14602_v34, %v14602_v34  ;;  %v6320_v23 = vadd.f32 %v6319_v50, %v6318_v27  ;;  %v6222_v22 = vsel %vm6216_vm2, %v14602_v34, 0.0 }
 0x8af   : > { %v6220_v11 = vsel %vm6216_vm2, %v14607_v10, 0.0  ;;  %v6288_v38 = vmul.f32 %v14607_v10, %v14607_v10  ;;  %v6093_v53 = vpop.permute.xlu0 %6092 }
 0x8b0   : > { %v6221_v60 = vadd.f32 %v6220_v11, %v6219_v18  ;;  %v14616_v19 = vadd.f32 %v6093_v53, %v15943_v48  ;;  %v6091_v15 = vpop.permute.xlu1 %6090  ;;  %v6323_v59 = vsel %vm6216_vm2, %v6289_v13, 0.0  ;;  %v15950_v18 = vld [vmem:[#allocation26_spill] sm:$0xff] }
 0x8b1   : > { %v6321_v52 = vsel %vm6216_vm2, %v6288_v38, 0.0  ;;  %v14622_v1 = vadd.f32 %v6091_v15, %v15944_v26  ;;  %v15951_v26 = vld [vmem:[#allocation40_spill] sm:$0xff] }
 0x8b2   : > { %v6322_v8 = vadd.f32 %v6321_v52, %v6320_v23  ;;  %v6223_v29 = vadd.f32 %v6222_v22, %v6221_v60  ;;  %v6291_v61 = vmul.f32 %v14616_v19, %v14616_v19  ;;  %v6226_v56 = vsel %vm6216_vm2, %v14616_v19, 0.0 }
 0x8b3   : > { %v6224_v9 = vsel %vm6216_vm2, %v14622_v1, 0.0  ;;  %v6290_v14 = vmul.f32 %v14622_v1, %v14622_v1  ;;  %v6097_v37 = vpop.permute.xlu0 %6096 }
 0x8b4   : > { %v6324_v33 = vadd.f32 %v6323_v59, %v6322_v8  ;;  %v6225_v30 = vadd.f32 %v6224_v9, %v6223_v29  ;;  %v14632_v3 = vadd.f32 %v6097_v37, %v15945_v45  ;;  %v6095_v42 = vpop.permute.xlu1 %6094  ;;  %v6327_v46 = vsel %vm6216_vm2, %v6291_v61, 0.0  ;;  %v15952_v9 = vld [vmem:[#allocation34_spill] sm:$0xff] }
 0x8b5   : > { %v6325_v49 = vsel %vm6216_vm2, %v6290_v14, 0.0  ;;  %v14638_v57 = vadd.f32 %v6095_v42, %v15946_v7 }
 0x8b6   : > { %v6326_v54 = vadd.f32 %v6325_v49, %v6324_v33  ;;  %v6227_v47 = vadd.f32 %v6226_v56, %v6225_v30  ;;  %v6293_v5 = vmul.f32 %v14632_v3, %v14632_v3  ;;  %v6230_v21 = vsel %vm6216_vm2, %v14632_v3, 0.0 }
 0x8b7   : > { %v6228_v41 = vsel %vm6216_vm2, %v14638_v57, 0.0  ;;  %v6292_v17 = vmul.f32 %v14638_v57, %v14638_v57  ;;  %v6101_v36 = vpop.permute.xlu0 %6100 }
 0x8b8   : > { %v6328_v20 = vadd.f32 %v6327_v46, %v6326_v54  ;;  %v6229_v63 = vadd.f32 %v6228_v41, %v6227_v47  ;;  %v14648_v58 = vadd.f32 %v6101_v36, %v15947_v32  ;;  %v6099_v4 = vpop.permute.xlu1 %6098  ;;  %v6331_v40 = vsel %vm6216_vm2, %v6293_v5, 0.0  ;;  %v15953_v47 = vld [vmem:[#allocation36_spill] sm:$0xff]  ;;  %v15954_v36 = vld [vmem:[#allocation33_spill] sm:$0xff] }
 0x8b9   : > { %v6329_v39 = vsel %vm6216_vm2, %v6292_v17, 0.0  ;;  %v14654_v25 = vadd.f32 %v6099_v4, %v15948_v24 }
 0x8ba   : > { %v6330_v6 = vadd.f32 %v6329_v39, %v6328_v20  ;;  %v6231_v51 = vadd.f32 %v6230_v21, %v6229_v63  ;;  %v6295_v28 = vmul.f32 %v14648_v58, %v14648_v58  ;;  %v6234_v27 = vsel %vm6216_vm2, %v14648_v58, 0.0 }
 0x8bb   : > { %v6232_v55 = vsel %vm6216_vm2, %v14654_v25, 0.0  ;;  %v6294_v31 = vmul.f32 %v14654_v25, %v14654_v25  ;;  %v6105_v0 = vpop.permute.xlu0 %6104 }
 0x8bc   : > { %v6332_v12 = vadd.f32 %v6331_v40, %v6330_v6  ;;  %v6233_v2 = vadd.f32 %v6232_v55, %v6231_v51  ;;  %v14664_v44 = vadd.f32 %v6105_v0, %v15949_v35  ;;  %v6103_v50 = vpop.permute.xlu1 %6102  ;;  %v6335_v53 = vsel %vm6216_vm2, %v6295_v28, 0.0  ;;  %v15955_v28 = vld [vmem:[#allocation44_spill] sm:$0xff] }
 0x8bd   : > { %v6333_v16 = vsel %vm6216_vm2, %v6294_v31, 0.0  ;;  %v14670_v13 = vadd.f32 %v6103_v50, %v15950_v18 }
 0x8be   : > { %v6334_v11 = vadd.f32 %v6333_v16, %v6332_v12  ;;  %v6235_v38 = vadd.f32 %v6234_v27, %v6233_v2  ;;  %v6297_v23 = vmul.f32 %v14664_v44, %v14664_v44  ;;  %v6238_v59 = vsel %vm6216_vm2, %v14664_v44, 0.0  ;;  %v15956_v2 = vld [vmem:[#allocation38_spill] sm:$0xff] }
 0x8bf   : > { %v6236_v60 = vsel %vm6216_vm2, %v14670_v13, 0.0  ;;  %v6296_v48 = vmul.f32 %v14670_v13, %v14670_v13  ;;  %v6109_v15 = vpop.permute.xlu0 %6108 }
 0x8c0   : > { %v6336_v22 = vadd.f32 %v6335_v53, %v6334_v11  ;;  %v6237_v52 = vadd.f32 %v6236_v60, %v6235_v38  ;;  %v14680_v8 = vadd.f32 %v6109_v15, %v15951_v26  ;;  %v6107_v29 = vpop.permute.xlu1 %6106  ;;  %v6339_v30 = vsel %vm6216_vm2, %v6297_v23, 0.0 }
 0x8c1   : > { %v6337_v61 = vsel %vm6216_vm2, %v6296_v48, 0.0  ;;  %v14686_v14 = vadd.f32 %v6107_v29, %v15952_v9  ;;  %v15957_v48 = vld [vmem:[#allocation39_spill] sm:$0xff]  ;;  %v15958_v29 = vld [vmem:[#allocation37_spill] sm:$0xff] }
 0x8c2   : > { %v6338_v37 = vadd.f32 %v6337_v61, %v6336_v22  ;;  %v6239_v33 = vadd.f32 %v6238_v59, %v6237_v52  ;;  %v6299_v45 = vmul.f32 %v14680_v8, %v14680_v8  ;;  %v6242_v41 = vsel %vm6216_vm2, %v14680_v8, 0.0 }
 0x8c3   : > { %v6240_v42 = vsel %vm6216_vm2, %v14686_v14, 0.0  ;;  %v6298_v56 = vmul.f32 %v14686_v14, %v14686_v14  ;;  %v6113_v49 = vpop.permute.xlu0 %6112 }
 0x8c4   : > { %v6340_v7 = vadd.f32 %v6339_v30, %v6338_v37  ;;  %v6241_v54 = vadd.f32 %v6240_v42, %v6239_v33  ;;  %v14696_v46 = vadd.f32 %v6113_v49, %v15953_v47  ;;  %v6111_v5 = vpop.permute.xlu1 %6110  ;;  %v6343_v4 = vsel %vm6216_vm2, %v6299_v45, 0.0 }
 0x8c5   : > { %v6341_v17 = vsel %vm6216_vm2, %v6298_v56, 0.0  ;;  %v14702_v20 = vadd.f32 %v6111_v5, %v15954_v36 }
 0x8c6   : > { %v6342_v63 = vadd.f32 %v6341_v17, %v6340_v7  ;;  %v6243_v32 = vadd.f32 %v6242_v41, %v6241_v54  ;;  %v6301_v21 = vmul.f32 %v14696_v46, %v14696_v46  ;;  %v6246_v0 = vsel %vm6216_vm2, %v14696_v46, 0.0  ;;  %v15959_v7 = vld [vmem:[#allocation53_spill] sm:$0xff] }
 0x8c7   : > { %v6244_v39 = vsel %vm6216_vm2, %v14702_v20, 0.0  ;;  %v6300_v24 = vmul.f32 %v14702_v20, %v14702_v20  ;;  %v6117_v6 = vpop.permute.xlu0 %6116  ;;  %v15960_v17 = vld [vmem:[#allocation41_spill] sm:$0xff] }
 0x8c8   : > { %v6344_v51 = vadd.f32 %v6343_v4, %v6342_v63  ;;  %v6245_v40 = vadd.f32 %v6244_v39, %v6243_v32  ;;  %v14712_v55 = vadd.f32 %v6117_v6, %v15955_v28  ;;  %v6115_v31 = vpop.permute.xlu1 %6114  ;;  %v6347_v16 = vsel %vm6216_vm2, %v6301_v21, 0.0  ;;  %v15961_v28 = vld [vmem:[#allocation58_spill] sm:$0xff] }
 0x8c9   : > { %v6345_v12 = vsel %vm6216_vm2, %v6300_v24, 0.0  ;;  %v14718_v35 = vadd.f32 %v6115_v31, %v15956_v2 }
 0x8ca   : > { %v6346_v50 = vadd.f32 %v6345_v12, %v6344_v51  ;;  %v6247_v27 = vadd.f32 %v6246_v0, %v6245_v40  ;;  %v6303_v18 = vmul.f32 %v14712_v55, %v14712_v55  ;;  %v6250_v52 = vsel %vm6216_vm2, %v14712_v55, 0.0 }
 0x8cb   : > { %v6248_v11 = vsel %vm6216_vm2, %v14718_v35, 0.0  ;;  %v6302_v38 = vmul.f32 %v14718_v35, %v14718_v35  ;;  %v6121_v53 = vpop.permute.xlu0 %6120 }
 0x8cc   : > { %v6348_v23 = vadd.f32 %v6347_v16, %v6346_v50  ;;  %v6249_v60 = vadd.f32 %v6248_v11, %v6247_v27  ;;  %v14728_v15 = vadd.f32 %v6121_v53, %v15957_v48  ;;  %v6119_v22 = vpop.permute.xlu1 %6118  ;;  %v6351_v37 = vsel %vm6216_vm2, %v6303_v18, 0.0  ;;  %v15962_v50 = vld [vmem:[#allocation51_spill] sm:$0xff] }
 0x8cd   : > { %v6349_v26 = vsel %vm6216_vm2, %v6302_v38, 0.0  ;;  %v14734_v59 = vadd.f32 %v6119_v22, %v15958_v29 }
 0x8ce   : > { %v6350_v61 = vadd.f32 %v6349_v26, %v6348_v23  ;;  %v6251_v9 = vadd.f32 %v6250_v52, %v6249_v60  ;;  %v6305_v33 = vmul.f32 %v14728_v15, %v14728_v15  ;;  %v6254_v5 = vsel %vm6216_vm2, %v14728_v15, 0.0  ;;  %v15963_v52 = vld [vmem:[#allocation47_spill] sm:$0xff] }
 0x8cf   : > { %v6252_v30 = vsel %vm6216_vm2, %v14734_v59, 0.0  ;;  %v6304_v45 = vmul.f32 %v14734_v59, %v14734_v59  ;;  %v6125_v42 = vpop.permute.xlu0 %6124 }
 0x8d0   : > { %v6352_v56 = vadd.f32 %v6351_v37, %v6350_v61  ;;  %v6253_v49 = vadd.f32 %v6252_v30, %v6251_v9  ;;  %v14744_v54 = vadd.f32 %v6125_v42, %v15959_v7  ;;  %v6123_v47 = vpop.permute.xlu1 %6122  ;;  %v6355_v4 = vsel %vm6216_vm2, %v6305_v33, 0.0  ;;  %v15964_v37 = vld [vmem:[#allocation49_spill] sm:$0xff] }
 0x8d1   : > { %v6353_v41 = vsel %vm6216_vm2, %v6304_v45, 0.0  ;;  %v14750_v36 = vadd.f32 %v6123_v47, %v15960_v17  ;;  %v15965_v17 = vld [vmem:[#allocation64_spill] sm:$0xff] }
 0x8d2   : > { %v6354_v63 = vadd.f32 %v6353_v41, %v6352_v56  ;;  %v6255_v32 = vadd.f32 %v6254_v5, %v6253_v49  ;;  %v6307_v21 = vmul.f32 %v14744_v54, %v14744_v54  ;;  %v6258_v12 = vsel %vm6216_vm2, %v14744_v54, 0.0 }
 0x8d3   : > { %v6256_v39 = vsel %vm6216_vm2, %v14750_v36, 0.0  ;;  %v6306_v24 = vmul.f32 %v14750_v36, %v14750_v36  ;;  %v6129_v6 = vpop.permute.xlu0 %6128 }
 0x8d4   : > { %v6356_v51 = vadd.f32 %v6355_v4, %v6354_v63  ;;  %v6257_v40 = vadd.f32 %v6256_v39, %v6255_v32  ;;  %v14760_v31 = vadd.f32 %v6129_v6, %v15961_v28  ;;  %v6127_v0 = vpop.permute.xlu1 %6126  ;;  %v6359_v11 = vsel %vm6216_vm2, %v6307_v21, 0.0  ;;  %v15966_v39 = vld [vmem:[#allocation57_spill] sm:$0xff] }
 0x8d5   : > { %v6357_v2 = vsel %vm6216_vm2, %v6306_v24, 0.0  ;;  %v14766_v27 = vadd.f32 %v6127_v0, %v15962_v50 }
 0x8d6   : > { %v6358_v16 = vadd.f32 %v6357_v2, %v6356_v51  ;;  %v6259_v18 = vadd.f32 %v6258_v12, %v6257_v40  ;;  %v6309_v38 = vmul.f32 %v14760_v31, %v14760_v31  ;;  %v6262_v61 = vsel %vm6216_vm2, %v14760_v31, 0.0 }
 0x8d7   : > { %v6260_v53 = vsel %vm6216_vm2, %v14766_v27, 0.0  ;;  %v6308_v23 = vmul.f32 %v14766_v27, %v14766_v27  ;;  %v6133_v60 = vpop.permute.xlu0 %6132 }
 0x8d8   : > { %v6360_v48 = vadd.f32 %v6359_v11, %v6358_v16  ;;  %v6261_v22 = vadd.f32 %v6260_v53, %v6259_v18  ;;  %v14776_v26 = vadd.f32 %v6133_v60, %v15963_v52  ;;  %v6131_v29 = vpop.permute.xlu1 %6130  ;;  %v6363_v42 = vsel %vm6216_vm2, %v6309_v38, 0.0  ;;  %v15967_v18 = vld [vmem:[#allocation67_spill] sm:$0xff]  ;;  %v15968_v60 = vld [vmem:[#allocation14_spill] sm:$0xff] }
 0x8d9   : > { %v6361_v9 = vsel %vm6216_vm2, %v6308_v23, 0.0  ;;  %v14782_v33 = vadd.f32 %v6131_v29, %v15964_v37 }
 0x8da   : > { %v6362_v30 = vadd.f32 %v6361_v9, %v6360_v48  ;;  %v6263_v45 = vadd.f32 %v6262_v61, %v6261_v22  ;;  %v6311_v56 = vmul.f32 %v14776_v26, %v14776_v26  ;;  %v6266_v4 = vsel %vm6216_vm2, %v14776_v26, 0.0 }
 0x8db   : > { %v6264_v49 = vsel %vm6216_vm2, %v14782_v33, 0.0  ;;  %v6310_v7 = vmul.f32 %v14782_v33, %v14782_v33  ;;  %v6137_v47 = vpop.permute.xlu0 %6136 }
 0x8dc   : > { %v6364_v5 = vadd.f32 %v6363_v42, %v6362_v30  ;;  %v6265_v41 = vadd.f32 %v6264_v49, %v6263_v45  ;;  %v14792_v63 = vadd.f32 %v6137_v47, %v15965_v17  ;;  %v6135_v32 = vpop.permute.xlu1 %6134  ;;  %v6367_v40 = vsel %vm6216_vm2, %v6311_v56, 0.0  ;;  %v15969_v56 = vld [vmem:[#allocation48_spill] sm:$0xff] }
 0x8dd   : > { %v6365_v21 = vsel %vm6216_vm2, %v6310_v7, 0.0  ;;  %v14798_v24 = vadd.f32 %v6135_v32, %v15966_v39 }
 0x8de   : > { %v6366_v6 = vadd.f32 %v6365_v21, %v6364_v5  ;;  %v6267_v51 = vadd.f32 %v6266_v4, %v6265_v41  ;;  %v6313_v28 = vmul.f32 %v14792_v63, %v14792_v63  ;;  %v6270_v53 = vsel %vm6216_vm2, %v14792_v63, 0.0  ;;  %v15970_v41 = vld [vmem:[#allocation68_spill] sm:$0xff] }
 0x8df   : > { %v6268_v0 = vsel %vm6216_vm2, %v14798_v24, 0.0  ;;  %v6312_v12 = vmul.f32 %v14798_v24, %v14798_v24  ;;  %v6141_v2 = vpop.permute.xlu0 %6140 }
 0x8e0   : > { %v6368_v50 = vadd.f32 %v6367_v40, %v6366_v6  ;;  %v6269_v16 = vadd.f32 %v6268_v0, %v6267_v51  ;;  %v14808_v11 = vadd.f32 %v6141_v2, %v15967_v18  ;;  %v6139_v38 = vpop.permute.xlu1 %6138  ;;  %v6371_v29 = vsel %vm6216_vm2, %v6313_v28, 0.0 }
 0x8e1   : > { %v6369_v23 = vsel %vm6216_vm2, %v6312_v12, 0.0  ;;  %v14814_v48 = vadd.f32 %v6139_v38, %v15968_v60 }
 0x8e2   : > { %v6370_v22 = vadd.f32 %v6369_v23, %v6368_v50  ;;  %v6271_v52 = vadd.f32 %v6270_v53, %v6269_v16  ;;  %v6315_v61 = vmul.f32 %v14808_v11, %v14808_v11  ;;  %v6274_v47 = vsel %vm6216_vm2, %v14808_v11, 0.0 }
 0x8e3   : > { %v6272_v9 = vsel %vm6216_vm2, %v14814_v48, 0.0  ;;  %v6314_v37 = vmul.f32 %v14814_v48, %v14814_v48  ;;  %v6145_v30 = vpop.permute.xlu0 %6144 }
 0x8e4   : > { %v6372_v45 = vadd.f32 %v6371_v29, %v6370_v22  ;;  %v6273_v42 = vadd.f32 %v6272_v9, %v6271_v52  ;;  %v14824_v49 = vadd.f32 %v6145_v30, %v15969_v56  ;;  %v6143_v7 = vpop.permute.xlu1 %6142  ;;  %v6375_v21 = vsel %vm6216_vm2, %v6315_v61, 0.0  ;;  %v15971_v30 = vld [vmem:[#allocation63_spill] sm:$0xff] }
 0x8e5   : > { %v6373_v5 = vsel %vm6216_vm2, %v6314_v37, 0.0  ;;  %v14830_v17 = vadd.f32 %v6143_v7, %v15970_v41  ;;  %9407 = vtanh.f32 %v15971_v30  ;;  %v15972_v7 = vld [vmem:[#allocation78_spill] sm:$0xff]  ;;  %v15984_v30 = vld [vmem:[#allocation55_spill] sm:$0xff] }
 0x8e6   : > { %v6374_v32 = vadd.f32 %v6373_v5, %v6372_v45  ;;  %v6275_v4 = vadd.f32 %v6274_v47, %v6273_v42  ;;  %v6317_v39 = vmul.f32 %v14824_v49, %v14824_v49  ;;  %v6278_v0 = vsel %vm6216_vm2, %v14824_v49, 0.0  ;;  %v7568_v47 = vld [vmem:[%s15296_s9] ss:$0 sm:$0xff]  ;;  %v15973_v5 = vld [vmem:[#allocation31_spill] sm:$0xff] }
 0x8e7   : > { %v6276_v6 = vsel %vm6216_vm2, %v14830_v17, 0.0  ;;  %v6316_v51 = vmul.f32 %v14830_v17, %v14830_v17  ;;  %9409 = vtanh.f32 %v15972_v7  ;;  %v15985_v7 = vld [vmem:[#allocation83_spill] sm:$0xff] }
 0x8e8   : > { %v6376_v40 = vadd.f32 %v6375_v21, %v6374_v32  ;;  %v6277_v28 = vadd.f32 %v6276_v6, %v6275_v4  ;;  %v6379_v16 = vsel %vm6216_vm2, %v6317_v39, 0.0  ;;  %9411 = vtanh.f32 %v15973_v5  ;;  %v15974_v32 = vld [vmem:[#allocation80_spill] sm:$0xff]  ;;  %v15975_v21 = vld [vmem:[#allocation42_spill] sm:$0xff] }
 0x8e9   : > { %v6377_v12 = vsel %vm6216_vm2, %v6316_v51, 0.0  ;;  %9413 = vtanh.f32 %v15974_v32  ;;  %v15976_v6 = vld [vmem:[#allocation66_spill] sm:$0xff]  ;;  %v15986_v5 = vld [vmem:[#allocation88_spill] sm:$0xff]  ;;  %v15987_v32 = vld [vmem:[#allocation59_spill] sm:$0xff] }
 0x8ea   : > { %v6279_v2 = vadd.f32 %v6278_v0, %v6277_v28  ;;  %v6378_v50 = vadd.f32 %v6377_v12, %v6376_v40  ;;  %9415 = vtanh.f32 %v15975_v21  ;;  %v15977_v40 = vld [vmem:[#allocation32_spill] sm:$0xff]  ;;  %v15978_v0 = vld [vmem:[#allocation81_spill] sm:$0xff] }
 0x8eb   : > { %9417 = vtanh.f32 %v15976_v6  ;;  %v15989_v6 = vld [vmem:[#allocation61_spill] sm:$0xff] }
 0x8ec   : > { %v6280_v18 = vrot.slane %v6279_v2, 4  ;;  %v6380_v38 = vadd.f32 %v6379_v16, %v6378_v50  ;;  %9419 = vtanh.f32 %v15977_v40 }
 0x8ed   : > { %9421 = vtanh.f32 %v15978_v0 }
 0x8ee   : > { %v6281_v53 = vadd.f32 %v6280_v18, %v6279_v2  ;;  %v6381_v23 = vrot.slane %v6380_v38, 4  ;;  %v15979_v2 = vld [vmem:[#allocation46_spill] sm:$0xff] }
 0x8ef   : > { %v9408_v41 = vpop.eup %9407  ;;  %9423 = vtanh.f32 %v15979_v2  ;;  %v15993_v2 = vld [vmem:[#allocation94_spill] sm:$0xff] }
 0x8f0   : > { %v6282_v60 = vrot.slane %v6281_v53, 2  ;;  %v6382_v22 = vadd.f32 %v6381_v23, %v6380_v38  ;;  %v15981_v23 = vld [vmem:[#allocation45_spill] sm:$0xff] }
 0x8f1   : > { %v9410_v4 = vpop.eup %9409 }
 0x8f2   : > { %v6283_v52 = vadd.f32 %v6282_v60, %v6281_v53  ;;  %v6383_v29 = vrot.slane %v6382_v22, 2  ;;  %v9412_v39 = vpop.eup %9411  ;;  %v15980_v53 = vld [vmem:[#allocation76_spill] sm:$0xff] }
 0x8f3   : > { %v9414_v51 = vpop.eup %9413  ;;  %9425 = vtanh.f32 %v15980_v53 }
 0x8f4   : > { %v6284_v61 = vrot.slane %v6283_v52, 1  ;;  %v6384_v9 = vadd.f32 %v6383_v29, %v6382_v22  ;;  %v9416_v28 = vpop.eup %9415  ;;  %9427 = vtanh.f32 %v15981_v23  ;;  %v15995_v23 = vld [vmem:[#allocation56_spill] sm:$0xff] }
 0x8f5   : > { %v9418_v12 = vpop.eup %9417  ;;  %9429 = vtanh.f32 %v15984_v30 }
 0x8f6   : > { %v6385_v37 = vrot.slane %v6384_v9, 1  ;;  %v6285_v45 = vadd.f32 %v6284_v61, %v6283_v52  ;;  %v9420_v50 = vpop.eup %9419  ;;  %v15982_v52 = vld [vmem:[#allocation65_spill] sm:$0xff]  ;;  %9431 = vtanh.f32 %v15985_v7 }
 0x8f7   : > { %v9422_v16 = vpop.eup %9421  ;;  %v15983_v29 = vsub.s32 0, %v15982_v52  ;;  %v15991_v40 = vsub.s32 1, %v15982_v52  ;;  %v15996_v52 = vld [vmem:[#allocation93_spill] sm:$0xff] }
 0x8f8   : > { %v6386_v42 = vadd.f32 %v6385_v37, %v6384_v9 }
 0x8f9   : > { %v9424_v18 = vpop.eup %9423 }
 0x8fa   : > { %v6387_v56 = vsel %vm966_vm1, %v6285_v45, %v6386_v42 }
 0x8fb   : > { %6389 = vrot.lane.b32.xlu1 %v6387_v56, %s9669_s16 }
 0x8fd   : > { %v9426_v42 = vpop.eup %9425 }
 0x8ff   : > { %6595 = vrot.lane.b32.xlu1 %v7568_v47, %s9672_s17  ;;  %v9428_v47 = vpop.eup %9427 }
 0x903   : > { %6888 = vrot.lane.b32.xlu1 %v9408_v41, %s9671_s23  ;;  %v9430_v41 = vpop.eup %9429 }
 0x904   : > { %v9432_v21 = vpop.eup %9431 }
 0x907   : > { %6892 = vrot.lane.b32.xlu1 %v9410_v4, %s9671_s23  ;;  %v15988_v4 = vld [vmem:[#allocation77_spill] sm:$0xff] }
 0x90b   : > { %6896 = vrot.lane.b32.xlu1 %v9412_v39, %s9671_s23 }
 0x90f   : > { %6900 = vrot.lane.b32.xlu1 %v9414_v51, %s9671_s23  ;;  %v15990_v51 = vld [vmem:[#allocation90_spill] sm:$0xff] }
 0x913   : > { %6904 = vrot.lane.b32.xlu1 %v9416_v28, %s9671_s23 }
 0x917   : > { %6908 = vrot.lane.b32.xlu1 %v9418_v12, %s9671_s23  ;;  %v15992_v12 = vld [vmem:[#allocation75_spill] sm:$0xff] }
 0x91b   : > { %6912 = vrot.lane.b32.xlu1 %v9420_v50, %s9671_s23 }
 0x91f   : > { %6916 = vrot.lane.b32.xlu1 %v9422_v16, %s9671_s23 }
 0x923   : > { %6920 = vrot.lane.b32.xlu1 %v9424_v18, %s9671_s23  ;;  %v15994_v18 = vld [vmem:[#allocation84_spill] sm:$0xff] }
 0x96d   : > { %v6390_v38 = vpop.permute.xlu1 %6389 }
 0x96e   : > { %7868 = vmatmul.mubr.msk.f32.vlgmr.msra.gmra.mrb[128].mxu1 %vm2305_vm14, %v6390_v38 }
 0xa41   : > { %v6459_v60 = vpop.f32.mrb[128].mxu1 }
 0xa42   : > { %v6463_v22 = vmul.f32 %v6459_v60, %v6459_v60  ;;  %v6471_v61 = vrot.slane %v6459_v60, %v15983_v29  ;;  %v7869_v9 = vpop.f32.mrb[129].mxu1 }
 0xa44   : > { %v6465_v37 = vrot.slane %v6463_v22, 7  ;;  %6473 = vrot.lane.b32.xlu0 %v6471_v61, %s9672_s17  ;;  %v15997_v61 = vld [vmem:[#allocation85_spill] sm:$0xff] }
 0xa46   : > { %v6467_v45 = vsub.f32 %v6459_v60, %v6465_v37 }
 0xa48   : > { %v6508_v56 = vadd.f32 1e-05, %v6467_v45  ;;  %6918 = vrot.lane.b32.xlu0 %v9426_v42, %s9671_s23  ;;  %v14904_v45 = vpop.permute.xlu1 %6595  ;;  %v14906_v42 = vpop.permute.xlu0 %6555 }
 0xa4a   : > { %9433 = vrsqrt.f32 %v6508_v56 }
 0xa4b   : > { %9435 = vtanh.f32 %v15986_v5 }
 0xa4c   : > { %6922 = vrot.lane.b32.xlu0 %v9428_v47, %s9671_s23  ;;  %9437 = vtanh.f32 %v15987_v32  ;;  %v14908_v56 = vpop.permute.xlu1 %6888  ;;  %v14910_v7 = vpop.permute.xlu0 %6886 }
 0xa4d   : > { %9439 = vtanh.f32 %v15988_v4 }
 0xa4e   : > { %9441 = vtanh.f32 %v15989_v6 }
 0xa4f   : > { %9443 = vtanh.f32 %v15990_v51 }
 0xa50   : > { %6926 = vrot.lane.b32.xlu0 %v9430_v41, %s9671_s23  ;;  %9445 = vtanh.f32 %v15992_v12  ;;  %v14912_v47 = vpop.permute.xlu1 %6892  ;;  %v14914_v5 = vpop.permute.xlu0 %6890 }
 0xa51   : > { %9447 = vtanh.f32 %v15993_v2 }
 0xa52   : > { %9449 = vtanh.f32 %v15994_v18 }
 0xa53   : > { %9451 = vtanh.f32 %v15995_v23 }
 0xa54   : > { %v9434_v39 = vpop.eup %9433  ;;  %6930 = vrot.lane.b32.xlu0 %v9432_v21, %s9671_s23  ;;  %9453 = vtanh.f32 %v15996_v52  ;;  %v14916_v41 = vpop.permute.xlu1 %6896 }
 0xa55   : > { %v6513_v28 = vrot.slane %v9434_v39, %v15991_v40  ;;  %v9436_v0 = vpop.eup %9435  ;;  %9455 = vtanh.f32 %v15997_v61  ;;  %v14918_v32 = vpop.permute.xlu0 %6894 }
 0xa56   : > { %v9438_v50 = vpop.eup %9437 }
 0xa57   : > { %6515 = vrot.lane.b32.xlu1 %v6513_v28, %s9672_s17  ;;  %v9440_v16 = vpop.eup %9439 }
 0xa58   : > { %6934 = vrot.lane.b32.xlu0 %v9436_v0, %s9671_s23  ;;  %v9442_v38 = vpop.eup %9441  ;;  %v14920_v4 = vpop.permute.xlu1 %6900 }
 0xa59   : > { %v9444_v53 = vpop.eup %9443  ;;  %v14922_v21 = vpop.permute.xlu0 %6898 }
 0xa5a   : > { %v9446_v60 = vpop.eup %9445 }
 0xa5b   : > { %6924 = vrot.lane.b32.xlu1 %v9438_v50, %s9671_s23  ;;  %v9448_v22 = vpop.eup %9447 }
 0xa5c   : > { %6938 = vrot.lane.b32.xlu0 %v9440_v16, %s9671_s23  ;;  %v9450_v29 = vpop.eup %9449  ;;  %v14924_v39 = vpop.permute.xlu1 %6904 }
 0xa5d   : > { %v9452_v9 = vpop.eup %9451  ;;  %v14926_v6 = vpop.permute.xlu0 %6902 }
 0xa5e   : > { %v9454_v37 = vpop.eup %9453 }
 0xa5f   : > { %6928 = vrot.lane.b32.xlu1 %v9442_v38, %s9671_s23  ;;  %v9456_v30 = vpop.eup %9455 }
 0xa60   : > { %6942 = vrot.lane.b32.xlu0 %v9444_v53, %s9671_s23  ;;  %v14928_v51 = vpop.permute.xlu1 %6908 }
 0xa61   : > { %v14930_v40 = vpop.permute.xlu0 %6906 }
 0xa63   : > { %6932 = vrot.lane.b32.xlu1 %v9446_v60, %s9671_s23 }
 0xa64   : > { %6946 = vrot.lane.b32.xlu0 %v9448_v22, %s9671_s23  ;;  %v14932_v28 = vpop.permute.xlu1 %6912 }
 0xa65   : > { %v14934_v0 = vpop.permute.xlu0 %6910 }
 0xa67   : > { %6936 = vrot.lane.b32.xlu1 %v9450_v29, %s9671_s23 }
 0xa68   : > { %v14936_v12 = vpop.permute.xlu1 %6916 }
 0xa69   : > { %v14938_v2 = vpop.permute.xlu0 %6914 }
 0xa6b   : > { %6940 = vrot.lane.b32.xlu1 %v9452_v9, %s9671_s23 }
 0xa6c   : > { %v14940_v50 = vpop.permute.xlu1 %6920 }
 0xa6d   : > { %15998 = vst [vmem:[#allocation6_spill] sm:$0xff] %v14940_v50 }
 0xa6f   : > { %6944 = vrot.lane.b32.xlu1 %v9454_v37, %s9671_s23 }
 0xa73   : > { %6948 = vrot.lane.b32.xlu1 %v9456_v30, %s9671_s23 }
 0xab6   : > { %v14942_v16 = vpop.permute.xlu0 %6473 }
 0xab7   : > { %v6502_v18 = vsub.f32 %v14798_v24, %v14942_v16  ;;  %v6504_v53 = vsub.f32 %v14814_v48, %v14942_v16  ;;  %v6506_v23 = vsub.f32 %v14830_v17, %v14942_v16  ;;  %v6505_v24 = vsub.f32 %v14808_v11, %v14942_v16 }
 0xab8   : > { %v6507_v48 = vsub.f32 %v14824_v49, %v14942_v16  ;;  %v6477_v17 = vsub.f32 %v14588_v43, %v14942_v16  ;;  %v6476_v61 = vsub.f32 %v14591_v62, %v14942_v16  ;;  %v6479_v62 = vsub.f32 %v14602_v34, %v14942_v16 }
 0xab9   : > { %v6483_v34 = vsub.f32 %v14632_v3, %v14942_v16 }
 0xac9   : > { %v14946_v38 = vpop.permute.xlu1 %6515 }
 0xaca   : > { %v14953_v60 = vmul.f32 %v14946_v38, %v6502_v18  ;;  %v14956_v22 = vmul.f32 %v14946_v38, %v6504_v53  ;;  %v14959_v52 = vmul.f32 %v14946_v38, %v6506_v23  ;;  %v14964_v29 = vmul.f32 %v14946_v38, %v6505_v24 }
 0xacb   : > { %v14973_v9 = vmul.f32 %v14946_v38, %v6507_v48  ;;  %v6519_v37 = vmul.f32 %v14946_v38, %v6477_v17  ;;  %v6518_v30 = vmul.f32 %v14946_v38, %v6476_v61  ;;  %v6478_v24 = vsub.f32 %v14607_v10, %v14942_v16 }
 0xacc   : > { %v6521_v48 = vmul.f32 %v14946_v38, %v6479_v62  ;;  %v6481_v17 = vsub.f32 %v14616_v19, %v14942_v16  ;;  %v6480_v61 = vsub.f32 %v14622_v1, %v14942_v16  ;;  %v6482_v10 = vsub.f32 %v14638_v57, %v14942_v16 }
 0xacd   : > { %v6559_v11 = vmul.f32 %v14906_v42, %v6519_v37  ;;  %v6558_v18 = vmul.f32 %v14906_v42, %v6518_v30  ;;  %v6520_v37 = vmul.f32 %v14946_v38, %v6478_v24  ;;  %v6525_v19 = vmul.f32 %v14946_v38, %v6483_v34 }
 0xace   : > { %v6523_v30 = vmul.f32 %v14946_v38, %v6481_v17  ;;  %v6485_v1 = vsub.f32 %v14648_v58, %v14942_v16  ;;  %v6487_v62 = vsub.f32 %v14664_v44, %v14942_v16  ;;  %v6489_v44 = vsub.f32 %v14680_v8, %v14942_v16 }
 0xacf   : > { %v6599_v53 = vadd.f32 %v14904_v45, %v6559_v11  ;;  %v6598_v49 = vadd.f32 %v14904_v45, %v6558_v18  ;;  %v6522_v11 = vmul.f32 %v14946_v38, %v6480_v61  ;;  %v6561_v18 = vmul.f32 %v14906_v42, %v6521_v48 }
 0xad0   : > { %v6527_v57 = vmul.f32 %v14946_v38, %v6485_v1  ;;  %v6565_v48 = vmul.f32 %v14906_v42, %v6525_v19  ;;  %v6529_v17 = vmul.f32 %v14946_v38, %v6487_v62  ;;  %v6495_v61 = vsub.f32 %v14728_v15, %v14942_v16 }
 0xad1   : > { %v7570_v23 = vmul.f32 -1.442695, %v6599_v53  ;;  %v7569_v43 = vmul.f32 -1.442695, %v6598_v49  ;;  %v6560_v53 = vmul.f32 %v14906_v42, %v6520_v37  ;;  %v6524_v49 = vmul.f32 %v14946_v38, %v6482_v10 }
 0xad2   : > { %v6562_v3 = vmul.f32 %v14906_v42, %v6522_v11  ;;  %v6601_v58 = vadd.f32 %v14904_v45, %v6561_v18  ;;  %v6567_v10 = vmul.f32 %v14906_v42, %v6527_v57  ;;  %v6531_v15 = vmul.f32 %v14946_v38, %v6489_v44 }
 0xad3   : > { %9457 = vpow2.f32 %v7570_v23  ;;  %v6484_v23 = vsub.f32 %v14654_v25, %v14942_v16  ;;  %v6486_v25 = vsub.f32 %v14670_v13, %v14942_v16  ;;  %v6600_v37 = vadd.f32 %v14904_v45, %v6560_v53 }
 0xad4   : > { %9459 = vpow2.f32 %v7569_v43  ;;  %v6563_v43 = vmul.f32 %v14906_v42, %v6523_v30  ;;  %v6564_v30 = vmul.f32 %v14906_v42, %v6524_v49  ;;  %v6602_v34 = vadd.f32 %v14904_v45, %v6562_v3 }
 0xad5   : > { %v6526_v24 = vmul.f32 %v14946_v38, %v6484_v23  ;;  %v6528_v18 = vmul.f32 %v14946_v38, %v6486_v25  ;;  %v6488_v1 = vsub.f32 %v14686_v14, %v14942_v16  ;;  %v6491_v53 = vsub.f32 %v14696_v46, %v14942_v16 }
 0xad6   : > { %v6603_v11 = vadd.f32 %v14904_v45, %v6563_v43  ;;  %v7572_v23 = vmul.f32 -1.442695, %v6601_v58  ;;  %v6605_v43 = vadd.f32 %v14904_v45, %v6565_v48  ;;  %v6569_v3 = vmul.f32 %v14906_v42, %v6529_v17 }
 0xad7   : > { %v6566_v13 = vmul.f32 %v14906_v42, %v6526_v24  ;;  %v7571_v62 = vmul.f32 -1.442695, %v6600_v37  ;;  %v6604_v25 = vadd.f32 %v14904_v45, %v6564_v30  ;;  %v6568_v24 = vmul.f32 %v14906_v42, %v6528_v18 }
 0xad8   : > { %v7574_v44 = vmul.f32 -1.442695, %v6603_v11  ;;  %v7573_v50 = vmul.f32 -1.442695, %v6602_v34  ;;  %v6607_v14 = vadd.f32 %v14904_v45, %v6567_v10  ;;  %v6571_v58 = vmul.f32 %v14906_v42, %v6531_v15 }
 0xad9   : > { %v6606_v46 = vadd.f32 %v14904_v45, %v6566_v13  ;;  %v6530_v48 = vmul.f32 %v14946_v38, %v6488_v1  ;;  %v6537_v17 = vmul.f32 %v14946_v38, %v6495_v61  ;;  %v7576_v37 = vmul.f32 -1.442695, %v6605_v43 }
 0xada   : > { %v6609_v30 = vadd.f32 %v14904_v45, %v6569_v3  ;;  %v7575_v18 = vmul.f32 -1.442695, %v6604_v25  ;;  %v6608_v11 = vadd.f32 %v14904_v45, %v6568_v24  ;;  %v6497_v10 = vsub.f32 %v14744_v54, %v14942_v16 }
 0xadb   : > { %v6570_v34 = vmul.f32 %v14906_v42, %v6530_v48  ;;  %v6533_v13 = vmul.f32 %v14946_v38, %v6491_v53  ;;  %v7577_v15 = vmul.f32 -1.442695, %v6606_v46  ;;  %v6611_v61 = vadd.f32 %v14904_v45, %v6571_v58 }
 0xadc   : > { %v6539_v1 = vmul.f32 %v14946_v38, %v6497_v10  ;;  %v7579_v43 = vmul.f32 -1.442695, %v6608_v11  ;;  %v6500_v54 = vsub.f32 %v14782_v33, %v14942_v16  ;;  %v6499_v53 = vsub.f32 %v14760_v31, %v14942_v16 }
 0xadd   : > { %v9458_v19 = vpop.eup %9457  ;;  %v6501_v3 = vsub.f32 %v14776_v26, %v14942_v16  ;;  %v6493_v33 = vsub.f32 %v14712_v55, %v14942_v16  ;;  %v6492_v58 = vsub.f32 %v14718_v35, %v14942_v16  ;;  %v6496_v10 = vsub.f32 %v14750_v36, %v14942_v16 }
 0xade   : > { %v9460_v8 = vpop.eup %9459  ;;  %v6727_v49 = vadd.f32 1.0, %v9458_v19  ;;  %v7578_v19 = vmul.f32 -1.442695, %v6607_v14  ;;  %v6579_v24 = vmul.f32 %v14906_v42, %v6539_v1 }
 0xadf   : > { %v6726_v57 = vadd.f32 1.0, %v9460_v8  ;;  %v7580_v8 = vmul.f32 -1.442695, %v6609_v30  ;;  %v6494_v30 = vsub.f32 %v14734_v59, %v14942_v16  ;;  %v6534_v11 = vmul.f32 %v14946_v38, %v6492_v58 }
 0xae0   : > { %9461 = vrcp.f32 %v6727_v49  ;;  %v6610_v49 = vadd.f32 %v14904_v45, %v6570_v34  ;;  %v6619_v34 = vadd.f32 %v14904_v45, %v6579_v24  ;;  %v6498_v24 = vsub.f32 %v14766_v27, %v14942_v16 }
 0xae1   : > { %9463 = vrcp.f32 %v6726_v57  ;;  %v7582_v57 = vmul.f32 -1.442695, %v6611_v61  ;;  %v6541_v58 = vmul.f32 %v14946_v38, %v6499_v53  ;;  %v6543_v53 = vmul.f32 %v14946_v38, %v6501_v3 }
 0xae2   : > { %9465 = vpow2.f32 %v7572_v23  ;;  %v6577_v23 = vmul.f32 %v14906_v42, %v6537_v17 }
 0xae3   : > { %9467 = vpow2.f32 %v7571_v62  ;;  %v6490_v62 = vsub.f32 %v14702_v20, %v14942_v16 }
 0xae4   : > { %9469 = vpow2.f32 %v7574_v44  ;;  %v7581_v44 = vmul.f32 -1.442695, %v6610_v49  ;;  %v6617_v14 = vadd.f32 %v14904_v45, %v6577_v23 }
 0xae5   : > { %9471 = vpow2.f32 %v7573_v50  ;;  %v6573_v50 = vmul.f32 %v14906_v42, %v6533_v13 }
 0xae6   : > { %9473 = vpow2.f32 %v7576_v37  ;;  %v6532_v37 = vmul.f32 %v14946_v38, %v6490_v62 }
 0xae7   : > { %9475 = vpow2.f32 %v7575_v18  ;;  %v6613_v17 = vadd.f32 %v14904_v45, %v6573_v50 }
 0xae8   : > { %9477 = vpow2.f32 %v7578_v19  ;;  %v7588_v19 = vmul.f32 -1.442695, %v6617_v14  ;;  %v6572_v49 = vmul.f32 %v14906_v42, %v6532_v37 }
 0xae9   : > { %9479 = vpow2.f32 %v7577_v15  ;;  %v6536_v15 = vmul.f32 %v14946_v38, %v6494_v30 }
 0xaea   : > { %v9462_v25 = vpop.eup %9461  ;;  %9481 = vpow2.f32 %v7580_v8  ;;  %v7584_v8 = vmul.f32 -1.442695, %v6613_v17 }
 0xaeb   : > { %v9464_v31 = vpop.eup %9463  ;;  %v6983_v46 = vmul.f32 %v9462_v25, %v14908_v56  ;;  %9483 = vpow2.f32 %v7579_v43  ;;  %v6535_v56 = vmul.f32 %v14946_v38, %v6493_v33  ;;  %v6538_v25 = vmul.f32 %v14946_v38, %v6496_v10 }
 0xaec   : > { %v9466_v48 = vpop.eup %9465  ;;  %v6982_v20 = vmul.f32 %v9464_v31, %v14910_v7  ;;  %9485 = vpow2.f32 %v7582_v57  ;;  %v6574_v57 = vmul.f32 %v14906_v42, %v6534_v11  ;;  %v6542_v33 = vmul.f32 %v14946_v38, %v6500_v54 }
 0xaed   : > { %v9468_v55 = vpop.eup %9467  ;;  %7048 = vrot.lane.b32.xlu1 %v6983_v46, %s9669_s16  ;;  %v6729_v18 = vadd.f32 1.0, %v9466_v48  ;;  %9487 = vpow2.f32 %v7581_v44  ;;  %v6575_v50 = vmul.f32 %v14906_v42, %v6535_v56  ;;  %v7590_v31 = vmul.f32 -1.442695, %v6619_v34 }
 0xaee   : > { %v9470_v35 = vpop.eup %9469  ;;  %7046 = vrot.lane.b32.xlu0 %v6982_v20, %s9669_s16  ;;  %v6728_v7 = vadd.f32 1.0, %v9468_v55  ;;  %v6576_v14 = vmul.f32 %v14906_v42, %v6536_v15  ;;  %v6612_v20 = vadd.f32 %v14904_v45, %v6572_v49  ;;  %v6614_v27 = vadd.f32 %v14904_v45, %v6574_v57 }
 0xaef   : > { %v9472_v59 = vpop.eup %9471  ;;  %9489 = vrcp.f32 %v6729_v18  ;;  %v6731_v13 = vadd.f32 1.0, %v9470_v35  ;;  %v6615_v30 = vadd.f32 %v14904_v45, %v6575_v50  ;;  %v6578_v55 = vmul.f32 %v14906_v42, %v6538_v25 }
 0xaf0   : > { %v9474_v61 = vpop.eup %9473  ;;  %9491 = vrcp.f32 %v6728_v7  ;;  %v6730_v1 = vadd.f32 1.0, %v9472_v59  ;;  %v6540_v18 = vmul.f32 %v14946_v38, %v6498_v24  ;;  %v6616_v35 = vadd.f32 %v14904_v45, %v6576_v14 }
 0xaf1   : > { %v9476_v23 = vpop.eup %9475  ;;  %9493 = vrcp.f32 %v6731_v13  ;;  %v6733_v43 = vadd.f32 1.0, %v9474_v61  ;;  %v6581_v7 = vmul.f32 %v14906_v42, %v6541_v58  ;;  %v6503_v10 = vsub.f32 %v14792_v63, %v14942_v16 }
 0xaf2   : > { %v9478_v36 = vpop.eup %9477  ;;  %9495 = vrcp.f32 %v6730_v1  ;;  %v6732_v62 = vadd.f32 1.0, %v9476_v23  ;;  %v7583_v59 = vmul.f32 -1.442695, %v6612_v20  ;;  %v6582_v13 = vmul.f32 %v14906_v42, %v6542_v33 }
 0xaf3   : > { %v9480_v44 = vpop.eup %9479  ;;  %9497 = vpow2.f32 %v7588_v19  ;;  %v6735_v48 = vadd.f32 1.0, %v9478_v36  ;;  %v7586_v15 = vmul.f32 -1.442695, %v6615_v30  ;;  %v7585_v61 = vmul.f32 -1.442695, %v6614_v27 }
 0xaf4   : > { %v9482_v46 = vpop.eup %9481  ;;  %9499 = vpow2.f32 %v7584_v8  ;;  %v6734_v37 = vadd.f32 1.0, %v9480_v44  ;;  %v6618_v1 = vadd.f32 %v14904_v45, %v6578_v55  ;;  %v6580_v8 = vmul.f32 %v14906_v42, %v6540_v18 }
 0xaf5   : > { %v9484_v17 = vpop.eup %9483  ;;  %9501 = vrcp.f32 %v6733_v43  ;;  %v6737_v54 = vadd.f32 1.0, %v9482_v46  ;;  %v6583_v23 = vmul.f32 %v14906_v42, %v6543_v53  ;;  %v7587_v16 = vmul.f32 -1.442695, %v6616_v35 }
 0xaf6   : > { %9503 = vrcp.f32 %v6732_v62  ;;  %v9486_v56 = vpop.eup %9485  ;;  %v6736_v11 = vadd.f32 1.0, %v9484_v17  ;;  %v6621_v50 = vadd.f32 %v14904_v45, %v6581_v7  ;;  %v6545_v57 = vmul.f32 %v14946_v38, %v6503_v10 }
 0xaf7   : > { %9505 = vpow2.f32 %v7590_v31  ;;  %v9488_v34 = vpop.eup %9487  ;;  %v6620_v44 = vadd.f32 %v14904_v45, %v6580_v8  ;;  %v6622_v31 = vadd.f32 %v14904_v45, %v6582_v13  ;;  %v6623_v58 = vadd.f32 %v14904_v45, %v6583_v23 }
 0xaf8   : > { %9507 = vrcp.f32 %v6735_v48  ;;  %v6738_v62 = vadd.f32 1.0, %v9488_v34  ;;  %v7592_v46 = vmul.f32 -1.442695, %v6621_v50  ;;  %v6585_v48 = vmul.f32 %v14906_v42, %v6545_v57 }
 0xaf9   : > { %v9490_v19 = vpop.eup %9489  ;;  %9509 = vrcp.f32 %v6734_v37  ;;  %v6584_v37 = vmul.f32 %v14906_v42, %v14953_v60  ;;  %v7591_v30 = vmul.f32 -1.442695, %v6620_v44  ;;  %v6587_v55 = vmul.f32 %v14906_v42, %v14964_v29 }
 0xafa   : > { %v9492_v26 = vpop.eup %9491  ;;  %v6985_v3 = vmul.f32 %v9490_v19, %v14912_v47  ;;  %9511 = vrcp.f32 %v6737_v54  ;;  %v6739_v47 = vadd.f32 1.0, %v9486_v56  ;;  %v7593_v54 = vmul.f32 -1.442695, %v6622_v31 }
 0xafb   : > { %v9494_v49 = vpop.eup %9493  ;;  %v6984_v63 = vmul.f32 %v9492_v26, %v14914_v5  ;;  %9513 = vrcp.f32 %v6736_v11  ;;  %v7589_v5 = vmul.f32 -1.442695, %v6618_v1  ;;  %v7594_v53 = vmul.f32 -1.442695, %v6623_v58  ;;  %v15138_v26 = vpop.permute.xlu0 %6918 }
 0xafc   : > { %v9496_v43 = vpop.eup %9495  ;;  %7052 = vrot.lane.b32.xlu1 %v6985_v3, %s9669_s16  ;;  %9515 = vpow2.f32 %v7583_v59  ;;  %v6987_v24 = vmul.f32 %v9494_v49, %v14916_v41  ;;  %v6625_v11 = vadd.f32 %v14904_v45, %v6585_v48  ;;  %v6624_v60 = vadd.f32 %v14904_v45, %v6584_v37 }
 0xafd   : > { %v9498_v36 = vpop.eup %9497  ;;  %7050 = vrot.lane.b32.xlu0 %v6984_v63, %s9669_s16  ;;  %9517 = vpow2.f32 %v7586_v15  ;;  %v6986_v38 = vmul.f32 %v9496_v43, %v14918_v32  ;;  %v6586_v34 = vmul.f32 %v14906_v42, %v14956_v22  ;;  %v6627_v7 = vadd.f32 %v14904_v45, %v6587_v55 }
 0xafe   : > { %v9500_v25 = vpop.eup %9499  ;;  %9519 = vpow2.f32 %v7585_v61  ;;  %v7596_v13 = vmul.f32 -1.442695, %v6625_v11  ;;  %v6589_v15 = vmul.f32 %v14906_v42, %v14973_v9  ;;  %v6588_v3 = vmul.f32 %v14906_v42, %v14959_v52  ;;  %v6925_v52 = vpop.permute.xlu1 %6924 }
 0xaff   : > { %v9502_v33 = vpop.eup %9501  ;;  %9521 = vpow2.f32 %v7587_v16  ;;  %v6741_v20 = vadd.f32 1.0, %v9500_v25  ;;  %v7595_v8 = vmul.f32 -1.442695, %v6624_v60  ;;  %v6626_v49 = vadd.f32 %v14904_v45, %v6586_v34  ;;  %v6923_v25 = vpop.permute.xlu0 %6922 }
 0xb00   : > { %v9504_v14 = vpop.eup %9503  ;;  %7056 = vrot.lane.b32.xlu1 %v6987_v24, %s9669_s16  ;;  %9523 = vrcp.f32 %v6739_v47  ;;  %v6989_v32 = vmul.f32 %v9502_v33, %v14920_v4  ;;  %v7598_v50 = vmul.f32 -1.442695, %v6627_v7  ;;  %v6629_v42 = vadd.f32 %v14904_v45, %v6589_v15 }
 0xb01   : > { %v9506_v41 = vpop.eup %9505  ;;  %7054 = vrot.lane.b32.xlu0 %v6986_v38, %s9669_s16  ;;  %9525 = vrcp.f32 %v6738_v62  ;;  %v6988_v18 = vmul.f32 %v9504_v14, %v14922_v21 }
 0xb02   : > { %v9508_v17 = vpop.eup %9507  ;;  %9527 = vpow2.f32 %v7589_v5  ;;  %v6747_v57 = vadd.f32 1.0, %v9506_v41  ;;  %v7600_v33 = vmul.f32 -1.442695, %v6629_v42  ;;  %v6929_v58 = vpop.permute.xlu1 %6928 }
 0xb03   : > { %v9510_v27 = vpop.eup %9509  ;;  %9529 = vpow2.f32 %v7592_v46  ;;  %v6991_v29 = vmul.f32 %v9508_v17, %v14924_v39  ;;  %v6745_v39 = vadd.f32 1.0, %v9498_v36  ;;  %v6628_v36 = vadd.f32 %v14904_v45, %v6588_v3  ;;  %v6927_v17 = vpop.permute.xlu0 %6926 }
 0xb04   : > { %v9512_v56 = vpop.eup %9511  ;;  %7060 = vrot.lane.b32.xlu1 %v6989_v32, %s9669_s16  ;;  %9531 = vrcp.f32 %v6741_v20  ;;  %v6990_v10 = vmul.f32 %v9510_v27, %v14926_v6 }
 0xb05   : > { %v9514_v35 = vpop.eup %9513  ;;  %7058 = vrot.lane.b32.xlu0 %v6988_v18, %s9669_s16  ;;  %9533 = vpow2.f32 %v7591_v30  ;;  %v6993_v9 = vmul.f32 %v9512_v56, %v14928_v51  ;;  %v7597_v51 = vmul.f32 -1.442695, %v6626_v49  ;;  %v7599_v45 = vmul.f32 -1.442695, %v6628_v36  ;;  %v15999_v30 = vld [vmem:[#allocation6_spill] sm:$0xff] }
 0xb06   : > { %v9516_v4 = vpop.eup %9515  ;;  %9535 = vpow2.f32 %v7593_v54  ;;  %v6992_v63 = vmul.f32 %v9514_v35, %v14930_v40 }
 0xb07   : > { %v9518_v21 = vpop.eup %9517  ;;  %v6740_v59 = vadd.f32 1.0, %v9516_v4  ;;  %9537 = vpow2.f32 %v7594_v53  ;;  %v6931_v60 = vpop.permute.xlu0 %6930 }
 0xb08   : > { %v9520_v19 = vpop.eup %9519  ;;  %7064 = vrot.lane.b32.xlu1 %v6991_v29, %s9669_s16  ;;  %v6743_v61 = vadd.f32 1.0, %v9518_v21 }
 0xb09   : > { %v9522_v22 = vpop.eup %9521  ;;  %7062 = vrot.lane.b32.xlu0 %v6990_v10, %s9669_s16  ;;  %9539 = vrcp.f32 %v6740_v59  ;;  %v6742_v6 = vadd.f32 1.0, %v9520_v19 }
 0xb0a   : > { %v9524_v1 = vpop.eup %9523  ;;  %9541 = vrcp.f32 %v6743_v61  ;;  %v6744_v16 = vadd.f32 1.0, %v9522_v22 }
 0xb0b   : > { %v9526_v23 = vpop.eup %9525  ;;  %9543 = vrcp.f32 %v6742_v6  ;;  %v6995_v40 = vmul.f32 %v9524_v1, %v14932_v28  ;;  %v6935_v3 = vpop.permute.xlu0 %6934 }
 0xb0c   : > { %v9528_v43 = vpop.eup %9527  ;;  %9545 = vpow2.f32 %v7596_v13  ;;  %7068 = vrot.lane.b32.xlu1 %v6993_v9, %s9669_s16  ;;  %v6994_v24 = vmul.f32 %v9526_v23, %v14934_v0 }
 0xb0d   : > { %9547 = vrcp.f32 %v6745_v39  ;;  %7066 = vrot.lane.b32.xlu0 %v6992_v63, %s9669_s16  ;;  %v9530_v47 = vpop.eup %9529  ;;  %v6746_v5 = vadd.f32 1.0, %v9528_v43 }
 0xb0e   : > { %9549 = vpow2.f32 %v7595_v8  ;;  %v9532_v62 = vpop.eup %9531  ;;  %v6749_v38 = vadd.f32 1.0, %v9530_v47 }
 0xb0f   : > { %9551 = vrcp.f32 %v6744_v16  ;;  %v9534_v44 = vpop.eup %9533  ;;  %v6997_v28 = vmul.f32 %v9532_v62, %v14936_v12 }
 0xb10   : > { %9553 = vpow2.f32 %v7598_v50  ;;  %7072 = vrot.lane.b32.xlu1 %v6995_v40, %s9669_s16  ;;  %v9536_v31 = vpop.eup %9535  ;;  %v6748_v0 = vadd.f32 1.0, %v9534_v44  ;;  %v6939_v50 = vpop.permute.xlu0 %6938 }
 0xb11   : > { %9555 = vrcp.f32 %v6747_v57  ;;  %7070 = vrot.lane.b32.xlu0 %v6994_v24, %s9669_s16  ;;  %v9538_v14 = vpop.eup %9537  ;;  %v6750_v54 = vadd.f32 1.0, %v9536_v31 }
 0xb12   : > { %9557 = vpow2.f32 %v7597_v51  ;;  %v6751_v37 = vadd.f32 1.0, %v9538_v14 }
 0xb13   : > { %v9540_v46 = vpop.eup %9539  ;;  %9559 = vrcp.f32 %v6746_v5 }
 0xb14   : > { %v9542_v48 = vpop.eup %9541  ;;  %9561 = vpow2.f32 %v7600_v33  ;;  %7076 = vrot.lane.b32.xlu1 %v6997_v28, %s9669_s16  ;;  %v6996_v41 = vmul.f32 %v9540_v46, %v14938_v2  ;;  %v6933_v2 = vpop.permute.xlu1 %6932 }
 0xb15   : > { %v9544_v20 = vpop.eup %9543  ;;  %9563 = vrcp.f32 %v6749_v38  ;;  %v6999_v12 = vmul.f32 %v9542_v48, %v15999_v30  ;;  %v6943_v62 = vpop.permute.xlu0 %6942 }
 0xb16   : > { %v9546_v32 = vpop.eup %9545  ;;  %9565 = vpow2.f32 %v7599_v45  ;;  %7074 = vrot.lane.b32.xlu0 %v6996_v41, %s9669_s16  ;;  %v6998_v18 = vmul.f32 %v9544_v20, %v15138_v26 }
 0xb17   : > { %v9548_v27 = vpop.eup %9547  ;;  %9567 = vrcp.f32 %v6748_v0  ;;  %v6753_v53 = vadd.f32 1.0, %v9546_v32 }
 0xb18   : > { %v9550_v55 = vpop.eup %9549  ;;  %7080 = vrot.lane.b32.xlu1 %v6999_v12, %s9669_s16  ;;  %9569 = vrcp.f32 %v6751_v37  ;;  %v7001_v35 = vmul.f32 %v9548_v27, %v6925_v52  ;;  %v6937_v61 = vpop.permute.xlu1 %6936 }
 0xb19   : > { %v9552_v56 = vpop.eup %9551  ;;  %9571 = vrcp.f32 %v6750_v54  ;;  %v6752_v34 = vadd.f32 1.0, %v9550_v55  ;;  %v6947_v38 = vpop.permute.xlu0 %6946 }
 0xb1a   : > { %v9554_v11 = vpop.eup %9553  ;;  %7078 = vrot.lane.b32.xlu0 %v6998_v18, %s9669_s16  ;;  %v7000_v21 = vmul.f32 %v9552_v56, %v6923_v25  ;;  %9573 = vrcp.f32 %v6753_v53 }
 0xb1b   : > { %v9556_v4 = vpop.eup %9555  ;;  %v6755_v10 = vadd.f32 1.0, %v9554_v11  ;;  %9575 = vrcp.f32 %v6752_v34 }
 0xb1c   : > { %v9558_v29 = vpop.eup %9557  ;;  %7084 = vrot.lane.b32.xlu1 %v7001_v35, %s9669_s16  ;;  %v7003_v19 = vmul.f32 %v9556_v4, %v6929_v58  ;;  %v6941_v63 = vpop.permute.xlu1 %6940 }
 0xb1d   : > { %v9560_v7 = vpop.eup %9559  ;;  %v6754_v15 = vadd.f32 1.0, %v9558_v29  ;;  %9577 = vrcp.f32 %v6755_v10 }
 0xb1e   : > { %v9562_v59 = vpop.eup %9561  ;;  %7082 = vrot.lane.b32.xlu0 %v7000_v21, %s9669_s16  ;;  %v7002_v26 = vmul.f32 %v9560_v7, %v6927_v17 }
 0xb1f   : > { %v9564_v13 = vpop.eup %9563  ;;  %v6757_v6 = vadd.f32 1.0, %v9562_v59  ;;  %9579 = vrcp.f32 %v6754_v15 }
 0xb20   : > { %v9566_v22 = vpop.eup %9565  ;;  %7088 = vrot.lane.b32.xlu1 %v7003_v19, %s9669_s16  ;;  %v7005_v1 = vmul.f32 %v9564_v13, %v6933_v2  ;;  %v6945_v51 = vpop.permute.xlu1 %6944 }
 0xb21   : > { %v9568_v39 = vpop.eup %9567  ;;  %v6756_v49 = vadd.f32 1.0, %v9566_v22  ;;  %9581 = vrcp.f32 %v6757_v6 }
 0xb22   : > { %7086 = vrot.lane.b32.xlu0 %v7002_v26, %s9669_s16  ;;  %v9570_v8 = vpop.eup %9569  ;;  %v7004_v9 = vmul.f32 %v9568_v39, %v6931_v60 }
 0xb23   : > { %v9572_v23 = vpop.eup %9571  ;;  %v7007_v16 = vmul.f32 %v9570_v8, %v6937_v61  ;;  %9583 = vrcp.f32 %v6756_v49 }
 0xb24   : > { %7092 = vrot.lane.b32.xlu1 %v7005_v1, %s9669_s16  ;;  %v9574_v43 = vpop.eup %9573  ;;  %v7006_v42 = vmul.f32 %v9572_v23, %v6935_v3  ;;  %v6949_v33 = vpop.permute.xlu1 %6948 }
 0xb25   : > { %v9576_v52 = vpop.eup %9575  ;;  %v7009_v57 = vmul.f32 %v9574_v43, %v6941_v63 }
 0xb26   : > { %7090 = vrot.lane.b32.xlu0 %v7004_v9, %s9669_s16  ;;  %v7008_v36 = vmul.f32 %v9576_v52, %v6939_v50 }
 0xb27   : > { %v9578_v47 = vpop.eup %9577 }
 0xb28   : > { %7096 = vrot.lane.b32.xlu1 %v7007_v16, %s9669_s16  ;;  %v7011_v25 = vmul.f32 %v9578_v47, %v6945_v51 }
 0xb29   : > { %v9580_v40 = vpop.eup %9579 }
 0xb2a   : > { %7094 = vrot.lane.b32.xlu0 %v7006_v42, %s9669_s16  ;;  %v7010_v5 = vmul.f32 %v9580_v40, %v6943_v62 }
 0xb2b   : > { %v9582_v24 = vpop.eup %9581 }
 0xb2c   : > { %7100 = vrot.lane.b32.xlu1 %v7009_v57, %s9669_s16  ;;  %v7013_v31 = vmul.f32 %v9582_v24, %v6949_v33 }
 0xb2d   : > { %v9584_v44 = vpop.eup %9583 }
 0xb2e   : > { %7098 = vrot.lane.b32.xlu0 %v7008_v36, %s9669_s16  ;;  %v7012_v14 = vmul.f32 %v9584_v44, %v6947_v38 }
 0xb30   : > { %7104 = vrot.lane.b32.xlu1 %v7011_v25, %s9669_s16 }
 0xb32   : > { %7102 = vrot.lane.b32.xlu0 %v7010_v5, %s9669_s16 }
 0xb34   : > { %7108 = vrot.lane.b32.xlu1 %v7013_v31, %s9669_s16 }
 0xb36   : > { %7106 = vrot.lane.b32.xlu0 %v7012_v14, %s9669_s16 }
 0xb5f   : > { %v7049_v45 = vpop.permute.xlu1 %7048 }
 0xb60   : > { %7143 = vst.msk [vmem:[#allocation2 + $0x8] sm:$0xff] %vm2305_vm14, %v7049_v45  ;;  %7239 = vst.msk [vmem:[%s9771_s15 + $0x8] sm:$0xff] %vm2305_vm14, %v7049_v45  ;;  %v7047_v28 = vpop.permute.xlu0 %7046 }
 0xb61   : > { %7142 = vst.msk [vmem:[#allocation2] sm:$0xff] %vm2305_vm14, %v7047_v28  ;;  %7238 = vst.msk [vmem:[%s9771_s15] sm:$0xff] %vm2305_vm14, %v7047_v28 }
 0xb6e   : > { %v7053_v46 = vpop.permute.xlu1 %7052 }
 0xb6f   : > { %7145 = vst.msk [vmem:[#allocation2 + $0x18] sm:$0xff] %vm2305_vm14, %v7053_v46  ;;  %7241 = vst.msk [vmem:[%s9771_s15 + $0x18] sm:$0xff] %vm2305_vm14, %v7053_v46  ;;  %v7051_v58 = vpop.permute.xlu0 %7050 }
 0xb70   : > { %7144 = vst.msk [vmem:[#allocation2 + $0x10] sm:$0xff] %vm2305_vm14, %v7051_v58  ;;  %7240 = vst.msk [vmem:[%s9771_s15 + $0x10] sm:$0xff] %vm2305_vm14, %v7051_v58 }
 0xb72   : > { %v7057_v0 = vpop.permute.xlu1 %7056 }
 0xb73   : > { %7147 = vst.msk [vmem:[#allocation2 + $0x28] sm:$0xff] %vm2305_vm14, %v7057_v0  ;;  %7243 = vst.msk [vmem:[%s9771_s15 + $0x28] sm:$0xff] %vm2305_vm14, %v7057_v0  ;;  %v7055_v48 = vpop.permute.xlu0 %7054 }
 0xb74   : > { %7146 = vst.msk [vmem:[#allocation2 + $0x20] sm:$0xff] %vm2305_vm14, %v7055_v48  ;;  %7242 = vst.msk [vmem:[%s9771_s15 + $0x20] sm:$0xff] %vm2305_vm14, %v7055_v48 }
 0xb76   : > { %v7061_v41 = vpop.permute.xlu1 %7060 }
 0xb77   : > { %7149 = vst.msk [vmem:[#allocation2 + $0x38] sm:$0xff] %vm2305_vm14, %v7061_v41  ;;  %7245 = vst.msk [vmem:[%s9771_s15 + $0x38] sm:$0xff] %vm2305_vm14, %v7061_v41  ;;  %v7059_v20 = vpop.permute.xlu0 %7058 }
 0xb78   : > { %7148 = vst.msk [vmem:[#allocation2 + $0x30] sm:$0xff] %vm2305_vm14, %v7059_v20  ;;  %7244 = vst.msk [vmem:[%s9771_s15 + $0x30] sm:$0xff] %vm2305_vm14, %v7059_v20 }
 0xb7a   : > { %v7065_v17 = vpop.permute.xlu1 %7064 }
 0xb7b   : > { %7151 = vst.msk [vmem:[#allocation2 + $0x48] sm:$0xff] %vm2305_vm14, %v7065_v17  ;;  %7247 = vst.msk [vmem:[%s9771_s15 + $0x48] sm:$0xff] %vm2305_vm14, %v7065_v17  ;;  %v7063_v37 = vpop.permute.xlu0 %7062 }
 0xb7c   : > { %7150 = vst.msk [vmem:[#allocation2 + $0x40] sm:$0xff] %vm2305_vm14, %v7063_v37  ;;  %7246 = vst.msk [vmem:[%s9771_s15 + $0x40] sm:$0xff] %vm2305_vm14, %v7063_v37 }
 0xb7e   : > { %v7069_v32 = vpop.permute.xlu1 %7068 }
 0xb7f   : > { %7153 = vst.msk [vmem:[#allocation2 + $0x58] sm:$0xff] %vm2305_vm14, %v7069_v32  ;;  %7249 = vst.msk [vmem:[%s9771_s15 + $0x58] sm:$0xff] %vm2305_vm14, %v7069_v32  ;;  %v7067_v30 = vpop.permute.xlu0 %7066 }
 0xb80   : > { %7152 = vst.msk [vmem:[#allocation2 + $0x50] sm:$0xff] %vm2305_vm14, %v7067_v30  ;;  %7248 = vst.msk [vmem:[%s9771_s15 + $0x50] sm:$0xff] %vm2305_vm14, %v7067_v30 }
 0xb82   : > { %v7073_v12 = vpop.permute.xlu1 %7072 }
 0xb83   : > { %7155 = vst.msk [vmem:[#allocation2 + $0x68] sm:$0xff] %vm2305_vm14, %v7073_v12  ;;  %7251 = vst.msk [vmem:[%s9771_s15 + $0x68] sm:$0xff] %vm2305_vm14, %v7073_v12  ;;  %v7071_v27 = vpop.permute.xlu0 %7070 }
 0xb84   : > { %7154 = vst.msk [vmem:[#allocation2 + $0x60] sm:$0xff] %vm2305_vm14, %v7071_v27  ;;  %7250 = vst.msk [vmem:[%s9771_s15 + $0x60] sm:$0xff] %vm2305_vm14, %v7071_v27 }
 0xb86   : > { %v7077_v54 = vpop.permute.xlu1 %7076 }
 0xb87   : > { %7157 = vst.msk [vmem:[#allocation2 + $0x78] sm:$0xff] %vm2305_vm14, %v7077_v54  ;;  %7253 = vst.msk [vmem:[%s9771_s15 + $0x78] sm:$0xff] %vm2305_vm14, %v7077_v54 }
 0xb88   : > { %v7075_v55 = vpop.permute.xlu0 %7074 }
 0xb89   : > { %7156 = vst.msk [vmem:[#allocation2 + $0x70] sm:$0xff] %vm2305_vm14, %v7075_v55  ;;  %7252 = vst.msk [vmem:[%s9771_s15 + $0x70] sm:$0xff] %vm2305_vm14, %v7075_v55 }
 0xb8a   : > { %v7081_v18 = vpop.permute.xlu1 %7080 }
 0xb8b   : > { %7159 = vst.msk [vmem:[#allocation2 + $0x88] sm:$0xff] %vm2305_vm14, %v7081_v18  ;;  %7255 = vst.msk [vmem:[%s9771_s15 + $0x88] sm:$0xff] %vm2305_vm14, %v7081_v18 }
 0xb8c   : > { %v7079_v56 = vpop.permute.xlu0 %7078 }
 0xb8d   : > { %7158 = vst.msk [vmem:[#allocation2 + $0x80] sm:$0xff] %vm2305_vm14, %v7079_v56  ;;  %7254 = vst.msk [vmem:[%s9771_s15 + $0x80] sm:$0xff] %vm2305_vm14, %v7079_v56 }
 0xb8e   : > { %v7085_v2 = vpop.permute.xlu1 %7084 }
 0xb8f   : > { %7161 = vst.msk [vmem:[#allocation2 + $0x98] sm:$0xff] %vm2305_vm14, %v7085_v2  ;;  %7257 = vst.msk [vmem:[%s9771_s15 + $0x98] sm:$0xff] %vm2305_vm14, %v7085_v2 }
 0xb90   : > { %v7083_v53 = vpop.permute.xlu0 %7082 }
 0xb91   : > { %7160 = vst.msk [vmem:[#allocation2 + $0x90] sm:$0xff] %vm2305_vm14, %v7083_v53  ;;  %7256 = vst.msk [vmem:[%s9771_s15 + $0x90] sm:$0xff] %vm2305_vm14, %v7083_v53 }
 0xb92   : > { %v7089_v11 = vpop.permute.xlu1 %7088 }
 0xb93   : > { %7163 = vst.msk [vmem:[#allocation2 + $0xa8] sm:$0xff] %vm2305_vm14, %v7089_v11  ;;  %7259 = vst.msk [vmem:[%s9771_s15 + $0xa8] sm:$0xff] %vm2305_vm14, %v7089_v11 }
 0xb94   : > { %v7087_v35 = vpop.permute.xlu0 %7086 }
 0xb95   : > { %7162 = vst.msk [vmem:[#allocation2 + $0xa0] sm:$0xff] %vm2305_vm14, %v7087_v35  ;;  %7258 = vst.msk [vmem:[%s9771_s15 + $0xa0] sm:$0xff] %vm2305_vm14, %v7087_v35 }
 0xb96   : > { %v7093_v4 = vpop.permute.xlu1 %7092 }
 0xb97   : > { %7165 = vst.msk [vmem:[#allocation2 + $0xb8] sm:$0xff] %vm2305_vm14, %v7093_v4  ;;  %7261 = vst.msk [vmem:[%s9771_s15 + $0xb8] sm:$0xff] %vm2305_vm14, %v7093_v4 }
 0xb98   : > { %v7091_v60 = vpop.permute.xlu0 %7090 }
 0xb99   : > { %7164 = vst.msk [vmem:[#allocation2 + $0xb0] sm:$0xff] %vm2305_vm14, %v7091_v60  ;;  %7260 = vst.msk [vmem:[%s9771_s15 + $0xb0] sm:$0xff] %vm2305_vm14, %v7091_v60 }
 0xb9a   : > { %v7097_v34 = vpop.permute.xlu1 %7096 }
 0xb9b   : > { %7167 = vst.msk [vmem:[#allocation2 + $0xc8] sm:$0xff] %vm2305_vm14, %v7097_v34  ;;  %7263 = vst.msk [vmem:[%s9771_s15 + $0xc8] sm:$0xff] %vm2305_vm14, %v7097_v34 }
 0xb9c   : > { %v7095_v29 = vpop.permute.xlu0 %7094 }
 0xb9d   : > { %7166 = vst.msk [vmem:[#allocation2 + $0xc0] sm:$0xff] %vm2305_vm14, %v7095_v29  ;;  %7262 = vst.msk [vmem:[%s9771_s15 + $0xc0] sm:$0xff] %vm2305_vm14, %v7095_v29 }
 0xb9e   : > { %v7101_v21 = vpop.permute.xlu1 %7100 }
 0xb9f   : > { %7169 = vst.msk [vmem:[#allocation2 + $0xd8] sm:$0xff] %vm2305_vm14, %v7101_v21  ;;  %7265 = vst.msk [vmem:[%s9771_s15 + $0xd8] sm:$0xff] %vm2305_vm14, %v7101_v21 }
 0xba0   : > { %v7099_v7 = vpop.permute.xlu0 %7098 }
 0xba1   : > { %7168 = vst.msk [vmem:[#allocation2 + $0xd0] sm:$0xff] %vm2305_vm14, %v7099_v7  ;;  %7264 = vst.msk [vmem:[%s9771_s15 + $0xd0] sm:$0xff] %vm2305_vm14, %v7099_v7 }
 0xba2   : > { %v7105_v10 = vpop.permute.xlu1 %7104 }
 0xba3   : > { %7171 = vst.msk [vmem:[#allocation2 + $0xe8] sm:$0xff] %vm2305_vm14, %v7105_v10  ;;  %7267 = vst.msk [vmem:[%s9771_s15 + $0xe8] sm:$0xff] %vm2305_vm14, %v7105_v10 }
 0xba4   : > { %v7103_v59 = vpop.permute.xlu0 %7102 }
 0xba5   : > { %7170 = vst.msk [vmem:[#allocation2 + $0xe0] sm:$0xff] %vm2305_vm14, %v7103_v59  ;;  %7266 = vst.msk [vmem:[%s9771_s15 + $0xe0] sm:$0xff] %vm2305_vm14, %v7103_v59 }
 0xba6   : > { %v7109_v19 = vpop.permute.xlu1 %7108 }
 0xba7   : > { %7173 = vst.msk [vmem:[#allocation2 + $0xf8] sm:$0xff] %vm2305_vm14, %v7109_v19  ;;  %7269 = vst.msk [vmem:[%s9771_s15 + $0xf8] sm:$0xff] %vm2305_vm14, %v7109_v19 }
 0xba8   : > { %v7107_v13 = vpop.permute.xlu0 %7106 }
 0xba9   : > { %7172 = vst.msk [vmem:[#allocation2 + $0xf0] sm:$0xff] %vm2305_vm14, %v7107_v13  ;;  %7268 = vst.msk [vmem:[%s9771_s15 + $0xf0] sm:$0xff] %vm2305_vm14, %v7107_v13 }
 0xbaa PF: > { %s22_s21 = sadd.s32 1, %s9655_s21   ;;  %s16000_s16 = sld [smem:[#allocation4_spill]] }
 0xbab   : > { %p19_p8 = scmp.ge.s32.totalorder %s22_s21, 18   ;;  %s16001_s23 = sld [smem:[#allocation5_spill]] }
 0xbac   : > { %s16002_s17 = smov %s9647_s19  ;;  %s16003_s18 = smov %s9651_s20 }
 0xbad   :  { %21 = sbr.rel (!%p19_p8) target bundleno = 3 (0x3), region = 106 }
 0xbb0   : > { %s16004_s19 = smov %s16000_s16 }
 0xbb1   : > { %s16005_s20 = smov %s16001_s23 }

</bundles_post_ra>
